<compile_context>
chip_gen: v7x
topology: tpu7x:2x2x1
jax: 0.10.0
libtpu: 0.0.40
codegen_flags: <defaults>
</compile_context>

<pallas_src>
import jax
import jax.numpy as jnp
from jax import lax
from jax.experimental import pallas as pl
from jax.experimental.pallas import tpu as pltpu


def _make_attention_kernel(heads, dim_head, scale):
    """Kernel factory. heads/dim_head are Python ints, scale a Python float, so
    nothing is captured as a traced constant."""
    hidden = heads * dim_head
    scale = float(scale)

    def kernel(x_ref, wqkv_ref, wout_ref, bo_ref, o_ref):
        x = x_ref[0]           # (C, N)          bf16
        wqkv = wqkv_ref[...]   # (3*hidden, C)   bf16
        wout = wout_ref[...]   # (C, hidden)     bf16
        bo = bo_ref[...]       # (C, 1)          f32

        # Fused QKV 1x1-conv: one MXU matmul for all heads and q/k/v at once.
        qkv = jnp.dot(wqkv, x, preferred_element_type=jnp.float32)  # (3*hidden, N) f32

        q = qkv[0 * hidden:1 * hidden]   # (hidden, N)
        k = qkv[1 * hidden:2 * hidden]
        v = qkv[2 * hidden:3 * hidden]

        # F.normalize(dim=-1) in the torch code acts on the spatial axis, which is the
        # lane axis (last) here.  rsqrt(max(ss, eps^2)) == 1 / max(sqrt(ss), eps) with
        # eps = 1e-12, matching F.normalize; rsqrt lowers to the EUP (free slot).
        q_inv = lax.rsqrt(jnp.maximum(jnp.sum(q * q, axis=-1, keepdims=True), 1e-24))
        k_inv = lax.rsqrt(jnp.maximum(jnp.sum(k * k, axis=-1, keepdims=True), 1e-24))
        qn = (q * q_inv).astype(jnp.bfloat16)   # (hidden, N) bf16
        kn = (k * k_inv).astype(jnp.bfloat16)
        vb = v.astype(jnp.bfloat16)

        # Per-head attention, statically unrolled (all heads share this grid step).
        outs = []
        for h in range(heads):
            lo = h * dim_head
            hi = lo + dim_head
            qh = qn[lo:hi]      # (dim_head, N) bf16
            kh = kn[lo:hi]
            vh = vb[lo:hi]

            # sim[i, j] = scale * sum_d qh[d, i] * kh[d, j]   -> (N, N), f32 accumulate
            sim = jnp.dot(qh.T, kh, preferred_element_type=jnp.float32) * scale

            # softmax over j (keys), statistics in f32; approx reciprocal on the EUP.
            sim_max = jnp.max(sim, axis=-1, keepdims=True)
            p = jnp.exp(sim - sim_max)
            attn = p * pl.reciprocal(jnp.sum(p, axis=-1, keepdims=True), approx=True)
            attn = attn.astype(jnp.bfloat16)

            # out[d, i] = sum_j vh[d, j] * attn[i, j]  (NT matmul; keeps N on the lanes)
            out_h = lax.dot_general(
                vh, attn, (((1,), (1,)), ((), ())),
                preferred_element_type=jnp.float32)     # (dim_head, N)
            outs.append(out_h.astype(jnp.bfloat16))

        out_all = jnp.concatenate(outs, axis=0)         # (hidden, N) bf16

        # Fused output 1x1-conv over all heads (K = hidden) + bias; lane-dense store.
        res = jnp.dot(wout, out_all, preferred_element_type=jnp.float32) + bo  # (C, N)
        o_ref[0] = res.astype(o_ref.dtype)

    return kernel


def attention_pallas(x_nchw, w_qkv, w_out, b_out, *, heads=4, dim_head=32, scale=10.0):
    """x_nchw: (B, C, H, W) f32; w_qkv: (3*heads*dim_head, C); w_out: (C, heads*dim_head);
    b_out: (C,). Returns (B, C, H, W) f32."""
    B, C, H, W = x_nchw.shape
    N = H * W
    hidden = heads * dim_head
    assert w_qkv.shape == (3 * hidden, C)
    assert w_out.shape == (C, hidden)
    assert b_out.shape == (C,)

    # Layout plumbing only — no transposes: channels stay on sublanes, spatial on lanes.
    x_cn = x_nchw.reshape(B, C, N).astype(jnp.bfloat16)
    wqkv = w_qkv.astype(jnp.bfloat16)
    wout = w_out.astype(jnp.bfloat16)
    bo = b_out.reshape(C, 1).astype(jnp.float32)

    # Crude per-step VMEM working-set guard (sim/p dominate).  Fine for diffusion-UNet
    # feature maps; for much larger N, a flash-style KV-tiled inner loop is needed so
    # the full (N, N) sim is never materialized.
    # TODO(synk): add online-softmax KV tiling for N where this guard trips.
    work_bytes = (2 * N * N * 4) + (N * N * 2) + (4 * hidden * N * 4) + (2 * hidden * N * 2)
    assert work_bytes < 12 * (1 << 20), (
        f"attention working set ~{work_bytes} bytes exceeds conservative VMEM budget; "
        "add flash-style KV tiling")

    kernel = _make_attention_kernel(heads, dim_head, float(scale))

    out_cn = pl.pallas_call(
        kernel,
        out_shape=jax.ShapeDtypeStruct((B, C, N), jnp.float32),
        grid_spec=pltpu.PrefetchScalarGridSpec(
            num_scalar_prefetch=0,
            grid=(B,),
            in_specs=[
                pl.BlockSpec((1, C, N), lambda b: (b, 0, 0)),        # x, per batch
                pl.BlockSpec((3 * hidden, C), lambda b: (0, 0)),     # fused QKV weight (grid-invariant)
                pl.BlockSpec((C, hidden), lambda b: (0, 0)),         # output weight (grid-invariant)
                pl.BlockSpec((C, 1), lambda b: (0, 0)),              # output bias (grid-invariant)
            ],
            out_specs=pl.BlockSpec((1, C, N), lambda b: (b, 0, 0)),  # lane-dense (N last)
        ),
        compiler_params=pltpu.CompilerParams(
            dimension_semantics=("parallel",),   # B=2 feeds both TCs on v7x
        ),
    )(x_cn, wqkv, wout, bo)

    return out_cn.reshape(B, C, H, W)


def attention_reference(x, w_qkv, w_out, b_out, *, heads, dim_head, scale):
    """Pure-JAX (f32) replica of the PyTorch forward, for correctness checking."""
    B, C, H, W = x.shape
    N = H * W
    hidden = heads * dim_head
    xt = x.reshape(B, C, N)
    qkv = jnp.einsum("oc,bcn->bon", w_qkv, xt)
    q, k, v = jnp.split(qkv, 3, axis=1)
    rearr = lambda t: t.reshape(B, heads, dim_head, N)
    q, k, v = map(rearr, (q, k, v))
    l2n = lambda t: t / jnp.maximum(
        jnp.sqrt(jnp.sum(t * t, axis=-1, keepdims=True)), 1e-12)
    q, k = l2n(q), l2n(k)
    sim = jnp.einsum("bhdi,bhdj->bhij", q, k) * scale
    attn = jax.nn.softmax(sim, axis=-1)
    out = jnp.einsum("bhij,bhdj->bhid", attn, v)           # (B, heads, N, dim_head)
    out = out.transpose(0, 1, 3, 2).reshape(B, hidden, H, W)
    res = jnp.einsum("oc,bchw->bohw", w_out, out) + b_out[None, :, None, None]
    return res


if __name__ == "__main__":
    # Shapes consistent with the module: dim=4 channels, heads=4, dim_head=32,
    # batch=2, spatial=16x16 (N = 256).
    B, DIM, H, W = 2, 4, 16, 16
    HEADS, DIM_HEAD, SCALE = 4, 32, 10.0
    HIDDEN = HEADS * DIM_HEAD

    key = jax.random.PRNGKey(0)
    kx, kq, ko, kb = jax.random.split(key, 4)

    x = jax.random.normal(kx, (B, DIM, H, W), dtype=jnp.float32)
    # 1x1 conv weights flattened to plain matrices.
    w_qkv = jax.random.normal(kq, (3 * HIDDEN, DIM), dtype=jnp.float32) * 0.1
    w_out = jax.random.normal(ko, (DIM, HIDDEN), dtype=jnp.float32) * 0.1
    b_out = jax.random.normal(kb, (DIM,), dtype=jnp.float32) * 0.1

    y = attention_pallas(x, w_qkv, w_out, b_out,
                         heads=HEADS, dim_head=DIM_HEAD, scale=SCALE)
    y = jax.block_until_ready(y)

    y_ref = attention_reference(x, w_qkv, w_out, b_out,
                                heads=HEADS, dim_head=DIM_HEAD, scale=SCALE)

    assert y.shape == (B, DIM, H, W)
    # bf16 MXU inputs vs. an all-f32 reference: agreement to the ~1e-2 level is expected.
    max_err = jnp.max(jnp.abs(y - y_ref))
    assert jnp.allclose(y, y_ref, atol=3e-2, rtol=3e-2), f"max abs err = {max_err}"

    print("KERNEL_OK")
</pallas_src>

<mosaic_0001>
module attributes {stable_mosaic.version = 11 : i64} {
  func.func @kernel(%arg0: i32, %arg1: memref<1x4x256xbf16, #tpu.memory_space<vmem>>, %arg2: memref<384x4xbf16, #tpu.memory_space<vmem>>, %arg3: memref<4x128xbf16, #tpu.memory_space<vmem>>, %arg4: memref<4x1xf32, #tpu.memory_space<vmem>>, %arg5: memref<1x4x256xf32, #tpu.memory_space<vmem>>) attributes {dimension_semantics = [#tpu.dimension_semantics<parallel>], iteration_bounds = array<i64: 2>, scalar_prefetch = 0 : i64, scratch_operands = 0 : i64, tpu.core_type = #tpu.core_type<tc>, window_params = [{transform_indices = @transform_0, window_bounds = array<i64: 1, 4, 256>}, {pipeline_mode = #tpu.pipeline_mode<synchronous>, transform_indices = @transform_1, window_bounds = array<i64: 384, 4>}, {pipeline_mode = #tpu.pipeline_mode<synchronous>, transform_indices = @transform_2, window_bounds = array<i64: 4, 128>}, {pipeline_mode = #tpu.pipeline_mode<synchronous>, transform_indices = @transform_3, window_bounds = array<i64: 4, 1>}, {transform_indices = @transform_4, window_bounds = array<i64: 1, 4, 256>}]} {
    %c0 = arith.constant 0 : index
    %c0_0 = arith.constant 0 : index
    %c0_1 = arith.constant 0 : index
    %0 = vector.load %arg1[%c0, %c0_0, %c0_1] : memref<1x4x256xbf16, #tpu.memory_space<vmem>>, vector<1x4x256xbf16>
    %1 = vector.shape_cast %0 : vector<1x4x256xbf16> to vector<4x256xbf16>
    %c0_2 = arith.constant 0 : index
    %c0_3 = arith.constant 0 : index
    %2 = vector.load %arg2[%c0_2, %c0_3] : memref<384x4xbf16, #tpu.memory_space<vmem>>, vector<384x4xbf16>
    %c0_4 = arith.constant 0 : index
    %c0_5 = arith.constant 0 : index
    %3 = vector.load %arg3[%c0_4, %c0_5] : memref<4x128xbf16, #tpu.memory_space<vmem>>, vector<4x128xbf16>
    %c0_6 = arith.constant 0 : index
    %c0_7 = arith.constant 0 : index
    %4 = vector.load %arg4[%c0_6, %c0_7] : memref<4x1xf32, #tpu.memory_space<vmem>>, vector<4x1xf32>
    %cst = arith.constant dense<0.000000e+00> : vector<384x256xf32>
    %5 = tpu.matmul %2, %1, %cst {dimension_numbers = #tpu.dot_dimension_numbers<[1], [0], [0], [1], [0, 0, 1, 1], [], []>} : vector<384x4xbf16>, vector<4x256xbf16>, vector<384x256xf32> -> vector<384x256xf32>
    %6 = vector.extract_strided_slice %5 {offsets = [0, 0], sizes = [128, 256], strides = [1, 1]} : vector<384x256xf32> to vector<128x256xf32>
    %7 = vector.extract_strided_slice %5 {offsets = [128, 0], sizes = [128, 256], strides = [1, 1]} : vector<384x256xf32> to vector<128x256xf32>
    %8 = vector.extract_strided_slice %5 {offsets = [256, 0], sizes = [128, 256], strides = [1, 1]} : vector<384x256xf32> to vector<128x256xf32>
    %9 = arith.mulf %6, %6 : vector<128x256xf32>
    %cst_8 = arith.constant dense<0.000000e+00> : vector<128xf32>
    %10 = vector.multi_reduction <add>, %9, %cst_8 [1] : vector<128x256xf32> to vector<128xf32>
    %11 = vector.shape_cast %10 : vector<128xf32> to vector<128x1xf32>
    %cst_9 = arith.constant 1.000000e-24 : f32
    %12 = vector.broadcast %cst_9 : f32 to vector<128x1xf32>
    %13 = arith.maximumf %11, %12 : vector<128x1xf32>
    %14 = math.rsqrt %13 : vector<128x1xf32>
    %15 = arith.mulf %7, %7 : vector<128x256xf32>
    %cst_10 = arith.constant dense<0.000000e+00> : vector<128xf32>
    %16 = vector.multi_reduction <add>, %15, %cst_10 [1] : vector<128x256xf32> to vector<128xf32>
    %17 = vector.shape_cast %16 : vector<128xf32> to vector<128x1xf32>
    %cst_11 = arith.constant 1.000000e-24 : f32
    %18 = vector.broadcast %cst_11 : f32 to vector<128x1xf32>
    %19 = arith.maximumf %17, %18 : vector<128x1xf32>
    %20 = math.rsqrt %19 : vector<128x1xf32>
    %21 = vector.broadcast %14 : vector<128x1xf32> to vector<128x256xf32>
    %22 = arith.mulf %6, %21 : vector<128x256xf32>
    %23 = arith.truncf %22 : vector<128x256xf32> to vector<128x256xbf16>
    %24 = vector.broadcast %20 : vector<128x1xf32> to vector<128x256xf32>
    %25 = arith.mulf %7, %24 : vector<128x256xf32>
    %26 = arith.truncf %25 : vector<128x256xf32> to vector<128x256xbf16>
    %27 = arith.truncf %8 : vector<128x256xf32> to vector<128x256xbf16>
    %28 = vector.extract_strided_slice %23 {offsets = [0, 0], sizes = [32, 256], strides = [1, 1]} : vector<128x256xbf16> to vector<32x256xbf16>
    %29 = vector.extract_strided_slice %26 {offsets = [0, 0], sizes = [32, 256], strides = [1, 1]} : vector<128x256xbf16> to vector<32x256xbf16>
    %30 = vector.extract_strided_slice %27 {offsets = [0, 0], sizes = [32, 256], strides = [1, 1]} : vector<128x256xbf16> to vector<32x256xbf16>
    %31 = tpu.transpose %28, [1, 0] : vector<32x256xbf16> -> vector<256x32xbf16>
    %cst_12 = arith.constant dense<0.000000e+00> : vector<256x256xf32>
    %32 = tpu.matmul %31, %29, %cst_12 {dimension_numbers = #tpu.dot_dimension_numbers<[1], [0], [0], [1], [0, 0, 1, 1], [], []>} : vector<256x32xbf16>, vector<32x256xbf16>, vector<256x256xf32> -> vector<256x256xf32>
    %cst_13 = arith.constant 1.000000e+01 : f32
    %33 = vector.broadcast %cst_13 : f32 to vector<256x256xf32>
    %34 = arith.mulf %32, %33 : vector<256x256xf32>
    %cst_14 = arith.constant dense<0xFF800000> : vector<256xf32>
    %35 = vector.multi_reduction <maximumf>, %34, %cst_14 [1] : vector<256x256xf32> to vector<256xf32>
    %36 = vector.shape_cast %35 : vector<256xf32> to vector<256x1xf32>
    %37 = vector.broadcast %36 : vector<256x1xf32> to vector<256x256xf32>
    %38 = arith.subf %34, %37 : vector<256x256xf32>
    %39 = math.exp %38 : vector<256x256xf32>
    %cst_15 = arith.constant dense<0.000000e+00> : vector<256xf32>
    %40 = vector.multi_reduction <add>, %39, %cst_15 [1] : vector<256x256xf32> to vector<256xf32>
    %41 = vector.shape_cast %40 : vector<256xf32> to vector<256x1xf32>
    %42 = tpu.reciprocal %41 {approx = true} : vector<256x1xf32> -> vector<256x1xf32>
    %43 = vector.broadcast %42 : vector<256x1xf32> to vector<256x256xf32>
    %44 = arith.mulf %39, %43 : vector<256x256xf32>
    %45 = arith.truncf %44 : vector<256x256xf32> to vector<256x256xbf16>
    %cst_16 = arith.constant dense<0.000000e+00> : vector<32x256xf32>
    %46 = tpu.matmul %30, %45, %cst_16 {dimension_numbers = #tpu.dot_dimension_numbers<[1], [1], [0], [0], [0, 0, 1, 0], [], []>} : vector<32x256xbf16>, vector<256x256xbf16>, vector<32x256xf32> -> vector<32x256xf32>
    %47 = arith.truncf %46 : vector<32x256xf32> to vector<32x256xbf16>
    %48 = vector.extract_strided_slice %23 {offsets = [32, 0], sizes = [32, 256], strides = [1, 1]} : vector<128x256xbf16> to vector<32x256xbf16>
    %49 = vector.extract_strided_slice %26 {offsets = [32, 0], sizes = [32, 256], strides = [1, 1]} : vector<128x256xbf16> to vector<32x256xbf16>
    %50 = vector.extract_strided_slice %27 {offsets = [32, 0], sizes = [32, 256], strides = [1, 1]} : vector<128x256xbf16> to vector<32x256xbf16>
    %51 = tpu.transpose %48, [1, 0] : vector<32x256xbf16> -> vector<256x32xbf16>
    %cst_17 = arith.constant dense<0.000000e+00> : vector<256x256xf32>
    %52 = tpu.matmul %51, %49, %cst_17 {dimension_numbers = #tpu.dot_dimension_numbers<[1], [0], [0], [1], [0, 0, 1, 1], [], []>} : vector<256x32xbf16>, vector<32x256xbf16>, vector<256x256xf32> -> vector<256x256xf32>
    %cst_18 = arith.constant 1.000000e+01 : f32
    %53 = vector.broadcast %cst_18 : f32 to vector<256x256xf32>
    %54 = arith.mulf %52, %53 : vector<256x256xf32>
    %cst_19 = arith.constant dense<0xFF800000> : vector<256xf32>
    %55 = vector.multi_reduction <maximumf>, %54, %cst_19 [1] : vector<256x256xf32> to vector<256xf32>
    %56 = vector.shape_cast %55 : vector<256xf32> to vector<256x1xf32>
    %57 = vector.broadcast %56 : vector<256x1xf32> to vector<256x256xf32>
    %58 = arith.subf %54, %57 : vector<256x256xf32>
    %59 = math.exp %58 : vector<256x256xf32>
    %cst_20 = arith.constant dense<0.000000e+00> : vector<256xf32>
    %60 = vector.multi_reduction <add>, %59, %cst_20 [1] : vector<256x256xf32> to vector<256xf32>
    %61 = vector.shape_cast %60 : vector<256xf32> to vector<256x1xf32>
    %62 = tpu.reciprocal %61 {approx = true} : vector<256x1xf32> -> vector<256x1xf32>
    %63 = vector.broadcast %62 : vector<256x1xf32> to vector<256x256xf32>
    %64 = arith.mulf %59, %63 : vector<256x256xf32>
    %65 = arith.truncf %64 : vector<256x256xf32> to vector<256x256xbf16>
    %cst_21 = arith.constant dense<0.000000e+00> : vector<32x256xf32>
    %66 = tpu.matmul %50, %65, %cst_21 {dimension_numbers = #tpu.dot_dimension_numbers<[1], [1], [0], [0], [0, 0, 1, 0], [], []>} : vector<32x256xbf16>, vector<256x256xbf16>, vector<32x256xf32> -> vector<32x256xf32>
    %67 = arith.truncf %66 : vector<32x256xf32> to vector<32x256xbf16>
    %68 = vector.extract_strided_slice %23 {offsets = [64, 0], sizes = [32, 256], strides = [1, 1]} : vector<128x256xbf16> to vector<32x256xbf16>
    %69 = vector.extract_strided_slice %26 {offsets = [64, 0], sizes = [32, 256], strides = [1, 1]} : vector<128x256xbf16> to vector<32x256xbf16>
    %70 = vector.extract_strided_slice %27 {offsets = [64, 0], sizes = [32, 256], strides = [1, 1]} : vector<128x256xbf16> to vector<32x256xbf16>
    %71 = tpu.transpose %68, [1, 0] : vector<32x256xbf16> -> vector<256x32xbf16>
    %cst_22 = arith.constant dense<0.000000e+00> : vector<256x256xf32>
    %72 = tpu.matmul %71, %69, %cst_22 {dimension_numbers = #tpu.dot_dimension_numbers<[1], [0], [0], [1], [0, 0, 1, 1], [], []>} : vector<256x32xbf16>, vector<32x256xbf16>, vector<256x256xf32> -> vector<256x256xf32>
    %cst_23 = arith.constant 1.000000e+01 : f32
    %73 = vector.broadcast %cst_23 : f32 to vector<256x256xf32>
    %74 = arith.mulf %72, %73 : vector<256x256xf32>
    %cst_24 = arith.constant dense<0xFF800000> : vector<256xf32>
    %75 = vector.multi_reduction <maximumf>, %74, %cst_24 [1] : vector<256x256xf32> to vector<256xf32>
    %76 = vector.shape_cast %75 : vector<256xf32> to vector<256x1xf32>
    %77 = vector.broadcast %76 : vector<256x1xf32> to vector<256x256xf32>
    %78 = arith.subf %74, %77 : vector<256x256xf32>
    %79 = math.exp %78 : vector<256x256xf32>
    %cst_25 = arith.constant dense<0.000000e+00> : vector<256xf32>
    %80 = vector.multi_reduction <add>, %79, %cst_25 [1] : vector<256x256xf32> to vector<256xf32>
    %81 = vector.shape_cast %80 : vector<256xf32> to vector<256x1xf32>
    %82 = tpu.reciprocal %81 {approx = true} : vector<256x1xf32> -> vector<256x1xf32>
    %83 = vector.broadcast %82 : vector<256x1xf32> to vector<256x256xf32>
    %84 = arith.mulf %79, %83 : vector<256x256xf32>
    %85 = arith.truncf %84 : vector<256x256xf32> to vector<256x256xbf16>
    %cst_26 = arith.constant dense<0.000000e+00> : vector<32x256xf32>
    %86 = tpu.matmul %70, %85, %cst_26 {dimension_numbers = #tpu.dot_dimension_numbers<[1], [1], [0], [0], [0, 0, 1, 0], [], []>} : vector<32x256xbf16>, vector<256x256xbf16>, vector<32x256xf32> -> vector<32x256xf32>
    %87 = arith.truncf %86 : vector<32x256xf32> to vector<32x256xbf16>
    %88 = vector.extract_strided_slice %23 {offsets = [96, 0], sizes = [32, 256], strides = [1, 1]} : vector<128x256xbf16> to vector<32x256xbf16>
    %89 = vector.extract_strided_slice %26 {offsets = [96, 0], sizes = [32, 256], strides = [1, 1]} : vector<128x256xbf16> to vector<32x256xbf16>
    %90 = vector.extract_strided_slice %27 {offsets = [96, 0], sizes = [32, 256], strides = [1, 1]} : vector<128x256xbf16> to vector<32x256xbf16>
    %91 = tpu.transpose %88, [1, 0] : vector<32x256xbf16> -> vector<256x32xbf16>
    %cst_27 = arith.constant dense<0.000000e+00> : vector<256x256xf32>
    %92 = tpu.matmul %91, %89, %cst_27 {dimension_numbers = #tpu.dot_dimension_numbers<[1], [0], [0], [1], [0, 0, 1, 1], [], []>} : vector<256x32xbf16>, vector<32x256xbf16>, vector<256x256xf32> -> vector<256x256xf32>
    %cst_28 = arith.constant 1.000000e+01 : f32
    %93 = vector.broadcast %cst_28 : f32 to vector<256x256xf32>
    %94 = arith.mulf %92, %93 : vector<256x256xf32>
    %cst_29 = arith.constant dense<0xFF800000> : vector<256xf32>
    %95 = vector.multi_reduction <maximumf>, %94, %cst_29 [1] : vector<256x256xf32> to vector<256xf32>
    %96 = vector.shape_cast %95 : vector<256xf32> to vector<256x1xf32>
    %97 = vector.broadcast %96 : vector<256x1xf32> to vector<256x256xf32>
    %98 = arith.subf %94, %97 : vector<256x256xf32>
    %99 = math.exp %98 : vector<256x256xf32>
    %cst_30 = arith.constant dense<0.000000e+00> : vector<256xf32>
    %100 = vector.multi_reduction <add>, %99, %cst_30 [1] : vector<256x256xf32> to vector<256xf32>
    %101 = vector.shape_cast %100 : vector<256xf32> to vector<256x1xf32>
    %102 = tpu.reciprocal %101 {approx = true} : vector<256x1xf32> -> vector<256x1xf32>
    %103 = vector.broadcast %102 : vector<256x1xf32> to vector<256x256xf32>
    %104 = arith.mulf %99, %103 : vector<256x256xf32>
    %105 = arith.truncf %104 : vector<256x256xf32> to vector<256x256xbf16>
    %cst_31 = arith.constant dense<0.000000e+00> : vector<32x256xf32>
    %106 = tpu.matmul %90, %105, %cst_31 {dimension_numbers = #tpu.dot_dimension_numbers<[1], [1], [0], [0], [0, 0, 1, 0], [], []>} : vector<32x256xbf16>, vector<256x256xbf16>, vector<32x256xf32> -> vector<32x256xf32>
    %107 = arith.truncf %106 : vector<32x256xf32> to vector<32x256xbf16>
    %108 = tpu.concatenate %47, %67, %87, %107 in 0 : vector<32x256xbf16>, vector<32x256xbf16>, vector<32x256xbf16>, vector<32x256xbf16> -> vector<128x256xbf16>
    %cst_32 = arith.constant dense<0.000000e+00> : vector<4x256xf32>
    %109 = tpu.matmul %3, %108, %cst_32 {dimension_numbers = #tpu.dot_dimension_numbers<[1], [0], [0], [1], [0, 0, 1, 1], [], []>} : vector<4x128xbf16>, vector<128x256xbf16>, vector<4x256xf32> -> vector<4x256xf32>
    %110 = vector.broadcast %4 : vector<4x1xf32> to vector<4x256xf32>
    %111 = arith.addf %109, %110 : vector<4x256xf32>
    %c0_33 = arith.constant 0 : index
    %c0_34 = arith.constant 0 : index
    %c0_35 = arith.constant 0 : index
    %112 = vector.load %arg5[%c0_33, %c0_34, %c0_35] : memref<1x4x256xf32, #tpu.memory_space<vmem>>, vector<1x4x256xf32>
    %113 = vector.shape_cast %112 : vector<1x4x256xf32> to vector<4x256xf32>
    %114 = vector.shape_cast %111 : vector<4x256xf32> to vector<1x4x256xf32>
    tpu.vector_store %arg5[%c0_33, %c0_34, %c0_35], %114 {strides = array<i32>} : memref<1x4x256xf32, #tpu.memory_space<vmem>>, vector<1x4x256xf32>,
    return
  }
  func.func @transform_0(%arg0: i32) -> (i32, i32, i32) {
    %c0_i32 = arith.constant 0 : i32
    %c0_i32_0 = arith.constant 0 : i32
    %c0_i32_1 = arith.constant 0 : i32
    return %arg0, %c0_i32, %c0_i32_0 : i32, i32, i32
  }
  func.func @transform_1(%arg0: i32) -> (i32, i32) {
    %c0_i32 = arith.constant 0 : i32
    %c0_i32_0 = arith.constant 0 : i32
    %c0_i32_1 = arith.constant 0 : i32
    return %c0_i32, %c0_i32_0 : i32, i32
  }
  func.func @transform_2(%arg0: i32) -> (i32, i32) {
    %c0_i32 = arith.constant 0 : i32
    %c0_i32_0 = arith.constant 0 : i32
    %c0_i32_1 = arith.constant 0 : i32
    return %c0_i32, %c0_i32_0 : i32, i32
  }
  func.func @transform_3(%arg0: i32) -> (i32, i32) {
    %c0_i32 = arith.constant 0 : i32
    %c0_i32_0 = arith.constant 0 : i32
    %c0_i32_1 = arith.constant 0 : i32
    return %c0_i32, %c0_i32_0 : i32, i32
  }
  func.func @transform_4(%arg0: i32) -> (i32, i32, i32) {
    %c0_i32 = arith.constant 0 : i32
    %c0_i32_0 = arith.constant 0 : i32
    %c0_i32_1 = arith.constant 0 : i32
    return %arg0, %c0_i32, %c0_i32_0 : i32, i32, i32
  }
}

</mosaic_0001>

<bundles_post_ra>
// kernel: tpu_custom_call.1
= control target key start
LH: loop header
LB: loop body
LE: loop exit
PB: predicated region body
PF: predicated region fallthrough
CT: control target
= control target key end

     0   :  { %9 = vsyncpa [#allocation3], 0  ;;  %s9094_s0 = inlined_call_operand.vmem [shape: bf16[2,4,256], index: 0, kind: input, shape index: {}]   ;;  %s9095_s1 = inlined_call_operand.vmem [shape: bf16[384,4], index: 1, kind: input, shape index: {}]   ;;  %s9096_s2 = inlined_call_operand.vmem [shape: bf16[4,128], index: 2, kind: input, shape index: {}]   ;;  %s9097_s3 = inlined_call_operand.vmem [shape: f32[4,1], index: 3, kind: input, shape index: {}]   ;;  %s9098_s4 = inlined_call_operand.hbm [shape: f32[2,4,256], index: 4, kind: output, shape index: {}]  }
   0x1   :  { %11 = vsyncpa [#allocation3 + $0x1], 0  ;;  %s5932_s15 = smov 0   ;;  %s5934_s16 = smov 0  }
   0x2   :  { %s5936_s17 = smov 0   ;;  %s5938_s18 = smov 0  }
   0x3 LB: > { %s5953_s19 = sadd.s32 4294967295, %s5903_s18   ;;  %s4816_s20 = sadd.s32 4294967294, %s5903_s18   ;;  %s5903_s18 = sphi %s5938_s18, %s9762_s18   ;;  %s5899_s17 = sphi %s5936_s17, %s9761_s17   ;;  %s5895_s16 = sphi %s5934_s16, %s9760_s16   ;;  %s5891_s15 = sphi %s5932_s15, %s9759_s15  }
   0x4   : > { %s5957_s21 = sadd.s32 1, %s5903_s18   ;;  %s113_s22 = sadd.s32 1, %s5899_s17 }
   0x5   : > { %s110_s23 = ssub.s32 %s5903_s18, %s5957_s21  ;;  %p123_p0 = scmp.ne.s32.totalorder %s5899_s17, %s5895_s16 }
   0x6   : > { %p111_p1 = scmp.eq.s32.totalorder %s110_s23, 0  ;;  %p124_p2 = scmp.eq.s32.totalorder %s5953_s19, 1 }
   0x7   : > { %p129_p3 = scmp.ne.s32.totalorder %s5895_s16, %s5891_s15  ;;  %p130_p4 = scmp.eq.s32.totalorder %s4816_s20, 1 }
   0x8   : > { %s5968_s24 = scalar_select %p111_p1, %s5899_s17, %s113_s22  }
   0x9   : > { %p5970_p5 = por %p124_p2, %p123_p0  ;;  %p5974_p6 = por %p130_p4, %p129_p3 }
   0xa   : > { %p4819_p7 = scmp.ge.s32.totalorder %s5903_s18, 1  ;;  %p165_p8 = scmp.lt.s32.totalorder %s5903_s18, 3 }
   0xc   : > { %p166_p9 = pnand %p4819_p7, %p165_p8 }
   0xe   : > { %169 = sbr.rel (%p166_p9) target bundleno = 4132 (0x1024), region = 36 }
  0x15   : > { %p191_p10 = scmp.lt.s32.totalorder %s5953_s19, 1  ;;  %v9099_v0 = vmov 0   ;;  %vm450_vm0 = vcmask 1041408   ;;  %v4985_v4 = vld [vmem:[%s9095_s1] sm:$0xff]   ;;  %vm377_vm1 = vcmask 31744   ;;  %v4986_v5 = vld [vmem:[%s9095_s1 + $0x8] sm:$0xff]  }
  0x16   : > { %489 = vmatprep.mubr.bf16.mxu0 %v9099_v0  ;;  %1179 = vmatprep.mubr.bf16.mxu1 %v9099_v0  ;;  %v4987_v6 = vld [vmem:[%s9095_s1 + $0x10] sm:$0xff]   ;;  %v4988_v7 = vld [vmem:[%s9095_s1 + $0x18] sm:$0xff]   ;;  %v4989_v8 = vld [vmem:[%s9095_s1 + $0x20] sm:$0xff]   ;;  %vm1098_vm2 = vcmask 261120   ;;  %s188_s7 = sand.u32 1, %s5895_s16   ;;  %s4943_s9 = sshll.u32 %s5953_s19, 7 }
  0x17   : > { %s192_s27 = scalar_select %p191_p10, %s5953_s19, 1  ;;  %v4990_v9 = vld [vmem:[%s9095_s1 + $0x28] sm:$0xff]   ;;  %v4991_v10 = vld [vmem:[%s9095_s1 + $0x30] sm:$0xff]   ;;  %v4992_v11 = vld [vmem:[%s9095_s1 + $0x38] sm:$0xff]  }
  0x18   : > { %v4993_v12 = vld [vmem:[%s9095_s1 + $0x40] sm:$0xff]   ;;  %v4994_v13 = vld [vmem:[%s9095_s1 + $0x48] sm:$0xff]   ;;  %s4820_s8 = sshll.u32 %s188_s7, 3  ;;  %s9052_s14 = scalar_lea.hbm %s9098_s4, %s4943_s9 }
  0x19   : > { %s4942_s28 = sshll.u32 %s192_s27, 2  ;;  %s190_s10 = scalar_lea.vmem [#allocation2], %s4820_s8 }
  0x1a   : > { %s195_s5 = scalar_lea.vmem %s9094_s0, %s4942_s28  ;;  %s4757_s11 = sshll.u32 %s190_s10, 4  ;;  %s9054_s11 = int_to_ptr.vmem [resolvable:$true] %s4757_s11 }
  0x1b   : > { %v4847_v1 = vld.sshfl [vmem:[%s195_s5] sm:$0x33 pattern:$0x76325410]  ;;  %s4743_s20 = scalar_lea.sflag [#allocation3], %s188_s7  ;;  %s5841_s22 = scalar_lea.vmem %s9054_s11, 128 }
  0x1c   : > { %v376_v2 = vcombine.high %v4847_v1, %v4847_v1  ;;  %v452_v3 = vsel %vm450_vm0, %v4847_v1, 0  ;;  %p5842_p11 = scmp.ne.s32.totalorder %s9054_s11, %s5841_s22  ;;  %s5906_s19 = smov [#allocation2]  }
  0x1d   : > { %s5845_s23 = sshll.u32 %s5906_s19, 4  ;;  %s5846_s23 = int_to_ptr.vmem [resolvable:$false] %s5845_s23 }
  0x1e   : > { %4848 = vmatprep.subr.msk.bf16.mxu0 %vm450_vm0, %v376_v2  ;;  %p5843_p12 = pnand %p5842_p11, %p5970_p5  ;;  %s5847_s27 = scalar_lea.vmem %s5846_s23, 256 }
  0x1f   : > { %458 = vmatpush1.bf16.msra.mxu0 %v452_v3  ;;  %p5848_p0 = scmp.lt.s32.totalorder %s9054_s11, %s5846_s23  ;;  %p5849_p1 = scmp.lt.s32.totalorder %s5847_s27, %s5841_s22 }
  0x20   : > { %p5844_p13 = pneg %p5843_p12 }
  0x21   : > { %p5850_p2 = por %p5849_p1, %p5848_p0 }
  0x22   : > { %4849 = vmatmul.mubr.msk.bf16.vlgmr.msra.gmra.mrb[0].mxu0 %vm377_vm1, %v4985_v4 }
  0x23   : > { %499 = vmatprep.mubr.bf16.mxu0 %v9099_v0  ;;  %p5851_p3 = pnand %p5850_p2, %p5844_p13 }
  0x2a   : > { %4850 = vmatmul.mubr.msk.bf16.gmra.mrb[4].mxu0 %vm377_vm1, %v4986_v5 }
  0x2b   : > { %509 = vmatprep.mubr.bf16.mxu0 %v9099_v0 }
  0x32   : > { %4851 = vmatmul.mubr.msk.bf16.gmra.mrb[8].mxu0 %vm377_vm1, %v4987_v6 }
  0x33   : > { %519 = vmatprep.mubr.bf16.mxu0 %v9099_v0 }
  0x3a   : > { %4852 = vmatmul.mubr.msk.bf16.gmra.mrb[12].mxu0 %vm377_vm1, %v4988_v7 }
  0x3b   : > { %529 = vmatprep.mubr.bf16.mxu0 %v9099_v0 }
  0x42   : > { %4853 = vmatmul.mubr.msk.bf16.gmra.mrb[16].mxu0 %vm377_vm1, %v4989_v8 }
  0x43   : > { %539 = vmatprep.mubr.bf16.mxu0 %v9099_v0 }
  0x4a   : > { %4854 = vmatmul.mubr.msk.bf16.gmra.mrb[20].mxu0 %vm377_vm1, %v4990_v9 }
  0x4b   : > { %549 = vmatprep.mubr.bf16.mxu0 %v9099_v0 }
  0x52   : > { %4855 = vmatmul.mubr.msk.bf16.gmra.mrb[24].mxu0 %vm377_vm1, %v4991_v10 }
  0x53   : > { %559 = vmatprep.mubr.bf16.mxu0 %v9099_v0 }
  0x5a   : > { %4856 = vmatmul.mubr.msk.bf16.gmra.mrb[28].mxu0 %vm377_vm1, %v4992_v11 }
  0x5b   : > { %569 = vmatprep.mubr.bf16.mxu0 %v9099_v0 }
  0x62   : > { %4857 = vmatmul.mubr.msk.bf16.gmra.mrb[32].mxu0 %vm377_vm1, %v4993_v12 }
  0x63   : > { %579 = vmatprep.mubr.bf16.mxu0 %v9099_v0 }
  0x6a   : > { %4858 = vmatmul.mubr.msk.bf16.gmra.mrb[36].mxu0 %vm377_vm1, %v4994_v13 }
  0x6b   : > { %589 = vmatprep.mubr.bf16.mxu0 %v9099_v0 }
  0xf5   : > { %v6037_v14 = vpop.f32.mrb[0].mxu0 }
  0xf6   : > { %v730_v15 = vmul.f32 %v6037_v14, %v6037_v14  ;;  %v6041_v16 = vpop.f32.mrb[1].mxu0 }
  0xf7   : > { %v731_v17 = vmul.f32 %v6041_v16, %v6041_v16  ;;  %v6045_v18 = vpop.f32.mrb[2].mxu0 }
  0xf8   : > { %v732_v19 = vmul.f32 %v6045_v18, %v6045_v18  ;;  %v6049_v20 = vpop.f32.mrb[3].mxu0 }
  0xf9   : > { %v733_v21 = vmul.f32 %v6049_v20, %v6049_v20  ;;  %v762_v22 = vadd.f32 %v731_v17, %v730_v15 }
  0xfb   : > { %763 = vadd.xlane.f32.xlu0 %v762_v22  ;;  %v765_v23 = vadd.f32 %v733_v21, %v732_v19 }
  0xfd   : > { %v6053_v24 = vpop.f32.mrb[4].mxu0 }
  0xfe   : > { %v734_v25 = vmul.f32 %v6053_v24, %v6053_v24  ;;  %v6057_v26 = vpop.f32.mrb[5].mxu0 }
  0xff   : > { %v735_v27 = vmul.f32 %v6057_v26, %v6057_v26  ;;  %766 = vadd.xlane.f32.xlu0 %v765_v23  ;;  %v6061_v28 = vpop.f32.mrb[6].mxu0 }
 0x100   : > { %v736_v29 = vmul.f32 %v6061_v28, %v6061_v28  ;;  %v6065_v30 = vpop.f32.mrb[7].mxu0 }
 0x101   : > { %v737_v31 = vmul.f32 %v6065_v30, %v6065_v30  ;;  %v768_v32 = vadd.f32 %v735_v27, %v734_v25 }
 0x103   : > { %769 = vadd.xlane.f32.xlu1 %v768_v32  ;;  %v771_v33 = vadd.f32 %v737_v31, %v736_v29 }
 0x105   : > { %v6069_v34 = vpop.f32.mrb[8].mxu0 }
 0x106   : > { %9303 = vst [vmem:[#allocation5_spill] sm:$0xff] %v6069_v34  ;;  %v738_v35 = vmul.f32 %v6069_v34, %v6069_v34  ;;  %v6073_v36 = vpop.f32.mrb[9].mxu0 }
 0x107   : > { %9304 = vst [vmem:[#allocation6_spill] sm:$0xff] %v6073_v36  ;;  %772 = vadd.xlane.f32.xlu1 %v771_v33  ;;  %v739_v37 = vmul.f32 %v6073_v36, %v6073_v36  ;;  %v6077_v38 = vpop.f32.mrb[10].mxu0 }
 0x108   : > { %9305 = vst [vmem:[#allocation7_spill] sm:$0xff] %v6077_v38  ;;  %v740_v39 = vmul.f32 %v6077_v38, %v6077_v38  ;;  %v6081_v40 = vpop.f32.mrb[11].mxu0 }
 0x109   : > { %9306 = vst [vmem:[#allocation8_spill] sm:$0xff] %v6081_v40  ;;  %v741_v41 = vmul.f32 %v6081_v40, %v6081_v40  ;;  %v6085_v42 = vadd.f32 %v739_v37, %v738_v35 }
 0x10b   : > { %9307 = vst [vmem:[#allocation9_spill] sm:$0xff] %v6085_v42  ;;  %v6087_v43 = vadd.f32 %v741_v41, %v740_v39 }
 0x10d   : > { %9308 = vst [vmem:[#allocation10_spill] sm:$0xff] %v6087_v43  ;;  %v6089_v44 = vpop.f32.mrb[12].mxu0 }
 0x10e   : > { %9309 = vst [vmem:[#allocation11_spill] sm:$0xff] %v6089_v44  ;;  %v742_v45 = vmul.f32 %v6089_v44, %v6089_v44  ;;  %v6093_v46 = vpop.f32.mrb[13].mxu0 }
 0x10f   : > { %9310 = vst [vmem:[#allocation12_spill] sm:$0xff] %v6093_v46  ;;  %v743_v47 = vmul.f32 %v6093_v46, %v6093_v46  ;;  %v6097_v48 = vpop.f32.mrb[14].mxu0 }
 0x110   : > { %9311 = vst [vmem:[#allocation13_spill] sm:$0xff] %v6097_v48  ;;  %v744_v49 = vmul.f32 %v6097_v48, %v6097_v48  ;;  %v6101_v50 = vpop.f32.mrb[15].mxu0 }
 0x111   : > { %9312 = vst [vmem:[#allocation14_spill] sm:$0xff] %v6101_v50  ;;  %v745_v51 = vmul.f32 %v6101_v50, %v6101_v50  ;;  %v6105_v52 = vadd.f32 %v743_v47, %v742_v45 }
 0x113   : > { %9313 = vst [vmem:[#allocation15_spill] sm:$0xff] %v6105_v52  ;;  %v6107_v53 = vadd.f32 %v745_v51, %v744_v49 }
 0x115   : > { %9314 = vst [vmem:[#allocation16_spill] sm:$0xff] %v6107_v53  ;;  %v6109_v54 = vpop.f32.mrb[16].mxu0 }
 0x116   : > { %9315 = vst [vmem:[#allocation17_spill] sm:$0xff] %v6109_v54  ;;  %v746_v55 = vmul.f32 %v6109_v54, %v6109_v54  ;;  %v6113_v56 = vpop.f32.mrb[17].mxu0 }
 0x117   : > { %9316 = vst [vmem:[#allocation18_spill] sm:$0xff] %v6113_v56  ;;  %v747_v57 = vmul.f32 %v6113_v56, %v6113_v56  ;;  %v6117_v58 = vpop.f32.mrb[18].mxu0 }
 0x118   : > { %9317 = vst [vmem:[#allocation19_spill] sm:$0xff] %v6117_v58  ;;  %v748_v59 = vmul.f32 %v6117_v58, %v6117_v58  ;;  %v6121_v60 = vpop.f32.mrb[19].mxu0 }
 0x119   : > { %9318 = vst [vmem:[#allocation20_spill] sm:$0xff] %v6121_v60  ;;  %v6123_v61 = vadd.f32 %v747_v57, %v746_v55  ;;  %v749_v62 = vmul.f32 %v6121_v60, %v6121_v60 }
 0x11b   : > { %9319 = vst [vmem:[#allocation21_spill] sm:$0xff] %v6123_v61  ;;  %v6127_v63 = vadd.f32 %v749_v62, %v748_v59 }
 0x11d   : > { %9320 = vst [vmem:[#allocation22_spill] sm:$0xff] %v6127_v63  ;;  %v6129_v1 = vpop.f32.mrb[20].mxu0 }
 0x11e   : > { %9321 = vst [vmem:[#allocation23_spill] sm:$0xff] %v6129_v1  ;;  %v750_v2 = vmul.f32 %v6129_v1, %v6129_v1  ;;  %v6133_v3 = vpop.f32.mrb[21].mxu0 }
 0x11f   : > { %9322 = vst [vmem:[#allocation24_spill] sm:$0xff] %v6133_v3  ;;  %v751_v4 = vmul.f32 %v6133_v3, %v6133_v3  ;;  %v6137_v5 = vpop.f32.mrb[22].mxu0 }
 0x120   : > { %9323 = vst [vmem:[#allocation25_spill] sm:$0xff] %v6137_v5  ;;  %v752_v6 = vmul.f32 %v6137_v5, %v6137_v5  ;;  %v6141_v7 = vpop.f32.mrb[23].mxu0 }
 0x121   : > { %9324 = vst [vmem:[#allocation26_spill] sm:$0xff] %v6141_v7  ;;  %v6143_v8 = vadd.f32 %v751_v4, %v750_v2  ;;  %v753_v9 = vmul.f32 %v6141_v7, %v6141_v7 }
 0x123   : > { %9325 = vst [vmem:[#allocation27_spill] sm:$0xff] %v6143_v8  ;;  %v6147_v10 = vadd.f32 %v753_v9, %v752_v6 }
 0x125   : > { %9326 = vst [vmem:[#allocation28_spill] sm:$0xff] %v6147_v10  ;;  %v6149_v11 = vpop.f32.mrb[24].mxu0 }
 0x126   : > { %9327 = vst [vmem:[#allocation29_spill] sm:$0xff] %v6149_v11  ;;  %v754_v12 = vmul.f32 %v6149_v11, %v6149_v11  ;;  %v6153_v13 = vpop.f32.mrb[25].mxu0 }
 0x127   : > { %9328 = vst [vmem:[#allocation30_spill] sm:$0xff] %v6153_v13  ;;  %v755_v15 = vmul.f32 %v6153_v13, %v6153_v13  ;;  %v6157_v17 = vpop.f32.mrb[26].mxu0 }
 0x128   : > { %9329 = vst [vmem:[#allocation31_spill] sm:$0xff] %v6157_v17  ;;  %v756_v19 = vmul.f32 %v6157_v17, %v6157_v17  ;;  %v6161_v21 = vpop.f32.mrb[27].mxu0 }
 0x129   : > { %9330 = vst [vmem:[#allocation32_spill] sm:$0xff] %v6161_v21  ;;  %v6163_v22 = vadd.f32 %v755_v15, %v754_v12  ;;  %v757_v23 = vmul.f32 %v6161_v21, %v6161_v21 }
 0x12b   : > { %9331 = vst [vmem:[#allocation33_spill] sm:$0xff] %v6163_v22  ;;  %v6167_v25 = vadd.f32 %v757_v23, %v756_v19 }
 0x12d   : > { %9332 = vst [vmem:[#allocation34_spill] sm:$0xff] %v6167_v25  ;;  %v6169_v27 = vpop.f32.mrb[28].mxu0 }
 0x12e   : > { %9333 = vst [vmem:[#allocation35_spill] sm:$0xff] %v6169_v27  ;;  %v758_v29 = vmul.f32 %v6169_v27, %v6169_v27  ;;  %v6173_v31 = vpop.f32.mrb[29].mxu0 }
 0x12f   : > { %9334 = vst [vmem:[#allocation36_spill] sm:$0xff] %v6173_v31  ;;  %v759_v32 = vmul.f32 %v6173_v31, %v6173_v31  ;;  %v6177_v33 = vpop.f32.mrb[30].mxu0 }
 0x130   : > { %9335 = vst [vmem:[#allocation37_spill] sm:$0xff] %v6177_v33  ;;  %v760_v35 = vmul.f32 %v6177_v33, %v6177_v33  ;;  %v6181_v37 = vpop.f32.mrb[31].mxu0 }
 0x131   : > { %9336 = vst [vmem:[#allocation38_spill] sm:$0xff] %v6181_v37  ;;  %v6183_v39 = vadd.f32 %v759_v32, %v758_v29  ;;  %v761_v41 = vmul.f32 %v6181_v37, %v6181_v37 }
 0x133   : > { %9337 = vst [vmem:[#allocation39_spill] sm:$0xff] %v6183_v39  ;;  %v6187_v45 = vadd.f32 %v761_v41, %v760_v35 }
 0x135   : > { %9338 = vst [vmem:[#allocation40_spill] sm:$0xff] %v6187_v45  ;;  %v6189_v47 = vpop.f32.mrb[32].mxu0 }
 0x136   : > { %v842_v49 = vmul.f32 %v6189_v47, %v6189_v47  ;;  %v6193_v51 = vpop.f32.mrb[33].mxu0 }
 0x137   : > { %v843_v55 = vmul.f32 %v6193_v51, %v6193_v51  ;;  %v6197_v57 = vpop.f32.mrb[34].mxu0 }
 0x138   : > { %v844_v59 = vmul.f32 %v6197_v57, %v6197_v57  ;;  %v6201_v62 = vpop.f32.mrb[35].mxu0 }
 0x139   : > { %v845_v2 = vmul.f32 %v6201_v62, %v6201_v62  ;;  %v874_v4 = vadd.f32 %v843_v55, %v842_v49 }
 0x13b   : > { %875 = vadd.xlane.f32.xlu0 %v874_v4  ;;  %v877_v6 = vadd.f32 %v845_v2, %v844_v59 }
 0x13d   : > { %878 = vadd.xlane.f32.xlu1 %v877_v6  ;;  %v6205_v9 = vpop.f32.mrb[36].mxu0 }
 0x13e   : > { %v846_v12 = vmul.f32 %v6205_v9, %v6205_v9  ;;  %v6209_v15 = vpop.f32.mrb[37].mxu0 }
 0x13f   : > { %v847_v19 = vmul.f32 %v6209_v15, %v6209_v15  ;;  %v6213_v23 = vpop.f32.mrb[38].mxu0 }
 0x140   : > { %v848_v29 = vmul.f32 %v6213_v23, %v6213_v23  ;;  %v6217_v32 = vpop.f32.mrb[39].mxu0 }
 0x141   : > { %v849_v35 = vmul.f32 %v6217_v32, %v6217_v32  ;;  %v880_v41 = vadd.f32 %v847_v19, %v846_v12 }
 0x143   : > { %881 = vadd.xlane.f32.xlu0 %v880_v41  ;;  %v883_v49 = vadd.f32 %v849_v35, %v848_v29 }
 0x145   : > { %884 = vadd.xlane.f32.xlu1 %v883_v49 }
 0x188   : > { %v764_v55 = vpop.xlane.xlu0 %763 }
 0x189   : > { %v810_v59 = vmax.f32 %v764_v55, 1e-24 }
 0x18b   : > { %5009 = vrsqrt.f32 %v810_v59 }
 0x18c   : > { %v767_v2 = vpop.xlane.xlu0 %766 }
 0x18d   : > { %v811_v4 = vmax.f32 %v767_v2, 1e-24 }
 0x18f   : > { %5011 = vrsqrt.f32 %v811_v4 }
 0x190   : > { %v770_v6 = vpop.xlane.xlu1 %769 }
 0x191   : > { %v812_v0 = vmax.f32 %v770_v6, 1e-24 }
 0x193   : > { %5013 = vrsqrt.f32 %v812_v0 }
 0x194   : > { %v773_v33 = vpop.xlane.xlu1 %772 }
 0x195   : > { %v813_v27 = vmax.f32 %v773_v33, 1e-24  ;;  %v5010_v37 = vpop.eup %5009 }
 0x196   : > { %v954_v17 = vmul.f32 %v5010_v37, %v6037_v14  ;;  %v955_v19 = vmul.f32 %v5010_v37, %v6041_v16 }
 0x197   : > { %5015 = vrsqrt.f32 %v813_v27 }
 0x199   : > { %v5012_v31 = vpop.eup %5011 }
 0x19a   : > { %v956_v12 = vmul.f32 %v5012_v31, %v6045_v18  ;;  %v957_v29 = vmul.f32 %v5012_v31, %v6049_v20 }
 0x19c   : > { %v986_v35 = vpack.c.bf16 %v956_v12, %v954_v17  ;;  %v987_v41 = vpack.c.bf16 %v957_v29, %v955_v19 }
 0x19d   : > { %v5014_v49 = vpop.eup %5013 }
 0x19e   : > { %1066 = vxpose.xlu0.c.b16.start [1/2] (short) %v986_v35, 128  ;;  %1082 = vxpose.xlu1.c.b16.start [1/2] (short) %v987_v41, 128  ;;  %v958_v0 = vmul.f32 %v5014_v49, %v6053_v24  ;;  %v959_v27 = vmul.f32 %v5014_v49, %v6057_v26 }
 0x1a1   : > { %v5016_v55 = vpop.eup %5015 }
 0x1a2   : > { %v960_v33 = vmul.f32 %v5016_v55, %v6061_v28  ;;  %v961_v14 = vmul.f32 %v5016_v55, %v6065_v30 }
 0x1a4   : > { %v988_v59 = vpack.c.bf16 %v960_v33, %v958_v0  ;;  %v989_v18 = vpack.c.bf16 %v961_v14, %v959_v27 }
 0x1a6   : > { %1067 = vxpose.xlu0.c.b16.end [2/2] (short) %v988_v59, 128  ;;  %1083 = vxpose.xlu1.c.b16.end [2/2] (short) %v989_v18, 128 }
 0x1c8   : > { %v876_v16 = vpop.xlane.xlu0 %875 }
 0x1c9   : > { %v922_v20 = vmax.f32 %v876_v16, 1e-24 }
 0x1ca   : > { %v879_v17 = vpop.xlane.xlu1 %878 }
 0x1cb   : > { %5017 = vrsqrt.f32 %v922_v20  ;;  %v923_v31 = vmax.f32 %v879_v17, 1e-24 }
 0x1cd   : > { %5019 = vrsqrt.f32 %v923_v31 }
 0x1d0   : > { %v882_v37 = vpop.xlane.xlu0 %881 }
 0x1d1   : > { %v924_v2 = vmax.f32 %v882_v37, 1e-24 }
 0x1d2   : > { %v885_v4 = vpop.xlane.xlu1 %884 }
 0x1d3   : > { %5021 = vrsqrt.f32 %v924_v2  ;;  %v925_v24 = vmax.f32 %v885_v4, 1e-24 }
 0x1d5   : > { %v5018_v28 = vpop.eup %5017  ;;  %5023 = vrsqrt.f32 %v925_v24 }
 0x1d6   : > { %v1003_v30 = vmul.f32 %v5018_v28, %v6193_v51  ;;  %v1002_v12 = vmul.f32 %v5018_v28, %v6189_v47  ;;  %v4995_v28 = vld [vmem:[%s9095_s1 + $0x50] sm:$0xff]  }
 0x1d7   : > { %v5020_v26 = vpop.eup %5019  ;;  %4859 = vmatmul.mubr.msk.bf16.gmra.mrb[40].mxu0 %vm377_vm1, %v4995_v28 }
 0x1d8   : > { %v1005_v6 = vmul.f32 %v5020_v26, %v6201_v62  ;;  %v1004_v19 = vmul.f32 %v5020_v26, %v6197_v57  ;;  %v9339_v57 = vmov 0   ;;  %v4996_v26 = vld [vmem:[%s9095_s1 + $0x58] sm:$0xff]  }
 0x1d9   : > { %599 = vmatprep.mubr.bf16.mxu0 %v9339_v57 }
 0x1da   : > { %v1035_v29 = vpack.c.bf16 %v1005_v6, %v1003_v30  ;;  %v1034_v35 = vpack.c.bf16 %v1004_v19, %v1002_v12 }
 0x1dc   : > { %1147 = vmatprep.subr.bf16.mxu1 %v1035_v29 }
 0x1dd   : > { %v5022_v41 = vpop.eup %5021  ;;  %1148 = vmatpush1.bf16.msra.mxu1 %v1034_v35 }
 0x1de   : > { %v1007_v55 = vmul.f32 %v5022_v41, %v6209_v15  ;;  %v1006_v33 = vmul.f32 %v5022_v41, %v6205_v9 }
 0x1df   : > { %v5024_v49 = vpop.eup %5023  ;;  %4860 = vmatmul.mubr.msk.bf16.gmra.mrb[44].mxu0 %vm377_vm1, %v4996_v26 }
 0x1e0   : > { %v1009_v0 = vmul.f32 %v5024_v49, %v6217_v32  ;;  %v1008_v51 = vmul.f32 %v5024_v49, %v6213_v23  ;;  %609 = vmatprep.mubr.bf16.mxu0 %v9339_v57 }
 0x1e2   : > { %v1037_v27 = vpack.c.bf16 %v1009_v0, %v1007_v55  ;;  %v1036_v62 = vpack.c.bf16 %v1008_v51, %v1006_v33 }
 0x1e4   : > { %1149 = vmatprep.subr.bf16.mxu1 %v1037_v27 }
 0x1e5   : > { %1150 = vmatpush1.bf16.msra.mxu1 %v1036_v62 }
 0x208   : > { %v1074_v47 = vpop.trf.xlu0  ;;  %v1090_v16 = vpop.trf.xlu1 }
 0x209   : > { %4873 = vmatmul.mubr.msk.bf16.vlgmr.msra.gmra.mrb[0].mxu1 %vm1098_vm2, %v1074_v47 }
 0x20a   : > { %1189 = vmatprep.mubr.bf16.mxu1 %v9339_v57 }
 0x20c   : > { %v1075_v14 = vpop.trf.xlu0  ;;  %v1091_v20 = vpop.trf.xlu1 }
 0x210   : > { %v1076_v15 = vpop.trf.xlu0  ;;  %v1092_v17 = vpop.trf.xlu1 }
 0x211   : > { %4874 = vmatmul.mubr.msk.bf16.gmra.mrb[4].mxu1 %vm1098_vm2, %v1075_v14 }
 0x212   : > { %1199 = vmatprep.mubr.bf16.mxu1 %v9339_v57 }
 0x214   : > { %v1077_v9 = vpop.trf.xlu0  ;;  %v1093_v31 = vpop.trf.xlu1 }
 0x218   : > { %v1078_v23 = vpop.trf.xlu0  ;;  %v1094_v37 = vpop.trf.xlu1 }
 0x219   : > { %4875 = vmatmul.mubr.msk.bf16.gmra.mrb[8].mxu1 %vm1098_vm2, %v1076_v15 }
 0x21a   : > { %1209 = vmatprep.mubr.bf16.mxu1 %v9339_v57 }
 0x21c   : > { %v1079_v32 = vpop.trf.xlu0  ;;  %v1095_v2 = vpop.trf.xlu1 }
 0x220   : > { %v1080_v59 = vpop.trf.xlu0  ;;  %v1096_v4 = vpop.trf.xlu1 }
 0x221   : > { %4876 = vmatmul.mubr.msk.bf16.gmra.mrb[12].mxu1 %vm1098_vm2, %v1077_v9 }
 0x222   : > { %1219 = vmatprep.mubr.bf16.mxu1 %v9339_v57 }
 0x224   : > { %v1081_v18 = vpop.trf.xlu0  ;;  %v1097_v24 = vpop.trf.xlu1 }
 0x229   : > { %4877 = vmatmul.mubr.msk.bf16.gmra.mrb[16].mxu1 %vm1098_vm2, %v1078_v23 }
 0x22a   : > { %1229 = vmatprep.mubr.bf16.mxu1 %v9339_v57 }
 0x231   : > { %4878 = vmatmul.mubr.msk.bf16.gmra.mrb[20].mxu1 %vm1098_vm2, %v1079_v32 }
 0x232   : > { %1239 = vmatprep.mubr.bf16.mxu1 %v9339_v57 }
 0x239   : > { %4879 = vmatmul.mubr.msk.bf16.gmra.mrb[24].mxu1 %vm1098_vm2, %v1080_v59 }
 0x23a   : > { %1249 = vmatprep.mubr.bf16.mxu1 %v9339_v57 }
 0x241   : > { %4880 = vmatmul.mubr.msk.bf16.gmra.mrb[28].mxu1 %vm1098_vm2, %v1081_v18 }
 0x242   : > { %1259 = vmatprep.mubr.bf16.mxu1 %v9339_v57 }
 0x249   : > { %4881 = vmatmul.mubr.msk.bf16.gmra.mrb[32].mxu1 %vm1098_vm2, %v1090_v16 }
 0x24a   : > { %1269 = vmatprep.mubr.bf16.mxu1 %v9339_v57 }
 0x251   : > { %4882 = vmatmul.mubr.msk.bf16.gmra.mrb[36].mxu1 %vm1098_vm2, %v1091_v20 }
 0x252   : > { %1279 = vmatprep.mubr.bf16.mxu1 %v9339_v57 }
 0x259   : > { %4883 = vmatmul.mubr.msk.bf16.gmra.mrb[40].mxu1 %vm1098_vm2, %v1092_v17 }
 0x25a   : > { %1289 = vmatprep.mubr.bf16.mxu1 %v9339_v57 }
 0x261   : > { %4884 = vmatmul.mubr.msk.bf16.gmra.mrb[44].mxu1 %vm1098_vm2, %v1093_v31 }
 0x262   : > { %1299 = vmatprep.mubr.bf16.mxu1 %v9339_v57 }
 0x269   : > { %4885 = vmatmul.mubr.msk.bf16.gmra.mrb[48].mxu1 %vm1098_vm2, %v1094_v37 }
 0x26a   : > { %1309 = vmatprep.mubr.bf16.mxu1 %v9339_v57 }
 0x271   : > { %4886 = vmatmul.mubr.msk.bf16.gmra.mrb[52].mxu1 %vm1098_vm2, %v1095_v2 }
 0x272   : > { %1319 = vmatprep.mubr.bf16.mxu1 %v9339_v57 }
 0x279   : > { %4887 = vmatmul.mubr.msk.bf16.gmra.mrb[56].mxu1 %vm1098_vm2, %v1096_v4 }
 0x27a   : > { %1329 = vmatprep.mubr.bf16.mxu1 %v9339_v57 }
 0x281   : > { %4888 = vmatmul.mubr.msk.bf16.gmra.mrb[60].mxu1 %vm1098_vm2, %v1097_v24 }
 0x2dc   : > { %v1181_v30 = vpop.f32.mrb[0].mxu1 }
 0x2dd   : > { %v6278_v6 = vmul.f32 10.0, %v1181_v30  ;;  %v1183_v12 = vpop.f32.mrb[1].mxu1 }
 0x2de   : > { %v6280_v19 = vmul.f32 10.0, %v1183_v12  ;;  %v1185_v29 = vpop.f32.mrb[2].mxu1 }
 0x2df   : > { %v6282_v35 = vmul.f32 10.0, %v1185_v29  ;;  %v1187_v41 = vpop.f32.mrb[3].mxu1 }
 0x2e0   : > { %v6284_v49 = vmul.f32 10.0, %v1187_v41  ;;  %v1404_v55 = vmax.f32 %v6278_v6, %v6280_v19 }
 0x2e2   : > { %1405 = vmax.xlane.f32.xlu0 %v1404_v55  ;;  %v1407_v0 = vmax.f32 %v6282_v35, %v6284_v49 }
 0x2e4   : > { %1408 = vmax.xlane.f32.xlu1 %v1407_v0  ;;  %v1191_v33 = vpop.f32.mrb[4].mxu1 }
 0x2e5   : > { %v6290_v51 = vmul.f32 10.0, %v1191_v33  ;;  %v1193_v27 = vpop.f32.mrb[5].mxu1 }
 0x2e6   : > { %v6292_v62 = vmul.f32 10.0, %v1193_v27  ;;  %v1195_v47 = vpop.f32.mrb[6].mxu1 }
 0x2e7   : > { %v6294_v14 = vmul.f32 10.0, %v1195_v47  ;;  %v1197_v15 = vpop.f32.mrb[7].mxu1 }
 0x2e8   : > { %v6296_v9 = vmul.f32 10.0, %v1197_v15  ;;  %v1410_v23 = vmax.f32 %v6290_v51, %v6292_v62 }
 0x2ea   : > { %1411 = vmax.xlane.f32.xlu0 %v1410_v23  ;;  %v1413_v32 = vmax.f32 %v6294_v14, %v6296_v9 }
 0x2ec   : > { %1414 = vmax.xlane.f32.xlu1 %v1413_v32  ;;  %v1201_v59 = vpop.f32.mrb[8].mxu1 }
 0x2ed   : > { %v6302_v18 = vmul.f32 10.0, %v1201_v59  ;;  %v1203_v16 = vpop.f32.mrb[9].mxu1 }
 0x2ee   : > { %v6304_v20 = vmul.f32 10.0, %v1203_v16  ;;  %v1205_v17 = vpop.f32.mrb[10].mxu1 }
 0x2ef   : > { %v6306_v31 = vmul.f32 10.0, %v1205_v17  ;;  %v1207_v37 = vpop.f32.mrb[11].mxu1 }
 0x2f0   : > { %v6308_v2 = vmul.f32 10.0, %v1207_v37  ;;  %v1416_v4 = vmax.f32 %v6302_v18, %v6304_v20 }
 0x2f2   : > { %1417 = vmax.xlane.f32.xlu0 %v1416_v4  ;;  %v1419_v24 = vmax.f32 %v6306_v31, %v6308_v2 }
 0x2f4   : > { %1420 = vmax.xlane.f32.xlu1 %v1419_v24  ;;  %v1211_v28 = vpop.f32.mrb[12].mxu1 }
 0x2f5   : > { %v6314_v26 = vmul.f32 10.0, %v1211_v28  ;;  %v1213_v30 = vpop.f32.mrb[13].mxu1 }
 0x2f6   : > { %v6316_v12 = vmul.f32 10.0, %v1213_v30  ;;  %v1215_v29 = vpop.f32.mrb[14].mxu1 }
 0x2f7   : > { %v6318_v41 = vmul.f32 10.0, %v1215_v29  ;;  %v1217_v55 = vpop.f32.mrb[15].mxu1 }
 0x2f8   : > { %v6320_v0 = vmul.f32 10.0, %v1217_v55  ;;  %v1422_v33 = vmax.f32 %v6314_v26, %v6316_v12 }
 0x2fa   : > { %1423 = vmax.xlane.f32.xlu0 %v1422_v33  ;;  %v1425_v27 = vmax.f32 %v6318_v41, %v6320_v0 }
 0x2fc   : > { %1426 = vmax.xlane.f32.xlu1 %v1425_v27  ;;  %v1221_v47 = vpop.f32.mrb[16].mxu1 }
 0x2fd   : > { %v6326_v15 = vmul.f32 10.0, %v1221_v47  ;;  %v1223_v23 = vpop.f32.mrb[17].mxu1 }
 0x2fe   : > { %v6328_v32 = vmul.f32 10.0, %v1223_v23  ;;  %v1225_v59 = vpop.f32.mrb[18].mxu1 }
 0x2ff   : > { %v6330_v16 = vmul.f32 10.0, %v1225_v59  ;;  %v1227_v17 = vpop.f32.mrb[19].mxu1 }
 0x300   : > { %v6332_v37 = vmul.f32 10.0, %v1227_v17  ;;  %v1428_v4 = vmax.f32 %v6326_v15, %v6328_v32 }
 0x302   : > { %1429 = vmax.xlane.f32.xlu0 %v1428_v4  ;;  %v1431_v24 = vmax.f32 %v6330_v16, %v6332_v37 }
 0x304   : > { %1432 = vmax.xlane.f32.xlu1 %v1431_v24  ;;  %v1231_v28 = vpop.f32.mrb[20].mxu1 }
 0x305   : > { %v6338_v30 = vmul.f32 10.0, %v1231_v28  ;;  %v1233_v29 = vpop.f32.mrb[21].mxu1 }
 0x306   : > { %v6340_v55 = vmul.f32 10.0, %v1233_v29  ;;  %v1235_v33 = vpop.f32.mrb[22].mxu1 }
 0x307   : > { %v6342_v27 = vmul.f32 10.0, %v1235_v33  ;;  %v1237_v47 = vpop.f32.mrb[23].mxu1 }
 0x308   : > { %v6344_v23 = vmul.f32 10.0, %v1237_v47  ;;  %v1434_v59 = vmax.f32 %v6338_v30, %v6340_v55 }
 0x30a   : > { %1435 = vmax.xlane.f32.xlu0 %v1434_v59  ;;  %v1437_v17 = vmax.f32 %v6342_v27, %v6344_v23 }
 0x30c   : > { %1438 = vmax.xlane.f32.xlu1 %v1437_v17  ;;  %v1241_v4 = vpop.f32.mrb[24].mxu1 }
 0x30d   : > { %v6350_v24 = vmul.f32 10.0, %v1241_v4  ;;  %v1243_v28 = vpop.f32.mrb[25].mxu1 }
 0x30e   : > { %v6352_v29 = vmul.f32 10.0, %v1243_v28  ;;  %v1245_v11 = vpop.f32.mrb[26].mxu1 }
 0x30f   : > { %v6354_v33 = vmul.f32 10.0, %v1245_v11  ;;  %v1247_v21 = vpop.f32.mrb[27].mxu1 }
 0x310   : > { %v6356_v47 = vmul.f32 10.0, %v1247_v21  ;;  %v1440_v13 = vmax.f32 %v6350_v24, %v6352_v29 }
 0x312   : > { %1441 = vmax.xlane.f32.xlu0 %v1440_v13  ;;  %v1443_v59 = vmax.f32 %v6354_v33, %v6356_v47 }
 0x314   : > { %1444 = vmax.xlane.f32.xlu1 %v1443_v59  ;;  %v1251_v17 = vpop.f32.mrb[28].mxu1 }
 0x315   : > { %v6362_v4 = vmul.f32 10.0, %v1251_v17  ;;  %v1253_v45 = vpop.f32.mrb[29].mxu1 }
 0x316   : > { %v6364_v28 = vmul.f32 10.0, %v1253_v45  ;;  %v1255_v39 = vpop.f32.mrb[30].mxu1 }
 0x317   : > { %v6366_v11 = vmul.f32 10.0, %v1255_v39  ;;  %v1257_v25 = vpop.f32.mrb[31].mxu1 }
 0x318   : > { %v6368_v21 = vmul.f32 10.0, %v1257_v25  ;;  %v1446_v22 = vmax.f32 %v6362_v4, %v6364_v28 }
 0x31a   : > { %1447 = vmax.xlane.f32.xlu0 %v1446_v22  ;;  %v1449_v13 = vmax.f32 %v6366_v11, %v6368_v21 }
 0x31c   : > { %1450 = vmax.xlane.f32.xlu1 %v1449_v13  ;;  %v1261_v59 = vpop.f32.mrb[32].mxu1 }
 0x31d   : > { %v6374_v17 = vmul.f32 10.0, %v1261_v59  ;;  %v1263_v5 = vpop.f32.mrb[33].mxu1 }
 0x31e   : > { %v6376_v45 = vmul.f32 10.0, %v1263_v5  ;;  %v1265_v1 = vpop.f32.mrb[34].mxu1 }
 0x31f   : > { %v6378_v39 = vmul.f32 10.0, %v1265_v1  ;;  %v1267_v7 = vpop.f32.mrb[35].mxu1 }
 0x320   : > { %v6380_v25 = vmul.f32 10.0, %v1267_v7  ;;  %v1452_v3 = vmax.f32 %v6374_v17, %v6376_v45 }
 0x322   : > { %1453 = vmax.xlane.f32.xlu0 %v1452_v3  ;;  %v1455_v22 = vmax.f32 %v6378_v39, %v6380_v25 }
 0x324   : > { %1456 = vmax.xlane.f32.xlu1 %v1455_v22  ;;  %v1271_v13 = vpop.f32.mrb[36].mxu1 }
 0x325   : > { %v6386_v59 = vmul.f32 10.0, %v1271_v13  ;;  %v1273_v58 = vpop.f32.mrb[37].mxu1 }
 0x326   : > { %v6388_v5 = vmul.f32 10.0, %v1273_v58  ;;  %v1275_v54 = vpop.f32.mrb[38].mxu1 }
 0x327   : > { %9340 = vst [vmem:[#allocation41_spill] sm:$0xff] %v6386_v59  ;;  %v6390_v1 = vmul.f32 10.0, %v1275_v54  ;;  %v1277_v60 = vpop.f32.mrb[39].mxu1 }
 0x328   : > { %9341 = vst [vmem:[#allocation42_spill] sm:$0xff] %v6388_v5  ;;  %v6392_v7 = vmul.f32 10.0, %v1277_v60  ;;  %v1458_v56 = vmax.f32 %v6386_v59, %v6388_v5 }
 0x329   : > { %9342 = vst [vmem:[#allocation43_spill] sm:$0xff] %v6390_v1 }
 0x32a   : > { %9343 = vst [vmem:[#allocation44_spill] sm:$0xff] %v6392_v7  ;;  %1459 = vmax.xlane.f32.xlu0 %v1458_v56  ;;  %v1461_v3 = vmax.f32 %v6390_v1, %v6392_v7 }
 0x32c   : > { %1462 = vmax.xlane.f32.xlu1 %v1461_v3  ;;  %v1281_v22 = vpop.f32.mrb[40].mxu1 }
 0x32d   : > { %v6398_v13 = vmul.f32 10.0, %v1281_v22  ;;  %v1283_v10 = vpop.f32.mrb[41].mxu1 }
 0x32e   : > { %v6400_v58 = vmul.f32 10.0, %v1283_v10  ;;  %v1285_v8 = vpop.f32.mrb[42].mxu1 }
 0x32f   : > { %9344 = vst [vmem:[#allocation45_spill] sm:$0xff] %v6398_v13  ;;  %v6402_v54 = vmul.f32 10.0, %v1285_v8  ;;  %v1287_v63 = vpop.f32.mrb[43].mxu1 }
 0x330   : > { %9345 = vst [vmem:[#allocation46_spill] sm:$0xff] %v6400_v58  ;;  %v6404_v60 = vmul.f32 10.0, %v1287_v63  ;;  %v1464_v61 = vmax.f32 %v6398_v13, %v6400_v58 }
 0x331   : > { %9346 = vst [vmem:[#allocation47_spill] sm:$0xff] %v6402_v54 }
 0x332   : > { %9347 = vst [vmem:[#allocation48_spill] sm:$0xff] %v6404_v60  ;;  %1465 = vmax.xlane.f32.xlu0 %v1464_v61  ;;  %v1467_v56 = vmax.f32 %v6402_v54, %v6404_v60 }
 0x334   : > { %1468 = vmax.xlane.f32.xlu1 %v1467_v56  ;;  %v1291_v3 = vpop.f32.mrb[44].mxu1 }
 0x335   : > { %v6410_v22 = vmul.f32 10.0, %v1291_v3  ;;  %v1293_v50 = vpop.f32.mrb[45].mxu1 }
 0x336   : > { %v6412_v10 = vmul.f32 10.0, %v1293_v50  ;;  %v1295_v46 = vpop.f32.mrb[46].mxu1 }
 0x337   : > { %9348 = vst [vmem:[#allocation49_spill] sm:$0xff] %v6410_v22  ;;  %v6414_v8 = vmul.f32 10.0, %v1295_v46  ;;  %v1297_v48 = vpop.f32.mrb[47].mxu1 }
 0x338   : > { %9349 = vst [vmem:[#allocation50_spill] sm:$0xff] %v6412_v10  ;;  %v6416_v63 = vmul.f32 10.0, %v1297_v48  ;;  %v1470_v44 = vmax.f32 %v6410_v22, %v6412_v10  ;;  %v4998_v10 = vld [vmem:[%s9095_s1 + $0x68] sm:$0xff]   ;;  %v4999_v22 = vld [vmem:[%s9095_s1 + $0x70] sm:$0xff]  }
 0x339   : > { %9350 = vst [vmem:[#allocation51_spill] sm:$0xff] %v6414_v8 }
 0x33a   : > { %9351 = vst [vmem:[#allocation52_spill] sm:$0xff] %v6416_v63  ;;  %1471 = vmax.xlane.f32.xlu0 %v1470_v44  ;;  %v1473_v61 = vmax.f32 %v6414_v8, %v6416_v63  ;;  %v4997_v8 = vld [vmem:[%s9095_s1 + $0x60] sm:$0xff]  }
 0x33b   : > { %4861 = vmatmul.mubr.msk.bf16.gmra.mrb[48].mxu0 %vm377_vm1, %v4997_v8 }
 0x33c   : > { %1474 = vmax.xlane.f32.xlu1 %v1473_v61  ;;  %v1301_v56 = vpop.f32.mrb[48].mxu1  ;;  %619 = vmatprep.mubr.bf16.mxu0 %v9339_v57 }
 0x33d   : > { %v1303_v3 = vpop.f32.mrb[49].mxu1 }
 0x33e   : > { %v6422_v40 = vpop.f32.mrb[50].mxu1 }
 0x33f   : > { %v6424_v50 = vpop.f32.mrb[51].mxu1 }
 0x343   : > { %4862 = vmatmul.mubr.msk.bf16.gmra.mrb[52].mxu0 %vm377_vm1, %v4998_v10 }
 0x344   : > { %v6426_v36 = vpop.f32.mrb[52].mxu1  ;;  %629 = vmatprep.mubr.bf16.mxu0 %v9339_v57 }
 0x345   : > { %v6428_v46 = vpop.f32.mrb[53].mxu1 }
 0x346   : > { %v6430_v48 = vpop.f32.mrb[54].mxu1 }
 0x347   : > { %v6432_v38 = vpop.f32.mrb[55].mxu1 }
 0x34b   : > { %4863 = vmatmul.mubr.msk.bf16.gmra.mrb[56].mxu0 %vm377_vm1, %v4999_v22 }
 0x34c   : > { %v6434_v34 = vpop.f32.mrb[56].mxu1  ;;  %639 = vmatprep.mubr.bf16.mxu0 %v9339_v57 }
 0x34d   : > { %v6436_v44 = vpop.f32.mrb[57].mxu1 }
 0x34e   : > { %v6438_v53 = vpop.f32.mrb[58].mxu1 }
 0x34f   : > { %v6440_v61 = vpop.f32.mrb[59].mxu1 }
 0x354   : > { %v6442_v52 = vpop.f32.mrb[60].mxu1 }
 0x355   : > { %v6444_v43 = vpop.f32.mrb[61].mxu1 }
 0x356   : > { %v6446_v42 = vpop.f32.mrb[62].mxu1 }
 0x357   : > { %v6448_v63 = vpop.f32.mrb[63].mxu1 }
 0x36f   : > { %v1406_v60 = vpop.xlane.xlu0 %1405 }
 0x370   : > { %v1500_v54 = vsub.f32 %v6278_v6, %v1406_v60  ;;  %v1501_v58 = vsub.f32 %v6280_v19, %v1406_v60  ;;  %v5000_v6 = vld [vmem:[%s9095_s1 + $0x78] sm:$0xff]  }
 0x371   : > { %v1409_v8 = vpop.xlane.xlu1 %1408  ;;  %4864 = vmatmul.mubr.msk.bf16.gmra.mrb[60].mxu0 %vm377_vm1, %v5000_v6 }
 0x372   : > { %v1564_v13 = vmul.f32 1.442695, %v1500_v54  ;;  %v1566_v7 = vmul.f32 1.442695, %v1501_v58  ;;  %v1502_v1 = vsub.f32 %v6282_v35, %v1409_v8  ;;  %v1503_v5 = vsub.f32 %v6284_v49, %v1409_v8  ;;  %649 = vmatprep.mubr.bf16.mxu0 %v9339_v57 }
 0x374   : > { %5025 = vpow2.f32 %v1564_v13  ;;  %v1568_v10 = vmul.f32 1.442695, %v1502_v1  ;;  %v1570_v59 = vmul.f32 1.442695, %v1503_v5 }
 0x375   : > { %5027 = vpow2.f32 %v1566_v7 }
 0x376   : > { %5029 = vpow2.f32 %v1568_v10 }
 0x377   : > { %5031 = vpow2.f32 %v1570_v59  ;;  %v1412_v19 = vpop.xlane.xlu0 %1411  ;;  %v6478_v59 = vmul.f32 10.0, %v1301_v56 }
 0x378   : > { %v1504_v58 = vsub.f32 %v6290_v51, %v1412_v19  ;;  %v1505_v35 = vsub.f32 %v6292_v62, %v1412_v19  ;;  %v6480_v51 = vmul.f32 10.0, %v1303_v3 }
 0x379   : > { %v1415_v49 = vpop.xlane.xlu1 %1414 }
 0x37a   : > { %v1572_v54 = vmul.f32 1.442695, %v1504_v58  ;;  %v1574_v60 = vmul.f32 1.442695, %v1505_v35  ;;  %v1506_v22 = vsub.f32 %v6294_v14, %v1415_v49  ;;  %v1507_v1 = vsub.f32 %v6296_v9, %v1415_v49  ;;  %v5001_v14 = vld [vmem:[%s9095_s1 + $0x80] sm:$0xff]  }
 0x37b   : > { %v1476_v58 = vmax.f32 %v6478_v59, %v6480_v51  ;;  %4865 = vmatmul.mubr.msk.bf16.gmra.mrb[64].mxu0 %vm377_vm1, %v5001_v14 }
 0x37c   : > { %5033 = vpow2.f32 %v1572_v54  ;;  %v1576_v5 = vmul.f32 1.442695, %v1506_v22  ;;  %v1578_v7 = vmul.f32 1.442695, %v1507_v1  ;;  %659 = vmatprep.mubr.bf16.mxu0 %v9339_v57 }
 0x37d   : > { %5035 = vpow2.f32 %v1574_v60 }
 0x37e   : > { %v6482_v62 = vpop.eup %5025  ;;  %5037 = vpow2.f32 %v1576_v5 }
 0x37f   : > { %v6487_v9 = vpop.eup %5027  ;;  %5039 = vpow2.f32 %v1578_v7  ;;  %v1418_v13 = vpop.xlane.xlu0 %1417 }
 0x380   : > { %v6489_v8 = vpop.eup %5029  ;;  %v1508_v10 = vsub.f32 %v6302_v18, %v1418_v13  ;;  %v1509_v56 = vsub.f32 %v6304_v20, %v1418_v13  ;;  %v1692_v3 = vadd.f32 %v6487_v9, %v6482_v62  ;;  %v6503_v18 = vmul.f32 10.0, %v6422_v40 }
 0x381   : > { %v6495_v6 = vpop.eup %5031  ;;  %v1421_v19 = vpop.xlane.xlu1 %1420  ;;  %v6506_v20 = vmul.f32 10.0, %v6424_v50 }
 0x382   : > { %v1580_v35 = vmul.f32 1.442695, %v1508_v10  ;;  %v1582_v49 = vmul.f32 1.442695, %v1509_v56  ;;  %1693 = vadd.xlane.f32.xlu0 %v1692_v3  ;;  %v1510_v54 = vsub.f32 %v6306_v31, %v1421_v19  ;;  %v1511_v60 = vsub.f32 %v6308_v2, %v1421_v19 }
 0x383   : > { %v1695_v22 = vadd.f32 %v6495_v6, %v6489_v8  ;;  %v6512_v31 = vmul.f32 10.0, %v6426_v36  ;;  %v6515_v2 = vmul.f32 10.0, %v6428_v46  ;;  %v1479_v14 = vmax.f32 %v6503_v18, %v6506_v20 }
 0x384   : > { %5041 = vpow2.f32 %v1580_v35  ;;  %v1584_v1 = vmul.f32 1.442695, %v1510_v54  ;;  %v1586_v5 = vmul.f32 1.442695, %v1511_v60  ;;  %v6532_v3 = vmul.f32 10.0, %v6430_v48 }
 0x385   : > { %5043 = vpow2.f32 %v1582_v49  ;;  %1696 = vadd.xlane.f32.xlu1 %v1695_v22  ;;  %v1482_v35 = vmax.f32 %v6512_v31, %v6515_v2 }
 0x386   : > { %v6517_v40 = vpop.eup %5033  ;;  %5045 = vpow2.f32 %v1584_v1  ;;  %1477 = vmax.xlane.f32.xlu0 %v1476_v58  ;;  %v6535_v58 = vmul.f32 10.0, %v6432_v38  ;;  %v6544_v38 = vmul.f32 10.0, %v6434_v34 }
 0x387   : > { %v6519_v50 = vpop.eup %5035  ;;  %5047 = vpow2.f32 %v1586_v5  ;;  %v1424_v7 = vpop.xlane.xlu0 %1423  ;;  %v6549_v5 = vmul.f32 10.0, %v6436_v44  ;;  %v6564_v44 = vmul.f32 10.0, %v6438_v53 }
 0x388   : > { %v6523_v13 = vpop.eup %5037  ;;  %v1512_v10 = vsub.f32 %v6314_v26, %v1424_v7  ;;  %v1513_v36 = vsub.f32 %v6316_v12, %v1424_v7  ;;  %v1698_v46 = vadd.f32 %v6519_v50, %v6517_v40  ;;  %v1485_v1 = vmax.f32 %v6532_v3, %v6535_v58 }
 0x389   : > { %v6529_v56 = vpop.eup %5039  ;;  %1480 = vmax.xlane.f32.xlu1 %v1479_v14  ;;  %v1427_v19 = vpop.xlane.xlu1 %1426 }
 0x38a   : > { %v1588_v49 = vmul.f32 1.442695, %v1512_v10  ;;  %v1590_v26 = vmul.f32 1.442695, %v1513_v36  ;;  %1699 = vadd.xlane.f32.xlu0 %v1698_v46  ;;  %v1514_v12 = vsub.f32 %v6318_v41, %v1427_v19  ;;  %v1515_v54 = vsub.f32 %v6320_v0, %v1427_v19 }
 0x38b   : > { %v1701_v60 = vadd.f32 %v6529_v56, %v6523_v13 }
 0x38c   : > { %5049 = vpow2.f32 %v1588_v49  ;;  %v1592_v48 = vmul.f32 1.442695, %v1514_v12  ;;  %v1594_v22 = vmul.f32 1.442695, %v1515_v54  ;;  %v1488_v49 = vmax.f32 %v6544_v38, %v6549_v5 }
 0x38d   : > { %5051 = vpow2.f32 %v1590_v26  ;;  %1702 = vadd.xlane.f32.xlu1 %v1701_v60 }
 0x38e   : > { %v6551_v41 = vpop.eup %5041  ;;  %5053 = vpow2.f32 %v1592_v48  ;;  %1483 = vmax.xlane.f32.xlu0 %v1482_v35  ;;  %v6567_v35 = vmul.f32 10.0, %v6440_v61  ;;  %v6576_v61 = vmul.f32 10.0, %v6442_v52 }
 0x38f   : > { %v6553_v0 = vpop.eup %5043  ;;  %5055 = vpow2.f32 %v1594_v22  ;;  %v1430_v7 = vpop.xlane.xlu0 %1429  ;;  %v6581_v22 = vmul.f32 10.0, %v6444_v43  ;;  %v6596_v43 = vmul.f32 10.0, %v6446_v42 }
 0x390   : > { %v6555_v14 = vpop.eup %5045  ;;  %v1516_v10 = vsub.f32 %v6326_v15, %v1430_v7  ;;  %v1517_v34 = vsub.f32 %v6328_v32, %v1430_v7  ;;  %v1704_v36 = vadd.f32 %v6553_v0, %v6551_v41  ;;  %v1491_v48 = vmax.f32 %v6564_v44, %v6567_v35 }
 0x391   : > { %v6561_v46 = vpop.eup %5047  ;;  %1486 = vmax.xlane.f32.xlu1 %v1485_v1  ;;  %v1433_v19 = vpop.xlane.xlu1 %1432 }
 0x392   : > { %v1596_v26 = vmul.f32 1.442695, %v1516_v10  ;;  %v1598_v15 = vmul.f32 1.442695, %v1517_v34  ;;  %1705 = vadd.xlane.f32.xlu0 %v1704_v36  ;;  %v1518_v32 = vsub.f32 %v6330_v16, %v1433_v19  ;;  %v1519_v12 = vsub.f32 %v6332_v37, %v1433_v19 }
 0x393   : > { %v1707_v54 = vadd.f32 %v6561_v46, %v6555_v14 }
 0x394   : > { %5057 = vpow2.f32 %v1596_v26  ;;  %v1600_v53 = vmul.f32 1.442695, %v1518_v32  ;;  %v1602_v60 = vmul.f32 1.442695, %v1519_v12  ;;  %v1494_v26 = vmax.f32 %v6576_v61, %v6581_v22 }
 0x395   : > { %5059 = vpow2.f32 %v1598_v15  ;;  %1708 = vadd.xlane.f32.xlu1 %v1707_v54 }
 0x396   : > { %v6583_v16 = vpop.eup %5049  ;;  %5061 = vpow2.f32 %v1600_v53  ;;  %1489 = vmax.xlane.f32.xlu0 %v1488_v49  ;;  %v6599_v49 = vmul.f32 10.0, %v6448_v63 }
 0x397   : > { %v6585_v37 = vpop.eup %5051  ;;  %5063 = vpow2.f32 %v1602_v60  ;;  %v1436_v1 = vpop.xlane.xlu0 %1435 }
 0x398   : > { %v6587_v7 = vpop.eup %5053  ;;  %v1520_v10 = vsub.f32 %v6338_v30, %v1436_v1  ;;  %v1521_v52 = vsub.f32 %v6340_v55, %v1436_v1  ;;  %v1710_v34 = vadd.f32 %v6585_v37, %v6583_v16  ;;  %v1497_v63 = vmax.f32 %v6596_v43, %v6599_v49 }
 0x399   : > { %v6593_v36 = vpop.eup %5055  ;;  %1492 = vmax.xlane.f32.xlu1 %v1491_v48  ;;  %v1439_v19 = vpop.xlane.xlu1 %1438 }
 0x39a   : > { %v1604_v15 = vmul.f32 1.442695, %v1520_v10  ;;  %v1606_v30 = vmul.f32 1.442695, %v1521_v52  ;;  %1711 = vadd.xlane.f32.xlu0 %v1710_v34  ;;  %v1522_v55 = vsub.f32 %v6342_v27, %v1439_v19  ;;  %v1523_v32 = vsub.f32 %v6344_v23, %v1439_v19 }
 0x39b   : > { %v1713_v12 = vadd.f32 %v6593_v36, %v6587_v7 }
 0x39c   : > { %5065 = vpow2.f32 %v1604_v15  ;;  %v1608_v42 = vmul.f32 1.442695, %v1522_v55  ;;  %v1610_v54 = vmul.f32 1.442695, %v1523_v32 }
 0x39d   : > { %5067 = vpow2.f32 %v1606_v30  ;;  %1714 = vadd.xlane.f32.xlu1 %v1713_v12 }
 0x39e   : > { %v6609_v53 = vpop.eup %5057  ;;  %5069 = vpow2.f32 %v1608_v42  ;;  %1495 = vmax.xlane.f32.xlu0 %v1494_v26 }
 0x39f   : > { %v6611_v60 = vpop.eup %5059  ;;  %5071 = vpow2.f32 %v1610_v54  ;;  %v1442_v27 = vpop.xlane.xlu0 %1441 }
 0x3a0   : > { %v6613_v23 = vpop.eup %5061  ;;  %v1524_v48 = vsub.f32 %v6350_v24, %v1442_v27  ;;  %v1525_v1 = vsub.f32 %v6352_v29, %v1442_v27  ;;  %v1716_v10 = vadd.f32 %v6611_v60, %v6609_v53 }
 0x3a1   : > { %v6619_v52 = vpop.eup %5063  ;;  %1498 = vmax.xlane.f32.xlu1 %v1497_v63  ;;  %v1445_v34 = vpop.xlane.xlu1 %1444 }
 0x3a2   : > { %v1612_v19 = vmul.f32 1.442695, %v1524_v48  ;;  %v1614_v15 = vmul.f32 1.442695, %v1525_v1  ;;  %1717 = vadd.xlane.f32.xlu0 %v1716_v10  ;;  %v1526_v26 = vsub.f32 %v6354_v33, %v1445_v34  ;;  %v1527_v30 = vsub.f32 %v6356_v47, %v1445_v34 }
 0x3a3   : > { %v1719_v55 = vadd.f32 %v6619_v52, %v6613_v23 }
 0x3a4   : > { %5073 = vpow2.f32 %v1612_v19  ;;  %v1616_v24 = vmul.f32 1.442695, %v1526_v26  ;;  %v1618_v29 = vmul.f32 1.442695, %v1527_v30 }
 0x3a5   : > { %5075 = vpow2.f32 %v1614_v15  ;;  %1720 = vadd.xlane.f32.xlu1 %v1719_v55 }
 0x3a6   : > { %v6625_v32 = vpop.eup %5065  ;;  %5077 = vpow2.f32 %v1616_v24 }
 0x3a7   : > { %v6627_v12 = vpop.eup %5067  ;;  %5079 = vpow2.f32 %v1618_v29  ;;  %v1448_v42 = vpop.xlane.xlu0 %1447 }
 0x3a8   : > { %v6629_v54 = vpop.eup %5069  ;;  %v1528_v33 = vsub.f32 %v6362_v4, %v1448_v42  ;;  %v1529_v47 = vsub.f32 %v6364_v28, %v1448_v42  ;;  %v1722_v63 = vadd.f32 %v6627_v12, %v6625_v32 }
 0x3a9   : > { %v6635_v27 = vpop.eup %5071  ;;  %v1451_v48 = vpop.xlane.xlu1 %1450 }
 0x3aa   : > { %v1620_v1 = vmul.f32 1.442695, %v1528_v33  ;;  %v1622_v10 = vmul.f32 1.442695, %v1529_v47  ;;  %1723 = vadd.xlane.f32.xlu0 %v1722_v63  ;;  %v1530_v34 = vsub.f32 %v6366_v11, %v1451_v48  ;;  %v1531_v19 = vsub.f32 %v6368_v21, %v1451_v48 }
 0x3ab   : > { %v1725_v15 = vadd.f32 %v6635_v27, %v6629_v54 }
 0x3ac   : > { %5081 = vpow2.f32 %v1620_v1  ;;  %v1624_v4 = vmul.f32 1.442695, %v1530_v34  ;;  %v1626_v26 = vmul.f32 1.442695, %v1531_v19 }
 0x3ad   : > { %5083 = vpow2.f32 %v1622_v10  ;;  %1726 = vadd.xlane.f32.xlu1 %v1725_v15 }
 0x3ae   : > { %v6641_v28 = vpop.eup %5073  ;;  %5085 = vpow2.f32 %v1624_v4 }
 0x3af   : > { %9352 = vst [vmem:[#allocation53_spill] sm:$0xff] %v6641_v28  ;;  %v6643_v30 = vpop.eup %5075  ;;  %5087 = vpow2.f32 %v1626_v26  ;;  %v1454_v55 = vpop.xlane.xlu0 %1453 }
 0x3b0   : > { %9353 = vst [vmem:[#allocation54_spill] sm:$0xff] %v6643_v30  ;;  %v6645_v24 = vpop.eup %5077  ;;  %v1532_v11 = vsub.f32 %v6374_v17, %v1454_v55  ;;  %v1533_v21 = vsub.f32 %v6376_v45, %v1454_v55  ;;  %v1728_v29 = vadd.f32 %v6643_v30, %v6641_v28  ;;  %v9376_v28 = vld [vmem:[#allocation48_spill] sm:$0xff] }
 0x3b1   : > { %9354 = vst [vmem:[#allocation55_spill] sm:$0xff] %v6645_v24  ;;  %v6651_v42 = vpop.eup %5079  ;;  %v1457_v33 = vpop.xlane.xlu1 %1456 }
 0x3b2   : > { %9355 = vst [vmem:[#allocation56_spill] sm:$0xff] %v6651_v42  ;;  %v1628_v47 = vmul.f32 1.442695, %v1532_v11  ;;  %v1630_v63 = vmul.f32 1.442695, %v1533_v21  ;;  %1729 = vadd.xlane.f32.xlu0 %v1728_v29  ;;  %v1534_v48 = vsub.f32 %v6378_v39, %v1457_v33  ;;  %v1535_v1 = vsub.f32 %v6380_v25, %v1457_v33  ;;  %v9359_v39 = vld [vmem:[#allocation41_spill] sm:$0xff] }
 0x3b3   : > { %v1731_v10 = vadd.f32 %v6651_v42, %v6645_v24  ;;  %v9360_v25 = vld [vmem:[#allocation42_spill] sm:$0xff] }
 0x3b4   : > { %5089 = vpow2.f32 %v1628_v47  ;;  %v1632_v17 = vmul.f32 1.442695, %v1534_v48  ;;  %v1634_v34 = vmul.f32 1.442695, %v1535_v1  ;;  %v9363_v1 = vld [vmem:[#allocation44_spill] sm:$0xff] }
 0x3b5   : > { %5091 = vpow2.f32 %v1630_v63  ;;  %1732 = vadd.xlane.f32.xlu1 %v1731_v10  ;;  %v9362_v63 = vld [vmem:[#allocation43_spill] sm:$0xff] }
 0x3b6   : > { %v6657_v45 = vpop.eup %5081  ;;  %5093 = vpow2.f32 %v1632_v17 }
 0x3b7   : > { %9356 = vst [vmem:[#allocation57_spill] sm:$0xff] %v6657_v45  ;;  %v6659_v19 = vpop.eup %5083  ;;  %5095 = vpow2.f32 %v1634_v34  ;;  %v1460_v15 = vpop.xlane.xlu0 %1459 }
 0x3b8   : > { %9357 = vst [vmem:[#allocation58_spill] sm:$0xff] %v6659_v19  ;;  %v6661_v4 = vpop.eup %5085  ;;  %v1536_v26 = vsub.f32 %v9359_v39, %v1460_v15  ;;  %v1537_v55 = vsub.f32 %v9360_v25, %v1460_v15  ;;  %v1734_v11 = vadd.f32 %v6659_v19, %v6657_v45  ;;  %v6673_v15 = vpop.f32.mrb[40].mxu0 }
 0x3b9   : > { %9358 = vst [vmem:[#allocation59_spill] sm:$0xff] %v6661_v4  ;;  %v6667_v21 = vpop.eup %5087  ;;  %v1463_v29 = vpop.xlane.xlu1 %1462  ;;  %9364 = vst [vmem:[#allocation42_spill] sm:$0xff] %v6673_v15 }
 0x3ba   : > { %9361 = vst [vmem:[#allocation41_spill] sm:$0xff] %v6667_v21  ;;  %v1636_v33 = vmul.f32 1.442695, %v1536_v26  ;;  %v1638_v47 = vmul.f32 1.442695, %v1537_v55  ;;  %1735 = vadd.xlane.f32.xlu0 %v1734_v11  ;;  %v1538_v48 = vsub.f32 %v9362_v63, %v1463_v29  ;;  %v1539_v10 = vsub.f32 %v9363_v1, %v1463_v29  ;;  %v6677_v26 = vpop.f32.mrb[41].mxu0 }
 0x3bb   : > { %v1737_v17 = vadd.f32 %v6667_v21, %v6661_v4  ;;  %9366 = vst [vmem:[#allocation44_spill] sm:$0xff] %v6677_v26  ;;  %v850_v29 = vmul.f32 %v6673_v15, %v6673_v15  ;;  %v6685_v63 = vpop.f32.mrb[42].mxu0 }
 0x3bc   : > { %5097 = vpow2.f32 %v1636_v33  ;;  %v1640_v34 = vmul.f32 1.442695, %v1538_v48  ;;  %v1642_v39 = vmul.f32 1.442695, %v1539_v10  ;;  %v851_v33 = vmul.f32 %v6677_v26, %v6677_v26  ;;  %9368 = vst [vmem:[#allocation61_spill] sm:$0xff] %v6685_v63  ;;  %v9370_v48 = vld [vmem:[#allocation45_spill] sm:$0xff] }
 0x3bd   : > { %5099 = vpow2.f32 %v1638_v47  ;;  %1738 = vadd.xlane.f32.xlu1 %v1737_v17  ;;  %v9371_v10 = vld [vmem:[#allocation46_spill] sm:$0xff]  ;;  %v6695_v45 = vpop.f32.mrb[43].mxu0 }
 0x3be   : > { %v6675_v25 = vpop.eup %5089  ;;  %5101 = vpow2.f32 %v1640_v34  ;;  %9372 = vst [vmem:[#allocation45_spill] sm:$0xff] %v6695_v45  ;;  %v853_v26 = vmul.f32 %v6695_v45, %v6695_v45  ;;  %v6701_v21 = vpop.f32.mrb[44].mxu0  ;;  %v6713_v42 = vadd.f32 %v851_v33, %v850_v29 }
 0x3bf   : > { %9365 = vst [vmem:[#allocation43_spill] sm:$0xff] %v6675_v25  ;;  %v6679_v55 = vpop.eup %5091  ;;  %5103 = vpow2.f32 %v1642_v39  ;;  %v1466_v11 = vpop.xlane.xlu0 %1465  ;;  %v852_v39 = vmul.f32 %v6685_v63, %v6685_v63  ;;  %9374 = vst [vmem:[#allocation63_spill] sm:$0xff] %v6701_v21  ;;  %v854_v24 = vmul.f32 %v6701_v21, %v6701_v21  ;;  %v5002_v21 = vld [vmem:[%s9095_s1 + $0x88] sm:$0xff]  }
 0x3c0   : > { %9367 = vst [vmem:[#allocation60_spill] sm:$0xff] %v6679_v55  ;;  %v6687_v47 = vpop.eup %5093  ;;  %v1540_v1 = vsub.f32 %v9370_v48, %v1466_v11  ;;  %v1541_v17 = vsub.f32 %v9371_v10, %v1466_v11  ;;  %v1740_v34 = vadd.f32 %v6679_v55, %v6675_v25  ;;  %v9375_v11 = vld [vmem:[#allocation47_spill] sm:$0xff]  ;;  %v6705_v55 = vpop.f32.mrb[45].mxu0  ;;  %4866 = vmatmul.mubr.msk.bf16.gmra.mrb[68].mxu0 %vm377_vm1, %v5002_v21 }
 0x3c1   : > { %9369 = vst [vmem:[#allocation62_spill] sm:$0xff] %v6687_v47  ;;  %v6697_v15 = vpop.eup %5095  ;;  %v1469_v4 = vpop.xlane.xlu1 %1468  ;;  %9377 = vst [vmem:[#allocation47_spill] sm:$0xff] %v6705_v55  ;;  %v855_v45 = vmul.f32 %v6705_v55, %v6705_v55  ;;  %669 = vmatprep.mubr.bf16.mxu0 %v9339_v57  ;;  %v9382_v21 = vld [vmem:[#allocation51_spill] sm:$0xff] }
 0x3c2   : > { %9373 = vst [vmem:[#allocation46_spill] sm:$0xff] %v6697_v15  ;;  %v1644_v19 = vmul.f32 1.442695, %v1540_v1  ;;  %v1646_v48 = vmul.f32 1.442695, %v1541_v17  ;;  %1741 = vadd.xlane.f32.xlu0 %v1740_v34  ;;  %v1542_v10 = vsub.f32 %v9375_v11, %v1469_v4  ;;  %v1543_v25 = vsub.f32 %v9376_v28, %v1469_v4  ;;  %v6715_v34 = vpop.f32.mrb[46].mxu0 }
 0x3c3   : > { %v1743_v63 = vadd.f32 %v6697_v15, %v6687_v47  ;;  %9378 = vst [vmem:[#allocation48_spill] sm:$0xff] %v6715_v34  ;;  %v6717_v11 = vadd.f32 %v853_v26, %v852_v39  ;;  %v856_v28 = vmul.f32 %v6715_v34, %v6715_v34  ;;  %v6721_v4 = vpop.f32.mrb[47].mxu0  ;;  %v6726_v29 = vadd.f32 %v855_v45, %v854_v24  ;;  %v9380_v39 = vld [vmem:[#allocation49_spill] sm:$0xff]  ;;  %v9383_v15 = vld [vmem:[#allocation52_spill] sm:$0xff] }
 0x3c4   : > { %5105 = vpow2.f32 %v1644_v19  ;;  %v1648_v1 = vmul.f32 1.442695, %v1542_v10  ;;  %v1650_v17 = vmul.f32 1.442695, %v1543_v25  ;;  %9379 = vst [vmem:[#allocation64_spill] sm:$0xff] %v6721_v4  ;;  %v857_v25 = vmul.f32 %v6721_v4, %v6721_v4  ;;  %v9381_v10 = vld [vmem:[#allocation50_spill] sm:$0xff] }
 0x3c5   : > { %5107 = vpow2.f32 %v1646_v48  ;;  %1744 = vadd.xlane.f32.xlu1 %v1743_v63 }
 0x3c6   : > { %v6728_v19 = vpop.eup %5097  ;;  %5109 = vpow2.f32 %v1648_v1  ;;  %v6741_v45 = vadd.f32 %v857_v25, %v856_v28 }
 0x3c7   : > { %v6732_v26 = vpop.eup %5099  ;;  %5111 = vpow2.f32 %v1650_v17  ;;  %v1472_v33 = vpop.xlane.xlu0 %1471 }
 0x3c8   : > { %v6735_v63 = vpop.eup %5101  ;;  %v1544_v48 = vsub.f32 %v9380_v39, %v1472_v33  ;;  %v1545_v34 = vsub.f32 %v9381_v10, %v1472_v33  ;;  %v1746_v24 = vadd.f32 %v6732_v26, %v6728_v19 }
 0x3c9   : > { %v6744_v1 = vpop.eup %5103  ;;  %v1475_v4 = vpop.xlane.xlu1 %1474 }
 0x3ca   : > { %v1652_v17 = vmul.f32 1.442695, %v1544_v48  ;;  %v1654_v55 = vmul.f32 1.442695, %v1545_v34  ;;  %1747 = vadd.xlane.f32.xlu0 %v1746_v24  ;;  %v1546_v47 = vsub.f32 %v9382_v21, %v1475_v4  ;;  %v1547_v30 = vsub.f32 %v9383_v15, %v1475_v4 }
 0x3cb   : > { %v1749_v33 = vadd.f32 %v6744_v1, %v6735_v63 }
 0x3cc   : > { %5113 = vpow2.f32 %v1652_v17  ;;  %v1656_v39 = vmul.f32 1.442695, %v1546_v47  ;;  %v1658_v10 = vmul.f32 1.442695, %v1547_v30 }
 0x3cd   : > { %5115 = vpow2.f32 %v1654_v55  ;;  %1750 = vadd.xlane.f32.xlu1 %v1749_v33  ;;  %v9390_v33 = vld [vmem:[#allocation9_spill] sm:$0xff] }
 0x3ce   : > { %v6750_v28 = vpop.eup %5105  ;;  %5117 = vpow2.f32 %v1656_v39  ;;  %v9391_v39 = vld [vmem:[#allocation10_spill] sm:$0xff] }
 0x3cf   : > { %9384 = vst [vmem:[#allocation49_spill] sm:$0xff] %v6750_v28  ;;  %v6752_v25 = vpop.eup %5107  ;;  %5119 = vpow2.f32 %v1658_v10 }
 0x3d0   : > { %v6754_v34 = vpop.eup %5109  ;;  %v1752_v48 = vadd.f32 %v6752_v25, %v6750_v28 }
 0x3d1   : > { %9385 = vst [vmem:[#allocation50_spill] sm:$0xff] %v6754_v34  ;;  %v6758_v15 = vpop.eup %5111 }
 0x3d2   : > { %1753 = vadd.xlane.f32.xlu0 %v1752_v48  ;;  %v1755_v47 = vadd.f32 %v6758_v15, %v6754_v34 }
 0x3d4   : > { %1756 = vadd.xlane.f32.xlu1 %v1755_v47 }
 0x3d6   : > { %v6762_v30 = vpop.eup %5113 }
 0x3d7   : > { %9386 = vst [vmem:[#allocation51_spill] sm:$0xff] %v6762_v30  ;;  %v6764_v55 = vpop.eup %5115 }
 0x3d8   : > { %9387 = vst [vmem:[#allocation52_spill] sm:$0xff] %v6764_v55  ;;  %v6766_v4 = vpop.eup %5117  ;;  %v1758_v24 = vadd.f32 %v6764_v55, %v6762_v30 }
 0x3d9   : > { %9388 = vst [vmem:[#allocation65_spill] sm:$0xff] %v6766_v4  ;;  %v6770_v17 = vpop.eup %5119 }
 0x3da   : > { %9389 = vst [vmem:[#allocation66_spill] sm:$0xff] %v6770_v17  ;;  %1759 = vadd.xlane.f32.xlu0 %v1758_v24  ;;  %v1761_v21 = vadd.f32 %v6770_v17, %v6766_v4 }
 0x3dc   : > { %1762 = vadd.xlane.f32.xlu1 %v1761_v21 }
 0x3de   : > { %775 = vadd.xlane.f32.xlu0 %v9390_v33 }
 0x3e0   : > { %778 = vadd.xlane.f32.xlu1 %v9391_v39 }
 0x40f   : > { %v1694_v10 = vpop.xlane.xlu0 %1693 }
 0x410   : > { %5121 = vrcp.f32 %v1694_v10 }
 0x412   : > { %v1697_v48 = vpop.xlane.xlu1 %1696 }
 0x413   : > { %5123 = vrcp.f32 %v1697_v48  ;;  %v1478_v47 = vpop.xlane.xlu0 %1477 }
 0x414   : > { %v1548_v57 = vsub.f32 %v6478_v59, %v1478_v47  ;;  %v1549_v30 = vsub.f32 %v6480_v51, %v1478_v47 }
 0x416   : > { %v1660_v55 = vmul.f32 1.442695, %v1548_v57  ;;  %v1662_v28 = vmul.f32 1.442695, %v1549_v30  ;;  %v1481_v24 = vpop.xlane.xlu1 %1480 }
 0x417   : > { %v1550_v34 = vsub.f32 %v6503_v18, %v1481_v24  ;;  %v1551_v21 = vsub.f32 %v6506_v20, %v1481_v24  ;;  %v1700_v4 = vpop.xlane.xlu0 %1699 }
 0x418   : > { %5125 = vpow2.f32 %v1660_v55 }
 0x419   : > { %5127 = vpow2.f32 %v1662_v28  ;;  %v1664_v33 = vmul.f32 1.442695, %v1550_v34  ;;  %v1666_v39 = vmul.f32 1.442695, %v1551_v21 }
 0x41a   : > { %v5122_v10 = vpop.eup %5121  ;;  %5129 = vrcp.f32 %v1700_v4  ;;  %v1703_v48 = vpop.xlane.xlu1 %1702 }
 0x41b   : > { %5131 = vpow2.f32 %v1664_v33  ;;  %v1484_v17 = vpop.xlane.xlu0 %1483  ;;  %v1821_v18 = vmul.f32 %v5122_v10, %v6487_v9  ;;  %v1820_v20 = vmul.f32 %v5122_v10, %v6482_v62 }
 0x41c   : > { %5133 = vpow2.f32 %v1666_v39  ;;  %v1552_v59 = vsub.f32 %v6512_v31, %v1484_v17  ;;  %v1553_v57 = vsub.f32 %v6515_v2, %v1484_v17 }
 0x41d   : > { %v5124_v51 = vpop.eup %5123  ;;  %5135 = vrcp.f32 %v1703_v48 }
 0x41e   : > { %v1668_v30 = vmul.f32 1.442695, %v1552_v59  ;;  %v1670_v28 = vmul.f32 1.442695, %v1553_v57  ;;  %v1487_v34 = vpop.xlane.xlu1 %1486  ;;  %v1823_v55 = vmul.f32 %v5124_v51, %v6495_v6  ;;  %v1822_v4 = vmul.f32 %v5124_v51, %v6489_v8 }
 0x41f   : > { %v1554_v47 = vsub.f32 %v6532_v3, %v1487_v34  ;;  %v1555_v24 = vsub.f32 %v6535_v58, %v1487_v34  ;;  %v1706_v31 = vpop.xlane.xlu0 %1705 }
 0x420   : > { %5137 = vpow2.f32 %v1668_v30  ;;  %v1885_v2 = vpack.c.bf16 %v1823_v55, %v1821_v18  ;;  %v1884_v17 = vpack.c.bf16 %v1822_v4, %v1820_v20 }
 0x421   : > { %5139 = vpow2.f32 %v1670_v28  ;;  %v1672_v21 = vmul.f32 1.442695, %v1554_v47  ;;  %v1674_v9 = vmul.f32 1.442695, %v1555_v24 }
 0x422   : > { %v6788_v33 = vpop.eup %5125  ;;  %5141 = vrcp.f32 %v1706_v31  ;;  %1916 = vmatprep.subr.bf16.mxu1 %v1885_v2  ;;  %v1709_v62 = vpop.xlane.xlu1 %1708 }
 0x423   : > { %v6790_v39 = vpop.eup %5127  ;;  %5143 = vpow2.f32 %v1672_v21  ;;  %1917 = vmatpush1.bf16.xpose.msra.mxu1 %v1884_v17  ;;  %v1490_v8 = vpop.xlane.xlu0 %1489 }
 0x424   : > { %v5130_v6 = vpop.eup %5129  ;;  %5145 = vpow2.f32 %v1674_v9  ;;  %v1556_v3 = vsub.f32 %v6544_v38, %v1490_v8  ;;  %v1557_v58 = vsub.f32 %v6549_v5, %v1490_v8  ;;  %v1764_v10 = vadd.f32 %v6790_v39, %v6788_v33 }
 0x425   : > { %v6796_v48 = vpop.eup %5131  ;;  %5147 = vrcp.f32 %v1709_v62  ;;  %v1825_v34 = vmul.f32 %v5130_v6, %v6519_v50  ;;  %v1824_v4 = vmul.f32 %v5130_v6, %v6517_v40  ;;  %v9393_v6 = vld [vmem:[#allocation16_spill] sm:$0xff] }
 0x426   : > { %v6798_v59 = vpop.eup %5133  ;;  %v1676_v57 = vmul.f32 1.442695, %v1556_v3  ;;  %v1678_v51 = vmul.f32 1.442695, %v1557_v58  ;;  %1765 = vadd.xlane.f32.xlu0 %v1764_v10  ;;  %v1493_v18 = vpop.xlane.xlu1 %1492 }
 0x427   : > { %v5136_v20 = vpop.eup %5135  ;;  %v1558_v30 = vsub.f32 %v6564_v44, %v1493_v18  ;;  %v1559_v28 = vsub.f32 %v6567_v35, %v1493_v18  ;;  %v1712_v38 = vpop.xlane.xlu0 %1711  ;;  %v1767_v5 = vadd.f32 %v6798_v59, %v6796_v48  ;;  %v9392_v35 = vld [vmem:[#allocation15_spill] sm:$0xff] }
 0x428   : > { %5149 = vpow2.f32 %v1676_v57  ;;  %v1827_v55 = vmul.f32 %v5136_v20, %v6529_v56  ;;  %v1826_v47 = vmul.f32 %v5136_v20, %v6523_v13 }
 0x429   : > { %5151 = vpow2.f32 %v1678_v51  ;;  %v1680_v24 = vmul.f32 1.442695, %v1558_v30  ;;  %v1682_v31 = vmul.f32 1.442695, %v1559_v28  ;;  %1768 = vadd.xlane.f32.xlu1 %v1767_v5 }
 0x42a   : > { %v6808_v44 = vpop.eup %5137  ;;  %5153 = vrcp.f32 %v1712_v38  ;;  %781 = vadd.xlane.f32.xlu0 %v9392_v35  ;;  %v1887_v2 = vpack.c.bf16 %v1827_v55, %v1825_v34  ;;  %v1715_v17 = vpop.xlane.xlu1 %1714  ;;  %v1886_v21 = vpack.c.bf16 %v1826_v47, %v1824_v4 }
 0x42b   : > { %v6811_v50 = vpop.eup %5139  ;;  %5155 = vpow2.f32 %v1680_v24  ;;  %v1496_v56 = vpop.xlane.xlu0 %1495 }
 0x42c   : > { %v5142_v9 = vpop.eup %5141  ;;  %5157 = vpow2.f32 %v1682_v31  ;;  %1918 = vmatprep.subr.bf16.mxu1 %v1887_v2  ;;  %v1560_v40 = vsub.f32 %v6576_v61, %v1496_v56  ;;  %v1561_v13 = vsub.f32 %v6581_v22, %v1496_v56  ;;  %v1770_v62 = vadd.f32 %v6811_v50, %v6808_v44 }
 0x42d   : > { %v6817_v8 = vpop.eup %5143  ;;  %5159 = vrcp.f32 %v1715_v17  ;;  %1919 = vmatpush1.bf16.xpose.msra.mxu1 %v1886_v21  ;;  %784 = vadd.xlane.f32.xlu1 %v9393_v6  ;;  %v1829_v30 = vmul.f32 %v5142_v9, %v6553_v0  ;;  %v1828_v38 = vmul.f32 %v5142_v9, %v6551_v41 }
 0x42e   : > { %v6820_v3 = vpop.eup %5145  ;;  %v1684_v58 = vmul.f32 1.442695, %v1560_v40  ;;  %v1686_v10 = vmul.f32 1.442695, %v1561_v13  ;;  %1771 = vadd.xlane.f32.xlu0 %v1770_v62  ;;  %v1499_v57 = vpop.xlane.xlu1 %1498 }
 0x42f   : > { %v5148_v51 = vpop.eup %5147  ;;  %v1562_v61 = vsub.f32 %v6596_v43, %v1499_v57  ;;  %v1563_v22 = vsub.f32 %v6599_v49, %v1499_v57  ;;  %v1718_v18 = vpop.xlane.xlu0 %1717  ;;  %v1773_v20 = vadd.f32 %v6820_v3, %v6817_v8 }
 0x430   : > { %5161 = vpow2.f32 %v1684_v58  ;;  %v1831_v28 = vmul.f32 %v5148_v51, %v6561_v46  ;;  %v1830_v5 = vmul.f32 %v5148_v51, %v6555_v14 }
 0x431   : > { %5163 = vpow2.f32 %v1686_v10  ;;  %v1688_v34 = vmul.f32 1.442695, %v1562_v61  ;;  %v1690_v55 = vmul.f32 1.442695, %v1563_v22  ;;  %1774 = vadd.xlane.f32.xlu1 %v1773_v20 }
 0x432   : > { %v6830_v43 = vpop.eup %5149  ;;  %5165 = vrcp.f32 %v1718_v18  ;;  %v1889_v49 = vpack.c.bf16 %v1831_v28, %v1829_v30  ;;  %v1721_v4 = vpop.xlane.xlu1 %1720  ;;  %v1888_v47 = vpack.c.bf16 %v1830_v5, %v1828_v38 }
 0x433   : > { %v6832_v24 = vpop.eup %5151  ;;  %5167 = vpow2.f32 %v1688_v34 }
 0x434   : > { %v5154_v0 = vpop.eup %5153  ;;  %5169 = vpow2.f32 %v1690_v55  ;;  %1920 = vmatprep.subr.bf16.mxu1 %v1889_v49  ;;  %v1776_v41 = vadd.f32 %v6832_v24, %v6830_v43 }
 0x435   : > { %v6836_v14 = vpop.eup %5155  ;;  %5171 = vrcp.f32 %v1721_v4  ;;  %1921 = vmatpush1.bf16.xpose.msra.mxu1 %v1888_v47  ;;  %v1833_v17 = vmul.f32 %v5154_v0, %v6585_v37  ;;  %v1832_v56 = vmul.f32 %v5154_v0, %v6583_v16  ;;  %v9395_v0 = vld [vmem:[#allocation56_spill] sm:$0xff] }
 0x436   : > { %v6838_v46 = vpop.eup %5157  ;;  %1777 = vadd.xlane.f32.xlu0 %v1776_v41  ;;  %v9396_v41 = vld [vmem:[#allocation55_spill] sm:$0xff] }
 0x437   : > { %v5160_v31 = vpop.eup %5159  ;;  %v1724_v35 = vpop.xlane.xlu0 %1723  ;;  %v1779_v2 = vadd.f32 %v6838_v46, %v6836_v14 }
 0x438   : > { %v1835_v21 = vmul.f32 %v5160_v31, %v6593_v36  ;;  %v1834_v9 = vmul.f32 %v5160_v31, %v6587_v7  ;;  %5173 = vrcp.f32 %v1724_v35  ;;  %v9397_v35 = vld [vmem:[#allocation53_spill] sm:$0xff] }
 0x439   : > { %1780 = vadd.xlane.f32.xlu1 %v1779_v2 }
 0x43a   : > { %v6846_v40 = vpop.eup %5161  ;;  %v1891_v13 = vpack.c.bf16 %v1835_v21, %v1833_v17  ;;  %v1727_v62 = vpop.xlane.xlu1 %1726  ;;  %v1890_v6 = vpack.c.bf16 %v1834_v9, %v1832_v56 }
 0x43b   : > { %v6848_v58 = vpop.eup %5163  ;;  %5175 = vrcp.f32 %v1727_v62 }
 0x43c   : > { %v5166_v10 = vpop.eup %5165  ;;  %1922 = vmatprep.subr.bf16.mxu1 %v1891_v13  ;;  %v1782_v37 = vadd.f32 %v6848_v58, %v6846_v40 }
 0x43d   : > { %v6852_v36 = vpop.eup %5167  ;;  %1923 = vmatpush1.bf16.xpose.msra.mxu1 %v1890_v6  ;;  %v1837_v61 = vmul.f32 %v5166_v10, %v6611_v60  ;;  %v1836_v18 = vmul.f32 %v5166_v10, %v6609_v53 }
 0x43e   : > { %v6854_v16 = vpop.eup %5169  ;;  %1783 = vadd.xlane.f32.xlu0 %v1782_v37 }
 0x43f   : > { %v5172_v7 = vpop.eup %5171  ;;  %v1730_v57 = vpop.xlane.xlu0 %1729  ;;  %v1785_v51 = vadd.f32 %v6854_v16, %v6852_v36 }
 0x440   : > { %v1839_v22 = vmul.f32 %v5172_v7, %v6619_v52  ;;  %v1838_v20 = vmul.f32 %v5172_v7, %v6613_v23  ;;  %5177 = vrcp.f32 %v1730_v57 }
 0x441   : > { %1786 = vadd.xlane.f32.xlu1 %v1785_v51 }
 0x442   : > { %v1893_v30 = vpack.c.bf16 %v1839_v22, %v1837_v61  ;;  %v1733_v28 = vpop.xlane.xlu1 %1732  ;;  %887 = vadd.xlane.f32.xlu0 %v6713_v42  ;;  %v1892_v38 = vpack.c.bf16 %v1838_v20, %v1836_v18  ;;  %v5174_v5 = vpop.eup %5173  ;;  %v9404_v22 = vld [vmem:[#allocation58_spill] sm:$0xff]  ;;  %v9405_v20 = vld [vmem:[#allocation41_spill] sm:$0xff] }
 0x443   : > { %5179 = vrcp.f32 %v1733_v28  ;;  %v1841_v53 = vmul.f32 %v5174_v5, %v6627_v12  ;;  %v1840_v55 = vmul.f32 %v5174_v5, %v6625_v32  ;;  %v9406_v28 = vld [vmem:[#allocation59_spill] sm:$0xff] }
 0x444   : > { %1924 = vmatprep.subr.bf16.mxu1 %v1893_v30 }
 0x445   : > { %v5176_v34 = vpop.eup %5175  ;;  %1925 = vmatpush1.bf16.xpose.msra.mxu1 %v1892_v38  ;;  %890 = vadd.xlane.f32.xlu1 %v6717_v11 }
 0x446   : > { %893 = vadd.xlane.f32.xlu0 %v6726_v29  ;;  %v1843_v60 = vmul.f32 %v5176_v34, %v6635_v27  ;;  %v1842_v23 = vmul.f32 %v5176_v34, %v6629_v54  ;;  %v9394_v29 = vld [vmem:[#allocation54_spill] sm:$0xff] }
 0x447   : > { %v1736_v52 = vpop.xlane.xlu0 %1735 }
 0x448   : > { %v1895_v42 = vpack.c.bf16 %v1843_v60, %v1841_v53  ;;  %5181 = vrcp.f32 %v1736_v52  ;;  %v1894_v49 = vpack.c.bf16 %v1842_v23, %v1840_v55  ;;  %v9408_v60 = vld [vmem:[#allocation57_spill] sm:$0xff] }
 0x449   : > { %896 = vadd.xlane.f32.xlu1 %v6741_v45  ;;  %v6874_v45 = vpop.f32.mrb[48].mxu0 }
 0x44a   : > { %1926 = vmatprep.subr.bf16.mxu1 %v1895_v42  ;;  %v1739_v4 = vpop.xlane.xlu1 %1738  ;;  %v5178_v47 = vpop.eup %5177  ;;  %9398 = vst [vmem:[#allocation9_spill] sm:$0xff] %v6874_v45  ;;  %v858_v56 = vmul.f32 %v6874_v45, %v6874_v45 }
 0x44b   : > { %5183 = vrcp.f32 %v1739_v4  ;;  %v1845_v12 = vmul.f32 %v5178_v47, %v9394_v29  ;;  %v1844_v32 = vmul.f32 %v5178_v47, %v9397_v35  ;;  %v6878_v9 = vpop.f32.mrb[49].mxu0 }
 0x44c   : > { %9399 = vst [vmem:[#allocation10_spill] sm:$0xff] %v6878_v9  ;;  %v859_v62 = vmul.f32 %v6878_v9, %v6878_v9  ;;  %v6882_v6 = vpop.f32.mrb[50].mxu0 }
 0x44d   : > { %v5180_v11 = vpop.eup %5179  ;;  %1927 = vmatpush1.bf16.xpose.msra.mxu1 %v1894_v49  ;;  %9400 = vst [vmem:[#allocation15_spill] sm:$0xff] %v6882_v6  ;;  %v6884_v10 = vpop.f32.mrb[51].mxu0  ;;  %v860_v57 = vmul.f32 %v6882_v6, %v6882_v6 }
 0x44e   : > { %v1847_v27 = vmul.f32 %v5180_v11, %v9395_v0  ;;  %v1846_v54 = vmul.f32 %v5180_v11, %v9396_v41  ;;  %9401 = vst [vmem:[#allocation16_spill] sm:$0xff] %v6884_v10  ;;  %v6886_v7 = vadd.f32 %v859_v62, %v858_v56  ;;  %v861_v51 = vmul.f32 %v6884_v10, %v6884_v10  ;;  %v6892_v61 = vpop.f32.mrb[52].mxu0 }
 0x44f   : > { %v1742_v31 = vpop.xlane.xlu0 %1741  ;;  %9403 = vst [vmem:[#allocation56_spill] sm:$0xff] %v6892_v61  ;;  %v862_v5 = vmul.f32 %v6892_v61, %v6892_v61  ;;  %v6899_v34 = vpop.f32.mrb[53].mxu0 }
 0x450   : > { %5185 = vrcp.f32 %v1742_v31  ;;  %v1897_v2 = vpack.c.bf16 %v1847_v27, %v1845_v12  ;;  %v1896_v17 = vpack.c.bf16 %v1846_v54, %v1844_v32  ;;  %9402 = vst [vmem:[#allocation54_spill] sm:$0xff] %v6886_v7  ;;  %9407 = vst [vmem:[#allocation55_spill] sm:$0xff] %v6899_v34  ;;  %v6902_v52 = vadd.f32 %v861_v51, %v860_v57  ;;  %v6906_v42 = vpop.f32.mrb[54].mxu0  ;;  %v9420_v51 = vld [vmem:[#allocation46_spill] sm:$0xff] }
 0x451   : > { %v863_v55 = vmul.f32 %v6899_v34, %v6899_v34  ;;  %9410 = vst [vmem:[#allocation58_spill] sm:$0xff] %v6906_v42  ;;  %v6908_v4 = vpop.f32.mrb[55].mxu0  ;;  %v864_v29 = vmul.f32 %v6906_v42, %v6906_v42 }
 0x452   : > { %1928 = vmatprep.subr.bf16.mxu1 %v1897_v2  ;;  %v1745_v21 = vpop.xlane.xlu1 %1744  ;;  %v5182_v13 = vpop.eup %5181  ;;  %9409 = vst [vmem:[#allocation53_spill] sm:$0xff] %v6902_v52  ;;  %9411 = vst [vmem:[#allocation41_spill] sm:$0xff] %v6908_v4  ;;  %v865_v12 = vmul.f32 %v6908_v4, %v6908_v4 }
 0x453   : > { %5187 = vrcp.f32 %v1745_v21  ;;  %v1849_v18 = vmul.f32 %v5182_v13, %v9404_v22  ;;  %v1848_v23 = vmul.f32 %v5182_v13, %v9408_v60  ;;  %v6910_v11 = vadd.f32 %v863_v55, %v862_v5  ;;  %v6916_v0 = vpop.f32.mrb[56].mxu0  ;;  %v9418_v13 = vld [vmem:[#allocation60_spill] sm:$0xff] }
 0x454   : > { %9413 = vst [vmem:[#allocation57_spill] sm:$0xff] %v6916_v0  ;;  %v866_v54 = vmul.f32 %v6916_v0, %v6916_v0  ;;  %v6920_v31 = vpop.f32.mrb[57].mxu0  ;;  %v6922_v35 = vadd.f32 %v865_v12, %v864_v29 }
 0x455   : > { %v5184_v37 = vpop.eup %5183  ;;  %1929 = vmatpush1.bf16.xpose.msra.mxu1 %v1896_v17  ;;  %9412 = vst [vmem:[#allocation59_spill] sm:$0xff] %v6910_v11  ;;  %9414 = vst [vmem:[#allocation67_spill] sm:$0xff] %v6920_v31  ;;  %v6924_v32 = vpop.f32.mrb[58].mxu0  ;;  %v867_v2 = vmul.f32 %v6920_v31, %v6920_v31 }
 0x456   : > { %v1851_v30 = vmul.f32 %v5184_v37, %v9405_v20  ;;  %v1850_v38 = vmul.f32 %v5184_v37, %v9406_v28  ;;  %9415 = vst [vmem:[#allocation68_spill] sm:$0xff] %v6922_v35  ;;  %9416 = vst [vmem:[#allocation69_spill] sm:$0xff] %v6924_v32  ;;  %v868_v17 = vmul.f32 %v6924_v32, %v6924_v32  ;;  %v6930_v21 = vpop.f32.mrb[59].mxu0 }
 0x457   : > { %v1748_v53 = vpop.xlane.xlu0 %1747  ;;  %9417 = vst [vmem:[#allocation70_spill] sm:$0xff] %v6930_v21  ;;  %v869_v37 = vmul.f32 %v6930_v21, %v6930_v21  ;;  %v6935_v57 = vpop.f32.mrb[60].mxu0 }
 0x458   : > { %5189 = vrcp.f32 %v1748_v53  ;;  %v1899_v49 = vpack.c.bf16 %v1851_v30, %v1849_v18  ;;  %v1898_v47 = vpack.c.bf16 %v1850_v38, %v1848_v23  ;;  %9419 = vst [vmem:[#allocation60_spill] sm:$0xff] %v6935_v57  ;;  %v9421_v18 = vld [vmem:[#allocation62_spill] sm:$0xff]  ;;  %v6939_v30 = vadd.f32 %v867_v2, %v866_v54  ;;  %v6943_v38 = vpop.f32.mrb[61].mxu0  ;;  %v9424_v53 = vld [vmem:[#allocation43_spill] sm:$0xff] }
 0x459   : > { %v870_v28 = vmul.f32 %v6935_v57, %v6935_v57  ;;  %9423 = vst [vmem:[#allocation62_spill] sm:$0xff] %v6943_v38  ;;  %v6946_v23 = vadd.f32 %v869_v37, %v868_v17  ;;  %v871_v55 = vmul.f32 %v6943_v38, %v6943_v38 }
 0x45a   : > { %v5186_v27 = vpop.eup %5185  ;;  %1930 = vmatprep.subr.bf16.mxu1 %v1899_v49  ;;  %v1751_v41 = vpop.xlane.xlu1 %1750  ;;  %9422 = vst [vmem:[#allocation46_spill] sm:$0xff] %v6939_v30 }
 0x45b   : > { %5191 = vrcp.f32 %v1751_v41  ;;  %v1853_v62 = vmul.f32 %v5186_v27, %v9418_v13  ;;  %v1852_v60 = vmul.f32 %v5186_v27, %v9424_v53  ;;  %9425 = vst [vmem:[#allocation43_spill] sm:$0xff] %v6946_v23  ;;  %v6950_v49 = vpop.f32.mrb[62].mxu0  ;;  %v6956_v2 = vadd.f32 %v871_v55, %v870_v28 }
 0x45c   : > { %9426 = vst [vmem:[#allocation71_spill] sm:$0xff] %v6950_v49  ;;  %v872_v29 = vmul.f32 %v6950_v49, %v6950_v49  ;;  %v6954_v12 = vpop.f32.mrb[63].mxu0  ;;  %v9435_v49 = vld [vmem:[#allocation51_spill] sm:$0xff] }
 0x45d   : > { %v5188_v56 = vpop.eup %5187  ;;  %1931 = vmatpush1.bf16.xpose.msra.mxu1 %v1898_v47  ;;  %9427 = vst [vmem:[#allocation72_spill] sm:$0xff] %v6954_v12  ;;  %9428 = vst [vmem:[#allocation73_spill] sm:$0xff] %v6956_v2  ;;  %v873_v27 = vmul.f32 %v6954_v12, %v6954_v12  ;;  %v6960_v17 = vpop.f32.mrb[64].mxu0 }
 0x45e   : > { %v1855_v22 = vmul.f32 %v5188_v56, %v9420_v51  ;;  %v1854_v20 = vmul.f32 %v5188_v56, %v9421_v18  ;;  %v653_v13 = vpop.f32.mrb[65].mxu0 }
 0x45f   : > { %v1754_v5 = vpop.xlane.xlu0 %1753  ;;  %v6962_v37 = vadd.f32 %v873_v27, %v872_v29 }
 0x460   : > { %5193 = vrcp.f32 %v1754_v5  ;;  %v1901_v47 = vpack.c.bf16 %v1855_v22, %v1853_v62  ;;  %v1900_v54 = vpack.c.bf16 %v1854_v20, %v1852_v60  ;;  %v6964_v62 = vpop.f32.mrb[66].mxu0 }
 0x461   : > { %v1757_v41 = vpop.xlane.xlu1 %1756  ;;  %9429 = vst [vmem:[#allocation74_spill] sm:$0xff] %v6962_v37  ;;  %v657_v22 = vpop.f32.mrb[67].mxu0 }
 0x462   : > { %v5190_v56 = vpop.eup %5189  ;;  %1932 = vmatprep.subr.bf16.mxu1 %v1901_v47  ;;  %5195 = vrcp.f32 %v1757_v41  ;;  %v1051_v20 = vpack.c.bf16 %v657_v22, %v653_v13  ;;  %v9430_v22 = vld [vmem:[#allocation50_spill] sm:$0xff] }
 0x463   : > { %v1857_v28 = vmul.f32 %v5190_v56, %v6732_v26  ;;  %v1856_v55 = vmul.f32 %v5190_v56, %v6728_v19 }
 0x464   : > { %1948 = vmatprep.mubr.bf16.mxu1 %v1051_v20  ;;  %v9431_v20 = vld [vmem:[#allocation49_spill] sm:$0xff] }
 0x465   : > { %v5192_v18 = vpop.eup %5191  ;;  %1933 = vmatpush1.bf16.xpose.msra.mxu1 %v1900_v54 }
 0x466   : > { %v1859_v5 = vmul.f32 %v5192_v18, %v6744_v1  ;;  %v1858_v53 = vmul.f32 %v5192_v18, %v6735_v63 }
 0x467   : > { %v1760_v60 = vpop.xlane.xlu0 %1759 }
 0x468   : > { %5197 = vrcp.f32 %v1760_v60  ;;  %v1903_v47 = vpack.c.bf16 %v1859_v5, %v1857_v28  ;;  %v1902_v41 = vpack.c.bf16 %v1858_v53, %v1856_v55 }
 0x469   : > { %v1763_v29 = vpop.xlane.xlu1 %1762 }
 0x46a   : > { %v5194_v27 = vpop.eup %5193  ;;  %1934 = vmatprep.subr.bf16.mxu1 %v1903_v47  ;;  %5199 = vrcp.f32 %v1763_v29  ;;  %v9433_v47 = vld [vmem:[#allocation66_spill] sm:$0xff] }
 0x46b   : > { %v776_v51 = vpop.xlane.xlu0 %775  ;;  %v1861_v1 = vmul.f32 %v5194_v27, %v6752_v25  ;;  %v1860_v28 = vmul.f32 %v5194_v27, %v9431_v20  ;;  %v9434_v25 = vld [vmem:[#allocation65_spill] sm:$0xff]  ;;  %v9439_v20 = vld [vmem:[#allocation8_spill] sm:$0xff] }
 0x46c   : > { %v5196_v54 = vpop.eup %5195  ;;  %v814_v13 = vmax.f32 %v776_v51, 1e-24  ;;  %v9432_v51 = vld [vmem:[#allocation52_spill] sm:$0xff]  ;;  %v9436_v27 = vld [vmem:[#allocation5_spill] sm:$0xff] }
 0x46d   : > { %1935 = vmatpush1.bf16.xpose.msra.mxu1 %v1902_v41  ;;  %v779_v26 = vpop.xlane.xlu1 %778  ;;  %v1863_v63 = vmul.f32 %v5196_v54, %v6758_v15  ;;  %v1862_v18 = vmul.f32 %v5196_v54, %v9430_v22  ;;  %v9437_v22 = vld [vmem:[#allocation7_spill] sm:$0xff] }
 0x46e   : > { %5201 = vrsqrt.f32 %v814_v13  ;;  %v815_v19 = vmax.f32 %v779_v26, 1e-24 }
 0x46f   : > { %v1905_v56 = vpack.c.bf16 %v1863_v63, %v1861_v1  ;;  %v1904_v5 = vpack.c.bf16 %v1862_v18, %v1860_v28 }
 0x470   : > { %5203 = vrsqrt.f32 %v815_v19  ;;  %v9438_v19 = vld [vmem:[#allocation6_spill] sm:$0xff] }
 0x471   : > { %1936 = vmatprep.subr.bf16.mxu1 %v1905_v56 }
 0x472   : > { %v5198_v53 = vpop.eup %5197 }
 0x473   : > { %v1865_v55 = vmul.f32 %v5198_v53, %v9432_v51  ;;  %v1864_v54 = vmul.f32 %v5198_v53, %v9435_v49 }
 0x474   : > { %v5200_v60 = vpop.eup %5199 }
 0x475   : > { %1937 = vmatpush1.bf16.xpose.msra.mxu1 %v1904_v5  ;;  %v1867_v29 = vmul.f32 %v5200_v60, %v9433_v47  ;;  %v1866_v41 = vmul.f32 %v5200_v60, %v9434_v25 }
 0x477   : > { %v1907_v15 = vpack.c.bf16 %v1867_v29, %v1865_v55  ;;  %v1906_v26 = vpack.c.bf16 %v1866_v41, %v1864_v54 }
 0x478   : > { %v5202_v13 = vpop.eup %5201 }
 0x479   : > { %1938 = vmatprep.subr.bf16.mxu1 %v1907_v15  ;;  %v962_v63 = vmul.f32 %v5202_v13, %v9436_v27  ;;  %v963_v56 = vmul.f32 %v5202_v13, %v9438_v19 }
 0x47a   : > { %v5204_v1 = vpop.eup %5203 }
 0x47b   : > { %v964_v18 = vmul.f32 %v5204_v1, %v9437_v22  ;;  %v965_v28 = vmul.f32 %v5204_v1, %v9439_v20 }
 0x47d   : > { %1939 = vmatpush1.bf16.xpose.msra.mxu1 %v1906_v26  ;;  %v990_v5 = vpack.c.bf16 %v964_v18, %v962_v63  ;;  %v991_v51 = vpack.c.bf16 %v965_v28, %v963_v56 }
 0x47f   : > { %1973 = vxpose.xlu0.c.b16.start [1/2] (short) %v990_v5, 128  ;;  %1989 = vxpose.xlu1.c.b16.start [1/2] (short) %v991_v51, 128 }
 0x493   : > { %v6984_v60 = vpop.f32.mrb[68].mxu0 }
 0x494   : > { %v6986_v49 = vpop.f32.mrb[69].mxu0 }
 0x495   : > { %v6988_v53 = vpop.f32.mrb[70].mxu0 }
 0x496   : > { %v1052_v55 = vpack.c.bf16 %v6988_v53, %v6984_v60  ;;  %v6992_v47 = vpop.f32.mrb[71].mxu0 }
 0x497   : > { %v1053_v29 = vpack.c.bf16 %v6992_v47, %v6986_v49 }
 0x4b3   : > { %v1766_v25 = vpop.xlane.xlu0 %1765 }
 0x4b4   : > { %5205 = vrcp.f32 %v1766_v25 }
 0x4b6   : > { %v1769_v41 = vpop.xlane.xlu1 %1768 }
 0x4b7   : > { %5207 = vrcp.f32 %v1769_v41  ;;  %v782_v15 = vpop.xlane.xlu0 %781 }
 0x4b8   : > { %v816_v54 = vmax.f32 %v782_v15, 1e-24 }
 0x4ba   : > { %v785_v13 = vpop.xlane.xlu1 %784  ;;  %5209 = vrsqrt.f32 %v816_v54 }
 0x4bb   : > { %v817_v26 = vmax.f32 %v785_v13, 1e-24  ;;  %v1772_v1 = vpop.xlane.xlu0 %1771  ;;  %v9440_v13 = vld [vmem:[#allocation11_spill] sm:$0xff] }
 0x4bc   : > { %5211 = vrcp.f32 %v1772_v1 }
 0x4bd   : > { %5213 = vrsqrt.f32 %v817_v26 }
 0x4be   : > { %v1775_v27 = vpop.xlane.xlu1 %1774  ;;  %v5206_v63 = vpop.eup %5205 }
 0x4bf   : > { %5215 = vrcp.f32 %v1775_v27  ;;  %v1869_v18 = vmul.f32 %v5206_v63, %v6790_v39  ;;  %v1868_v56 = vmul.f32 %v5206_v63, %v6788_v33  ;;  %v9441_v39 = vld [vmem:[#allocation13_spill] sm:$0xff]  ;;  %v9443_v33 = vld [vmem:[#allocation14_spill] sm:$0xff] }
 0x4c1   : > { %v5208_v22 = vpop.eup %5207 }
 0x4c2   : > { %v1871_v19 = vmul.f32 %v5208_v22, %v6798_v59  ;;  %v1870_v20 = vmul.f32 %v5208_v22, %v6796_v48  ;;  %v9442_v59 = vld [vmem:[#allocation12_spill] sm:$0xff] }
 0x4c3   : > { %v1778_v28 = vpop.xlane.xlu0 %1777 }
 0x4c4   : > { %v1909_v5 = vpack.c.bf16 %v1871_v19, %v1869_v18  ;;  %v1908_v51 = vpack.c.bf16 %v1870_v20, %v1868_v56  ;;  %v5210_v25 = vpop.eup %5209  ;;  %5217 = vrcp.f32 %v1778_v28 }
 0x4c5   : > { %v966_v26 = vmul.f32 %v5210_v25, %v9440_v13  ;;  %v967_v27 = vmul.f32 %v5210_v25, %v9442_v59 }
 0x4c6   : > { %v5212_v41 = vpop.eup %5211  ;;  %1940 = vmatprep.subr.bf16.mxu1 %v1909_v5  ;;  %v1781_v15 = vpop.xlane.xlu1 %1780 }
 0x4c7   : > { %v5214_v54 = vpop.eup %5213  ;;  %5219 = vrcp.f32 %v1781_v15  ;;  %1941 = vmatpush1.bf16.xpose.msra.mxu1 %v1908_v51  ;;  %v1873_v22 = vmul.f32 %v5212_v41, %v6811_v50  ;;  %v1872_v18 = vmul.f32 %v5212_v41, %v6808_v44 }
 0x4c8   : > { %v968_v1 = vmul.f32 %v5214_v54, %v9441_v39  ;;  %v969_v63 = vmul.f32 %v5214_v54, %v9443_v33 }
 0x4c9   : > { %v5216_v48 = vpop.eup %5215 }
 0x4ca   : > { %v992_v19 = vpack.c.bf16 %v968_v1, %v966_v26  ;;  %v993_v56 = vpack.c.bf16 %v969_v63, %v967_v27  ;;  %v1875_v20 = vmul.f32 %v5216_v48, %v6820_v3  ;;  %v1874_v28 = vmul.f32 %v5216_v48, %v6817_v8 }
 0x4cb   : > { %v1784_v5 = vpop.xlane.xlu0 %1783 }
 0x4cc   : > { %1974 = vxpose.xlu0.c.b16.end [2/2] (short) %v992_v19, 128  ;;  %1990 = vxpose.xlu1.c.b16.end [2/2] (short) %v993_v56, 128  ;;  %v1911_v51 = vpack.c.bf16 %v1875_v20, %v1873_v22  ;;  %v1910_v15 = vpack.c.bf16 %v1874_v28, %v1872_v18  ;;  %5221 = vrcp.f32 %v1784_v5 }
 0x4ce   : > { %1942 = vmatprep.subr.bf16.mxu1 %v1911_v51  ;;  %v1787_v25 = vpop.xlane.xlu1 %1786  ;;  %v5218_v54 = vpop.eup %5217  ;;  %v9444_v51 = vld [vmem:[#allocation44_spill] sm:$0xff] }
 0x4cf   : > { %5223 = vrcp.f32 %v1787_v25  ;;  %1943 = vmatpush1.bf16.xpose.msra.mxu1 %v1910_v15  ;;  %v888_v50 = vpop.xlane.xlu0 %887  ;;  %v1877_v26 = vmul.f32 %v5218_v54, %v6832_v24  ;;  %v1876_v8 = vmul.f32 %v5218_v54, %v6830_v43  ;;  %v9445_v25 = vld [vmem:[#allocation45_spill] sm:$0xff] }
 0x4d0   : > { %v926_v13 = vmax.f32 %v888_v50, 1e-24  ;;  %v9446_v50 = vld [vmem:[#allocation42_spill] sm:$0xff] }
 0x4d1   : > { %v5220_v44 = vpop.eup %5219 }
 0x4d2   : > { %v891_v41 = vpop.xlane.xlu1 %890  ;;  %v1879_v3 = vmul.f32 %v5220_v44, %v6838_v46  ;;  %v1878_v39 = vmul.f32 %v5220_v44, %v6836_v14  ;;  %5225 = vrsqrt.f32 %v926_v13  ;;  %v9447_v44 = vld [vmem:[#allocation61_spill] sm:$0xff] }
 0x4d3   : > { %v927_v1 = vmax.f32 %v891_v41, 1e-24  ;;  %v894_v59 = vpop.xlane.xlu0 %893 }
 0x4d4   : > { %v928_v27 = vmax.f32 %v894_v59, 1e-24  ;;  %v1913_v33 = vpack.c.bf16 %v1879_v3, %v1877_v26  ;;  %v1912_v63 = vpack.c.bf16 %v1878_v39, %v1876_v8  ;;  %v9449_v8 = vld [vmem:[#allocation64_spill] sm:$0xff] }
 0x4d5   : > { %5227 = vrsqrt.f32 %v927_v1  ;;  %v9450_v1 = vld [vmem:[#allocation63_spill] sm:$0xff] }
 0x4d6   : > { %1944 = vmatprep.subr.bf16.mxu1 %v1913_v33  ;;  %v897_v48 = vpop.xlane.xlu1 %896  ;;  %v5222_v22 = vpop.eup %5221  ;;  %5229 = vrsqrt.f32 %v928_v27  ;;  %v9451_v27 = vld [vmem:[#allocation48_spill] sm:$0xff] }
 0x4d7   : > { %v929_v18 = vmax.f32 %v897_v48, 1e-24  ;;  %1945 = vmatpush1.bf16.xpose.msra.mxu1 %v1912_v63  ;;  %v1881_v46 = vmul.f32 %v5222_v22, %v6848_v58  ;;  %v1880_v14 = vmul.f32 %v5222_v22, %v6846_v40  ;;  %v9452_v63 = vpack.c.bf16 %v6964_v62, %v6960_v17 }
 0x4d9   : > { %v5224_v24 = vpop.eup %5223  ;;  %5231 = vrsqrt.f32 %v929_v18  ;;  %v9453_v18 = vmov 0  }
 0x4da   : > { %v1883_v43 = vmul.f32 %v5224_v24, %v6854_v16  ;;  %v1882_v19 = vmul.f32 %v5224_v24, %v6852_v36  ;;  %v9448_v36 = vld [vmem:[#allocation47_spill] sm:$0xff] }
 0x4dc   : > { %v1915_v56 = vpack.c.bf16 %v1883_v43, %v1881_v46  ;;  %v1914_v20 = vpack.c.bf16 %v1882_v19, %v1880_v14  ;;  %v5226_v28 = vpop.eup %5225 }
 0x4dd   : > { %v1011_v15 = vmul.f32 %v5226_v28, %v9444_v51  ;;  %v1010_v13 = vmul.f32 %v5226_v28, %v9446_v50 }
 0x4de   : > { %1946 = vmatprep.subr.bf16.mxu1 %v1915_v56 }
 0x4df   : > { %v5228_v5 = vpop.eup %5227  ;;  %1947 = vmatpush1.bf16.xpose.msra.mxu1 %v1914_v20 }
 0x4e0   : > { %v1013_v54 = vmul.f32 %v5228_v5, %v9445_v25  ;;  %v1012_v58 = vmul.f32 %v5228_v5, %v9447_v44  ;;  %v5230_v41 = vpop.eup %5229 }
 0x4e1   : > { %v1015_v3 = vmul.f32 %v5230_v41, %v9448_v36  ;;  %v1014_v59 = vmul.f32 %v5230_v41, %v9450_v1 }
 0x4e2   : > { %v1039_v16 = vpack.c.bf16 %v1013_v54, %v1011_v15  ;;  %v1038_v26 = vpack.c.bf16 %v1012_v58, %v1010_v13 }
 0x4e3   : > { %v5232_v40 = vpop.eup %5231 }
 0x4e4   : > { %2053 = vmatprep.subr.bf16.mxu1 %v1039_v16  ;;  %v1017_v39 = vmul.f32 %v5232_v40, %v9449_v8  ;;  %v1016_v33 = vmul.f32 %v5232_v40, %v9451_v27 }
 0x4e6   : > { %1949 = vmatmul.mubr.bf16.vlgmr.msra.gmra.mrb[64].mxu1 %v9452_v63  ;;  %v1041_v48 = vpack.c.bf16 %v1017_v39, %v1015_v3  ;;  %v1040_v22 = vpack.c.bf16 %v1016_v33, %v1014_v59 }
 0x4e7   : > { %2054 = vmatpush1.bf16.msra.mxu1 %v1038_v26  ;;  %1958 = vmatprep.mubr.bf16.mxu1 %v1053_v29 }
 0x4e8   : > { %2055 = vmatprep.subr.bf16.mxu1 %v1041_v48 }
 0x4eb   : > { %2056 = vmatpush1.bf16.msra.mxu1 %v1040_v22 }
 0x4ee   : > { %1959 = vmatmul.mubr.bf16.gmra.mrb[68].mxu1 %v1052_v55 }
 0x4ef   : > { %2085 = vmatprep.mubr.bf16.mxu1 %v9453_v18 }
 0x52e   : > { %v1981_v24 = vpop.trf.xlu0  ;;  %v1997_v29 = vpop.trf.xlu1 }
 0x52f   : > { %4889 = vmatmul.mubr.msk.bf16.vlgmr.msra.gmra.mrb[72].mxu1 %vm1098_vm2, %v1981_v24 }
 0x530   : > { %2095 = vmatprep.mubr.bf16.mxu1 %v9453_v18 }
 0x532   : > { %v1982_v17 = vpop.trf.xlu0  ;;  %v1998_v46 = vpop.trf.xlu1 }
 0x536   : > { %v1983_v62 = vpop.trf.xlu0  ;;  %v1999_v43 = vpop.trf.xlu1 }
 0x537   : > { %4890 = vmatmul.mubr.msk.bf16.gmra.mrb[76].mxu1 %vm1098_vm2, %v1982_v17 }
 0x538   : > { %2105 = vmatprep.mubr.bf16.mxu1 %v9453_v18 }
 0x53a   : > { %v1984_v49 = vpop.trf.xlu0  ;;  %v2000_v14 = vpop.trf.xlu1 }
 0x53e   : > { %v1985_v60 = vpop.trf.xlu0  ;;  %v2001_v19 = vpop.trf.xlu1 }
 0x53f   : > { %4891 = vmatmul.mubr.msk.bf16.gmra.mrb[80].mxu1 %vm1098_vm2, %v1983_v62 }
 0x540   : > { %2115 = vmatprep.mubr.bf16.mxu1 %v9453_v18 }
 0x542   : > { %v1986_v53 = vpop.trf.xlu0  ;;  %v2002_v56 = vpop.trf.xlu1 }
 0x546   : > { %v1987_v55 = vpop.trf.xlu0  ;;  %v2003_v20 = vpop.trf.xlu1 }
 0x547   : > { %4892 = vmatmul.mubr.msk.bf16.gmra.mrb[84].mxu1 %vm1098_vm2, %v1984_v49 }
 0x548   : > { %2125 = vmatprep.mubr.bf16.mxu1 %v9453_v18 }
 0x54a   : > { %v1988_v47 = vpop.trf.xlu0  ;;  %v2004_v28 = vpop.trf.xlu1 }
 0x54f   : > { %4893 = vmatmul.mubr.msk.bf16.gmra.mrb[88].mxu1 %vm1098_vm2, %v1985_v60 }
 0x550   : > { %2135 = vmatprep.mubr.bf16.mxu1 %v9453_v18 }
 0x557   : > { %4894 = vmatmul.mubr.msk.bf16.gmra.mrb[92].mxu1 %vm1098_vm2, %v1986_v53 }
 0x558   : > { %2145 = vmatprep.mubr.bf16.mxu1 %v9453_v18 }
 0x55f   : > { %4895 = vmatmul.mubr.msk.bf16.gmra.mrb[96].mxu1 %vm1098_vm2, %v1987_v55 }
 0x560   : > { %2155 = vmatprep.mubr.bf16.mxu1 %v9453_v18 }
 0x567   : > { %4896 = vmatmul.mubr.msk.bf16.gmra.mrb[100].mxu1 %vm1098_vm2, %v1988_v47 }
 0x568   : > { %2165 = vmatprep.mubr.bf16.mxu1 %v9453_v18 }
 0x56f   : > { %4897 = vmatmul.mubr.msk.bf16.gmra.mrb[104].mxu1 %vm1098_vm2, %v1997_v29 }
 0x570   : > { %2175 = vmatprep.mubr.bf16.mxu1 %v9453_v18 }
 0x577   : > { %4898 = vmatmul.mubr.msk.bf16.gmra.mrb[108].mxu1 %vm1098_vm2, %v1998_v46 }
 0x578   : > { %2185 = vmatprep.mubr.bf16.mxu1 %v9453_v18 }
 0x57f   : > { %4899 = vmatmul.mubr.msk.bf16.gmra.mrb[112].mxu1 %vm1098_vm2, %v1999_v43 }
 0x580   : > { %2195 = vmatprep.mubr.bf16.mxu1 %v9453_v18 }
 0x587   : > { %4900 = vmatmul.mubr.msk.bf16.gmra.mrb[116].mxu1 %vm1098_vm2, %v2000_v14 }
 0x588   : > { %2205 = vmatprep.mubr.bf16.mxu1 %v9453_v18 }
 0x58f   : > { %4901 = vmatmul.mubr.msk.bf16.gmra.mrb[120].mxu1 %vm1098_vm2, %v2001_v19 }
 0x590   : > { %2215 = vmatprep.mubr.bf16.mxu1 %v9453_v18 }
 0x597   : > { %4902 = vmatmul.mubr.msk.bf16.gmra.mrb[124].mxu1 %vm1098_vm2, %v2002_v56 }
 0x598   : > { %2225 = vmatprep.mubr.bf16.mxu1 %v9453_v18 }
 0x59f   : > { %4903 = vmatmul.mubr.msk.bf16.gmra.mrb[128].mxu1 %vm1098_vm2, %v2003_v20 }
 0x5a0   : > { %2235 = vmatprep.mubr.bf16.mxu1 %v9453_v18 }
 0x5a7   : > { %4904 = vmatmul.mubr.msk.bf16.gmra.mrb[132].mxu1 %vm1098_vm2, %v2004_v28 }
 0x5b9   : > { %v7065_v5 = vpop.f32.mrb[64].mxu1 }
 0x5ba   : > { %9454 = vst [vmem:[#allocation50_spill] sm:$0xff] %v7065_v5  ;;  %v7067_v51 = vpop.f32.mrb[65].mxu1 }
 0x5bb   : > { %9455 = vst [vmem:[#allocation49_spill] sm:$0xff] %v7067_v51  ;;  %v7069_v15 = vpop.f32.mrb[66].mxu1 }
 0x5bc   : > { %9456 = vst [vmem:[#allocation52_spill] sm:$0xff] %v7069_v15  ;;  %v7073_v54 = vpop.f32.mrb[67].mxu1 }
 0x5bd   : > { %9457 = vst [vmem:[#allocation66_spill] sm:$0xff] %v7073_v54 }
 0x5c1   : > { %v7077_v13 = vpop.f32.mrb[68].mxu1 }
 0x5c2   : > { %9458 = vst [vmem:[#allocation65_spill] sm:$0xff] %v7077_v13  ;;  %v7079_v44 = vpop.f32.mrb[69].mxu1 }
 0x5c3   : > { %9459 = vst [vmem:[#allocation51_spill] sm:$0xff] %v7079_v44  ;;  %v7081_v58 = vpop.f32.mrb[70].mxu1 }
 0x5c4   : > { %9460 = vst [vmem:[#allocation5_spill] sm:$0xff] %v7081_v58  ;;  %v7085_v16 = vpop.f32.mrb[71].mxu1 }
 0x5c5   : > { %9461 = vst [vmem:[#allocation7_spill] sm:$0xff] %v7085_v16 }
 0x602   : > { %v2087_v40 = vpop.f32.mrb[72].mxu1 }
 0x603   : > { %v7089_v36 = vmul.f32 10.0, %v2087_v40  ;;  %v2089_v3 = vpop.f32.mrb[73].mxu1 }
 0x604   : > { %v7091_v8 = vmul.f32 10.0, %v2089_v3  ;;  %v2091_v39 = vpop.f32.mrb[74].mxu1 }
 0x605   : > { %v7093_v1 = vmul.f32 10.0, %v2091_v39  ;;  %v2093_v59 = vpop.f32.mrb[75].mxu1 }
 0x606   : > { %v2310_v27 = vmax.f32 %v7089_v36, %v7091_v8  ;;  %v7097_v33 = vmul.f32 10.0, %v2093_v59 }
 0x608   : > { %v2313_v63 = vmax.f32 %v7093_v1, %v7097_v33  ;;  %2311 = vmax.xlane.f32.xlu0 %v2310_v27 }
 0x60a   : > { %2314 = vmax.xlane.f32.xlu1 %v2313_v63  ;;  %v2097_v48 = vpop.f32.mrb[76].mxu1 }
 0x60b   : > { %v7101_v22 = vmul.f32 10.0, %v2097_v48  ;;  %v2099_v24 = vpop.f32.mrb[77].mxu1 }
 0x60c   : > { %v7103_v17 = vmul.f32 10.0, %v2099_v24  ;;  %v2101_v62 = vpop.f32.mrb[78].mxu1 }
 0x60d   : > { %v7105_v49 = vmul.f32 10.0, %v2101_v62  ;;  %v2103_v60 = vpop.f32.mrb[79].mxu1 }
 0x60e   : > { %v2316_v53 = vmax.f32 %v7101_v22, %v7103_v17  ;;  %v7109_v55 = vmul.f32 10.0, %v2103_v60 }
 0x610   : > { %v2319_v47 = vmax.f32 %v7105_v49, %v7109_v55  ;;  %2317 = vmax.xlane.f32.xlu0 %v2316_v53 }
 0x612   : > { %2320 = vmax.xlane.f32.xlu1 %v2319_v47  ;;  %v2107_v29 = vpop.f32.mrb[80].mxu1 }
 0x613   : > { %v7113_v46 = vmul.f32 10.0, %v2107_v29  ;;  %v2109_v43 = vpop.f32.mrb[81].mxu1 }
 0x614   : > { %v7115_v14 = vmul.f32 10.0, %v2109_v43  ;;  %v2111_v19 = vpop.f32.mrb[82].mxu1 }
 0x615   : > { %v7117_v56 = vmul.f32 10.0, %v2111_v19  ;;  %v2113_v20 = vpop.f32.mrb[83].mxu1 }
 0x616   : > { %v2322_v28 = vmax.f32 %v7113_v46, %v7115_v14  ;;  %v7121_v40 = vmul.f32 10.0, %v2113_v20 }
 0x618   : > { %v2325_v3 = vmax.f32 %v7117_v56, %v7121_v40  ;;  %2323 = vmax.xlane.f32.xlu0 %v2322_v28 }
 0x61a   : > { %2326 = vmax.xlane.f32.xlu1 %v2325_v3  ;;  %v2117_v39 = vpop.f32.mrb[84].mxu1 }
 0x61b   : > { %v7125_v59 = vmul.f32 10.0, %v2117_v39  ;;  %v2119_v27 = vpop.f32.mrb[85].mxu1 }
 0x61c   : > { %v7127_v63 = vmul.f32 10.0, %v2119_v27  ;;  %v2121_v48 = vpop.f32.mrb[86].mxu1 }
 0x61d   : > { %v7129_v24 = vmul.f32 10.0, %v2121_v48  ;;  %v2123_v62 = vpop.f32.mrb[87].mxu1 }
 0x61e   : > { %v2328_v60 = vmax.f32 %v7125_v59, %v7127_v63  ;;  %v7133_v53 = vmul.f32 10.0, %v2123_v62 }
 0x620   : > { %v2331_v47 = vmax.f32 %v7129_v24, %v7133_v53  ;;  %2329 = vmax.xlane.f32.xlu0 %v2328_v60 }
 0x622   : > { %2332 = vmax.xlane.f32.xlu1 %v2331_v47  ;;  %v2127_v29 = vpop.f32.mrb[88].mxu1 }
 0x623   : > { %v7137_v43 = vmul.f32 10.0, %v2127_v29  ;;  %v2129_v19 = vpop.f32.mrb[89].mxu1 }
 0x624   : > { %v7139_v20 = vmul.f32 10.0, %v2129_v19  ;;  %v2131_v28 = vpop.f32.mrb[90].mxu1 }
 0x625   : > { %v7141_v3 = vmul.f32 10.0, %v2131_v28  ;;  %v2133_v39 = vpop.f32.mrb[91].mxu1 }
 0x626   : > { %v2334_v27 = vmax.f32 %v7137_v43, %v7139_v20  ;;  %v7145_v48 = vmul.f32 10.0, %v2133_v39 }
 0x628   : > { %v2337_v62 = vmax.f32 %v7141_v3, %v7145_v48  ;;  %2335 = vmax.xlane.f32.xlu0 %v2334_v27 }
 0x62a   : > { %2338 = vmax.xlane.f32.xlu1 %v2337_v62  ;;  %v2137_v60 = vpop.f32.mrb[92].mxu1 }
 0x62b   : > { %v7149_v47 = vmul.f32 10.0, %v2137_v60  ;;  %v2139_v29 = vpop.f32.mrb[93].mxu1 }
 0x62c   : > { %v7151_v19 = vmul.f32 10.0, %v2139_v29  ;;  %v2141_v41 = vpop.f32.mrb[94].mxu1 }
 0x62d   : > { %v7153_v28 = vmul.f32 10.0, %v2141_v41  ;;  %v2143_v26 = vpop.f32.mrb[95].mxu1 }
 0x62e   : > { %v2340_v25 = vmax.f32 %v7149_v47, %v7151_v19  ;;  %v7157_v39 = vmul.f32 10.0, %v2143_v26 }
 0x630   : > { %v2343_v50 = vmax.f32 %v7153_v28, %v7157_v39  ;;  %2341 = vmax.xlane.f32.xlu0 %v2340_v25 }
 0x632   : > { %2344 = vmax.xlane.f32.xlu1 %v2343_v50  ;;  %v2147_v27 = vpop.f32.mrb[96].mxu1 }
 0x633   : > { %v7161_v62 = vmul.f32 10.0, %v2147_v27  ;;  %v2149_v60 = vpop.f32.mrb[97].mxu1 }
 0x634   : > { %v7163_v29 = vmul.f32 10.0, %v2149_v60  ;;  %v2151_v13 = vpop.f32.mrb[98].mxu1 }
 0x635   : > { %v7165_v41 = vmul.f32 10.0, %v2151_v13  ;;  %v2153_v58 = vpop.f32.mrb[99].mxu1 }
 0x636   : > { %v2346_v44 = vmax.f32 %v7161_v62, %v7163_v29  ;;  %v7169_v26 = vmul.f32 10.0, %v2153_v58 }
 0x638   : > { %v2349_v16 = vmax.f32 %v7165_v41, %v7169_v26  ;;  %2347 = vmax.xlane.f32.xlu0 %v2346_v44 }
 0x63a   : > { %2350 = vmax.xlane.f32.xlu1 %v2349_v16  ;;  %v2157_v25 = vpop.f32.mrb[100].mxu1 }
 0x63b   : > { %v7173_v50 = vmul.f32 10.0, %v2157_v25  ;;  %v2159_v27 = vpop.f32.mrb[101].mxu1 }
 0x63c   : > { %v7175_v60 = vmul.f32 10.0, %v2159_v27  ;;  %v2161_v5 = vpop.f32.mrb[102].mxu1 }
 0x63d   : > { %v7177_v13 = vmul.f32 10.0, %v2161_v5  ;;  %v2163_v15 = vpop.f32.mrb[103].mxu1 }
 0x63e   : > { %v2352_v51 = vmax.f32 %v7173_v50, %v7175_v60  ;;  %v7181_v58 = vmul.f32 10.0, %v2163_v15 }
 0x640   : > { %v2355_v54 = vmax.f32 %v7177_v13, %v7181_v58  ;;  %2353 = vmax.xlane.f32.xlu0 %v2352_v51 }
 0x642   : > { %2356 = vmax.xlane.f32.xlu1 %v2355_v54  ;;  %v2167_v44 = vpop.f32.mrb[104].mxu1 }
 0x643   : > { %v7185_v16 = vmul.f32 10.0, %v2167_v44  ;;  %v2169_v25 = vpop.f32.mrb[105].mxu1 }
 0x644   : > { %v7187_v27 = vmul.f32 10.0, %v2169_v25  ;;  %v2171_v57 = vpop.f32.mrb[106].mxu1 }
 0x645   : > { %v7189_v5 = vmul.f32 10.0, %v2171_v57  ;;  %v2173_v12 = vpop.f32.mrb[107].mxu1 }
 0x646   : > { %v2358_v38 = vmax.f32 %v7185_v16, %v7187_v27  ;;  %v7193_v15 = vmul.f32 10.0, %v2173_v12 }
 0x648   : > { %9462 = vst [vmem:[#allocation6_spill] sm:$0xff] %v7193_v15  ;;  %v2361_v32 = vmax.f32 %v7189_v5, %v7193_v15  ;;  %2359 = vmax.xlane.f32.xlu0 %v2358_v38 }
 0x64a   : > { %2362 = vmax.xlane.f32.xlu1 %v2361_v32  ;;  %v2177_v51 = vpop.f32.mrb[108].mxu1 }
 0x64b   : > { %v7197_v54 = vmul.f32 10.0, %v2177_v51  ;;  %v2179_v44 = vpop.f32.mrb[109].mxu1 }
 0x64c   : > { %v7199_v25 = vmul.f32 10.0, %v2179_v44  ;;  %v2181_v0 = vpop.f32.mrb[110].mxu1 }
 0x64d   : > { %9463 = vst [vmem:[#allocation8_spill] sm:$0xff] %v7197_v54  ;;  %v7201_v57 = vmul.f32 10.0, %v2181_v0  ;;  %v2183_v21 = vpop.f32.mrb[111].mxu1 }
 0x64e   : > { %9464 = vst [vmem:[#allocation11_spill] sm:$0xff] %v7199_v25  ;;  %v2364_v31 = vmax.f32 %v7197_v54, %v7199_v25  ;;  %v7205_v12 = vmul.f32 10.0, %v2183_v21 }
 0x64f   : > { %9465 = vst [vmem:[#allocation13_spill] sm:$0xff] %v7201_v57 }
 0x650   : > { %9466 = vst [vmem:[#allocation12_spill] sm:$0xff] %v7205_v12  ;;  %v2367_v37 = vmax.f32 %v7201_v57, %v7205_v12  ;;  %2365 = vmax.xlane.f32.xlu0 %v2364_v31 }
 0x652   : > { %2368 = vmax.xlane.f32.xlu1 %v2367_v37  ;;  %v2187_v32 = vpop.f32.mrb[112].mxu1 }
 0x653   : > { %v7209_v38 = vmul.f32 10.0, %v2187_v32  ;;  %v2189_v51 = vpop.f32.mrb[113].mxu1 }
 0x654   : > { %v7211_v44 = vmul.f32 10.0, %v2189_v51  ;;  %v2191_v2 = vpop.f32.mrb[114].mxu1 }
 0x655   : > { %9467 = vst [vmem:[#allocation14_spill] sm:$0xff] %v7209_v38  ;;  %v7213_v0 = vmul.f32 10.0, %v2191_v2  ;;  %v2193_v23 = vpop.f32.mrb[115].mxu1 }
 0x656   : > { %9468 = vst [vmem:[#allocation44_spill] sm:$0xff] %v7211_v44  ;;  %v2370_v30 = vmax.f32 %v7209_v38, %v7211_v44  ;;  %v7217_v21 = vmul.f32 10.0, %v2193_v23 }
 0x657   : > { %9469 = vst [vmem:[#allocation45_spill] sm:$0xff] %v7213_v0 }
 0x658   : > { %9470 = vst [vmem:[#allocation42_spill] sm:$0xff] %v7217_v21  ;;  %v2373_v42 = vmax.f32 %v7213_v0, %v7217_v21  ;;  %2371 = vmax.xlane.f32.xlu0 %v2370_v30 }
 0x65a   : > { %2374 = vmax.xlane.f32.xlu1 %v2373_v42  ;;  %v2197_v31 = vpop.f32.mrb[116].mxu1 }
 0x65b   : > { %v7221_v37 = vmul.f32 10.0, %v2197_v31  ;;  %v2199_v32 = vpop.f32.mrb[117].mxu1 }
 0x65c   : > { %v7223_v51 = vmul.f32 10.0, %v2199_v32  ;;  %v2201_v61 = vpop.f32.mrb[118].mxu1 }
 0x65d   : > { %9471 = vst [vmem:[#allocation61_spill] sm:$0xff] %v7221_v37  ;;  %v7225_v2 = vmul.f32 10.0, %v2201_v61  ;;  %v2203_v4 = vpop.f32.mrb[119].mxu1 }
 0x65e   : > { %9472 = vst [vmem:[#allocation47_spill] sm:$0xff] %v7223_v51  ;;  %v2376_v34 = vmax.f32 %v7221_v37, %v7223_v51  ;;  %v7229_v23 = vmul.f32 10.0, %v2203_v4 }
 0x65f   : > { %9473 = vst [vmem:[#allocation64_spill] sm:$0xff] %v7225_v2 }
 0x660   : > { %9474 = vst [vmem:[#allocation63_spill] sm:$0xff] %v7229_v23  ;;  %v2379_v6 = vmax.f32 %v7225_v2, %v7229_v23  ;;  %2377 = vmax.xlane.f32.xlu0 %v2376_v34  ;;  %v5003_v2 = vld [vmem:[%s9095_s1 + $0x90] sm:$0xff]  }
 0x661   : > { %4867 = vmatmul.mubr.msk.bf16.gmra.mrb[72].mxu0 %vm377_vm1, %v5003_v2 }
 0x662   : > { %2380 = vmax.xlane.f32.xlu1 %v2379_v6  ;;  %v2207_v42 = vpop.f32.mrb[120].mxu1  ;;  %679 = vmatprep.mubr.bf16.mxu0 %v9453_v18 }
 0x663   : > { %v2209_v30 = vpop.f32.mrb[121].mxu1 }
 0x664   : > { %v2211_v31 = vpop.f32.mrb[122].mxu1 }
 0x665   : > { %v2213_v45 = vpop.f32.mrb[123].mxu1 }
 0x66a   : > { %v7233_v32 = vpop.f32.mrb[124].mxu1 }
 0x66b   : > { %v7235_v10 = vpop.f32.mrb[125].mxu1 }
 0x66c   : > { %v7237_v61 = vpop.f32.mrb[126].mxu1 }
 0x66d   : > { %v7239_v9 = vpop.f32.mrb[127].mxu1 }
 0x672   : > { %v7241_v35 = vpop.f32.mrb[128].mxu1 }
 0x673   : > { %v7243_v4 = vpop.f32.mrb[129].mxu1 }
 0x674   : > { %v7245_v11 = vpop.f32.mrb[130].mxu1 }
 0x675   : > { %v7247_v34 = vpop.f32.mrb[131].mxu1 }
 0x67a   : > { %v7249_v6 = vpop.f32.mrb[132].mxu1 }
 0x67b   : > { %v7251_v52 = vpop.f32.mrb[133].mxu1 }
 0x67c   : > { %v7253_v7 = vpop.f32.mrb[134].mxu1 }
 0x67d   : > { %v7255_v23 = vpop.f32.mrb[135].mxu1 }
 0x695   : > { %v2312_v51 = vpop.xlane.xlu0 %2311 }
 0x696   : > { %v2406_v37 = vsub.f32 %v7089_v36, %v2312_v51  ;;  %v2407_v21 = vsub.f32 %v7091_v8, %v2312_v51 }
 0x697   : > { %v2315_v0 = vpop.xlane.xlu1 %2314 }
 0x698   : > { %v2470_v44 = vmul.f32 1.442695, %v2406_v37  ;;  %v2472_v38 = vmul.f32 1.442695, %v2407_v21  ;;  %v2408_v12 = vsub.f32 %v7093_v1, %v2315_v0  ;;  %v2409_v57 = vsub.f32 %v7097_v33, %v2315_v0 }
 0x69a   : > { %5233 = vpow2.f32 %v2470_v44  ;;  %v2474_v25 = vmul.f32 1.442695, %v2408_v12  ;;  %v2476_v54 = vmul.f32 1.442695, %v2409_v57  ;;  %v7270_v57 = vmul.f32 10.0, %v2207_v42 }
 0x69b   : > { %5235 = vpow2.f32 %v2472_v38 }
 0x69c   : > { %5237 = vpow2.f32 %v2474_v25  ;;  %v7272_v25 = vmul.f32 10.0, %v2209_v30 }
 0x69d   : > { %5239 = vpow2.f32 %v2476_v54  ;;  %v2318_v2 = vpop.xlane.xlu0 %2317 }
 0x69e   : > { %v2410_v18 = vsub.f32 %v7101_v22, %v2318_v2  ;;  %v2411_v36 = vsub.f32 %v7103_v17, %v2318_v2  ;;  %v2382_v38 = vmax.f32 %v7270_v57, %v7272_v25 }
 0x69f   : > { %v2321_v15 = vpop.xlane.xlu1 %2320 }
 0x6a0   : > { %v2478_v8 = vmul.f32 1.442695, %v2410_v18  ;;  %v2480_v51 = vmul.f32 1.442695, %v2411_v36  ;;  %v2412_v21 = vsub.f32 %v7105_v49, %v2321_v15  ;;  %v2413_v1 = vsub.f32 %v7109_v55, %v2321_v15 }
 0x6a1   : > { %v7290_v36 = vmul.f32 10.0, %v2211_v31 }
 0x6a2   : > { %5241 = vpow2.f32 %v2478_v8  ;;  %v2482_v33 = vmul.f32 1.442695, %v2412_v21  ;;  %v2484_v44 = vmul.f32 1.442695, %v2413_v1  ;;  %v7297_v21 = vmul.f32 10.0, %v7233_v32 }
 0x6a3   : > { %5243 = vpow2.f32 %v2480_v51 }
 0x6a4   : > { %v7274_v54 = vpop.eup %5233  ;;  %5245 = vpow2.f32 %v2482_v33 }
 0x6a5   : > { %v7276_v22 = vpop.eup %5235  ;;  %5247 = vpow2.f32 %v2484_v44  ;;  %v2324_v18 = vpop.xlane.xlu0 %2323 }
 0x6a6   : > { %v7278_v17 = vpop.eup %5237  ;;  %v2414_v49 = vsub.f32 %v7113_v46, %v2324_v18  ;;  %v2415_v55 = vsub.f32 %v7115_v14, %v2324_v18  ;;  %v2598_v15 = vadd.f32 %v7276_v22, %v7274_v54  ;;  %v7292_v46 = vmul.f32 10.0, %v2213_v45 }
 0x6a7   : > { %v7284_v12 = vpop.eup %5239  ;;  %v2327_v0 = vpop.xlane.xlu1 %2326 }
 0x6a8   : > { %v2486_v37 = vmul.f32 1.442695, %v2414_v49  ;;  %v2488_v42 = vmul.f32 1.442695, %v2415_v55  ;;  %v2416_v30 = vsub.f32 %v7117_v56, %v2327_v0  ;;  %v2417_v2 = vsub.f32 %v7121_v40, %v2327_v0  ;;  %2599 = vadd.xlane.f32.xlu0 %v2598_v15 }
 0x6a9   : > { %v2601_v14 = vadd.f32 %v7284_v12, %v7278_v17  ;;  %v7300_v56 = vmul.f32 10.0, %v7235_v10  ;;  %v2385_v31 = vmax.f32 %v7290_v36, %v7292_v46  ;;  %v7319_v15 = vmul.f32 10.0, %v7237_v61 }
 0x6aa   : > { %5249 = vpow2.f32 %v2486_v37  ;;  %v2490_v8 = vmul.f32 1.442695, %v2416_v30  ;;  %v2492_v51 = vmul.f32 1.442695, %v2417_v2 }
 0x6ab   : > { %5251 = vpow2.f32 %v2488_v42  ;;  %2602 = vadd.xlane.f32.xlu1 %v2601_v14  ;;  %v2388_v49 = vmax.f32 %v7297_v21, %v7300_v56  ;;  %v7334_v14 = vmul.f32 10.0, %v7243_v4 }
 0x6ac   : > { %v7302_v40 = vpop.eup %5241  ;;  %5253 = vpow2.f32 %v2490_v8  ;;  %2383 = vmax.xlane.f32.xlu0 %v2382_v38  ;;  %v7322_v38 = vmul.f32 10.0, %v7239_v9  ;;  %v7331_v9 = vmul.f32 10.0, %v7241_v35 }
 0x6ad   : > { %v7304_v45 = vpop.eup %5243  ;;  %5255 = vpow2.f32 %v2492_v51  ;;  %v2330_v1 = vpop.xlane.xlu0 %2329 }
 0x6ae   : > { %v7308_v33 = vpop.eup %5245  ;;  %v2418_v44 = vsub.f32 %v7125_v59, %v2330_v1  ;;  %v2419_v32 = vsub.f32 %v7127_v63, %v2330_v1  ;;  %v2604_v10 = vadd.f32 %v7304_v45, %v7302_v40  ;;  %v2391_v61 = vmax.f32 %v7319_v15, %v7322_v38 }
 0x6af   : > { %v7314_v18 = vpop.eup %5247  ;;  %2386 = vmax.xlane.f32.xlu1 %v2385_v31  ;;  %v2333_v55 = vpop.xlane.xlu1 %2332  ;;  %v2394_v4 = vmax.f32 %v7331_v9, %v7334_v14 }
 0x6b0   : > { %v2494_v0 = vmul.f32 1.442695, %v2418_v44  ;;  %v2496_v59 = vmul.f32 1.442695, %v2419_v32  ;;  %v2420_v63 = vsub.f32 %v7129_v24, %v2333_v55  ;;  %v2421_v37 = vsub.f32 %v7133_v53, %v2333_v55  ;;  %2605 = vadd.xlane.f32.xlu0 %v2604_v10 }
 0x6b1   : > { %v2607_v42 = vadd.f32 %v7314_v18, %v7308_v33  ;;  %v7351_v10 = vmul.f32 10.0, %v7245_v11 }
 0x6b2   : > { %5257 = vpow2.f32 %v2494_v0  ;;  %v2498_v30 = vmul.f32 1.442695, %v2420_v63  ;;  %v2500_v2 = vmul.f32 1.442695, %v2421_v37 }
 0x6b3   : > { %5259 = vpow2.f32 %v2496_v59  ;;  %2608 = vadd.xlane.f32.xlu1 %v2607_v42  ;;  %v7366_v42 = vmul.f32 10.0, %v7251_v52 }
 0x6b4   : > { %v7336_v24 = vpop.eup %5249  ;;  %5261 = vpow2.f32 %v2498_v30  ;;  %2389 = vmax.xlane.f32.xlu0 %v2388_v49  ;;  %v7354_v49 = vmul.f32 10.0, %v7247_v34  ;;  %v7363_v34 = vmul.f32 10.0, %v7249_v6 }
 0x6b5   : > { %v7338_v53 = vpop.eup %5251  ;;  %5263 = vpow2.f32 %v2500_v2  ;;  %v2336_v8 = vpop.xlane.xlu0 %2335 }
 0x6b6   : > { %v7340_v51 = vpop.eup %5253  ;;  %v2422_v31 = vsub.f32 %v7137_v43, %v2336_v8  ;;  %v2423_v1 = vsub.f32 %v7139_v20, %v2336_v8  ;;  %v2610_v35 = vadd.f32 %v7338_v53, %v7336_v24  ;;  %v2397_v11 = vmax.f32 %v7351_v10, %v7354_v49 }
 0x6b7   : > { %v7346_v44 = vpop.eup %5255  ;;  %2392 = vmax.xlane.f32.xlu1 %v2391_v61  ;;  %v2339_v32 = vpop.xlane.xlu1 %2338  ;;  %v2400_v52 = vmax.f32 %v7363_v34, %v7366_v42 }
 0x6b8   : > { %v2502_v55 = vmul.f32 1.442695, %v2422_v31  ;;  %v2504_v43 = vmul.f32 1.442695, %v2423_v1  ;;  %v2424_v20 = vsub.f32 %v7141_v3, %v2339_v32  ;;  %v2425_v0 = vsub.f32 %v7145_v48, %v2339_v32  ;;  %2611 = vadd.xlane.f32.xlu0 %v2610_v35 }
 0x6b9   : > { %v2613_v59 = vadd.f32 %v7346_v44, %v7340_v51  ;;  %v7383_v35 = vmul.f32 10.0, %v7253_v7 }
 0x6ba   : > { %5265 = vpow2.f32 %v2502_v55  ;;  %v2506_v63 = vmul.f32 1.442695, %v2424_v20  ;;  %v2508_v37 = vmul.f32 1.442695, %v2425_v0 }
 0x6bb   : > { %5267 = vpow2.f32 %v2504_v43  ;;  %2614 = vadd.xlane.f32.xlu1 %v2613_v59 }
 0x6bc   : > { %v7368_v3 = vpop.eup %5257  ;;  %5269 = vpow2.f32 %v2506_v63  ;;  %2395 = vmax.xlane.f32.xlu0 %v2394_v4  ;;  %v7386_v4 = vmul.f32 10.0, %v7255_v23 }
 0x6bd   : > { %v7370_v48 = vpop.eup %5259  ;;  %5271 = vpow2.f32 %v2508_v37  ;;  %v2342_v30 = vpop.xlane.xlu0 %2341 }
 0x6be   : > { %v7372_v2 = vpop.eup %5261  ;;  %v2426_v61 = vsub.f32 %v7149_v47, %v2342_v30  ;;  %v2427_v8 = vsub.f32 %v7151_v19, %v2342_v30  ;;  %v2616_v6 = vadd.f32 %v7370_v48, %v7368_v3  ;;  %v2403_v7 = vmax.f32 %v7383_v35, %v7386_v4 }
 0x6bf   : > { %v7378_v31 = vpop.eup %5263  ;;  %2398 = vmax.xlane.f32.xlu1 %v2397_v11  ;;  %v2345_v1 = vpop.xlane.xlu1 %2344 }
 0x6c0   : > { %v2510_v32 = vmul.f32 1.442695, %v2426_v61  ;;  %v2512_v47 = vmul.f32 1.442695, %v2427_v8  ;;  %v2428_v19 = vsub.f32 %v7153_v28, %v2345_v1  ;;  %v2429_v55 = vsub.f32 %v7157_v39, %v2345_v1  ;;  %2617 = vadd.xlane.f32.xlu0 %v2616_v6 }
 0x6c1   : > { %v2619_v43 = vadd.f32 %v7378_v31, %v7372_v2 }
 0x6c2   : > { %5273 = vpow2.f32 %v2510_v32  ;;  %v2514_v20 = vmul.f32 1.442695, %v2428_v19  ;;  %v2516_v0 = vmul.f32 1.442695, %v2429_v55 }
 0x6c3   : > { %5275 = vpow2.f32 %v2512_v47  ;;  %2620 = vadd.xlane.f32.xlu1 %v2619_v43 }
 0x6c4   : > { %v7394_v23 = vpop.eup %5265  ;;  %5277 = vpow2.f32 %v2514_v20  ;;  %2401 = vmax.xlane.f32.xlu0 %v2400_v52 }
 0x6c5   : > { %v7396_v59 = vpop.eup %5267  ;;  %5279 = vpow2.f32 %v2516_v0  ;;  %v2348_v28 = vpop.xlane.xlu0 %2347 }
 0x6c6   : > { %v7398_v39 = vpop.eup %5269  ;;  %v2430_v63 = vsub.f32 %v7161_v62, %v2348_v28  ;;  %v2431_v37 = vsub.f32 %v7163_v29, %v2348_v28  ;;  %v2622_v11 = vadd.f32 %v7396_v59, %v7394_v23 }
 0x6c7   : > { %v7404_v30 = vpop.eup %5271  ;;  %2404 = vmax.xlane.f32.xlu1 %v2403_v7  ;;  %v2351_v61 = vpop.xlane.xlu1 %2350 }
 0x6c8   : > { %v2518_v8 = vmul.f32 1.442695, %v2430_v63  ;;  %v2520_v6 = vmul.f32 1.442695, %v2431_v37  ;;  %v2432_v52 = vsub.f32 %v7165_v41, %v2351_v61  ;;  %v2433_v1 = vsub.f32 %v7169_v26, %v2351_v61  ;;  %2623 = vadd.xlane.f32.xlu0 %v2622_v11 }
 0x6c9   : > { %v2625_v32 = vadd.f32 %v7404_v30, %v7398_v39 }
 0x6ca   : > { %5281 = vpow2.f32 %v2518_v8  ;;  %v2522_v62 = vmul.f32 1.442695, %v2432_v52  ;;  %v2524_v29 = vmul.f32 1.442695, %v2433_v1 }
 0x6cb   : > { %5283 = vpow2.f32 %v2520_v6  ;;  %2626 = vadd.xlane.f32.xlu1 %v2625_v32 }
 0x6cc   : > { %v7410_v47 = vpop.eup %5273  ;;  %5285 = vpow2.f32 %v2522_v62 }
 0x6cd   : > { %v7412_v19 = vpop.eup %5275  ;;  %5287 = vpow2.f32 %v2524_v29  ;;  %v2354_v55 = vpop.xlane.xlu0 %2353 }
 0x6ce   : > { %v7414_v43 = vpop.eup %5277  ;;  %v2434_v41 = vsub.f32 %v7173_v50, %v2354_v55  ;;  %v2435_v26 = vsub.f32 %v7175_v60, %v2354_v55  ;;  %v2628_v20 = vadd.f32 %v7412_v19, %v7410_v47 }
 0x6cf   : > { %v7420_v0 = vpop.eup %5279  ;;  %v2357_v7 = vpop.xlane.xlu1 %2356 }
 0x6d0   : > { %v2526_v28 = vmul.f32 1.442695, %v2434_v41  ;;  %v2528_v63 = vmul.f32 1.442695, %v2435_v26  ;;  %v2436_v37 = vsub.f32 %v7177_v13, %v2357_v7  ;;  %v2437_v11 = vsub.f32 %v7181_v58, %v2357_v7  ;;  %2629 = vadd.xlane.f32.xlu0 %v2628_v20  ;;  %v9475_v20 = vld [vmem:[#allocation6_spill] sm:$0xff] }
 0x6d1   : > { %v2631_v61 = vadd.f32 %v7420_v0, %v7414_v43 }
 0x6d2   : > { %5289 = vpow2.f32 %v2526_v28  ;;  %v2530_v50 = vmul.f32 1.442695, %v2436_v37  ;;  %v2532_v8 = vmul.f32 1.442695, %v2437_v11 }
 0x6d3   : > { %5291 = vpow2.f32 %v2528_v63  ;;  %2632 = vadd.xlane.f32.xlu1 %v2631_v61 }
 0x6d4   : > { %v7426_v60 = vpop.eup %5281  ;;  %5293 = vpow2.f32 %v2530_v50 }
 0x6d5   : > { %v7428_v6 = vpop.eup %5283  ;;  %5295 = vpow2.f32 %v2532_v8  ;;  %v2360_v52 = vpop.xlane.xlu0 %2359  ;;  %v9479_v8 = vld [vmem:[#allocation11_spill] sm:$0xff] }
 0x6d6   : > { %v7430_v1 = vpop.eup %5285  ;;  %v2438_v13 = vsub.f32 %v7185_v16, %v2360_v52  ;;  %v2439_v58 = vsub.f32 %v7187_v27, %v2360_v52  ;;  %v2634_v32 = vadd.f32 %v7428_v6, %v7426_v60 }
 0x6d7   : > { %v7436_v62 = vpop.eup %5287  ;;  %v2363_v29 = vpop.xlane.xlu1 %2362 }
 0x6d8   : > { %v2534_v55 = vmul.f32 1.442695, %v2438_v13  ;;  %v2536_v41 = vmul.f32 1.442695, %v2439_v58  ;;  %v2440_v26 = vsub.f32 %v7189_v5, %v2363_v29  ;;  %v2441_v7 = vsub.f32 %v9475_v20, %v2363_v29  ;;  %2635 = vadd.xlane.f32.xlu0 %v2634_v32  ;;  %v9478_v5 = vld [vmem:[#allocation8_spill] sm:$0xff] }
 0x6d9   : > { %v2637_v28 = vadd.f32 %v7436_v62, %v7430_v1  ;;  %v9482_v20 = vld [vmem:[#allocation12_spill] sm:$0xff] }
 0x6da   : > { %5297 = vpow2.f32 %v2534_v55  ;;  %v2538_v16 = vmul.f32 1.442695, %v2440_v26  ;;  %v2540_v63 = vmul.f32 1.442695, %v2441_v7 }
 0x6db   : > { %5299 = vpow2.f32 %v2536_v41  ;;  %2638 = vadd.xlane.f32.xlu1 %v2637_v28  ;;  %v9481_v41 = vld [vmem:[#allocation13_spill] sm:$0xff] }
 0x6dc   : > { %v7442_v27 = vpop.eup %5289  ;;  %5301 = vpow2.f32 %v2538_v16 }
 0x6dd   : > { %9476 = vst [vmem:[#allocation48_spill] sm:$0xff] %v7442_v27  ;;  %v7444_v37 = vpop.eup %5291  ;;  %5303 = vpow2.f32 %v2540_v63  ;;  %v2366_v11 = vpop.xlane.xlu0 %2365 }
 0x6de   : > { %v7446_v61 = vpop.eup %5293  ;;  %v2442_v50 = vsub.f32 %v9478_v5, %v2366_v11  ;;  %v2443_v52 = vsub.f32 %v9479_v8, %v2366_v11  ;;  %v2640_v13 = vadd.f32 %v7444_v37, %v7442_v27  ;;  %v9489_v27 = vld [vmem:[#allocation42_spill] sm:$0xff] }
 0x6df   : > { %9477 = vst [vmem:[#allocation6_spill] sm:$0xff] %v7446_v61  ;;  %v7452_v58 = vpop.eup %5295  ;;  %v2369_v32 = vpop.xlane.xlu1 %2368 }
 0x6e0   : > { %9480 = vst [vmem:[#allocation8_spill] sm:$0xff] %v7452_v58  ;;  %v2542_v29 = vmul.f32 1.442695, %v2442_v50  ;;  %v2544_v55 = vmul.f32 1.442695, %v2443_v52  ;;  %v2444_v26 = vsub.f32 %v9481_v41, %v2369_v32  ;;  %v2445_v7 = vsub.f32 %v9482_v20, %v2369_v32  ;;  %2641 = vadd.xlane.f32.xlu0 %v2640_v13  ;;  %v9485_v52 = vld [vmem:[#allocation14_spill] sm:$0xff] }
 0x6e1   : > { %v2643_v28 = vadd.f32 %v7452_v58, %v7446_v61  ;;  %v9486_v13 = vld [vmem:[#allocation44_spill] sm:$0xff] }
 0x6e2   : > { %5305 = vpow2.f32 %v2542_v29  ;;  %v2546_v16 = vmul.f32 1.442695, %v2444_v26  ;;  %v2548_v63 = vmul.f32 1.442695, %v2445_v7 }
 0x6e3   : > { %5307 = vpow2.f32 %v2544_v55  ;;  %2644 = vadd.xlane.f32.xlu1 %v2643_v28  ;;  %v9488_v28 = vld [vmem:[#allocation45_spill] sm:$0xff] }
 0x6e4   : > { %v7458_v11 = vpop.eup %5297  ;;  %5309 = vpow2.f32 %v2546_v16 }
 0x6e5   : > { %9483 = vst [vmem:[#allocation11_spill] sm:$0xff] %v7458_v11  ;;  %v7460_v5 = vpop.eup %5299  ;;  %5311 = vpow2.f32 %v2548_v63  ;;  %v2372_v50 = vpop.xlane.xlu0 %2371 }
 0x6e6   : > { %v7462_v8 = vpop.eup %5301  ;;  %v2446_v32 = vsub.f32 %v9485_v52, %v2372_v50  ;;  %v2447_v41 = vsub.f32 %v9486_v13, %v2372_v50  ;;  %v2646_v29 = vadd.f32 %v7460_v5, %v7458_v11  ;;  %v5004_v50 = vld [vmem:[%s9095_s1 + $0x98] sm:$0xff]  }
 0x6e7   : > { %9484 = vst [vmem:[#allocation13_spill] sm:$0xff] %v7462_v8  ;;  %v7468_v26 = vpop.eup %5303  ;;  %v2375_v55 = vpop.xlane.xlu1 %2374  ;;  %4868 = vmatmul.mubr.msk.bf16.gmra.mrb[76].mxu0 %vm377_vm1, %v5004_v50 }
 0x6e8   : > { %9487 = vst [vmem:[#allocation12_spill] sm:$0xff] %v7468_v26  ;;  %v2550_v20 = vmul.f32 1.442695, %v2446_v32  ;;  %v2552_v7 = vmul.f32 1.442695, %v2447_v41  ;;  %v2448_v16 = vsub.f32 %v9488_v28, %v2375_v55  ;;  %v2449_v61 = vsub.f32 %v9489_v27, %v2375_v55  ;;  %2647 = vadd.xlane.f32.xlu0 %v2646_v29  ;;  %v9492_v29 = vld [vmem:[#allocation61_spill] sm:$0xff] }
 0x6e9   : > { %v2649_v63 = vadd.f32 %v7468_v26, %v7462_v8  ;;  %v9494_v28 = vmov 0   ;;  %v9496_v26 = vld [vmem:[#allocation63_spill] sm:$0xff] }
 0x6ea   : > { %5313 = vpow2.f32 %v2550_v20  ;;  %v2554_v52 = vmul.f32 1.442695, %v2448_v16  ;;  %v2556_v58 = vmul.f32 1.442695, %v2449_v61  ;;  %v9493_v61 = vld [vmem:[#allocation47_spill] sm:$0xff]  ;;  %689 = vmatprep.mubr.bf16.mxu0 %v9494_v28 }
 0x6eb   : > { %5315 = vpow2.f32 %v2552_v7  ;;  %2650 = vadd.xlane.f32.xlu1 %v2649_v63 }
 0x6ec   : > { %v7477_v13 = vpop.eup %5305  ;;  %5317 = vpow2.f32 %v2554_v52 }
 0x6ed   : > { %9490 = vst [vmem:[#allocation14_spill] sm:$0xff] %v7477_v13  ;;  %v7479_v32 = vpop.eup %5307  ;;  %5319 = vpow2.f32 %v2556_v58  ;;  %v2378_v27 = vpop.xlane.xlu0 %2377  ;;  %v9495_v58 = vld [vmem:[#allocation64_spill] sm:$0xff] }
 0x6ee   : > { %9491 = vst [vmem:[#allocation44_spill] sm:$0xff] %v7479_v32  ;;  %v7482_v41 = vpop.eup %5309  ;;  %v2450_v55 = vsub.f32 %v9492_v29, %v2378_v27  ;;  %v2451_v20 = vsub.f32 %v9493_v61, %v2378_v27  ;;  %v2652_v7 = vadd.f32 %v7479_v32, %v7477_v13 }
 0x6ef   : > { %v7489_v16 = vpop.eup %5311  ;;  %v2381_v63 = vpop.xlane.xlu1 %2380 }
 0x6f0   : > { %v2558_v52 = vmul.f32 1.442695, %v2450_v55  ;;  %v2560_v11 = vmul.f32 1.442695, %v2451_v20  ;;  %v2452_v8 = vsub.f32 %v9495_v58, %v2381_v63  ;;  %v2453_v50 = vsub.f32 %v9496_v26, %v2381_v63  ;;  %2653 = vadd.xlane.f32.xlu0 %v2652_v7 }
 0x6f1   : > { %v2655_v29 = vadd.f32 %v7489_v16, %v7482_v41 }
 0x6f2   : > { %5321 = vpow2.f32 %v2558_v52  ;;  %v2562_v27 = vmul.f32 1.442695, %v2452_v8  ;;  %v2564_v61 = vmul.f32 1.442695, %v2453_v50 }
 0x6f3   : > { %5323 = vpow2.f32 %v2560_v11  ;;  %2656 = vadd.xlane.f32.xlu1 %v2655_v29  ;;  %v9504_v29 = vld [vmem:[#allocation21_spill] sm:$0xff] }
 0x6f4   : > { %v7495_v13 = vpop.eup %5313  ;;  %5325 = vpow2.f32 %v2562_v27  ;;  %v9505_v27 = vld [vmem:[#allocation22_spill] sm:$0xff] }
 0x6f5   : > { %9497 = vst [vmem:[#allocation45_spill] sm:$0xff] %v7495_v13  ;;  %v7497_v32 = vpop.eup %5315  ;;  %5327 = vpow2.f32 %v2564_v61 }
 0x6f6   : > { %v7499_v55 = vpop.eup %5317  ;;  %v2658_v26 = vadd.f32 %v7497_v32, %v7495_v13 }
 0x6f7   : > { %9498 = vst [vmem:[#allocation42_spill] sm:$0xff] %v7499_v55  ;;  %v7503_v20 = vpop.eup %5319 }
 0x6f8   : > { %9499 = vst [vmem:[#allocation61_spill] sm:$0xff] %v7503_v20  ;;  %2659 = vadd.xlane.f32.xlu0 %v2658_v26  ;;  %v2661_v8 = vadd.f32 %v7503_v20, %v7499_v55 }
 0x6fa   : > { %2662 = vadd.xlane.f32.xlu1 %v2661_v8 }
 0x6fc   : > { %v7507_v11 = vpop.eup %5321 }
 0x6fd   : > { %9500 = vst [vmem:[#allocation47_spill] sm:$0xff] %v7507_v11  ;;  %v7509_v7 = vpop.eup %5323 }
 0x6fe   : > { %9501 = vst [vmem:[#allocation64_spill] sm:$0xff] %v7509_v7  ;;  %v7511_v63 = vpop.eup %5325  ;;  %v2664_v52 = vadd.f32 %v7509_v7, %v7507_v11 }
 0x6ff   : > { %9502 = vst [vmem:[#allocation63_spill] sm:$0xff] %v7511_v63  ;;  %v7515_v58 = vpop.eup %5327 }
 0x700   : > { %9503 = vst [vmem:[#allocation75_spill] sm:$0xff] %v7515_v58  ;;  %2665 = vadd.xlane.f32.xlu0 %v2664_v52  ;;  %v2667_v50 = vadd.f32 %v7515_v58, %v7511_v63 }
 0x702   : > { %2668 = vadd.xlane.f32.xlu1 %v2667_v50 }
 0x704   : > { %787 = vadd.xlane.f32.xlu0 %v9504_v29 }
 0x706   : > { %790 = vadd.xlane.f32.xlu1 %v9505_v27 }
 0x735   : > { %v2600_v61 = vpop.xlane.xlu0 %2599 }
 0x736   : > { %5329 = vrcp.f32 %v2600_v61 }
 0x738   : > { %v2603_v26 = vpop.xlane.xlu1 %2602 }
 0x739   : > { %5331 = vrcp.f32 %v2603_v26  ;;  %v2384_v8 = vpop.xlane.xlu0 %2383 }
 0x73a   : > { %v2454_v13 = vsub.f32 %v7270_v57, %v2384_v8  ;;  %v2455_v11 = vsub.f32 %v7272_v25, %v2384_v8 }
 0x73c   : > { %v2566_v7 = vmul.f32 1.442695, %v2454_v13  ;;  %v2568_v55 = vmul.f32 1.442695, %v2455_v11  ;;  %v2387_v52 = vpop.xlane.xlu1 %2386 }
 0x73d   : > { %v2456_v20 = vsub.f32 %v7290_v36, %v2387_v52  ;;  %v2457_v50 = vsub.f32 %v7292_v46, %v2387_v52  ;;  %v2606_v63 = vpop.xlane.xlu0 %2605 }
 0x73e   : > { %5333 = vpow2.f32 %v2566_v7 }
 0x73f   : > { %5335 = vpow2.f32 %v2568_v55  ;;  %v2570_v29 = vmul.f32 1.442695, %v2456_v20  ;;  %v2572_v27 = vmul.f32 1.442695, %v2457_v50 }
 0x740   : > { %v5330_v61 = vpop.eup %5329  ;;  %5337 = vrcp.f32 %v2606_v63  ;;  %v2609_v26 = vpop.xlane.xlu1 %2608 }
 0x741   : > { %5339 = vpow2.f32 %v2570_v29  ;;  %v2390_v58 = vpop.xlane.xlu0 %2389  ;;  %v2727_v36 = vmul.f32 %v5330_v61, %v7276_v22  ;;  %v2726_v46 = vmul.f32 %v5330_v61, %v7274_v54 }
 0x742   : > { %5341 = vpow2.f32 %v2572_v27  ;;  %v2458_v57 = vsub.f32 %v7297_v21, %v2390_v58  ;;  %v2459_v25 = vsub.f32 %v7300_v56, %v2390_v58 }
 0x743   : > { %v5332_v13 = vpop.eup %5331  ;;  %5343 = vrcp.f32 %v2609_v26 }
 0x744   : > { %v2574_v11 = vmul.f32 1.442695, %v2458_v57  ;;  %v2576_v55 = vmul.f32 1.442695, %v2459_v25  ;;  %v2393_v20 = vpop.xlane.xlu1 %2392  ;;  %v2729_v7 = vmul.f32 %v5332_v13, %v7284_v12  ;;  %v2728_v63 = vmul.f32 %v5332_v13, %v7278_v17 }
 0x745   : > { %v2460_v8 = vsub.f32 %v7319_v15, %v2393_v20  ;;  %v2461_v52 = vsub.f32 %v7322_v38, %v2393_v20  ;;  %v2612_v21 = vpop.xlane.xlu0 %2611 }
 0x746   : > { %5345 = vpow2.f32 %v2574_v11  ;;  %v2791_v56 = vpack.c.bf16 %v2729_v7, %v2727_v36  ;;  %v2790_v58 = vpack.c.bf16 %v2728_v63, %v2726_v46 }
 0x747   : > { %5347 = vpow2.f32 %v2576_v55  ;;  %v2578_v50 = vmul.f32 1.442695, %v2460_v8  ;;  %v2580_v22 = vmul.f32 1.442695, %v2461_v52 }
 0x748   : > { %v7533_v29 = vpop.eup %5333  ;;  %5349 = vrcp.f32 %v2612_v21  ;;  %2822 = vmatprep.subr.bf16.mxu0 %v2791_v56  ;;  %v2615_v54 = vpop.xlane.xlu1 %2614 }
 0x749   : > { %v7535_v27 = vpop.eup %5335  ;;  %5351 = vpow2.f32 %v2578_v50  ;;  %2823 = vmatpush1.bf16.xpose.msra.mxu0 %v2790_v58  ;;  %v2396_v17 = vpop.xlane.xlu0 %2395  ;;  %v9506_v58 = vld [vmem:[#allocation27_spill] sm:$0xff] }
 0x74a   : > { %v5338_v12 = vpop.eup %5337  ;;  %5353 = vpow2.f32 %v2580_v22  ;;  %v2462_v15 = vsub.f32 %v7331_v9, %v2396_v17  ;;  %v2463_v38 = vsub.f32 %v7334_v14, %v2396_v17  ;;  %v2670_v61 = vadd.f32 %v7535_v27, %v7533_v29 }
 0x74b   : > { %v7541_v26 = vpop.eup %5339  ;;  %5355 = vrcp.f32 %v2615_v54  ;;  %v2731_v20 = vmul.f32 %v5338_v12, %v7304_v45  ;;  %v2730_v63 = vmul.f32 %v5338_v12, %v7302_v40  ;;  %v9507_v12 = vld [vmem:[#allocation28_spill] sm:$0xff] }
 0x74c   : > { %v7543_v57 = vpop.eup %5341  ;;  %v2582_v25 = vmul.f32 1.442695, %v2462_v15  ;;  %v2584_v13 = vmul.f32 1.442695, %v2463_v38  ;;  %v2399_v36 = vpop.xlane.xlu1 %2398  ;;  %2671 = vadd.xlane.f32.xlu0 %v2670_v61 }
 0x74d   : > { %v5344_v46 = vpop.eup %5343  ;;  %v2464_v11 = vsub.f32 %v7351_v10, %v2399_v36  ;;  %v2465_v55 = vsub.f32 %v7354_v49, %v2399_v36  ;;  %v2618_v9 = vpop.xlane.xlu0 %2617  ;;  %v2673_v14 = vadd.f32 %v7543_v57, %v7541_v26 }
 0x74e   : > { %5357 = vpow2.f32 %v2582_v25  ;;  %v2733_v7 = vmul.f32 %v5344_v46, %v7314_v18  ;;  %v2732_v8 = vmul.f32 %v5344_v46, %v7308_v33 }
 0x74f   : > { %5359 = vpow2.f32 %v2584_v13  ;;  %v2586_v52 = vmul.f32 1.442695, %v2464_v11  ;;  %v2588_v21 = vmul.f32 1.442695, %v2465_v55  ;;  %2674 = vadd.xlane.f32.xlu1 %v2673_v14 }
 0x750   : > { %v7553_v10 = vpop.eup %5345  ;;  %5361 = vrcp.f32 %v2618_v9  ;;  %v2793_v49 = vpack.c.bf16 %v2733_v7, %v2731_v20  ;;  %v2621_v56 = vpop.xlane.xlu1 %2620  ;;  %793 = vadd.xlane.f32.xlu0 %v9506_v58  ;;  %v2792_v50 = vpack.c.bf16 %v2732_v8, %v2730_v63 }
 0x751   : > { %v7556_v45 = vpop.eup %5347  ;;  %5363 = vpow2.f32 %v2586_v52  ;;  %v2402_v18 = vpop.xlane.xlu0 %2401 }
 0x752   : > { %v5350_v22 = vpop.eup %5349  ;;  %5365 = vpow2.f32 %v2588_v21  ;;  %2824 = vmatprep.subr.bf16.mxu0 %v2793_v49  ;;  %v2466_v40 = vsub.f32 %v7363_v34, %v2402_v18  ;;  %v2467_v33 = vsub.f32 %v7366_v42, %v2402_v18  ;;  %v2676_v54 = vadd.f32 %v7556_v45, %v7553_v10 }
 0x753   : > { %v7562_v17 = vpop.eup %5351  ;;  %5367 = vrcp.f32 %v2621_v56  ;;  %2825 = vmatpush1.bf16.xpose.msra.mxu0 %v2792_v50  ;;  %796 = vadd.xlane.f32.xlu1 %v9507_v12  ;;  %v2735_v11 = vmul.f32 %v5350_v22, %v7338_v53  ;;  %v2734_v9 = vmul.f32 %v5350_v22, %v7336_v24 }
 0x754   : > { %v7565_v15 = vpop.eup %5353  ;;  %v2590_v38 = vmul.f32 1.442695, %v2466_v40  ;;  %v2592_v61 = vmul.f32 1.442695, %v2467_v33  ;;  %2677 = vadd.xlane.f32.xlu0 %v2676_v54  ;;  %v2405_v25 = vpop.xlane.xlu1 %2404 }
 0x755   : > { %v5356_v13 = vpop.eup %5355  ;;  %v2468_v34 = vsub.f32 %v7383_v35, %v2405_v25  ;;  %v2469_v42 = vsub.f32 %v7386_v4, %v2405_v25  ;;  %v2624_v36 = vpop.xlane.xlu0 %2623  ;;  %v2679_v46 = vadd.f32 %v7565_v15, %v7562_v17 }
 0x756   : > { %5369 = vpow2.f32 %v2590_v38  ;;  %v2737_v55 = vmul.f32 %v5356_v13, %v7346_v44  ;;  %v2736_v14 = vmul.f32 %v5356_v13, %v7340_v51 }
 0x757   : > { %5371 = vpow2.f32 %v2592_v61  ;;  %v2594_v20 = vmul.f32 1.442695, %v2468_v34  ;;  %v2596_v7 = vmul.f32 1.442695, %v2469_v42  ;;  %2680 = vadd.xlane.f32.xlu1 %v2679_v46 }
 0x758   : > { %v7575_v35 = vpop.eup %5357  ;;  %5373 = vrcp.f32 %v2624_v36  ;;  %v2795_v4 = vpack.c.bf16 %v2737_v55, %v2735_v11  ;;  %v2627_v63 = vpop.xlane.xlu1 %2626  ;;  %v2794_v8 = vpack.c.bf16 %v2736_v14, %v2734_v9  ;;  %v9508_v11 = vld [vmem:[#allocation54_spill] sm:$0xff] }
 0x759   : > { %v7577_v52 = vpop.eup %5359  ;;  %5375 = vpow2.f32 %v2594_v20 }
 0x75a   : > { %v5362_v53 = vpop.eup %5361  ;;  %5377 = vpow2.f32 %v2596_v7  ;;  %2826 = vmatprep.subr.bf16.mxu0 %v2795_v4  ;;  %v2682_v24 = vadd.f32 %v7577_v52, %v7575_v35  ;;  %v9509_v4 = vld [vmem:[#allocation53_spill] sm:$0xff] }
 0x75b   : > { %v7581_v51 = vpop.eup %5363  ;;  %5379 = vrcp.f32 %v2627_v63  ;;  %2827 = vmatpush1.bf16.xpose.msra.mxu0 %v2794_v8  ;;  %v2739_v58 = vmul.f32 %v5362_v53, %v7370_v48  ;;  %v2738_v18 = vmul.f32 %v5362_v53, %v7368_v3  ;;  %v5005_v63 = vld [vmem:[%s9095_s1 + $0xa0] sm:$0xff]  }
 0x75c   : > { %v7583_v44 = vpop.eup %5365  ;;  %2683 = vadd.xlane.f32.xlu0 %v2682_v24  ;;  %4869 = vmatmul.mubr.msk.bf16.gmra.mrb[80].mxu0 %vm377_vm1, %v5005_v63  ;;  %v7645_v63 = vpop.f32.mrb[72].mxu0 }
 0x75d   : > { %v5368_v21 = vpop.eup %5367  ;;  %v2630_v49 = vpop.xlane.xlu0 %2629  ;;  %v2685_v56 = vadd.f32 %v7583_v44, %v7581_v51  ;;  %699 = vmatprep.mubr.bf16.mxu0 %v9494_v28 }
 0x75e   : > { %v2741_v50 = vmul.f32 %v5368_v21, %v7378_v31  ;;  %v2740_v22 = vmul.f32 %v5368_v21, %v7372_v2  ;;  %5381 = vrcp.f32 %v2630_v49  ;;  %v9511_v21 = vld [vmem:[#allocation68_spill] sm:$0xff] }
 0x75f   : > { %2686 = vadd.xlane.f32.xlu1 %v2685_v56 }
 0x760   : > { %v7591_v40 = vpop.eup %5369  ;;  %v2797_v33 = vpack.c.bf16 %v2741_v50, %v2739_v58  ;;  %v2633_v54 = vpop.xlane.xlu1 %2632  ;;  %v2796_v12 = vpack.c.bf16 %v2740_v22, %v2738_v18  ;;  %v5006_v50 = vld [vmem:[%s9095_s1 + $0xa8] sm:$0xff]  }
 0x761   : > { %v7593_v38 = vpop.eup %5371  ;;  %5383 = vrcp.f32 %v2633_v54 }
 0x762   : > { %v5374_v61 = vpop.eup %5373  ;;  %2828 = vmatprep.subr.bf16.mxu0 %v2797_v33  ;;  %v2688_v48 = vadd.f32 %v7593_v38, %v7591_v40 }
 0x763   : > { %v7597_v31 = vpop.eup %5375  ;;  %2829 = vmatpush1.bf16.xpose.msra.mxu0 %v2796_v12  ;;  %v2743_v34 = vmul.f32 %v5374_v61, %v7396_v59  ;;  %v2742_v36 = vmul.f32 %v5374_v61, %v7394_v23  ;;  %v9510_v59 = vld [vmem:[#allocation59_spill] sm:$0xff]  ;;  %v9512_v61 = vld [vmem:[#allocation8_spill] sm:$0xff] }
 0x764   : > { %v7599_v3 = vpop.eup %5377  ;;  %2689 = vadd.xlane.f32.xlu0 %v2688_v48  ;;  %4870 = vmatmul.mubr.msk.bf16.gmra.mrb[84].mxu0 %vm377_vm1, %v5006_v50 }
 0x765   : > { %v5380_v2 = vpop.eup %5379  ;;  %v2636_v25 = vpop.xlane.xlu0 %2635  ;;  %v2691_v13 = vadd.f32 %v7599_v3, %v7597_v31  ;;  %709 = vmatprep.mubr.bf16.mxu0 %v9494_v28 }
 0x766   : > { %v2745_v42 = vmul.f32 %v5380_v2, %v7404_v30  ;;  %v2744_v46 = vmul.f32 %v5380_v2, %v7398_v39  ;;  %5385 = vrcp.f32 %v2636_v25  ;;  %v9513_v2 = vld [vmem:[#allocation6_spill] sm:$0xff] }
 0x767   : > { %2692 = vadd.xlane.f32.xlu1 %v2691_v13 }
 0x768   : > { %899 = vadd.xlane.f32.xlu0 %v9508_v11  ;;  %v2799_v55 = vpack.c.bf16 %v2745_v42, %v2743_v34  ;;  %v2639_v9 = vpop.xlane.xlu1 %2638  ;;  %v2798_v14 = vpack.c.bf16 %v2744_v46, %v2742_v36  ;;  %v5382_v20 = vpop.eup %5381  ;;  %v9514_v34 = vld [vmem:[#allocation48_spill] sm:$0xff] }
 0x769   : > { %5387 = vrcp.f32 %v2639_v9  ;;  %v2747_v23 = vmul.f32 %v5382_v20, %v7412_v19  ;;  %v2746_v53 = vmul.f32 %v5382_v20, %v7410_v47 }
 0x76a   : > { %2830 = vmatprep.subr.bf16.mxu0 %v2799_v55 }
 0x76b   : > { %v5384_v7 = vpop.eup %5383  ;;  %2831 = vmatpush1.bf16.xpose.msra.mxu0 %v2798_v14  ;;  %902 = vadd.xlane.f32.xlu1 %v9509_v4  ;;  %v9515_v14 = vld [vmem:[#allocation12_spill] sm:$0xff] }
 0x76c   : > { %905 = vadd.xlane.f32.xlu0 %v9510_v59  ;;  %v2749_v39 = vmul.f32 %v5384_v7, %v7420_v0  ;;  %v2748_v30 = vmul.f32 %v5384_v7, %v7414_v43  ;;  %v9516_v7 = vld [vmem:[#allocation13_spill] sm:$0xff]  ;;  %v5008_v59 = vld [vmem:[%s9095_s1 + $0xb8] sm:$0xff]  }
 0x76d   : > { %v2642_v8 = vpop.xlane.xlu0 %2641 }
 0x76e   : > { %v2801_v24 = vpack.c.bf16 %v2749_v39, %v2747_v23  ;;  %5389 = vrcp.f32 %v2642_v8  ;;  %v2800_v49 = vpack.c.bf16 %v2748_v30, %v2746_v53  ;;  %v9517_v39 = vld [vmem:[#allocation11_spill] sm:$0xff]  ;;  %v673_v53 = vpop.f32.mrb[73].mxu0 }
 0x76f   : > { %908 = vadd.xlane.f32.xlu1 %v9511_v21  ;;  %v7648_v21 = vpop.f32.mrb[74].mxu0 }
 0x770   : > { %2832 = vmatprep.subr.bf16.mxu0 %v2801_v24  ;;  %v2645_v19 = vpop.xlane.xlu1 %2644  ;;  %v5386_v0 = vpop.eup %5385 }
 0x771   : > { %5391 = vrcp.f32 %v2645_v19  ;;  %v2751_v56 = vmul.f32 %v5386_v0, %v7428_v6  ;;  %v2750_v22 = vmul.f32 %v5386_v0, %v7426_v60  ;;  %v5007_v60 = vld [vmem:[%s9095_s1 + $0xb0] sm:$0xff]   ;;  %v677_v19 = vpop.f32.mrb[75].mxu0 }
 0x772   : > { %4871 = vmatmul.mubr.msk.bf16.gmra.mrb[88].mxu0 %vm377_vm1, %v5007_v60 }
 0x773   : > { %v5388_v43 = vpop.eup %5387  ;;  %2833 = vmatpush1.bf16.xpose.msra.mxu0 %v2800_v49  ;;  %719 = vmatprep.mubr.bf16.mxu0 %v9494_v28  ;;  %v1054_v49 = vpack.c.bf16 %v7648_v21, %v7645_v63 }
 0x774   : > { %v2753_v58 = vmul.f32 %v5388_v43, %v7436_v62  ;;  %v2752_v47 = vmul.f32 %v5388_v43, %v7430_v1  ;;  %v1055_v43 = vpack.c.bf16 %v677_v19, %v673_v53 }
 0x775   : > { %v2648_v18 = vpop.xlane.xlu0 %2647 }
 0x776   : > { %v2803_v33 = vpack.c.bf16 %v2753_v58, %v2751_v56  ;;  %5393 = vrcp.f32 %v2648_v18  ;;  %v2802_v54 = vpack.c.bf16 %v2752_v47, %v2750_v22  ;;  %v9518_v58 = vld [vmem:[#allocation44_spill] sm:$0xff] }
 0x778   : > { %2834 = vmatprep.subr.bf16.mxu0 %v2803_v33  ;;  %v2651_v6 = vpop.xlane.xlu1 %2650  ;;  %v5390_v12 = vpop.eup %5389  ;;  %v9519_v33 = vld [vmem:[#allocation14_spill] sm:$0xff] }
 0x779   : > { %5395 = vrcp.f32 %v2651_v6  ;;  %v2755_v1 = vmul.f32 %v5390_v12, %v7444_v37  ;;  %v2754_v42 = vmul.f32 %v5390_v12, %v9514_v34 }
 0x77a   : > { %4872 = vmatmul.mubr.msk.bf16.gmra.mrb[92].mxu0 %vm377_vm1, %v5008_v59 }
 0x77b   : > { %v5392_v62 = vpop.eup %5391  ;;  %2835 = vmatpush1.bf16.xpose.msra.mxu0 %v2802_v54  ;;  %2854 = vmatprep.mubr.bf16.mxu0 %v1055_v43 }
 0x77c   : > { %v2757_v48 = vmul.f32 %v5392_v62, %v9512_v61  ;;  %v2756_v25 = vmul.f32 %v5392_v62, %v9513_v2 }
 0x77d   : > { %v2654_v13 = vpop.xlane.xlu0 %2653 }
 0x77e   : > { %v2805_v36 = vpack.c.bf16 %v2757_v48, %v2755_v1  ;;  %5397 = vrcp.f32 %v2654_v13  ;;  %v2804_v46 = vpack.c.bf16 %v2756_v25, %v2754_v42 }
 0x780   : > { %2836 = vmatprep.subr.bf16.mxu0 %v2805_v36  ;;  %v2657_v37 = vpop.xlane.xlu1 %2656  ;;  %v5394_v11 = vpop.eup %5393 }
 0x781   : > { %5399 = vrcp.f32 %v2657_v37  ;;  %v2759_v9 = vmul.f32 %v5394_v11, %v7460_v5  ;;  %v2758_v30 = vmul.f32 %v5394_v11, %v9517_v39  ;;  %v9526_v39 = vld [vmem:[#allocation47_spill] sm:$0xff] }
 0x783   : > { %v5396_v55 = vpop.eup %5395  ;;  %2837 = vmatpush1.bf16.xpose.msra.mxu0 %v2804_v46  ;;  %v9522_v46 = vld [vmem:[#allocation45_spill] sm:$0xff] }
 0x784   : > { %v2761_v20 = vmul.f32 %v5396_v55, %v9515_v14  ;;  %v2760_v4 = vmul.f32 %v5396_v55, %v9516_v7  ;;  %v9523_v14 = vld [vmem:[#allocation64_spill] sm:$0xff]  ;;  %v9524_v7 = vld [vmem:[#allocation75_spill] sm:$0xff] }
 0x785   : > { %v2660_v23 = vpop.xlane.xlu0 %2659 }
 0x786   : > { %5401 = vrcp.f32 %v2660_v23  ;;  %v2807_v8 = vpack.c.bf16 %v2761_v20, %v2759_v9  ;;  %v2806_v5 = vpack.c.bf16 %v2760_v4, %v2758_v30 }
 0x787   : > { %v2663_v24 = vpop.xlane.xlu1 %2662 }
 0x788   : > { %2838 = vmatprep.subr.bf16.mxu0 %v2807_v8  ;;  %5403 = vrcp.f32 %v2663_v24  ;;  %v5398_v0 = vpop.eup %5397 }
 0x789   : > { %v2763_v47 = vmul.f32 %v5398_v0, %v9518_v58  ;;  %v2762_v54 = vmul.f32 %v5398_v0, %v9519_v33  ;;  %v9528_v0 = vld [vmem:[#allocation20_spill] sm:$0xff] }
 0x78b   : > { %v5400_v56 = vpop.eup %5399  ;;  %2839 = vmatpush1.bf16.xpose.msra.mxu0 %v2806_v5  ;;  %v9527_v5 = vld [vmem:[#allocation18_spill] sm:$0xff] }
 0x78c   : > { %v2765_v50 = vmul.f32 %v5400_v56, %v7489_v16  ;;  %v2764_v18 = vmul.f32 %v5400_v56, %v7482_v41  ;;  %v9520_v16 = vld [vmem:[#allocation61_spill] sm:$0xff]  ;;  %v9521_v41 = vld [vmem:[#allocation42_spill] sm:$0xff] }
 0x78d   : > { %v2666_v22 = vpop.xlane.xlu0 %2665  ;;  %v9529_v56 = vld [vmem:[#allocation17_spill] sm:$0xff] }
 0x78e   : > { %5405 = vrcp.f32 %v2666_v22  ;;  %v2809_v6 = vpack.c.bf16 %v2765_v50, %v2763_v47  ;;  %v2808_v62 = vpack.c.bf16 %v2764_v18, %v2762_v54  ;;  %v9530_v47 = vld [vmem:[#allocation19_spill] sm:$0xff] }
 0x78f   : > { %v2669_v12 = vpop.xlane.xlu1 %2668 }
 0x790   : > { %v5402_v1 = vpop.eup %5401  ;;  %2840 = vmatprep.subr.bf16.mxu0 %v2809_v6  ;;  %5407 = vrcp.f32 %v2669_v12 }
 0x791   : > { %v788_v61 = vpop.xlane.xlu0 %787  ;;  %v2767_v60 = vmul.f32 %v5402_v1, %v7497_v32  ;;  %v2766_v37 = vmul.f32 %v5402_v1, %v9522_v46  ;;  %v9525_v32 = vld [vmem:[#allocation63_spill] sm:$0xff] }
 0x792   : > { %v5404_v48 = vpop.eup %5403  ;;  %v818_v2 = vmax.f32 %v788_v61, 1e-24 }
 0x793   : > { %2841 = vmatpush1.bf16.xpose.msra.mxu0 %v2808_v62  ;;  %v791_v25 = vpop.xlane.xlu1 %790  ;;  %v2769_v13 = vmul.f32 %v5404_v48, %v9520_v16  ;;  %v2768_v34 = vmul.f32 %v5404_v48, %v9521_v41 }
 0x794   : > { %5409 = vrsqrt.f32 %v818_v2  ;;  %v819_v42 = vmax.f32 %v791_v25, 1e-24 }
 0x795   : > { %v2811_v36 = vpack.c.bf16 %v2769_v13, %v2767_v60  ;;  %v2810_v11 = vpack.c.bf16 %v2768_v34, %v2766_v37 }
 0x796   : > { %5411 = vrsqrt.f32 %v819_v42 }
 0x797   : > { %2842 = vmatprep.subr.bf16.mxu0 %v2811_v36 }
 0x798   : > { %v5406_v55 = vpop.eup %5405 }
 0x799   : > { %v2771_v20 = vmul.f32 %v5406_v55, %v9523_v14  ;;  %v2770_v30 = vmul.f32 %v5406_v55, %v9526_v39 }
 0x79a   : > { %v5408_v9 = vpop.eup %5407 }
 0x79b   : > { %2843 = vmatpush1.bf16.xpose.msra.mxu0 %v2810_v11  ;;  %v2773_v4 = vmul.f32 %v5408_v9, %v9524_v7  ;;  %v2772_v59 = vmul.f32 %v5408_v9, %v9525_v32 }
 0x79d   : > { %v2813_v23 = vpack.c.bf16 %v2773_v4, %v2771_v20  ;;  %v2812_v53 = vpack.c.bf16 %v2772_v59, %v2770_v30  ;;  %v9531_v59 = vld [vmem:[#allocation24_spill] sm:$0xff] }
 0x79e   : > { %v5410_v8 = vpop.eup %5409 }
 0x79f   : > { %2844 = vmatprep.subr.bf16.mxu0 %v2813_v23  ;;  %v971_v19 = vmul.f32 %v5410_v8, %v9527_v5  ;;  %v970_v58 = vmul.f32 %v5410_v8, %v9529_v56 }
 0x7a0   : > { %v5412_v24 = vpop.eup %5411 }
 0x7a1   : > { %v973_v43 = vmul.f32 %v5412_v24, %v9528_v0  ;;  %v972_v50 = vmul.f32 %v5412_v24, %v9530_v47 }
 0x7a3   : > { %2845 = vmatpush1.bf16.xpose.msra.mxu0 %v2812_v53  ;;  %v995_v18 = vpack.c.bf16 %v973_v43, %v971_v19  ;;  %v994_v22 = vpack.c.bf16 %v972_v50, %v970_v58 }
 0x7a5   : > { %2895 = vxpose.xlu1.c.b16.start [1/2] (short) %v995_v18, 128  ;;  %2879 = vxpose.xlu0.c.b16.start [1/2] (short) %v994_v22, 128 }
 0x7ba   : > { %v7668_v33 = vpop.f32.mrb[76].mxu0 }
 0x7bb   : > { %v7670_v54 = vpop.f32.mrb[77].mxu0 }
 0x7bc   : > { %v7672_v6 = vpop.f32.mrb[78].mxu0 }
 0x7bd   : > { %v1056_v12 = vpack.c.bf16 %v7672_v6, %v7668_v33  ;;  %v7676_v62 = vpop.f32.mrb[79].mxu0 }
 0x7be   : > { %v1057_v1 = vpack.c.bf16 %v7676_v62, %v7670_v54 }
 0x7d9   : > { %v2672_v61 = vpop.xlane.xlu0 %2671 }
 0x7da   : > { %5413 = vrcp.f32 %v2672_v61 }
 0x7dc   : > { %v2675_v48 = vpop.xlane.xlu1 %2674 }
 0x7dd   : > { %5415 = vrcp.f32 %v2675_v48  ;;  %v794_v2 = vpop.xlane.xlu0 %793 }
 0x7de   : > { %v820_v25 = vmax.f32 %v794_v2, 1e-24 }
 0x7e0   : > { %v797_v60 = vpop.xlane.xlu1 %796  ;;  %5417 = vrsqrt.f32 %v820_v25 }
 0x7e1   : > { %v821_v16 = vmax.f32 %v797_v60, 1e-24  ;;  %v2678_v13 = vpop.xlane.xlu0 %2677 }
 0x7e2   : > { %5419 = vrcp.f32 %v2678_v13 }
 0x7e3   : > { %5421 = vrsqrt.f32 %v821_v16 }
 0x7e4   : > { %v2681_v41 = vpop.xlane.xlu1 %2680  ;;  %v5414_v34 = vpop.eup %5413 }
 0x7e5   : > { %5423 = vrcp.f32 %v2681_v41  ;;  %v2775_v36 = vmul.f32 %v5414_v34, %v7535_v27  ;;  %v2774_v37 = vmul.f32 %v5414_v34, %v7533_v29  ;;  %v9532_v27 = vld [vmem:[#allocation26_spill] sm:$0xff]  ;;  %v9534_v29 = vld [vmem:[#allocation25_spill] sm:$0xff] }
 0x7e7   : > { %v5416_v42 = vpop.eup %5415 }
 0x7e8   : > { %v2777_v46 = vmul.f32 %v5416_v42, %v7543_v57  ;;  %v2776_v11 = vmul.f32 %v5416_v42, %v7541_v26  ;;  %v9533_v57 = vld [vmem:[#allocation23_spill] sm:$0xff] }
 0x7e9   : > { %v2684_v55 = vpop.xlane.xlu0 %2683 }
 0x7ea   : > { %v2815_v9 = vpack.c.bf16 %v2777_v46, %v2775_v36  ;;  %v2814_v14 = vpack.c.bf16 %v2776_v11, %v2774_v37  ;;  %v5418_v20 = vpop.eup %5417  ;;  %5425 = vrcp.f32 %v2684_v55 }
 0x7eb   : > { %v975_v23 = vmul.f32 %v5418_v20, %v9531_v59  ;;  %v974_v30 = vmul.f32 %v5418_v20, %v9533_v57 }
 0x7ec   : > { %v5420_v7 = vpop.eup %5419  ;;  %2846 = vmatprep.subr.bf16.mxu0 %v2815_v9  ;;  %v2687_v4 = vpop.xlane.xlu1 %2686 }
 0x7ed   : > { %v5422_v32 = vpop.eup %5421  ;;  %5427 = vrcp.f32 %v2687_v4  ;;  %2847 = vmatpush1.bf16.xpose.msra.mxu0 %v2814_v14  ;;  %v2779_v53 = vmul.f32 %v5420_v7, %v7556_v45  ;;  %v2778_v24 = vmul.f32 %v5420_v7, %v7553_v10  ;;  %v9535_v14 = vld [vmem:[#allocation10_spill] sm:$0xff]  ;;  %v9536_v7 = vld [vmem:[#allocation16_spill] sm:$0xff] }
 0x7ee   : > { %v977_v39 = vmul.f32 %v5422_v32, %v9532_v27  ;;  %v976_v8 = vmul.f32 %v5422_v32, %v9534_v29  ;;  %v9537_v32 = vld [vmem:[#allocation9_spill] sm:$0xff] }
 0x7ef   : > { %v5424_v26 = vpop.eup %5423 }
 0x7f0   : > { %v997_v5 = vpack.c.bf16 %v977_v39, %v975_v23  ;;  %v996_v19 = vpack.c.bf16 %v976_v8, %v974_v30  ;;  %v2781_v0 = vmul.f32 %v5424_v26, %v7565_v15  ;;  %v2780_v43 = vmul.f32 %v5424_v26, %v7562_v17  ;;  %v9538_v23 = vld [vmem:[#allocation15_spill] sm:$0xff]  ;;  %v9540_v30 = vld [vmem:[#allocation41_spill] sm:$0xff]  ;;  %v9541_v8 = vld [vmem:[#allocation56_spill] sm:$0xff] }
 0x7f1   : > { %v2690_v56 = vpop.xlane.xlu0 %2689 }
 0x7f2   : > { %2896 = vxpose.xlu1.c.b16.end [2/2] (short) %v997_v5, 128  ;;  %2880 = vxpose.xlu0.c.b16.end [2/2] (short) %v996_v19, 128  ;;  %v2817_v58 = vpack.c.bf16 %v2781_v0, %v2779_v53  ;;  %v2816_v47 = vpack.c.bf16 %v2780_v43, %v2778_v24  ;;  %5429 = vrcp.f32 %v2690_v56  ;;  %v9542_v53 = vld [vmem:[#allocation58_spill] sm:$0xff] }
 0x7f4   : > { %2848 = vmatprep.subr.bf16.mxu0 %v2817_v58  ;;  %v2693_v50 = vpop.xlane.xlu1 %2692  ;;  %v5426_v18 = vpop.eup %5425 }
 0x7f5   : > { %5431 = vrcp.f32 %v2693_v50  ;;  %2849 = vmatpush1.bf16.xpose.msra.mxu0 %v2816_v47  ;;  %v900_v45 = vpop.xlane.xlu0 %899  ;;  %v2783_v48 = vmul.f32 %v5426_v18, %v7577_v52  ;;  %v2782_v17 = vmul.f32 %v5426_v18, %v7575_v35 }
 0x7f6   : > { %v930_v22 = vmax.f32 %v900_v45, 1e-24 }
 0x7f7   : > { %v5428_v10 = vpop.eup %5427 }
 0x7f8   : > { %v903_v61 = vpop.xlane.xlu1 %902  ;;  %v2785_v15 = vmul.f32 %v5428_v10, %v7583_v44  ;;  %v2784_v2 = vmul.f32 %v5428_v10, %v7581_v51  ;;  %5433 = vrsqrt.f32 %v930_v22 }
 0x7f9   : > { %v931_v25 = vmax.f32 %v903_v61, 1e-24  ;;  %v906_v60 = vpop.xlane.xlu0 %905 }
 0x7fa   : > { %v932_v16 = vmax.f32 %v906_v60, 1e-24  ;;  %v2819_v13 = vpack.c.bf16 %v2785_v15, %v2783_v48  ;;  %v2818_v41 = vpack.c.bf16 %v2784_v2, %v2782_v17 }
 0x7fb   : > { %5435 = vrsqrt.f32 %v931_v25 }
 0x7fc   : > { %2850 = vmatprep.subr.bf16.mxu0 %v2819_v13  ;;  %v909_v34 = vpop.xlane.xlu1 %908  ;;  %v5430_v42 = vpop.eup %5429  ;;  %5437 = vrsqrt.f32 %v932_v16 }
 0x7fd   : > { %v933_v36 = vmax.f32 %v909_v34, 1e-24  ;;  %2851 = vmatpush1.bf16.xpose.msra.mxu0 %v2818_v41  ;;  %v2787_v44 = vmul.f32 %v5430_v42, %v7593_v38  ;;  %v2786_v51 = vmul.f32 %v5430_v42, %v7591_v40 }
 0x7ff   : > { %v5432_v52 = vpop.eup %5431  ;;  %5439 = vrsqrt.f32 %v933_v36 }
 0x800   : > { %v2789_v35 = vmul.f32 %v5432_v52, %v7599_v3  ;;  %v2788_v46 = vmul.f32 %v5432_v52, %v7597_v31  ;;  %v9539_v31 = vld [vmem:[#allocation55_spill] sm:$0xff] }
 0x802   : > { %v2821_v37 = vpack.c.bf16 %v2789_v35, %v2787_v44  ;;  %v2820_v11 = vpack.c.bf16 %v2788_v46, %v2786_v51  ;;  %v5434_v55 = vpop.eup %5433 }
 0x803   : > { %v1019_v20 = vmul.f32 %v5434_v55, %v9535_v14  ;;  %v1018_v59 = vmul.f32 %v5434_v55, %v9537_v32 }
 0x804   : > { %2852 = vmatprep.subr.bf16.mxu0 %v2821_v37 }
 0x805   : > { %v5436_v9 = vpop.eup %5435  ;;  %2853 = vmatpush1.bf16.xpose.msra.mxu0 %v2820_v11 }
 0x806   : > { %v1021_v4 = vmul.f32 %v5436_v9, %v9536_v7  ;;  %v1020_v38 = vmul.f32 %v5436_v9, %v9538_v23  ;;  %v5438_v27 = vpop.eup %5437 }
 0x807   : > { %v1023_v57 = vmul.f32 %v5438_v27, %v9539_v31  ;;  %v1022_v26 = vmul.f32 %v5438_v27, %v9541_v8 }
 0x808   : > { %v1043_v3 = vpack.c.bf16 %v1021_v4, %v1019_v20  ;;  %v1042_v39 = vpack.c.bf16 %v1020_v38, %v1018_v59 }
 0x809   : > { %v5440_v40 = vpop.eup %5439 }
 0x80a   : > { %2959 = vmatprep.subr.bf16.mxu0 %v1043_v3  ;;  %v1025_v29 = vmul.f32 %v5440_v40, %v9540_v30  ;;  %v1024_v24 = vmul.f32 %v5440_v40, %v9542_v53 }
 0x80c   : > { %2855 = vmatmul.mubr.bf16.vlgmr.msra.gmra.mrb[96].mxu0 %v1054_v49  ;;  %v1045_v5 = vpack.c.bf16 %v1025_v29, %v1023_v57  ;;  %v1044_v19 = vpack.c.bf16 %v1024_v24, %v1022_v26 }
 0x80d   : > { %2960 = vmatpush1.bf16.msra.mxu0 %v1042_v39  ;;  %2864 = vmatprep.mubr.bf16.mxu0 %v1057_v1 }
 0x80e   : > { %2961 = vmatprep.subr.bf16.mxu0 %v1045_v5 }
 0x811   : > { %2962 = vmatpush1.bf16.msra.mxu0 %v1044_v19 }
 0x814   : > { %2865 = vmatmul.mubr.bf16.gmra.mrb[100].mxu0 %v1056_v12 }
 0x815   : > { %2991 = vmatprep.mubr.bf16.mxu0 %v9494_v28 }
 0x82f   : > { %v7718_v0 = vpop.f32.mrb[80].mxu0 }
 0x830   : > { %9543 = vst [vmem:[#allocation21_spill] sm:$0xff] %v7718_v0  ;;  %v693_v43 = vpop.f32.mrb[81].mxu0 }
 0x831   : > { %v7720_v63 = vpop.f32.mrb[82].mxu0 }
 0x832   : > { %9544 = vst [vmem:[#allocation22_spill] sm:$0xff] %v7720_v63  ;;  %v697_v49 = vpop.f32.mrb[83].mxu0 }
 0x833   : > { %v1059_v56 = vpack.c.bf16 %v697_v49, %v693_v43 }
 0x835   : > { %3760 = vmatprep.mubr.bf16.mxu1 %v1059_v56 }
 0x837   : > { %v7724_v54 = vpop.f32.mrb[84].mxu0 }
 0x838   : > { %9545 = vst [vmem:[#allocation27_spill] sm:$0xff] %v7724_v54  ;;  %v7726_v62 = vpop.f32.mrb[85].mxu0 }
 0x839   : > { %9546 = vst [vmem:[#allocation28_spill] sm:$0xff] %v7726_v62  ;;  %v7728_v1 = vpop.f32.mrb[86].mxu0 }
 0x83a   : > { %9547 = vst [vmem:[#allocation54_spill] sm:$0xff] %v7728_v1  ;;  %v7732_v6 = vpop.f32.mrb[87].mxu0 }
 0x83b   : > { %9548 = vst [vmem:[#allocation53_spill] sm:$0xff] %v7732_v6 }
 0x845   : > { %v7736_v58 = vpop.f32.mrb[88].mxu0 }
 0x846   : > { %9549 = vst [vmem:[#allocation59_spill] sm:$0xff] %v7736_v58  ;;  %v713_v47 = vpop.f32.mrb[89].mxu0 }
 0x847   : > { %v7738_v50 = vpop.f32.mrb[90].mxu0 }
 0x848   : > { %9550 = vst [vmem:[#allocation68_spill] sm:$0xff] %v7738_v50  ;;  %v717_v22 = vpop.f32.mrb[91].mxu0 }
 0x849   : > { %v1063_v10 = vpack.c.bf16 %v717_v22, %v713_v47 }
 0x84d   : > { %v7744_v61 = vpop.f32.mrb[92].mxu0 }
 0x84e   : > { %9551 = vst [vmem:[#allocation8_spill] sm:$0xff] %v7744_v61  ;;  %v7746_v15 = vpop.f32.mrb[93].mxu0 }
 0x84f   : > { %9552 = vst [vmem:[#allocation6_spill] sm:$0xff] %v7746_v15  ;;  %v7748_v17 = vpop.f32.mrb[94].mxu0 }
 0x850   : > { %9553 = vst [vmem:[#allocation48_spill] sm:$0xff] %v7748_v17  ;;  %v7753_v25 = vpop.f32.mrb[95].mxu0 }
 0x851   : > { %9554 = vst [vmem:[#allocation12_spill] sm:$0xff] %v7753_v25 }
 0x854   : > { %v2887_v18 = vpop.trf.xlu0  ;;  %v2903_v52 = vpop.trf.xlu1 }
 0x855   : > { %4905 = vmatmul.mubr.msk.bf16.vlgmr.msra.gmra.mrb[104].mxu0 %vm1098_vm2, %v2887_v18 }
 0x856   : > { %3001 = vmatprep.mubr.bf16.mxu0 %v9494_v28 }
 0x858   : > { %v2888_v48 = vpop.trf.xlu0  ;;  %v2904_v44 = vpop.trf.xlu1 }
 0x85c   : > { %v2889_v16 = vpop.trf.xlu0  ;;  %v2905_v35 = vpop.trf.xlu1 }
 0x85d   : > { %4906 = vmatmul.mubr.msk.bf16.gmra.mrb[108].mxu0 %vm1098_vm2, %v2888_v48 }
 0x85e   : > { %3011 = vmatprep.mubr.bf16.mxu0 %v9494_v28 }
 0x860   : > { %v2890_v13 = vpop.trf.xlu0  ;;  %v2906_v51 = vpop.trf.xlu1 }
 0x864   : > { %v2891_v41 = vpop.trf.xlu0  ;;  %v2907_v46 = vpop.trf.xlu1 }
 0x865   : > { %4907 = vmatmul.mubr.msk.bf16.gmra.mrb[112].mxu0 %vm1098_vm2, %v2889_v16 }
 0x866   : > { %3021 = vmatprep.mubr.bf16.mxu0 %v9494_v28 }
 0x868   : > { %v2892_v34 = vpop.trf.xlu0  ;;  %v2908_v37 = vpop.trf.xlu1 }
 0x86c   : > { %v2893_v42 = vpop.trf.xlu0  ;;  %v2909_v11 = vpop.trf.xlu1 }
 0x86d   : > { %4908 = vmatmul.mubr.msk.bf16.gmra.mrb[116].mxu0 %vm1098_vm2, %v2890_v13 }
 0x86e   : > { %3031 = vmatprep.mubr.bf16.mxu0 %v9494_v28 }
 0x870   : > { %v2894_v36 = vpop.trf.xlu0  ;;  %v2910_v55 = vpop.trf.xlu1 }
 0x875   : > { %4909 = vmatmul.mubr.msk.bf16.gmra.mrb[120].mxu0 %vm1098_vm2, %v2891_v41 }
 0x876   : > { %3041 = vmatprep.mubr.bf16.mxu0 %v9494_v28 }
 0x87d   : > { %4910 = vmatmul.mubr.msk.bf16.gmra.mrb[124].mxu0 %vm1098_vm2, %v2892_v34 }
 0x87e   : > { %3051 = vmatprep.mubr.bf16.mxu0 %v9494_v28 }
 0x885   : > { %4911 = vmatmul.mubr.msk.bf16.gmra.mrb[128].mxu0 %vm1098_vm2, %v2893_v42 }
 0x886   : > { %3061 = vmatprep.mubr.bf16.mxu0 %v9494_v28 }
 0x88d   : > { %4912 = vmatmul.mubr.msk.bf16.gmra.mrb[132].mxu0 %vm1098_vm2, %v2894_v36 }
 0x88e   : > { %3071 = vmatprep.mubr.bf16.mxu0 %v9494_v28 }
 0x895   : > { %4913 = vmatmul.mubr.msk.bf16.gmra.mrb[136].mxu0 %vm1098_vm2, %v2903_v52 }
 0x896   : > { %3081 = vmatprep.mubr.bf16.mxu0 %v9494_v28 }
 0x89d   : > { %4914 = vmatmul.mubr.msk.bf16.gmra.mrb[140].mxu0 %vm1098_vm2, %v2904_v44 }
 0x89e   : > { %3091 = vmatprep.mubr.bf16.mxu0 %v9494_v28 }
 0x8a5   : > { %4915 = vmatmul.mubr.msk.bf16.gmra.mrb[144].mxu0 %vm1098_vm2, %v2905_v35 }
 0x8a6   : > { %3101 = vmatprep.mubr.bf16.mxu0 %v9494_v28 }
 0x8ad   : > { %4916 = vmatmul.mubr.msk.bf16.gmra.mrb[148].mxu0 %vm1098_vm2, %v2906_v51 }
 0x8ae   : > { %3111 = vmatprep.mubr.bf16.mxu0 %v9494_v28 }
 0x8b5   : > { %4917 = vmatmul.mubr.msk.bf16.gmra.mrb[152].mxu0 %vm1098_vm2, %v2907_v46 }
 0x8b6   : > { %3121 = vmatprep.mubr.bf16.mxu0 %v9494_v28 }
 0x8bd   : > { %4918 = vmatmul.mubr.msk.bf16.gmra.mrb[156].mxu0 %vm1098_vm2, %v2908_v37 }
 0x8be   : > { %3131 = vmatprep.mubr.bf16.mxu0 %v9494_v28 }
 0x8c5   : > { %4919 = vmatmul.mubr.msk.bf16.gmra.mrb[160].mxu0 %vm1098_vm2, %v2909_v11 }
 0x8c6   : > { %3141 = vmatprep.mubr.bf16.mxu0 %v9494_v28 }
 0x8cd   : > { %4920 = vmatmul.mubr.msk.bf16.gmra.mrb[164].mxu0 %vm1098_vm2, %v2910_v55 }
 0x8ce   : > { %4666 = vmatprep.mubr.bf16.mxu0 %v1063_v10 }
 0x8df   : > { %v7785_v9 = vpop.f32.mrb[96].mxu0 }
 0x8e0   : > { %9555 = vst [vmem:[#allocation13_spill] sm:$0xff] %v7785_v9  ;;  %v7787_v14 = vpop.f32.mrb[97].mxu0 }
 0x8e1   : > { %9556 = vst [vmem:[#allocation11_spill] sm:$0xff] %v7787_v14  ;;  %v7789_v20 = vpop.f32.mrb[98].mxu0 }
 0x8e2   : > { %9557 = vst [vmem:[#allocation44_spill] sm:$0xff] %v7789_v20  ;;  %v7793_v4 = vpop.f32.mrb[99].mxu0 }
 0x8e3   : > { %9558 = vst [vmem:[#allocation14_spill] sm:$0xff] %v7793_v4 }
 0x8e7   : > { %v7797_v59 = vpop.f32.mrb[100].mxu0 }
 0x8e8   : > { %9559 = vst [vmem:[#allocation61_spill] sm:$0xff] %v7797_v59  ;;  %v7799_v23 = vpop.f32.mrb[101].mxu0 }
 0x8e9   : > { %9560 = vst [vmem:[#allocation42_spill] sm:$0xff] %v7799_v23  ;;  %v7801_v38 = vpop.f32.mrb[102].mxu0 }
 0x8ea   : > { %9561 = vst [vmem:[#allocation45_spill] sm:$0xff] %v7801_v38  ;;  %v7805_v3 = vpop.f32.mrb[103].mxu0 }
 0x8eb   : > { %9562 = vst [vmem:[#allocation64_spill] sm:$0xff] %v7805_v3 }
 0x928   : > { %v2993_v40 = vpop.f32.mrb[104].mxu0 }
 0x929   : > { %v7809_v31 = vmul.f32 10.0, %v2993_v40  ;;  %v2995_v57 = vpop.f32.mrb[105].mxu0 }
 0x92a   : > { %v7811_v30 = vmul.f32 10.0, %v2995_v57  ;;  %v2997_v29 = vpop.f32.mrb[106].mxu0 }
 0x92b   : > { %v7813_v8 = vmul.f32 10.0, %v2997_v29  ;;  %v2999_v26 = vpop.f32.mrb[107].mxu0 }
 0x92c   : > { %v3216_v53 = vmax.f32 %v7809_v31, %v7811_v30  ;;  %v7817_v24 = vmul.f32 10.0, %v2999_v26 }
 0x92e   : > { %v3219_v5 = vmax.f32 %v7813_v8, %v7817_v24  ;;  %3217 = vmax.xlane.f32.xlu0 %v3216_v53 }
 0x930   : > { %3220 = vmax.xlane.f32.xlu1 %v3219_v5  ;;  %v3003_v19 = vpop.f32.mrb[108].mxu0 }
 0x931   : > { %v7821_v43 = vmul.f32 10.0, %v3003_v19  ;;  %v3005_v49 = vpop.f32.mrb[109].mxu0 }
 0x932   : > { %v7823_v56 = vmul.f32 10.0, %v3005_v49  ;;  %v3007_v47 = vpop.f32.mrb[110].mxu0 }
 0x933   : > { %v7825_v18 = vmul.f32 10.0, %v3007_v47  ;;  %v3009_v22 = vpop.f32.mrb[111].mxu0 }
 0x934   : > { %v3222_v10 = vmax.f32 %v7821_v43, %v7823_v56  ;;  %v7829_v48 = vmul.f32 10.0, %v3009_v22 }
 0x936   : > { %v3225_v16 = vmax.f32 %v7825_v18, %v7829_v48  ;;  %3223 = vmax.xlane.f32.xlu0 %v3222_v10 }
 0x938   : > { %3226 = vmax.xlane.f32.xlu1 %v3225_v16  ;;  %v3013_v13 = vpop.f32.mrb[112].mxu0 }
 0x939   : > { %v7833_v41 = vmul.f32 10.0, %v3013_v13  ;;  %v3015_v34 = vpop.f32.mrb[113].mxu0 }
 0x93a   : > { %v7835_v42 = vmul.f32 10.0, %v3015_v34  ;;  %v3017_v36 = vpop.f32.mrb[114].mxu0 }
 0x93b   : > { %v7837_v52 = vmul.f32 10.0, %v3017_v36  ;;  %v3019_v44 = vpop.f32.mrb[115].mxu0 }
 0x93c   : > { %v3228_v35 = vmax.f32 %v7833_v41, %v7835_v42  ;;  %v7841_v51 = vmul.f32 10.0, %v3019_v44 }
 0x93e   : > { %v3231_v46 = vmax.f32 %v7837_v52, %v7841_v51  ;;  %3229 = vmax.xlane.f32.xlu0 %v3228_v35 }
 0x940   : > { %3232 = vmax.xlane.f32.xlu1 %v3231_v46  ;;  %v3023_v37 = vpop.f32.mrb[116].mxu0 }
 0x941   : > { %v7845_v11 = vmul.f32 10.0, %v3023_v37  ;;  %v3025_v55 = vpop.f32.mrb[117].mxu0 }
 0x942   : > { %v7847_v40 = vmul.f32 10.0, %v3025_v55  ;;  %v3027_v57 = vpop.f32.mrb[118].mxu0 }
 0x943   : > { %v7849_v29 = vmul.f32 10.0, %v3027_v57  ;;  %v3029_v26 = vpop.f32.mrb[119].mxu0 }
 0x944   : > { %v3234_v53 = vmax.f32 %v7845_v11, %v7847_v40  ;;  %v7853_v5 = vmul.f32 10.0, %v3029_v26 }
 0x946   : > { %v3237_v19 = vmax.f32 %v7849_v29, %v7853_v5  ;;  %3235 = vmax.xlane.f32.xlu0 %v3234_v53 }
 0x948   : > { %3238 = vmax.xlane.f32.xlu1 %v3237_v19  ;;  %v3033_v49 = vpop.f32.mrb[120].mxu0 }
 0x949   : > { %v7857_v47 = vmul.f32 10.0, %v3033_v49  ;;  %v3035_v22 = vpop.f32.mrb[121].mxu0 }
 0x94a   : > { %v7859_v10 = vmul.f32 10.0, %v3035_v22  ;;  %v3037_v16 = vpop.f32.mrb[122].mxu0 }
 0x94b   : > { %v7861_v13 = vmul.f32 10.0, %v3037_v16  ;;  %v3039_v34 = vpop.f32.mrb[123].mxu0 }
 0x94c   : > { %v3240_v36 = vmax.f32 %v7857_v47, %v7859_v10  ;;  %v7865_v44 = vmul.f32 10.0, %v3039_v34 }
 0x94e   : > { %v3243_v35 = vmax.f32 %v7861_v13, %v7865_v44  ;;  %3241 = vmax.xlane.f32.xlu0 %v3240_v36 }
 0x950   : > { %3244 = vmax.xlane.f32.xlu1 %v3243_v35  ;;  %v3043_v46 = vpop.f32.mrb[124].mxu0 }
 0x951   : > { %v7869_v37 = vmul.f32 10.0, %v3043_v46  ;;  %v3045_v55 = vpop.f32.mrb[125].mxu0 }
 0x952   : > { %v7871_v57 = vmul.f32 10.0, %v3045_v55  ;;  %v3047_v26 = vpop.f32.mrb[126].mxu0 }
 0x953   : > { %v7873_v53 = vmul.f32 10.0, %v3047_v26  ;;  %v3049_v19 = vpop.f32.mrb[127].mxu0 }
 0x954   : > { %v3246_v49 = vmax.f32 %v7869_v37, %v7871_v57  ;;  %v7877_v22 = vmul.f32 10.0, %v3049_v19 }
 0x956   : > { %v3249_v16 = vmax.f32 %v7873_v53, %v7877_v22  ;;  %3247 = vmax.xlane.f32.xlu0 %v3246_v49 }
 0x958   : > { %3250 = vmax.xlane.f32.xlu1 %v3249_v16  ;;  %v3053_v34 = vpop.f32.mrb[128].mxu0 }
 0x959   : > { %v7881_v36 = vmul.f32 10.0, %v3053_v34  ;;  %v3055_v35 = vpop.f32.mrb[129].mxu0 }
 0x95a   : > { %v7883_v46 = vmul.f32 10.0, %v3055_v35  ;;  %v3057_v55 = vpop.f32.mrb[130].mxu0 }
 0x95b   : > { %v7885_v26 = vmul.f32 10.0, %v3057_v55  ;;  %v3059_v27 = vpop.f32.mrb[131].mxu0 }
 0x95c   : > { %v3252_v39 = vmax.f32 %v7881_v36, %v7883_v46  ;;  %v7889_v19 = vmul.f32 10.0, %v3059_v27 }
 0x95e   : > { %v3255_v7 = vmax.f32 %v7885_v26, %v7889_v19  ;;  %3253 = vmax.xlane.f32.xlu0 %v3252_v39 }
 0x960   : > { %3256 = vmax.xlane.f32.xlu1 %v3255_v7  ;;  %v3063_v49 = vpop.f32.mrb[132].mxu0 }
 0x961   : > { %v7893_v16 = vmul.f32 10.0, %v3063_v49  ;;  %v3065_v34 = vpop.f32.mrb[133].mxu0 }
 0x962   : > { %v7895_v35 = vmul.f32 10.0, %v3065_v34  ;;  %v3067_v2 = vpop.f32.mrb[134].mxu0 }
 0x963   : > { %v7897_v55 = vmul.f32 10.0, %v3067_v2  ;;  %v3069_v32 = vpop.f32.mrb[135].mxu0 }
 0x964   : > { %v3258_v60 = vmax.f32 %v7893_v16, %v7895_v35  ;;  %v7901_v27 = vmul.f32 10.0, %v3069_v32 }
 0x966   : > { %v3261_v45 = vmax.f32 %v7897_v55, %v7901_v27  ;;  %3259 = vmax.xlane.f32.xlu0 %v3258_v60 }
 0x968   : > { %3262 = vmax.xlane.f32.xlu1 %v3261_v45  ;;  %v3073_v7 = vpop.f32.mrb[136].mxu0 }
 0x969   : > { %v7905_v39 = vmul.f32 10.0, %v3073_v7  ;;  %v3075_v49 = vpop.f32.mrb[137].mxu0 }
 0x96a   : > { %v7907_v34 = vmul.f32 10.0, %v3075_v49  ;;  %v3077_v33 = vpop.f32.mrb[138].mxu0 }
 0x96b   : > { %v7909_v2 = vmul.f32 10.0, %v3077_v33  ;;  %v3079_v12 = vpop.f32.mrb[139].mxu0 }
 0x96c   : > { %v3264_v21 = vmax.f32 %v7905_v39, %v7907_v34  ;;  %v7913_v32 = vmul.f32 10.0, %v3079_v12 }
 0x96e   : > { %9563 = vst [vmem:[#allocation75_spill] sm:$0xff] %v7913_v32  ;;  %v3267_v59 = vmax.f32 %v7909_v2, %v7913_v32  ;;  %3265 = vmax.xlane.f32.xlu0 %v3264_v21 }
 0x970   : > { %3268 = vmax.xlane.f32.xlu1 %v3267_v59  ;;  %v3083_v45 = vpop.f32.mrb[140].mxu0 }
 0x971   : > { %v7917_v60 = vmul.f32 10.0, %v3083_v45  ;;  %v3085_v7 = vpop.f32.mrb[141].mxu0 }
 0x972   : > { %v7919_v49 = vmul.f32 10.0, %v3085_v7  ;;  %v3087_v38 = vpop.f32.mrb[142].mxu0 }
 0x973   : > { %9564 = vst [vmem:[#allocation63_spill] sm:$0xff] %v7917_v60  ;;  %v7921_v33 = vmul.f32 10.0, %v3087_v38  ;;  %v3089_v23 = vpop.f32.mrb[143].mxu0 }
 0x974   : > { %9565 = vst [vmem:[#allocation47_spill] sm:$0xff] %v7919_v49  ;;  %v3270_v3 = vmax.f32 %v7917_v60, %v7919_v49  ;;  %v7925_v12 = vmul.f32 10.0, %v3089_v23 }
 0x975   : > { %9566 = vst [vmem:[#allocation18_spill] sm:$0xff] %v7921_v33 }
 0x976   : > { %9567 = vst [vmem:[#allocation20_spill] sm:$0xff] %v7925_v12  ;;  %v3273_v9 = vmax.f32 %v7921_v33, %v7925_v12  ;;  %3271 = vmax.xlane.f32.xlu0 %v3270_v3 }
 0x978   : > { %3274 = vmax.xlane.f32.xlu1 %v3273_v9  ;;  %v3093_v21 = vpop.f32.mrb[144].mxu0 }
 0x979   : > { %v7929_v59 = vmul.f32 10.0, %v3093_v21  ;;  %v3095_v45 = vpop.f32.mrb[145].mxu0 }
 0x97a   : > { %v7931_v7 = vmul.f32 10.0, %v3095_v45  ;;  %v3097_v20 = vpop.f32.mrb[146].mxu0 }
 0x97b   : > { %9568 = vst [vmem:[#allocation17_spill] sm:$0xff] %v7929_v59  ;;  %v7933_v38 = vmul.f32 10.0, %v3097_v20  ;;  %v3099_v61 = vpop.f32.mrb[147].mxu0 }
 0x97c   : > { %9569 = vst [vmem:[#allocation19_spill] sm:$0xff] %v7931_v7  ;;  %v3276_v17 = vmax.f32 %v7929_v59, %v7931_v7  ;;  %v7937_v23 = vmul.f32 10.0, %v3099_v61 }
 0x97d   : > { %9570 = vst [vmem:[#allocation24_spill] sm:$0xff] %v7933_v38 }
 0x97e   : > { %9571 = vst [vmem:[#allocation26_spill] sm:$0xff] %v7937_v23  ;;  %v3279_v14 = vmax.f32 %v7933_v38, %v7937_v23  ;;  %3277 = vmax.xlane.f32.xlu0 %v3276_v17 }
 0x980   : > { %3280 = vmax.xlane.f32.xlu1 %v3279_v14  ;;  %v3103_v9 = vpop.f32.mrb[148].mxu0 }
 0x981   : > { %v7941_v3 = vmul.f32 10.0, %v3103_v9  ;;  %v3105_v21 = vpop.f32.mrb[149].mxu0 }
 0x982   : > { %v7943_v45 = vmul.f32 10.0, %v3105_v21  ;;  %v3107_v4 = vpop.f32.mrb[150].mxu0 }
 0x983   : > { %9572 = vst [vmem:[#allocation23_spill] sm:$0xff] %v7941_v3  ;;  %v7945_v20 = vmul.f32 10.0, %v3107_v4  ;;  %v3109_v15 = vpop.f32.mrb[151].mxu0 }
 0x984   : > { %9573 = vst [vmem:[#allocation25_spill] sm:$0xff] %v7943_v45  ;;  %v3282_v25 = vmax.f32 %v7941_v3, %v7943_v45  ;;  %v7949_v61 = vmul.f32 10.0, %v3109_v15 }
 0x985   : > { %9574 = vst [vmem:[#allocation10_spill] sm:$0xff] %v7945_v20 }
 0x986   : > { %9575 = vst [vmem:[#allocation16_spill] sm:$0xff] %v7949_v61  ;;  %v3285_v58 = vmax.f32 %v7945_v20, %v7949_v61  ;;  %3283 = vmax.xlane.f32.xlu0 %v3282_v25 }
 0x988   : > { %3286 = vmax.xlane.f32.xlu1 %v3285_v58  ;;  %v3113_v17 = vpop.f32.mrb[152].mxu0 }
 0x989   : > { %v3115_v14 = vpop.f32.mrb[153].mxu0 }
 0x98a   : > { %v3117_v9 = vpop.f32.mrb[154].mxu0 }
 0x98b   : > { %v3119_v50 = vpop.f32.mrb[155].mxu0 }
 0x990   : > { %v7953_v21 = vpop.f32.mrb[156].mxu0 }
 0x991   : > { %v7955_v54 = vpop.f32.mrb[157].mxu0 }
 0x992   : > { %v7957_v4 = vpop.f32.mrb[158].mxu0 }
 0x993   : > { %v7959_v1 = vpop.f32.mrb[159].mxu0 }
 0x998   : > { %v7961_v62 = vpop.f32.mrb[160].mxu0 }
 0x999   : > { %v7963_v15 = vpop.f32.mrb[161].mxu0 }
 0x99a   : > { %v7965_v6 = vpop.f32.mrb[162].mxu0 }
 0x99b   : > { %v7967_v25 = vpop.f32.mrb[163].mxu0 }
 0x9a0   : > { %v7969_v58 = vpop.f32.mrb[164].mxu0 }
 0x9a1   : > { %v7971_v0 = vpop.f32.mrb[165].mxu0 }
 0x9a2   : > { %v7973_v63 = vpop.f32.mrb[166].mxu0 }
 0x9a3   : > { %v7975_v28 = vpop.f32.mrb[167].mxu0 }
 0x9bb   : > { %v3218_v61 = vpop.xlane.xlu0 %3217 }
 0x9bc   : > { %v3312_v20 = vsub.f32 %v7809_v31, %v3218_v61  ;;  %v3313_v45 = vsub.f32 %v7811_v30, %v3218_v61 }
 0x9bd   : > { %v3221_v3 = vpop.xlane.xlu1 %3220 }
 0x9be   : > { %v3376_v23 = vmul.f32 1.442695, %v3312_v20  ;;  %v3378_v38 = vmul.f32 1.442695, %v3313_v45  ;;  %v3314_v7 = vsub.f32 %v7813_v8, %v3221_v3  ;;  %v3315_v59 = vsub.f32 %v7817_v24, %v3221_v3 }
 0x9c0   : > { %5441 = vpow2.f32 %v3376_v23  ;;  %v3380_v12 = vmul.f32 1.442695, %v3314_v7  ;;  %v3382_v33 = vmul.f32 1.442695, %v3315_v59  ;;  %v7985_v59 = vmul.f32 10.0, %v3113_v17 }
 0x9c1   : > { %5443 = vpow2.f32 %v3378_v38 }
 0x9c2   : > { %5445 = vpow2.f32 %v3380_v12  ;;  %v7987_v12 = vmul.f32 10.0, %v3115_v14 }
 0x9c3   : > { %5447 = vpow2.f32 %v3382_v33  ;;  %v3224_v49 = vpop.xlane.xlu0 %3223 }
 0x9c4   : > { %v3316_v60 = vsub.f32 %v7821_v43, %v3224_v49  ;;  %v3317_v31 = vsub.f32 %v7823_v56, %v3224_v49  ;;  %v3288_v7 = vmax.f32 %v7985_v59, %v7987_v12 }
 0x9c5   : > { %v3227_v32 = vpop.xlane.xlu1 %3226 }
 0x9c6   : > { %v3384_v30 = vmul.f32 1.442695, %v3316_v60  ;;  %v3386_v61 = vmul.f32 1.442695, %v3317_v31  ;;  %v3318_v45 = vsub.f32 %v7825_v18, %v3227_v32  ;;  %v3319_v8 = vsub.f32 %v7829_v48, %v3227_v32 }
 0x9c7   : > { %v8005_v31 = vmul.f32 10.0, %v3117_v9 }
 0x9c8   : > { %5449 = vpow2.f32 %v3384_v30  ;;  %v3388_v24 = vmul.f32 1.442695, %v3318_v45  ;;  %v3390_v23 = vmul.f32 1.442695, %v3319_v8  ;;  %v8012_v45 = vmul.f32 10.0, %v7953_v21 }
 0x9c9   : > { %5451 = vpow2.f32 %v3386_v61 }
 0x9ca   : > { %v7989_v33 = vpop.eup %5441  ;;  %5453 = vpow2.f32 %v3388_v24 }
 0x9cb   : > { %v7991_v43 = vpop.eup %5443  ;;  %5455 = vpow2.f32 %v3390_v23  ;;  %v3230_v56 = vpop.xlane.xlu0 %3229 }
 0x9cc   : > { %v7993_v60 = vpop.eup %5445  ;;  %v3320_v18 = vsub.f32 %v7833_v41, %v3230_v56  ;;  %v3321_v48 = vsub.f32 %v7835_v42, %v3230_v56  ;;  %v3504_v32 = vadd.f32 %v7991_v43, %v7989_v33  ;;  %v8007_v41 = vmul.f32 10.0, %v3119_v50 }
 0x9cd   : > { %v7999_v49 = vpop.eup %5447  ;;  %v3233_v38 = vpop.xlane.xlu1 %3232 }
 0x9ce   : > { %v3392_v3 = vmul.f32 1.442695, %v3320_v18  ;;  %v3394_v20 = vmul.f32 1.442695, %v3321_v48  ;;  %v3322_v17 = vsub.f32 %v7837_v52, %v3233_v38  ;;  %v3323_v14 = vsub.f32 %v7841_v51, %v3233_v38  ;;  %3505 = vadd.xlane.f32.xlu0 %v3504_v32 }
 0x9cf   : > { %v3507_v42 = vadd.f32 %v7999_v49, %v7993_v60  ;;  %v8015_v52 = vmul.f32 10.0, %v7955_v54  ;;  %v3291_v9 = vmax.f32 %v8005_v31, %v8007_v41  ;;  %v8034_v32 = vmul.f32 10.0, %v7957_v4 }
 0x9d0   : > { %5457 = vpow2.f32 %v3392_v3  ;;  %v3396_v30 = vmul.f32 1.442695, %v3322_v17  ;;  %v3398_v61 = vmul.f32 1.442695, %v3323_v14 }
 0x9d1   : > { %5459 = vpow2.f32 %v3394_v20  ;;  %3508 = vadd.xlane.f32.xlu1 %v3507_v42  ;;  %v3294_v18 = vmax.f32 %v8012_v45, %v8015_v52  ;;  %v8049_v42 = vmul.f32 10.0, %v7963_v15 }
 0x9d2   : > { %v8017_v51 = vpop.eup %5449  ;;  %5461 = vpow2.f32 %v3396_v30  ;;  %3289 = vmax.xlane.f32.xlu0 %v3288_v7  ;;  %v8037_v7 = vmul.f32 10.0, %v7959_v1  ;;  %v8046_v1 = vmul.f32 10.0, %v7961_v62 }
 0x9d3   : > { %v8019_v50 = vpop.eup %5451  ;;  %5463 = vpow2.f32 %v3398_v61  ;;  %v3236_v8 = vpop.xlane.xlu0 %3235 }
 0x9d4   : > { %v8023_v24 = vpop.eup %5453  ;;  %v3324_v23 = vsub.f32 %v7845_v11, %v3236_v8  ;;  %v3325_v21 = vsub.f32 %v7847_v40, %v3236_v8  ;;  %v3510_v54 = vadd.f32 %v8019_v50, %v8017_v51  ;;  %v3297_v4 = vmax.f32 %v8034_v32, %v8037_v7 }
 0x9d5   : > { %v8029_v56 = vpop.eup %5455  ;;  %3292 = vmax.xlane.f32.xlu1 %v3291_v9  ;;  %v3239_v48 = vpop.xlane.xlu1 %3238  ;;  %v3300_v15 = vmax.f32 %v8046_v1, %v8049_v42 }
 0x9d6   : > { %v3400_v38 = vmul.f32 1.442695, %v3324_v23  ;;  %v3402_v11 = vmul.f32 1.442695, %v3325_v21  ;;  %v3326_v40 = vsub.f32 %v7849_v29, %v3239_v48  ;;  %v3327_v3 = vsub.f32 %v7853_v5, %v3239_v48  ;;  %3511 = vadd.xlane.f32.xlu0 %v3510_v54 }
 0x9d7   : > { %v3513_v20 = vadd.f32 %v8029_v56, %v8023_v24  ;;  %v8066_v54 = vmul.f32 10.0, %v7965_v6 }
 0x9d8   : > { %5465 = vpow2.f32 %v3400_v38  ;;  %v3404_v17 = vmul.f32 1.442695, %v3326_v40  ;;  %v3406_v14 = vmul.f32 1.442695, %v3327_v3 }
 0x9d9   : > { %5467 = vpow2.f32 %v3402_v11  ;;  %3514 = vadd.xlane.f32.xlu1 %v3513_v20  ;;  %v8081_v20 = vmul.f32 10.0, %v7971_v0 }
 0x9da   : > { %v8051_v29 = vpop.eup %5457  ;;  %5469 = vpow2.f32 %v3404_v17  ;;  %3295 = vmax.xlane.f32.xlu0 %v3294_v18  ;;  %v8069_v18 = vmul.f32 10.0, %v7967_v25  ;;  %v8078_v25 = vmul.f32 10.0, %v7969_v58 }
 0x9db   : > { %v8053_v5 = vpop.eup %5459  ;;  %5471 = vpow2.f32 %v3406_v14  ;;  %v3242_v30 = vpop.xlane.xlu0 %3241 }
 0x9dc   : > { %v8055_v61 = vpop.eup %5461  ;;  %v3328_v9 = vsub.f32 %v7857_v47, %v3242_v30  ;;  %v3329_v8 = vsub.f32 %v7859_v10, %v3242_v30  ;;  %v3516_v62 = vadd.f32 %v8053_v5, %v8051_v29  ;;  %v3303_v6 = vmax.f32 %v8066_v54, %v8069_v18 }
 0x9dd   : > { %v8061_v23 = vpop.eup %5463  ;;  %3298 = vmax.xlane.f32.xlu1 %v3297_v4  ;;  %v3245_v21 = vpop.xlane.xlu1 %3244  ;;  %v3306_v0 = vmax.f32 %v8078_v25, %v8081_v20 }
 0x9de   : > { %v3408_v48 = vmul.f32 1.442695, %v3328_v9  ;;  %v3410_v47 = vmul.f32 1.442695, %v3329_v8  ;;  %v3330_v10 = vsub.f32 %v7861_v13, %v3245_v21  ;;  %v3331_v38 = vsub.f32 %v7865_v44, %v3245_v21  ;;  %3517 = vadd.xlane.f32.xlu0 %v3516_v62 }
 0x9df   : > { %v3519_v11 = vadd.f32 %v8061_v23, %v8055_v61  ;;  %v8098_v62 = vmul.f32 10.0, %v7973_v63 }
 0x9e0   : > { %5473 = vpow2.f32 %v3408_v48  ;;  %v3412_v40 = vmul.f32 1.442695, %v3330_v10  ;;  %v3414_v3 = vmul.f32 1.442695, %v3331_v38 }
 0x9e1   : > { %5475 = vpow2.f32 %v3410_v47  ;;  %3520 = vadd.xlane.f32.xlu1 %v3519_v11 }
 0x9e2   : > { %v8083_v13 = vpop.eup %5465  ;;  %5477 = vpow2.f32 %v3412_v40  ;;  %3301 = vmax.xlane.f32.xlu0 %v3300_v15  ;;  %v8101_v15 = vmul.f32 10.0, %v7975_v28 }
 0x9e3   : > { %v8085_v44 = vpop.eup %5467  ;;  %5479 = vpow2.f32 %v3414_v3  ;;  %v3248_v17 = vpop.xlane.xlu0 %3247 }
 0x9e4   : > { %v8087_v14 = vpop.eup %5469  ;;  %v3332_v4 = vsub.f32 %v7869_v37, %v3248_v17  ;;  %v3333_v30 = vsub.f32 %v7871_v57, %v3248_v17  ;;  %v3522_v58 = vadd.f32 %v8085_v44, %v8083_v13  ;;  %v3309_v63 = vmax.f32 %v8098_v62, %v8101_v15 }
 0x9e5   : > { %v8093_v9 = vpop.eup %5471  ;;  %3304 = vmax.xlane.f32.xlu1 %v3303_v6  ;;  %v3251_v8 = vpop.xlane.xlu1 %3250 }
 0x9e6   : > { %v3416_v21 = vmul.f32 1.442695, %v3332_v4  ;;  %v3418_v37 = vmul.f32 1.442695, %v3333_v30  ;;  %v3334_v57 = vsub.f32 %v7873_v53, %v3251_v8  ;;  %v3335_v48 = vsub.f32 %v7877_v22, %v3251_v8  ;;  %3523 = vadd.xlane.f32.xlu0 %v3522_v58 }
 0x9e7   : > { %v3525_v47 = vadd.f32 %v8093_v9, %v8087_v14 }
 0x9e8   : > { %5481 = vpow2.f32 %v3416_v21  ;;  %v3420_v10 = vmul.f32 1.442695, %v3334_v57  ;;  %v3422_v38 = vmul.f32 1.442695, %v3335_v48 }
 0x9e9   : > { %5483 = vpow2.f32 %v3418_v37  ;;  %3526 = vadd.xlane.f32.xlu1 %v3525_v47 }
 0x9ea   : > { %v8109_v28 = vpop.eup %5473  ;;  %5485 = vpow2.f32 %v3420_v10  ;;  %3307 = vmax.xlane.f32.xlu0 %v3306_v0 }
 0x9eb   : > { %v8111_v11 = vpop.eup %5475  ;;  %5487 = vpow2.f32 %v3422_v38  ;;  %v3254_v53 = vpop.xlane.xlu0 %3253 }
 0x9ec   : > { %v8113_v22 = vpop.eup %5477  ;;  %v3336_v40 = vsub.f32 %v7881_v36, %v3254_v53  ;;  %v3337_v3 = vsub.f32 %v7883_v46, %v3254_v53  ;;  %v3528_v6 = vadd.f32 %v8111_v11, %v8109_v28 }
 0x9ed   : > { %v8119_v17 = vpop.eup %5479  ;;  %3310 = vmax.xlane.f32.xlu1 %v3309_v63  ;;  %v3257_v4 = vpop.xlane.xlu1 %3256 }
 0x9ee   : > { %v3424_v30 = vmul.f32 1.442695, %v3336_v40  ;;  %v3426_v58 = vmul.f32 1.442695, %v3337_v3  ;;  %v3338_v0 = vsub.f32 %v7885_v26, %v3257_v4  ;;  %v3339_v8 = vsub.f32 %v7889_v19, %v3257_v4  ;;  %3529 = vadd.xlane.f32.xlu0 %v3528_v6 }
 0x9ef   : > { %v3531_v21 = vadd.f32 %v8119_v17, %v8113_v22 }
 0x9f0   : > { %5489 = vpow2.f32 %v3424_v30  ;;  %v3428_v36 = vmul.f32 1.442695, %v3338_v0  ;;  %v3430_v46 = vmul.f32 1.442695, %v3339_v8 }
 0x9f1   : > { %5491 = vpow2.f32 %v3426_v58  ;;  %3532 = vadd.xlane.f32.xlu1 %v3531_v21 }
 0x9f2   : > { %v8125_v37 = vpop.eup %5481  ;;  %5493 = vpow2.f32 %v3428_v36 }
 0x9f3   : > { %v8127_v57 = vpop.eup %5483  ;;  %5495 = vpow2.f32 %v3430_v46  ;;  %v3260_v48 = vpop.xlane.xlu0 %3259 }
 0x9f4   : > { %v8129_v47 = vpop.eup %5485  ;;  %v3340_v26 = vsub.f32 %v7893_v16, %v3260_v48  ;;  %v3341_v19 = vsub.f32 %v7895_v35, %v3260_v48  ;;  %v3534_v10 = vadd.f32 %v8127_v57, %v8125_v37 }
 0x9f5   : > { %v8135_v38 = vpop.eup %5487  ;;  %v3263_v63 = vpop.xlane.xlu1 %3262 }
 0x9f6   : > { %v3432_v53 = vmul.f32 1.442695, %v3340_v26  ;;  %v3434_v40 = vmul.f32 1.442695, %v3341_v19  ;;  %v3342_v3 = vsub.f32 %v7897_v55, %v3263_v63  ;;  %v3343_v6 = vsub.f32 %v7901_v27, %v3263_v63  ;;  %3535 = vadd.xlane.f32.xlu0 %v3534_v10  ;;  %v9576_v10 = vld [vmem:[#allocation75_spill] sm:$0xff] }
 0x9f7   : > { %v3537_v4 = vadd.f32 %v8135_v38, %v8129_v47 }
 0x9f8   : > { %5497 = vpow2.f32 %v3432_v53  ;;  %v3436_v16 = vmul.f32 1.442695, %v3342_v3  ;;  %v3438_v30 = vmul.f32 1.442695, %v3343_v6 }
 0x9f9   : > { %5499 = vpow2.f32 %v3434_v40  ;;  %3538 = vadd.xlane.f32.xlu1 %v3537_v4 }
 0x9fa   : > { %v8141_v35 = vpop.eup %5489  ;;  %5501 = vpow2.f32 %v3436_v16 }
 0x9fb   : > { %v8143_v58 = vpop.eup %5491  ;;  %5503 = vpow2.f32 %v3438_v30  ;;  %v3266_v0 = vpop.xlane.xlu0 %3265  ;;  %v9580_v30 = vld [vmem:[#allocation47_spill] sm:$0xff] }
 0x9fc   : > { %v8145_v8 = vpop.eup %5493  ;;  %v3344_v55 = vsub.f32 %v7905_v39, %v3266_v0  ;;  %v3345_v27 = vsub.f32 %v7907_v34, %v3266_v0  ;;  %v3540_v21 = vadd.f32 %v8143_v58, %v8141_v35 }
 0x9fd   : > { %v8151_v36 = vpop.eup %5495  ;;  %v3269_v46 = vpop.xlane.xlu1 %3268 }
 0x9fe   : > { %v3440_v48 = vmul.f32 1.442695, %v3344_v55  ;;  %v3442_v26 = vmul.f32 1.442695, %v3345_v27  ;;  %v3346_v19 = vsub.f32 %v7909_v2, %v3269_v46  ;;  %v3347_v63 = vsub.f32 %v9576_v10, %v3269_v46  ;;  %3541 = vadd.xlane.f32.xlu0 %v3540_v21  ;;  %v9579_v2 = vld [vmem:[#allocation63_spill] sm:$0xff]  ;;  %v9583_v10 = vld [vmem:[#allocation20_spill] sm:$0xff] }
 0x9ff   : > { %v3543_v53 = vadd.f32 %v8151_v36, %v8145_v8 }
 0xa00   : > { %5505 = vpow2.f32 %v3440_v48  ;;  %v3444_v39 = vmul.f32 1.442695, %v3346_v19  ;;  %v3446_v40 = vmul.f32 1.442695, %v3347_v63 }
 0xa01   : > { %5507 = vpow2.f32 %v3442_v26  ;;  %3544 = vadd.xlane.f32.xlu1 %v3543_v53  ;;  %v9582_v26 = vld [vmem:[#allocation18_spill] sm:$0xff] }
 0xa02   : > { %v8157_v34 = vpop.eup %5497  ;;  %5509 = vpow2.f32 %v3444_v39 }
 0xa03   : > { %9577 = vst [vmem:[#allocation9_spill] sm:$0xff] %v8157_v34  ;;  %v8159_v3 = vpop.eup %5499  ;;  %5511 = vpow2.f32 %v3446_v40  ;;  %v3272_v6 = vpop.xlane.xlu0 %3271 }
 0xa04   : > { %v8161_v4 = vpop.eup %5501  ;;  %v3348_v16 = vsub.f32 %v9579_v2, %v3272_v6  ;;  %v3349_v0 = vsub.f32 %v9580_v30, %v3272_v6  ;;  %v3546_v55 = vadd.f32 %v8159_v3, %v8157_v34  ;;  %v9591_v34 = vld [vmem:[#allocation26_spill] sm:$0xff] }
 0xa05   : > { %9578 = vst [vmem:[#allocation15_spill] sm:$0xff] %v8161_v4  ;;  %v8167_v27 = vpop.eup %5503  ;;  %v3275_v21 = vpop.xlane.xlu1 %3274 }
 0xa06   : > { %9581 = vst [vmem:[#allocation55_spill] sm:$0xff] %v8167_v27  ;;  %v3448_v46 = vmul.f32 1.442695, %v3348_v16  ;;  %v3450_v48 = vmul.f32 1.442695, %v3349_v0  ;;  %v3350_v19 = vsub.f32 %v9582_v26, %v3275_v21  ;;  %v3351_v63 = vsub.f32 %v9583_v10, %v3275_v21  ;;  %3547 = vadd.xlane.f32.xlu0 %v3546_v55  ;;  %v9587_v0 = vld [vmem:[#allocation17_spill] sm:$0xff] }
 0xa07   : > { %v3549_v53 = vadd.f32 %v8167_v27, %v8161_v4  ;;  %v9588_v55 = vld [vmem:[#allocation19_spill] sm:$0xff] }
 0xa08   : > { %5513 = vpow2.f32 %v3448_v46  ;;  %v3452_v39 = vmul.f32 1.442695, %v3350_v19  ;;  %v3454_v40 = vmul.f32 1.442695, %v3351_v63 }
 0xa09   : > { %5515 = vpow2.f32 %v3450_v48  ;;  %3550 = vadd.xlane.f32.xlu1 %v3549_v53  ;;  %v9590_v53 = vld [vmem:[#allocation24_spill] sm:$0xff] }
 0xa0a   : > { %v8173_v6 = vpop.eup %5505  ;;  %5517 = vpow2.f32 %v3452_v39 }
 0xa0b   : > { %9584 = vst [vmem:[#allocation41_spill] sm:$0xff] %v8173_v6  ;;  %v8175_v2 = vpop.eup %5507  ;;  %5519 = vpow2.f32 %v3454_v40  ;;  %v3278_v16 = vpop.xlane.xlu0 %3277 }
 0xa0c   : > { %9585 = vst [vmem:[#allocation56_spill] sm:$0xff] %v8175_v2  ;;  %v8177_v30 = vpop.eup %5509  ;;  %v3352_v21 = vsub.f32 %v9587_v0, %v3278_v16  ;;  %v3353_v26 = vsub.f32 %v9588_v55, %v3278_v16  ;;  %v3552_v46 = vadd.f32 %v8175_v2, %v8173_v6  ;;  %v9594_v6 = vld [vmem:[#allocation10_spill] sm:$0xff] }
 0xa0d   : > { %9586 = vst [vmem:[#allocation58_spill] sm:$0xff] %v8177_v30  ;;  %v8183_v19 = vpop.eup %5511  ;;  %v3281_v48 = vpop.xlane.xlu1 %3280 }
 0xa0e   : > { %9589 = vst [vmem:[#allocation75_spill] sm:$0xff] %v8183_v19  ;;  %v3456_v10 = vmul.f32 1.442695, %v3352_v21  ;;  %v3458_v63 = vmul.f32 1.442695, %v3353_v26  ;;  %v3354_v39 = vsub.f32 %v9590_v53, %v3281_v48  ;;  %v3355_v4 = vsub.f32 %v9591_v34, %v3281_v48  ;;  %3553 = vadd.xlane.f32.xlu0 %v3552_v46  ;;  %v9592_v53 = vld [vmem:[#allocation23_spill] sm:$0xff] }
 0xa0f   : > { %v3555_v40 = vadd.f32 %v8183_v19, %v8177_v30  ;;  %v9593_v46 = vld [vmem:[#allocation25_spill] sm:$0xff]  ;;  %v9595_v30 = vld [vmem:[#allocation16_spill] sm:$0xff] }
 0xa10   : > { %5521 = vpow2.f32 %v3456_v10  ;;  %v3460_v0 = vmul.f32 1.442695, %v3354_v39  ;;  %v3462_v27 = vmul.f32 1.442695, %v3355_v4 }
 0xa11   : > { %5523 = vpow2.f32 %v3458_v63  ;;  %3556 = vadd.xlane.f32.xlu1 %v3555_v40 }
 0xa12   : > { %v8189_v16 = vpop.eup %5513  ;;  %5525 = vpow2.f32 %v3460_v0 }
 0xa13   : > { %v8191_v55 = vpop.eup %5515  ;;  %5527 = vpow2.f32 %v3462_v27  ;;  %v3284_v21 = vpop.xlane.xlu0 %3283 }
 0xa14   : > { %v8193_v26 = vpop.eup %5517  ;;  %v3356_v34 = vsub.f32 %v9592_v53, %v3284_v21  ;;  %v3357_v48 = vsub.f32 %v9593_v46, %v3284_v21  ;;  %v3558_v10 = vadd.f32 %v8191_v55, %v8189_v16 }
 0xa15   : > { %v8199_v39 = vpop.eup %5519  ;;  %v3287_v4 = vpop.xlane.xlu1 %3286 }
 0xa16   : > { %v3464_v63 = vmul.f32 1.442695, %v3356_v34  ;;  %v3466_v40 = vmul.f32 1.442695, %v3357_v48  ;;  %v3358_v0 = vsub.f32 %v9594_v6, %v3287_v4  ;;  %v3359_v19 = vsub.f32 %v9595_v30, %v3287_v4  ;;  %3559 = vadd.xlane.f32.xlu0 %v3558_v10 }
 0xa17   : > { %v3561_v27 = vadd.f32 %v8199_v39, %v8193_v26 }
 0xa18   : > { %5529 = vpow2.f32 %v3464_v63  ;;  %v3468_v53 = vmul.f32 1.442695, %v3358_v0  ;;  %v3470_v2 = vmul.f32 1.442695, %v3359_v19  ;;  %v9603_v0 = vld [vmem:[#allocation33_spill] sm:$0xff] }
 0xa19   : > { %5531 = vpow2.f32 %v3466_v40  ;;  %3562 = vadd.xlane.f32.xlu1 %v3561_v27  ;;  %v9604_v27 = vld [vmem:[#allocation34_spill] sm:$0xff] }
 0xa1a   : > { %v8205_v21 = vpop.eup %5521  ;;  %5533 = vpow2.f32 %v3468_v53 }
 0xa1b   : > { %9596 = vst [vmem:[#allocation63_spill] sm:$0xff] %v8205_v21  ;;  %v8207_v46 = vpop.eup %5523  ;;  %5535 = vpow2.f32 %v3470_v2 }
 0xa1c   : > { %v8209_v34 = vpop.eup %5525  ;;  %v3564_v6 = vadd.f32 %v8207_v46, %v8205_v21 }
 0xa1d   : > { %9597 = vst [vmem:[#allocation47_spill] sm:$0xff] %v8209_v34  ;;  %v8213_v30 = vpop.eup %5527 }
 0xa1e   : > { %9598 = vst [vmem:[#allocation18_spill] sm:$0xff] %v8213_v30  ;;  %3565 = vadd.xlane.f32.xlu0 %v3564_v6  ;;  %v3567_v48 = vadd.f32 %v8213_v30, %v8209_v34 }
 0xa20   : > { %3568 = vadd.xlane.f32.xlu1 %v3567_v48 }
 0xa22   : > { %v8217_v19 = vpop.eup %5529 }
 0xa23   : > { %9599 = vst [vmem:[#allocation20_spill] sm:$0xff] %v8217_v19  ;;  %v8219_v10 = vpop.eup %5531 }
 0xa24   : > { %9600 = vst [vmem:[#allocation17_spill] sm:$0xff] %v8219_v10  ;;  %v8221_v4 = vpop.eup %5533  ;;  %v3570_v2 = vadd.f32 %v8219_v10, %v8217_v19 }
 0xa25   : > { %9601 = vst [vmem:[#allocation19_spill] sm:$0xff] %v8221_v4  ;;  %v8225_v63 = vpop.eup %5535 }
 0xa26   : > { %9602 = vst [vmem:[#allocation24_spill] sm:$0xff] %v8225_v63  ;;  %3571 = vadd.xlane.f32.xlu0 %v3570_v2  ;;  %v3573_v40 = vadd.f32 %v8225_v63, %v8221_v4 }
 0xa28   : > { %3574 = vadd.xlane.f32.xlu1 %v3573_v40 }
 0xa2a   : > { %799 = vadd.xlane.f32.xlu0 %v9603_v0 }
 0xa2c   : > { %802 = vadd.xlane.f32.xlu1 %v9604_v27 }
 0xa5b   : > { %v3506_v53 = vpop.xlane.xlu0 %3505 }
 0xa5c   : > { %5537 = vrcp.f32 %v3506_v53 }
 0xa5e   : > { %v3509_v6 = vpop.xlane.xlu1 %3508 }
 0xa5f   : > { %5539 = vrcp.f32 %v3509_v6  ;;  %v3290_v48 = vpop.xlane.xlu0 %3289 }
 0xa60   : > { %v3360_v21 = vsub.f32 %v7985_v59, %v3290_v48  ;;  %v3361_v19 = vsub.f32 %v7987_v12, %v3290_v48 }
 0xa62   : > { %v3472_v10 = vmul.f32 1.442695, %v3360_v21  ;;  %v3474_v34 = vmul.f32 1.442695, %v3361_v19  ;;  %v3293_v2 = vpop.xlane.xlu1 %3292 }
 0xa63   : > { %v3362_v30 = vsub.f32 %v8005_v31, %v3293_v2  ;;  %v3363_v40 = vsub.f32 %v8007_v41, %v3293_v2  ;;  %v3512_v4 = vpop.xlane.xlu0 %3511 }
 0xa64   : > { %5541 = vpow2.f32 %v3472_v10 }
 0xa65   : > { %5543 = vpow2.f32 %v3474_v34  ;;  %v3476_v0 = vmul.f32 1.442695, %v3362_v30  ;;  %v3478_v27 = vmul.f32 1.442695, %v3363_v40 }
 0xa66   : > { %v5538_v53 = vpop.eup %5537  ;;  %5545 = vrcp.f32 %v3512_v4  ;;  %v3515_v6 = vpop.xlane.xlu1 %3514 }
 0xa67   : > { %5547 = vpow2.f32 %v3476_v0  ;;  %v3296_v63 = vpop.xlane.xlu0 %3295  ;;  %v3633_v31 = vmul.f32 %v5538_v53, %v7991_v43  ;;  %v3632_v41 = vmul.f32 %v5538_v53, %v7989_v33 }
 0xa68   : > { %5549 = vpow2.f32 %v3478_v27  ;;  %v3364_v59 = vsub.f32 %v8012_v45, %v3296_v63  ;;  %v3365_v12 = vsub.f32 %v8015_v52, %v3296_v63 }
 0xa69   : > { %v5540_v21 = vpop.eup %5539  ;;  %5551 = vrcp.f32 %v3515_v6 }
 0xa6a   : > { %v3480_v19 = vmul.f32 1.442695, %v3364_v59  ;;  %v3482_v34 = vmul.f32 1.442695, %v3365_v12  ;;  %v3299_v30 = vpop.xlane.xlu1 %3298  ;;  %v3635_v10 = vmul.f32 %v5540_v21, %v7999_v49  ;;  %v3634_v4 = vmul.f32 %v5540_v21, %v7993_v60 }
 0xa6b   : > { %v3366_v48 = vsub.f32 %v8034_v32, %v3299_v30  ;;  %v3367_v2 = vsub.f32 %v8037_v7, %v3299_v30  ;;  %v3518_v45 = vpop.xlane.xlu0 %3517 }
 0xa6c   : > { %5553 = vpow2.f32 %v3480_v19  ;;  %v3697_v52 = vpack.c.bf16 %v3635_v10, %v3633_v31  ;;  %v3696_v63 = vpack.c.bf16 %v3634_v4, %v3632_v41 }
 0xa6d   : > { %5555 = vpow2.f32 %v3482_v34  ;;  %v3484_v40 = vmul.f32 1.442695, %v3366_v48  ;;  %v3486_v43 = vmul.f32 1.442695, %v3367_v2 }
 0xa6e   : > { %v8243_v0 = vpop.eup %5541  ;;  %5557 = vrcp.f32 %v3518_v45  ;;  %3728 = vmatprep.subr.bf16.mxu1 %v3697_v52  ;;  %v3521_v33 = vpop.xlane.xlu1 %3520 }
 0xa6f   : > { %v8245_v27 = vpop.eup %5543  ;;  %5559 = vpow2.f32 %v3484_v40  ;;  %3729 = vmatpush1.bf16.xpose.msra.mxu1 %v3696_v63  ;;  %v3302_v60 = vpop.xlane.xlu0 %3301  ;;  %v9605_v63 = vld [vmem:[#allocation39_spill] sm:$0xff] }
 0xa70   : > { %v5546_v49 = vpop.eup %5545  ;;  %5561 = vpow2.f32 %v3486_v43  ;;  %v3368_v32 = vsub.f32 %v8046_v1, %v3302_v60  ;;  %v3369_v7 = vsub.f32 %v8049_v42, %v3302_v60  ;;  %v3576_v53 = vadd.f32 %v8245_v27, %v8243_v0 }
 0xa71   : > { %v8251_v6 = vpop.eup %5547  ;;  %5563 = vrcp.f32 %v3521_v33  ;;  %v3637_v30 = vmul.f32 %v5546_v49, %v8019_v50  ;;  %v3636_v4 = vmul.f32 %v5546_v49, %v8017_v51  ;;  %v9606_v49 = vld [vmem:[#allocation40_spill] sm:$0xff] }
 0xa72   : > { %v8253_v59 = vpop.eup %5549  ;;  %v3488_v12 = vmul.f32 1.442695, %v3368_v32  ;;  %v3490_v21 = vmul.f32 1.442695, %v3369_v7  ;;  %v3305_v31 = vpop.xlane.xlu1 %3304  ;;  %3577 = vadd.xlane.f32.xlu0 %v3576_v53 }
 0xa73   : > { %v5552_v41 = vpop.eup %5551  ;;  %v3370_v19 = vsub.f32 %v8066_v54, %v3305_v31  ;;  %v3371_v34 = vsub.f32 %v8069_v18, %v3305_v31  ;;  %v3524_v1 = vpop.xlane.xlu0 %3523  ;;  %v3579_v42 = vadd.f32 %v8253_v59, %v8251_v6 }
 0xa74   : > { %5565 = vpow2.f32 %v3488_v12  ;;  %v3639_v10 = vmul.f32 %v5552_v41, %v8029_v56  ;;  %v3638_v48 = vmul.f32 %v5552_v41, %v8023_v24 }
 0xa75   : > { %5567 = vpow2.f32 %v3490_v21  ;;  %v3492_v2 = vmul.f32 1.442695, %v3370_v19  ;;  %v3494_v45 = vmul.f32 1.442695, %v3371_v34  ;;  %3580 = vadd.xlane.f32.xlu1 %v3579_v42 }
 0xa76   : > { %v8263_v54 = vpop.eup %5553  ;;  %5569 = vrcp.f32 %v3524_v1  ;;  %v3699_v18 = vpack.c.bf16 %v3639_v10, %v3637_v30  ;;  %v3527_v52 = vpop.xlane.xlu1 %3526  ;;  %805 = vadd.xlane.f32.xlu0 %v9605_v63  ;;  %v3698_v40 = vpack.c.bf16 %v3638_v48, %v3636_v4 }
 0xa77   : > { %v8266_v50 = vpop.eup %5555  ;;  %5571 = vpow2.f32 %v3492_v2  ;;  %v3308_v56 = vpop.xlane.xlu0 %3307 }
 0xa78   : > { %v5558_v43 = vpop.eup %5557  ;;  %5573 = vpow2.f32 %v3494_v45  ;;  %3730 = vmatprep.subr.bf16.mxu1 %v3699_v18  ;;  %v3372_v51 = vsub.f32 %v8078_v25, %v3308_v56  ;;  %v3373_v24 = vsub.f32 %v8081_v20, %v3308_v56  ;;  %v3582_v33 = vadd.f32 %v8266_v50, %v8263_v54 }
 0xa79   : > { %v8272_v60 = vpop.eup %5559  ;;  %5575 = vrcp.f32 %v3527_v52  ;;  %3731 = vmatpush1.bf16.xpose.msra.mxu1 %v3698_v40  ;;  %808 = vadd.xlane.f32.xlu1 %v9606_v49  ;;  %v3641_v19 = vmul.f32 %v5558_v43, %v8053_v5  ;;  %v3640_v1 = vmul.f32 %v5558_v43, %v8051_v29 }
 0xa7a   : > { %v8275_v32 = vpop.eup %5561  ;;  %v3496_v7 = vmul.f32 1.442695, %v3372_v51  ;;  %v3498_v53 = vmul.f32 1.442695, %v3373_v24  ;;  %3583 = vadd.xlane.f32.xlu0 %v3582_v33  ;;  %v3311_v12 = vpop.xlane.xlu1 %3310 }
 0xa7b   : > { %v5564_v21 = vpop.eup %5563  ;;  %v3374_v25 = vsub.f32 %v8098_v62, %v3311_v12  ;;  %v3375_v20 = vsub.f32 %v8101_v15, %v3311_v12  ;;  %v3530_v31 = vpop.xlane.xlu0 %3529  ;;  %v3585_v41 = vadd.f32 %v8275_v32, %v8272_v60 }
 0xa7c   : > { %5577 = vpow2.f32 %v3496_v7  ;;  %v3643_v34 = vmul.f32 %v5564_v21, %v8061_v23  ;;  %v3642_v42 = vmul.f32 %v5564_v21, %v8055_v61 }
 0xa7d   : > { %5579 = vpow2.f32 %v3498_v53  ;;  %v3500_v30 = vmul.f32 1.442695, %v3374_v25  ;;  %v3502_v10 = vmul.f32 1.442695, %v3375_v20  ;;  %3586 = vadd.xlane.f32.xlu1 %v3585_v41 }
 0xa7e   : > { %v8285_v62 = vpop.eup %5565  ;;  %5581 = vrcp.f32 %v3530_v31  ;;  %v3701_v15 = vpack.c.bf16 %v3643_v34, %v3641_v19  ;;  %v3533_v4 = vpop.xlane.xlu1 %3532  ;;  %v3700_v48 = vpack.c.bf16 %v3642_v42, %v3640_v1  ;;  %v9607_v19 = vld [vmem:[#allocation46_spill] sm:$0xff] }
 0xa7f   : > { %v8287_v2 = vpop.eup %5567  ;;  %5583 = vpow2.f32 %v3500_v30 }
 0xa80   : > { %v5570_v5 = vpop.eup %5569  ;;  %5585 = vpow2.f32 %v3502_v10  ;;  %3732 = vmatprep.subr.bf16.mxu1 %v3701_v15  ;;  %v3588_v29 = vadd.f32 %v8287_v2, %v8285_v62  ;;  %v9608_v15 = vld [vmem:[#allocation43_spill] sm:$0xff] }
 0xa81   : > { %v8291_v61 = vpop.eup %5571  ;;  %5587 = vrcp.f32 %v3533_v4  ;;  %3733 = vmatpush1.bf16.xpose.msra.mxu1 %v3700_v48  ;;  %v3645_v63 = vmul.f32 %v5570_v5, %v8085_v44  ;;  %v3644_v56 = vmul.f32 %v5570_v5, %v8083_v13 }
 0xa82   : > { %v8293_v23 = vpop.eup %5573  ;;  %3589 = vadd.xlane.f32.xlu0 %v3588_v29  ;;  %v9610_v29 = vld [vmem:[#allocation74_spill] sm:$0xff] }
 0xa83   : > { %v5576_v45 = vpop.eup %5575  ;;  %v3536_v18 = vpop.xlane.xlu0 %3535  ;;  %v3591_v52 = vadd.f32 %v8293_v23, %v8291_v61 }
 0xa84   : > { %v3647_v40 = vmul.f32 %v5576_v45, %v8093_v9  ;;  %v3646_v43 = vmul.f32 %v5576_v45, %v8087_v14  ;;  %5589 = vrcp.f32 %v3536_v18 }
 0xa85   : > { %3592 = vadd.xlane.f32.xlu1 %v3591_v52 }
 0xa86   : > { %v8301_v51 = vpop.eup %5577  ;;  %v3703_v24 = vpack.c.bf16 %v3647_v40, %v3645_v63  ;;  %v3539_v33 = vpop.xlane.xlu1 %3538  ;;  %v3702_v49 = vpack.c.bf16 %v3646_v43, %v3644_v56 }
 0xa87   : > { %v8303_v7 = vpop.eup %5579  ;;  %5591 = vrcp.f32 %v3539_v33 }
 0xa88   : > { %v5582_v53 = vpop.eup %5581  ;;  %3734 = vmatprep.subr.bf16.mxu1 %v3703_v24  ;;  %v3594_v44 = vadd.f32 %v8303_v7, %v8301_v51 }
 0xa89   : > { %v8307_v9 = vpop.eup %5583  ;;  %3735 = vmatpush1.bf16.xpose.msra.mxu1 %v3702_v49  ;;  %v3649_v25 = vmul.f32 %v5582_v53, %v8111_v11  ;;  %v3648_v31 = vmul.f32 %v5582_v53, %v8109_v28  ;;  %v9609_v11 = vld [vmem:[#allocation73_spill] sm:$0xff] }
 0xa8a   : > { %v8309_v13 = vpop.eup %5585  ;;  %3595 = vadd.xlane.f32.xlu0 %v3594_v44  ;;  %v9611_v44 = vld [vmem:[#allocation55_spill] sm:$0xff] }
 0xa8b   : > { %v5588_v14 = vpop.eup %5587  ;;  %v3542_v12 = vpop.xlane.xlu0 %3541  ;;  %v3597_v21 = vadd.f32 %v8309_v13, %v8307_v9 }
 0xa8c   : > { %v3651_v20 = vmul.f32 %v5588_v14, %v8119_v17  ;;  %v3650_v41 = vmul.f32 %v5588_v14, %v8113_v22  ;;  %5593 = vrcp.f32 %v3542_v12  ;;  %v9612_v14 = vld [vmem:[#allocation15_spill] sm:$0xff] }
 0xa8d   : > { %3598 = vadd.xlane.f32.xlu1 %v3597_v21 }
 0xa8e   : > { %911 = vadd.xlane.f32.xlu0 %v9607_v19  ;;  %v3705_v34 = vpack.c.bf16 %v3651_v20, %v3649_v25  ;;  %v3545_v1 = vpop.xlane.xlu1 %3544  ;;  %v3704_v42 = vpack.c.bf16 %v3650_v41, %v3648_v31  ;;  %v5590_v30 = vpop.eup %5589  ;;  %v9614_v19 = vld [vmem:[#allocation56_spill] sm:$0xff] }
 0xa8f   : > { %5595 = vrcp.f32 %v3545_v1  ;;  %v3653_v28 = vmul.f32 %v5590_v30, %v8127_v57  ;;  %v3652_v48 = vmul.f32 %v5590_v30, %v8125_v37  ;;  %v9615_v1 = vld [vmem:[#allocation75_spill] sm:$0xff] }
 0xa90   : > { %3736 = vmatprep.subr.bf16.mxu1 %v3705_v34 }
 0xa91   : > { %v5592_v10 = vpop.eup %5591  ;;  %3737 = vmatpush1.bf16.xpose.msra.mxu1 %v3704_v42  ;;  %914 = vadd.xlane.f32.xlu1 %v9608_v15  ;;  %v9616_v42 = vld [vmem:[#allocation58_spill] sm:$0xff]  ;;  %v9617_v15 = vld [vmem:[#allocation41_spill] sm:$0xff] }
 0xa92   : > { %917 = vadd.xlane.f32.xlu0 %v9609_v11  ;;  %v3655_v22 = vmul.f32 %v5592_v10, %v8135_v38  ;;  %v3654_v17 = vmul.f32 %v5592_v10, %v8129_v47 }
 0xa93   : > { %v3548_v4 = vpop.xlane.xlu0 %3547 }
 0xa94   : > { %v3707_v5 = vpack.c.bf16 %v3655_v22, %v3653_v28  ;;  %5597 = vrcp.f32 %v3548_v4  ;;  %v3706_v45 = vpack.c.bf16 %v3654_v17, %v3652_v48 }
 0xa95   : > { %920 = vadd.xlane.f32.xlu1 %v9610_v29 }
 0xa96   : > { %3738 = vmatprep.subr.bf16.mxu1 %v3707_v5  ;;  %v3551_v18 = vpop.xlane.xlu1 %3550  ;;  %v5594_v52 = vpop.eup %5593 }
 0xa97   : > { %5599 = vrcp.f32 %v3551_v18  ;;  %v3657_v57 = vmul.f32 %v5594_v52, %v8143_v58  ;;  %v3656_v37 = vmul.f32 %v5594_v52, %v8141_v35 }
 0xa99   : > { %v5596_v63 = vpop.eup %5595  ;;  %3739 = vmatpush1.bf16.xpose.msra.mxu1 %v3706_v45 }
 0xa9a   : > { %v3659_v38 = vmul.f32 %v5596_v63, %v8151_v36  ;;  %v3658_v47 = vmul.f32 %v5596_v63, %v8145_v8  ;;  %v9613_v8 = vld [vmem:[#allocation9_spill] sm:$0xff] }
 0xa9b   : > { %v3554_v40 = vpop.xlane.xlu0 %3553 }
 0xa9c   : > { %v3709_v56 = vpack.c.bf16 %v3659_v38, %v3657_v57  ;;  %5601 = vrcp.f32 %v3554_v40  ;;  %v3708_v43 = vpack.c.bf16 %v3658_v47, %v3656_v37 }
 0xa9e   : > { %3740 = vmatprep.subr.bf16.mxu1 %v3709_v56  ;;  %v3557_v24 = vpop.xlane.xlu1 %3556  ;;  %v5598_v33 = vpop.eup %5597 }
 0xa9f   : > { %5603 = vrcp.f32 %v3557_v24  ;;  %v3661_v53 = vmul.f32 %v5598_v33, %v8159_v3  ;;  %v3660_v21 = vmul.f32 %v5598_v33, %v9613_v8 }
 0xaa1   : > { %v5600_v49 = vpop.eup %5599  ;;  %3741 = vmatpush1.bf16.xpose.msra.mxu1 %v3708_v43 }
 0xaa2   : > { %v3663_v58 = vmul.f32 %v5600_v49, %v9611_v44  ;;  %v3662_v36 = vmul.f32 %v5600_v49, %v9612_v14 }
 0xaa3   : > { %v3560_v12 = vpop.xlane.xlu0 %3559 }
 0xaa4   : > { %v3711_v25 = vpack.c.bf16 %v3663_v58, %v3661_v53  ;;  %5605 = vrcp.f32 %v3560_v12  ;;  %v3710_v35 = vpack.c.bf16 %v3662_v36, %v3660_v21  ;;  %v9620_v53 = vld [vmem:[#allocation63_spill] sm:$0xff]  ;;  %v9621_v12 = vld [vmem:[#allocation17_spill] sm:$0xff]  ;;  %v9622_v21 = vld [vmem:[#allocation24_spill] sm:$0xff] }
 0xaa6   : > { %3742 = vmatprep.subr.bf16.mxu1 %v3711_v25  ;;  %v3563_v20 = vpop.xlane.xlu1 %3562  ;;  %v5602_v31 = vpop.eup %5601 }
 0xaa7   : > { %5607 = vrcp.f32 %v3563_v20  ;;  %v3665_v34 = vmul.f32 %v5602_v31, %v9614_v19  ;;  %v3664_v11 = vmul.f32 %v5602_v31, %v9617_v15  ;;  %v9624_v31 = vld [vmem:[#allocation20_spill] sm:$0xff]  ;;  %v9627_v15 = vld [vmem:[#allocation29_spill] sm:$0xff] }
 0xaa9   : > { %v5604_v41 = vpop.eup %5603  ;;  %3743 = vmatpush1.bf16.xpose.msra.mxu1 %v3710_v35 }
 0xaaa   : > { %v3667_v3 = vmul.f32 %v5604_v41, %v9615_v1  ;;  %v3666_v30 = vmul.f32 %v5604_v41, %v9616_v42 }
 0xaab   : > { %v3566_v10 = vpop.xlane.xlu0 %3565 }
 0xaac   : > { %5609 = vrcp.f32 %v3566_v10  ;;  %v3713_v28 = vpack.c.bf16 %v3667_v3, %v3665_v34  ;;  %v3712_v17 = vpack.c.bf16 %v3666_v30, %v3664_v11  ;;  %v9625_v3 = vld [vmem:[#allocation30_spill] sm:$0xff]  ;;  %v9626_v30 = vld [vmem:[#allocation32_spill] sm:$0xff] }
 0xaad   : > { %v3569_v22 = vpop.xlane.xlu1 %3568 }
 0xaae   : > { %3744 = vmatprep.subr.bf16.mxu1 %v3713_v28  ;;  %5611 = vrcp.f32 %v3569_v22  ;;  %v5606_v4 = vpop.eup %5605  ;;  %v9628_v28 = vld [vmem:[#allocation31_spill] sm:$0xff] }
 0xaaf   : > { %v3669_v5 = vmul.f32 %v5606_v4, %v8191_v55  ;;  %v3668_v52 = vmul.f32 %v5606_v4, %v8189_v16 }
 0xab1   : > { %v5608_v48 = vpop.eup %5607  ;;  %3745 = vmatpush1.bf16.xpose.msra.mxu1 %v3712_v17 }
 0xab2   : > { %v3671_v29 = vmul.f32 %v5608_v48, %v8199_v39  ;;  %v3670_v45 = vmul.f32 %v5608_v48, %v8193_v26  ;;  %v9618_v39 = vld [vmem:[#allocation18_spill] sm:$0xff]  ;;  %v9619_v26 = vld [vmem:[#allocation47_spill] sm:$0xff] }
 0xab3   : > { %v3572_v18 = vpop.xlane.xlu0 %3571 }
 0xab4   : > { %5613 = vrcp.f32 %v3572_v18  ;;  %v3715_v63 = vpack.c.bf16 %v3671_v29, %v3669_v5  ;;  %v3714_v38 = vpack.c.bf16 %v3670_v45, %v3668_v52 }
 0xab5   : > { %v3575_v57 = vpop.xlane.xlu1 %3574 }
 0xab6   : > { %v5610_v47 = vpop.eup %5609  ;;  %3746 = vmatprep.subr.bf16.mxu1 %v3715_v63  ;;  %5615 = vrcp.f32 %v3575_v57 }
 0xab7   : > { %v800_v40 = vpop.xlane.xlu0 %799  ;;  %v3673_v55 = vmul.f32 %v5610_v47, %v8207_v46  ;;  %v3672_v44 = vmul.f32 %v5610_v47, %v9620_v53  ;;  %v9623_v46 = vld [vmem:[#allocation19_spill] sm:$0xff]  ;;  %v9629_v53 = vld [vmem:[#allocation36_spill] sm:$0xff] }
 0xab8   : > { %v5612_v37 = vpop.eup %5611  ;;  %v822_v56 = vmax.f32 %v800_v40, 1e-24 }
 0xab9   : > { %3747 = vmatpush1.bf16.xpose.msra.mxu1 %v3714_v38  ;;  %v803_v43 = vpop.xlane.xlu1 %802  ;;  %v3675_v24 = vmul.f32 %v5612_v37, %v9618_v39  ;;  %v3674_v33 = vmul.f32 %v5612_v37, %v9619_v26 }
 0xaba   : > { %5617 = vrsqrt.f32 %v822_v56  ;;  %v823_v16 = vmax.f32 %v803_v43, 1e-24 }
 0xabb   : > { %v3717_v49 = vpack.c.bf16 %v3675_v24, %v3673_v55  ;;  %v3716_v58 = vpack.c.bf16 %v3674_v33, %v3672_v44 }
 0xabc   : > { %5619 = vrsqrt.f32 %v823_v16 }
 0xabd   : > { %3748 = vmatprep.subr.bf16.mxu1 %v3717_v49 }
 0xabe   : > { %v5614_v14 = vpop.eup %5613 }
 0xabf   : > { %v3677_v8 = vmul.f32 %v5614_v14, %v9621_v12  ;;  %v3676_v41 = vmul.f32 %v5614_v14, %v9624_v31 }
 0xac0   : > { %v5616_v36 = vpop.eup %5615 }
 0xac1   : > { %3749 = vmatpush1.bf16.xpose.msra.mxu1 %v3716_v58  ;;  %v3679_v25 = vmul.f32 %v5616_v36, %v9622_v21  ;;  %v3678_v35 = vmul.f32 %v5616_v36, %v9623_v46 }
 0xac3   : > { %v3719_v20 = vpack.c.bf16 %v3679_v25, %v3677_v8  ;;  %v3718_v34 = vpack.c.bf16 %v3678_v35, %v3676_v41 }
 0xac4   : > { %v5618_v19 = vpop.eup %5617 }
 0xac5   : > { %3750 = vmatprep.subr.bf16.mxu1 %v3719_v20  ;;  %v979_v42 = vmul.f32 %v5618_v19, %v9625_v3  ;;  %v978_v11 = vmul.f32 %v5618_v19, %v9627_v15 }
 0xac6   : > { %v5620_v1 = vpop.eup %5619 }
 0xac7   : > { %v981_v10 = vmul.f32 %v5620_v1, %v9626_v30  ;;  %v980_v22 = vmul.f32 %v5620_v1, %v9628_v28 }
 0xac9   : > { %3751 = vmatpush1.bf16.xpose.msra.mxu1 %v3718_v34  ;;  %v999_v17 = vpack.c.bf16 %v981_v10, %v979_v42  ;;  %v998_v4 = vpack.c.bf16 %v980_v22, %v978_v11 }
 0xacb   : > { %3801 = vxpose.xlu1.c.b16.start [1/2] (short) %v999_v17, 128  ;;  %3785 = vxpose.xlu0.c.b16.start [1/2] (short) %v998_v4, 128  ;;  %v9633_v17 = vmov 0  }
 0xaff   : > { %v3578_v48 = vpop.xlane.xlu0 %3577 }
 0xb00   : > { %5621 = vrcp.f32 %v3578_v48 }
 0xb02   : > { %v3581_v5 = vpop.xlane.xlu1 %3580 }
 0xb03   : > { %5623 = vrcp.f32 %v3581_v5  ;;  %v806_v29 = vpop.xlane.xlu0 %805 }
 0xb04   : > { %v824_v45 = vmax.f32 %v806_v29, 1e-24 }
 0xb06   : > { %v809_v18 = vpop.xlane.xlu1 %808  ;;  %5625 = vrsqrt.f32 %v824_v45 }
 0xb07   : > { %v825_v52 = vmax.f32 %v809_v18, 1e-24  ;;  %v3584_v63 = vpop.xlane.xlu0 %3583 }
 0xb08   : > { %5627 = vrcp.f32 %v3584_v63 }
 0xb09   : > { %5629 = vrsqrt.f32 %v825_v52 }
 0xb0a   : > { %v3587_v57 = vpop.xlane.xlu1 %3586  ;;  %v5622_v38 = vpop.eup %5621 }
 0xb0b   : > { %5631 = vrcp.f32 %v3587_v57  ;;  %v3681_v40 = vmul.f32 %v5622_v38, %v8245_v27  ;;  %v3680_v56 = vmul.f32 %v5622_v38, %v8243_v0  ;;  %v9630_v27 = vld [vmem:[#allocation38_spill] sm:$0xff]  ;;  %v9632_v0 = vld [vmem:[#allocation37_spill] sm:$0xff]  ;;  %v9634_v57 = vld [vmem:[#allocation67_spill] sm:$0xff] }
 0xb0d   : > { %v5624_v47 = vpop.eup %5623 }
 0xb0e   : > { %v3683_v37 = vmul.f32 %v5624_v47, %v8253_v59  ;;  %v3682_v43 = vmul.f32 %v5624_v47, %v8251_v6  ;;  %v9631_v59 = vld [vmem:[#allocation35_spill] sm:$0xff]  ;;  %v9635_v47 = vld [vmem:[#allocation70_spill] sm:$0xff] }
 0xb0f   : > { %v3590_v55 = vpop.xlane.xlu0 %3589 }
 0xb10   : > { %v3721_v39 = vpack.c.bf16 %v3683_v37, %v3681_v40  ;;  %v3720_v24 = vpack.c.bf16 %v3682_v43, %v3680_v56  ;;  %v5626_v26 = vpop.eup %5625  ;;  %5633 = vrcp.f32 %v3590_v55  ;;  %v9636_v37 = vld [vmem:[#allocation57_spill] sm:$0xff] }
 0xb11   : > { %v983_v44 = vmul.f32 %v5626_v26, %v9629_v53  ;;  %v982_v14 = vmul.f32 %v5626_v26, %v9631_v59  ;;  %v9637_v43 = vld [vmem:[#allocation69_spill] sm:$0xff]  ;;  %v9639_v26 = vld [vmem:[#allocation72_spill] sm:$0xff]  ;;  %v9641_v53 = vld [vmem:[#allocation71_spill] sm:$0xff] }
 0xb12   : > { %v5628_v33 = vpop.eup %5627  ;;  %3752 = vmatprep.subr.bf16.mxu1 %v3721_v39  ;;  %v3593_v16 = vpop.xlane.xlu1 %3592 }
 0xb13   : > { %v5630_v49 = vpop.eup %5629  ;;  %5635 = vrcp.f32 %v3593_v16  ;;  %3753 = vmatpush1.bf16.xpose.msra.mxu1 %v3720_v24  ;;  %v3685_v12 = vmul.f32 %v5628_v33, %v8266_v50  ;;  %v3684_v8 = vmul.f32 %v5628_v33, %v8263_v54  ;;  %v9640_v16 = vld [vmem:[#allocation60_spill] sm:$0xff] }
 0xb14   : > { %v985_v58 = vmul.f32 %v5630_v49, %v9630_v27  ;;  %v984_v36 = vmul.f32 %v5630_v49, %v9632_v0  ;;  %v9642_v27 = vld [vmem:[#allocation22_spill] sm:$0xff] }
 0xb15   : > { %v5632_v6 = vpop.eup %5631 }
 0xb16   : > { %v1001_v21 = vpack.c.bf16 %v985_v58, %v983_v44  ;;  %v1000_v25 = vpack.c.bf16 %v984_v36, %v982_v14  ;;  %v3687_v46 = vmul.f32 %v5632_v6, %v8275_v32  ;;  %v3686_v35 = vmul.f32 %v5632_v6, %v8272_v60  ;;  %v9643_v58 = vld [vmem:[#allocation21_spill] sm:$0xff]  ;;  %v9646_v6 = vld [vmem:[#allocation28_spill] sm:$0xff] }
 0xb17   : > { %v3596_v20 = vpop.xlane.xlu0 %3595  ;;  %v9644_v59 = vpack.c.bf16 %v9642_v27, %v9643_v58  ;;  %v9645_v36 = vld [vmem:[#allocation53_spill] sm:$0xff] }
 0xb18   : > { %3802 = vxpose.xlu1.c.b16.end [2/2] (short) %v1001_v21, 128  ;;  %3786 = vxpose.xlu0.c.b16.end [2/2] (short) %v1000_v25, 128  ;;  %v3723_v31 = vpack.c.bf16 %v3687_v46, %v3685_v12  ;;  %v3722_v41 = vpack.c.bf16 %v3686_v35, %v3684_v8  ;;  %5637 = vrcp.f32 %v3596_v20  ;;  %v9647_v12 = vpack.c.bf16 %v9645_v36, %v9646_v6  ;;  %v9648_v8 = vld [vmem:[#allocation54_spill] sm:$0xff]  ;;  %v9649_v21 = vld [vmem:[#allocation27_spill] sm:$0xff] }
 0xb19   : > { %v9650_v25 = vpack.c.bf16 %v9648_v8, %v9649_v21 }
 0xb1a   : > { %3754 = vmatprep.subr.bf16.mxu1 %v3723_v31  ;;  %v3599_v19 = vpop.xlane.xlu1 %3598  ;;  %v5634_v34 = vpop.eup %5633 }
 0xb1b   : > { %5639 = vrcp.f32 %v3599_v19  ;;  %3755 = vmatpush1.bf16.xpose.msra.mxu1 %v3722_v41  ;;  %v912_v50 = vpop.xlane.xlu0 %911  ;;  %v3689_v42 = vmul.f32 %v5634_v34, %v8287_v2  ;;  %v3688_v60 = vmul.f32 %v5634_v34, %v8285_v62 }
 0xb1c   : > { %v934_v1 = vmax.f32 %v912_v50, 1e-24 }
 0xb1d   : > { %v5636_v54 = vpop.eup %5635 }
 0xb1e   : > { %v915_v3 = vpop.xlane.xlu1 %914  ;;  %v3691_v32 = vmul.f32 %v5636_v54, %v8293_v23  ;;  %v3690_v30 = vmul.f32 %v5636_v54, %v8291_v61  ;;  %5641 = vrsqrt.f32 %v934_v1 }
 0xb1f   : > { %v935_v10 = vmax.f32 %v915_v3, 1e-24  ;;  %v918_v15 = vpop.xlane.xlu0 %917 }
 0xb20   : > { %v936_v11 = vmax.f32 %v918_v15, 1e-24  ;;  %v3725_v28 = vpack.c.bf16 %v3691_v32, %v3689_v42  ;;  %v3724_v22 = vpack.c.bf16 %v3690_v30, %v3688_v60 }
 0xb21   : > { %5643 = vrsqrt.f32 %v935_v10  ;;  %4984 = vset.pattern.permute.xlu0 %v9633_v17 }
 0xb22   : > { %3756 = vmatprep.subr.bf16.mxu1 %v3725_v28  ;;  %v921_v4 = vpop.xlane.xlu1 %920  ;;  %v5638_v48 = vpop.eup %5637  ;;  %5645 = vrsqrt.f32 %v936_v11 }
 0xb23   : > { %v937_v2 = vmax.f32 %v921_v4, 1e-24  ;;  %3757 = vmatpush1.bf16.xpose.msra.mxu1 %v3724_v22  ;;  %v3693_v62 = vmul.f32 %v5638_v48, %v8303_v7  ;;  %v3692_v5 = vmul.f32 %v5638_v48, %v8301_v51 }
 0xb25   : > { %v5640_v23 = vpop.eup %5639  ;;  %5647 = vrsqrt.f32 %v937_v2 }
 0xb26   : > { %v3695_v61 = vmul.f32 %v5640_v23, %v8309_v13  ;;  %v3694_v29 = vmul.f32 %v5640_v23, %v8307_v9  ;;  %v9638_v9 = vld [vmem:[#allocation62_spill] sm:$0xff] }
 0xb28   : > { %v3727_v45 = vpack.c.bf16 %v3695_v61, %v3693_v62  ;;  %v3726_v18 = vpack.c.bf16 %v3694_v29, %v3692_v5  ;;  %v5642_v52 = vpop.eup %5641 }
 0xb29   : > { %v1027_v38 = vmul.f32 %v5642_v52, %v9634_v57  ;;  %v1026_v56 = vmul.f32 %v5642_v52, %v9636_v37 }
 0xb2a   : > { %3758 = vmatprep.subr.bf16.mxu1 %v3727_v45 }
 0xb2b   : > { %v5644_v63 = vpop.eup %5643  ;;  %3759 = vmatpush1.bf16.xpose.msra.mxu1 %v3726_v18 }
 0xb2c   : > { %v1029_v40 = vmul.f32 %v5644_v63, %v9635_v47  ;;  %v1028_v7 = vmul.f32 %v5644_v63, %v9637_v43  ;;  %v5646_v55 = vpop.eup %5645 }
 0xb2d   : > { %v1031_v24 = vmul.f32 %v5646_v55, %v9638_v9  ;;  %v1030_v49 = vmul.f32 %v5646_v55, %v9640_v16 }
 0xb2e   : > { %v1047_v13 = vpack.c.bf16 %v1029_v40, %v1027_v38  ;;  %v1046_v39 = vpack.c.bf16 %v1028_v7, %v1026_v56 }
 0xb2f   : > { %v5648_v51 = vpop.eup %5647 }
 0xb30   : > { %3865 = vmatprep.subr.bf16.mxu1 %v1047_v13  ;;  %v1033_v33 = vmul.f32 %v5648_v51, %v9639_v26  ;;  %v1032_v44 = vmul.f32 %v5648_v51, %v9641_v53 }
 0xb32   : > { %3761 = vmatmul.mubr.bf16.vlgmr.msra.gmra.mrb[136].mxu1 %v9644_v59  ;;  %v1049_v14 = vpack.c.bf16 %v1033_v33, %v1031_v24  ;;  %v1048_v0 = vpack.c.bf16 %v1032_v44, %v1030_v49 }
 0xb33   : > { %3770 = vmatprep.mubr.bf16.mxu1 %v9647_v12  ;;  %3866 = vmatpush1.bf16.msra.mxu1 %v1046_v39 }
 0xb34   : > { %3867 = vmatprep.subr.bf16.mxu1 %v1049_v14 }
 0xb37   : > { %3868 = vmatpush1.bf16.msra.mxu1 %v1048_v0 }
 0xb3a   : > { %3771 = vmatmul.mubr.bf16.gmra.mrb[140].mxu1 %v9650_v25 }
 0xb3b   : > { %3897 = vmatprep.mubr.bf16.mxu1 %v9633_v17 }
 0xb7a   : > { %v3793_v46 = vpop.trf.xlu0  ;;  %v3809_v1 = vpop.trf.xlu1 }
 0xb7b   : > { %4921 = vmatmul.mubr.msk.bf16.vlgmr.msra.gmra.mrb[144].mxu1 %vm1098_vm2, %v3793_v46 }
 0xb7c   : > { %3907 = vmatprep.mubr.bf16.mxu1 %v9633_v17 }
 0xb7e   : > { %v3794_v35 = vpop.trf.xlu0  ;;  %v3810_v54 = vpop.trf.xlu1 }
 0xb82   : > { %v3795_v20 = vpop.trf.xlu0  ;;  %v3811_v3 = vpop.trf.xlu1 }
 0xb83   : > { %4922 = vmatmul.mubr.msk.bf16.gmra.mrb[148].mxu1 %vm1098_vm2, %v3794_v35 }
 0xb84   : > { %3917 = vmatprep.mubr.bf16.mxu1 %v9633_v17 }
 0xb86   : > { %v3796_v31 = vpop.trf.xlu0  ;;  %v3812_v42 = vpop.trf.xlu1 }
 0xb8a   : > { %v3797_v41 = vpop.trf.xlu0  ;;  %v3813_v32 = vpop.trf.xlu1 }
 0xb8b   : > { %4923 = vmatmul.mubr.msk.bf16.gmra.mrb[152].mxu1 %vm1098_vm2, %v3795_v20 }
 0xb8c   : > { %3927 = vmatprep.mubr.bf16.mxu1 %v9633_v17 }
 0xb8e   : > { %v3798_v19 = vpop.trf.xlu0  ;;  %v3814_v60 = vpop.trf.xlu1 }
 0xb92   : > { %v3799_v34 = vpop.trf.xlu0  ;;  %v3815_v30 = vpop.trf.xlu1 }
 0xb93   : > { %4924 = vmatmul.mubr.msk.bf16.gmra.mrb[156].mxu1 %vm1098_vm2, %v3796_v31 }
 0xb94   : > { %3937 = vmatprep.mubr.bf16.mxu1 %v9633_v17 }
 0xb96   : > { %v3800_v50 = vpop.trf.xlu0  ;;  %v3816_v10 = vpop.trf.xlu1 }
 0xb9b   : > { %4925 = vmatmul.mubr.msk.bf16.gmra.mrb[160].mxu1 %vm1098_vm2, %v3797_v41 }
 0xb9c   : > { %3947 = vmatprep.mubr.bf16.mxu1 %v9633_v17 }
 0xba3   : > { %4926 = vmatmul.mubr.msk.bf16.gmra.mrb[164].mxu1 %vm1098_vm2, %v3798_v19 }
 0xba4   : > { %3957 = vmatprep.mubr.bf16.mxu1 %v9633_v17 }
 0xbab   : > { %4927 = vmatmul.mubr.msk.bf16.gmra.mrb[168].mxu1 %vm1098_vm2, %v3799_v34 }
 0xbac   : > { %3967 = vmatprep.mubr.bf16.mxu1 %v9633_v17 }
 0xbb3   : > { %4928 = vmatmul.mubr.msk.bf16.gmra.mrb[172].mxu1 %vm1098_vm2, %v3800_v50 }
 0xbb4   : > { %3977 = vmatprep.mubr.bf16.mxu1 %v9633_v17 }
 0xbbb   : > { %4929 = vmatmul.mubr.msk.bf16.gmra.mrb[176].mxu1 %vm1098_vm2, %v3809_v1 }
 0xbbc   : > { %3987 = vmatprep.mubr.bf16.mxu1 %v9633_v17 }
 0xbc3   : > { %4930 = vmatmul.mubr.msk.bf16.gmra.mrb[180].mxu1 %vm1098_vm2, %v3810_v54 }
 0xbc4   : > { %3997 = vmatprep.mubr.bf16.mxu1 %v9633_v17 }
 0xbcb   : > { %4931 = vmatmul.mubr.msk.bf16.gmra.mrb[184].mxu1 %vm1098_vm2, %v3811_v3 }
 0xbcc   : > { %4007 = vmatprep.mubr.bf16.mxu1 %v9633_v17 }
 0xbd3   : > { %4932 = vmatmul.mubr.msk.bf16.gmra.mrb[188].mxu1 %vm1098_vm2, %v3812_v42 }
 0xbd4   : > { %4017 = vmatprep.mubr.bf16.mxu1 %v9633_v17 }
 0xbdb   : > { %4933 = vmatmul.mubr.msk.bf16.gmra.mrb[192].mxu1 %vm1098_vm2, %v3813_v32 }
 0xbdc   : > { %4027 = vmatprep.mubr.bf16.mxu1 %v9633_v17 }
 0xbe3   : > { %4934 = vmatmul.mubr.msk.bf16.gmra.mrb[196].mxu1 %vm1098_vm2, %v3814_v60 }
 0xbe4   : > { %4037 = vmatprep.mubr.bf16.mxu1 %v9633_v17 }
 0xbeb   : > { %4935 = vmatmul.mubr.msk.bf16.gmra.mrb[200].mxu1 %vm1098_vm2, %v3815_v30 }
 0xbec   : > { %4047 = vmatprep.mubr.bf16.mxu1 %v9633_v17 }
 0xbf3   : > { %4936 = vmatmul.mubr.msk.bf16.gmra.mrb[204].mxu1 %vm1098_vm2, %v3816_v10 }
 0xc05   : > { %v8423_v15 = vpop.f32.mrb[136].mxu1 }
 0xc06   : > { %9651 = vst [vmem:[#allocation26_spill] sm:$0xff] %v8423_v15  ;;  %v8425_v11 = vpop.f32.mrb[137].mxu1 }
 0xc07   : > { %9652 = vst [vmem:[#allocation23_spill] sm:$0xff] %v8425_v11  ;;  %v8427_v28 = vpop.f32.mrb[138].mxu1 }
 0xc08   : > { %9653 = vst [vmem:[#allocation25_spill] sm:$0xff] %v8427_v28  ;;  %v8431_v4 = vpop.f32.mrb[139].mxu1 }
 0xc09   : > { %9654 = vst [vmem:[#allocation10_spill] sm:$0xff] %v8431_v4 }
 0xc0d   : > { %v8435_v2 = vpop.f32.mrb[140].mxu1 }
 0xc0e   : > { %9655 = vst [vmem:[#allocation16_spill] sm:$0xff] %v8435_v2  ;;  %v8437_v23 = vpop.f32.mrb[141].mxu1 }
 0xc0f   : > { %9656 = vst [vmem:[#allocation33_spill] sm:$0xff] %v8437_v23  ;;  %v8439_v62 = vpop.f32.mrb[142].mxu1 }
 0xc10   : > { %9657 = vst [vmem:[#allocation34_spill] sm:$0xff] %v8439_v62  ;;  %v8443_v5 = vpop.f32.mrb[143].mxu1 }
 0xc11   : > { %9658 = vst [vmem:[#allocation39_spill] sm:$0xff] %v8443_v5 }
 0xc4e   : > { %v3899_v45 = vpop.f32.mrb[144].mxu1 }
 0xc4f   : > { %v8447_v18 = vmul.f32 10.0, %v3899_v45  ;;  %v3901_v52 = vpop.f32.mrb[145].mxu1 }
 0xc50   : > { %v8449_v63 = vmul.f32 10.0, %v3901_v52  ;;  %v3903_v57 = vpop.f32.mrb[146].mxu1 }
 0xc51   : > { %v8451_v38 = vmul.f32 10.0, %v3903_v57  ;;  %v3905_v47 = vpop.f32.mrb[147].mxu1 }
 0xc52   : > { %v4122_v40 = vmax.f32 %v8447_v18, %v8449_v63  ;;  %v8455_v37 = vmul.f32 10.0, %v3905_v47 }
 0xc54   : > { %v4125_v56 = vmax.f32 %v8451_v38, %v8455_v37  ;;  %4123 = vmax.xlane.f32.xlu0 %v4122_v40 }
 0xc56   : > { %4126 = vmax.xlane.f32.xlu1 %v4125_v56  ;;  %v3909_v43 = vpop.f32.mrb[148].mxu1 }
 0xc57   : > { %v8459_v7 = vmul.f32 10.0, %v3909_v43  ;;  %v3911_v55 = vpop.f32.mrb[149].mxu1 }
 0xc58   : > { %v8461_v13 = vmul.f32 10.0, %v3911_v55  ;;  %v3913_v39 = vpop.f32.mrb[150].mxu1 }
 0xc59   : > { %v8463_v51 = vmul.f32 10.0, %v3913_v39  ;;  %v3915_v9 = vpop.f32.mrb[151].mxu1 }
 0xc5a   : > { %v4128_v24 = vmax.f32 %v8459_v7, %v8461_v13  ;;  %v8467_v26 = vmul.f32 10.0, %v3915_v9 }
 0xc5c   : > { %v4131_v33 = vmax.f32 %v8463_v51, %v8467_v26  ;;  %4129 = vmax.xlane.f32.xlu0 %v4128_v24 }
 0xc5e   : > { %4132 = vmax.xlane.f32.xlu1 %v4131_v33  ;;  %v3919_v16 = vpop.f32.mrb[152].mxu1 }
 0xc5f   : > { %v8471_v49 = vmul.f32 10.0, %v3919_v16  ;;  %v3921_v53 = vpop.f32.mrb[153].mxu1 }
 0xc60   : > { %v8473_v44 = vmul.f32 10.0, %v3921_v53  ;;  %v3923_v27 = vpop.f32.mrb[154].mxu1 }
 0xc61   : > { %v8475_v58 = vmul.f32 10.0, %v3923_v27  ;;  %v3925_v59 = vpop.f32.mrb[155].mxu1 }
 0xc62   : > { %v4134_v14 = vmax.f32 %v8471_v49, %v8473_v44  ;;  %v8479_v0 = vmul.f32 10.0, %v3925_v59 }
 0xc64   : > { %v4137_v36 = vmax.f32 %v8475_v58, %v8479_v0  ;;  %4135 = vmax.xlane.f32.xlu0 %v4134_v14 }
 0xc66   : > { %4138 = vmax.xlane.f32.xlu1 %v4137_v36  ;;  %v3929_v6 = vpop.f32.mrb[156].mxu1 }
 0xc67   : > { %v8483_v12 = vmul.f32 10.0, %v3929_v6  ;;  %v3931_v8 = vpop.f32.mrb[157].mxu1 }
 0xc68   : > { %v8485_v21 = vmul.f32 10.0, %v3931_v8  ;;  %v3933_v25 = vpop.f32.mrb[158].mxu1 }
 0xc69   : > { %v8487_v46 = vmul.f32 10.0, %v3933_v25  ;;  %v3935_v35 = vpop.f32.mrb[159].mxu1 }
 0xc6a   : > { %v4140_v20 = vmax.f32 %v8483_v12, %v8485_v21  ;;  %v8491_v31 = vmul.f32 10.0, %v3935_v35 }
 0xc6c   : > { %v4143_v41 = vmax.f32 %v8487_v46, %v8491_v31  ;;  %4141 = vmax.xlane.f32.xlu0 %v4140_v20 }
 0xc6e   : > { %4144 = vmax.xlane.f32.xlu1 %v4143_v41  ;;  %v3939_v19 = vpop.f32.mrb[160].mxu1 }
 0xc6f   : > { %v8495_v34 = vmul.f32 10.0, %v3939_v19  ;;  %v3941_v50 = vpop.f32.mrb[161].mxu1 }
 0xc70   : > { %v8497_v1 = vmul.f32 10.0, %v3941_v50  ;;  %v3943_v54 = vpop.f32.mrb[162].mxu1 }
 0xc71   : > { %v8499_v3 = vmul.f32 10.0, %v3943_v54  ;;  %v3945_v42 = vpop.f32.mrb[163].mxu1 }
 0xc72   : > { %v4146_v32 = vmax.f32 %v8495_v34, %v8497_v1  ;;  %v8503_v60 = vmul.f32 10.0, %v3945_v42 }
 0xc74   : > { %v4149_v30 = vmax.f32 %v8499_v3, %v8503_v60  ;;  %4147 = vmax.xlane.f32.xlu0 %v4146_v32 }
 0xc76   : > { %4150 = vmax.xlane.f32.xlu1 %v4149_v30  ;;  %v3949_v10 = vpop.f32.mrb[164].mxu1 }
 0xc77   : > { %v8507_v45 = vmul.f32 10.0, %v3949_v10  ;;  %v3951_v52 = vpop.f32.mrb[165].mxu1 }
 0xc78   : > { %v8509_v57 = vmul.f32 10.0, %v3951_v52  ;;  %v3953_v47 = vpop.f32.mrb[166].mxu1 }
 0xc79   : > { %v8511_v40 = vmul.f32 10.0, %v3953_v47  ;;  %v3955_v56 = vpop.f32.mrb[167].mxu1 }
 0xc7a   : > { %v4152_v43 = vmax.f32 %v8507_v45, %v8509_v57  ;;  %v8515_v55 = vmul.f32 10.0, %v3955_v56 }
 0xc7c   : > { %v4155_v39 = vmax.f32 %v8511_v40, %v8515_v55  ;;  %4153 = vmax.xlane.f32.xlu0 %v4152_v43 }
 0xc7e   : > { %4156 = vmax.xlane.f32.xlu1 %v4155_v39  ;;  %v3959_v9 = vpop.f32.mrb[168].mxu1 }
 0xc7f   : > { %v8519_v24 = vmul.f32 10.0, %v3959_v9  ;;  %v3961_v33 = vpop.f32.mrb[169].mxu1 }
 0xc80   : > { %v8521_v16 = vmul.f32 10.0, %v3961_v33  ;;  %v3963_v53 = vpop.f32.mrb[170].mxu1 }
 0xc81   : > { %v8523_v27 = vmul.f32 10.0, %v3963_v53  ;;  %v3965_v59 = vpop.f32.mrb[171].mxu1 }
 0xc82   : > { %v4158_v14 = vmax.f32 %v8519_v24, %v8521_v16  ;;  %v8527_v36 = vmul.f32 10.0, %v3965_v59 }
 0xc84   : > { %v4161_v6 = vmax.f32 %v8523_v27, %v8527_v36  ;;  %4159 = vmax.xlane.f32.xlu0 %v4158_v14 }
 0xc86   : > { %4162 = vmax.xlane.f32.xlu1 %v4161_v6  ;;  %v3969_v8 = vpop.f32.mrb[172].mxu1 }
 0xc87   : > { %v8531_v25 = vmul.f32 10.0, %v3969_v8  ;;  %v3971_v35 = vpop.f32.mrb[173].mxu1 }
 0xc88   : > { %v8533_v20 = vmul.f32 10.0, %v3971_v35  ;;  %v3973_v41 = vpop.f32.mrb[174].mxu1 }
 0xc89   : > { %v8535_v19 = vmul.f32 10.0, %v3973_v41  ;;  %v3975_v50 = vpop.f32.mrb[175].mxu1 }
 0xc8a   : > { %v4164_v54 = vmax.f32 %v8531_v25, %v8533_v20  ;;  %v8539_v42 = vmul.f32 10.0, %v3975_v50 }
 0xc8c   : > { %v4167_v32 = vmax.f32 %v8535_v19, %v8539_v42  ;;  %4165 = vmax.xlane.f32.xlu0 %v4164_v54 }
 0xc8e   : > { %4168 = vmax.xlane.f32.xlu1 %v4167_v32  ;;  %v3979_v30 = vpop.f32.mrb[176].mxu1 }
 0xc8f   : > { %v8543_v10 = vmul.f32 10.0, %v3979_v30  ;;  %v3981_v52 = vpop.f32.mrb[177].mxu1 }
 0xc90   : > { %v8545_v47 = vmul.f32 10.0, %v3981_v52  ;;  %v3983_v56 = vpop.f32.mrb[178].mxu1 }
 0xc91   : > { %v8547_v43 = vmul.f32 10.0, %v3983_v56  ;;  %v3985_v39 = vpop.f32.mrb[179].mxu1 }
 0xc92   : > { %v4170_v9 = vmax.f32 %v8543_v10, %v8545_v47  ;;  %v8551_v33 = vmul.f32 10.0, %v3985_v39 }
 0xc94   : > { %9659 = vst [vmem:[#allocation40_spill] sm:$0xff] %v8551_v33  ;;  %v4173_v53 = vmax.f32 %v8547_v43, %v8551_v33  ;;  %4171 = vmax.xlane.f32.xlu0 %v4170_v9 }
 0xc96   : > { %4174 = vmax.xlane.f32.xlu1 %v4173_v53  ;;  %v3989_v59 = vpop.f32.mrb[180].mxu1 }
 0xc97   : > { %v8555_v14 = vmul.f32 10.0, %v3989_v59  ;;  %v3991_v6 = vpop.f32.mrb[181].mxu1 }
 0xc98   : > { %v8557_v8 = vmul.f32 10.0, %v3991_v6  ;;  %v3993_v35 = vpop.f32.mrb[182].mxu1 }
 0xc99   : > { %9660 = vst [vmem:[#allocation46_spill] sm:$0xff] %v8555_v14  ;;  %v8559_v41 = vmul.f32 10.0, %v3993_v35  ;;  %v3995_v50 = vpop.f32.mrb[183].mxu1 }
 0xc9a   : > { %9661 = vst [vmem:[#allocation43_spill] sm:$0xff] %v8557_v8  ;;  %v4176_v54 = vmax.f32 %v8555_v14, %v8557_v8  ;;  %v8563_v32 = vmul.f32 10.0, %v3995_v50 }
 0xc9b   : > { %9662 = vst [vmem:[#allocation73_spill] sm:$0xff] %v8559_v41 }
 0xc9c   : > { %9663 = vst [vmem:[#allocation74_spill] sm:$0xff] %v8563_v32  ;;  %v4179_v30 = vmax.f32 %v8559_v41, %v8563_v32  ;;  %4177 = vmax.xlane.f32.xlu0 %v4176_v54 }
 0xc9e   : > { %4180 = vmax.xlane.f32.xlu1 %v4179_v30  ;;  %v3999_v52 = vpop.f32.mrb[184].mxu1 }
 0xc9f   : > { %v8567_v56 = vmul.f32 10.0, %v3999_v52  ;;  %v4001_v39 = vpop.f32.mrb[185].mxu1 }
 0xca0   : > { %v8569_v9 = vmul.f32 10.0, %v4001_v39  ;;  %v4003_v53 = vpop.f32.mrb[186].mxu1 }
 0xca1   : > { %9664 = vst [vmem:[#allocation55_spill] sm:$0xff] %v8567_v56  ;;  %v8571_v59 = vmul.f32 10.0, %v4003_v53  ;;  %v4005_v6 = vpop.f32.mrb[187].mxu1 }
 0xca2   : > { %9665 = vst [vmem:[#allocation15_spill] sm:$0xff] %v8569_v9  ;;  %v4182_v35 = vmax.f32 %v8567_v56, %v8569_v9  ;;  %v8575_v50 = vmul.f32 10.0, %v4005_v6 }
 0xca3   : > { %9666 = vst [vmem:[#allocation9_spill] sm:$0xff] %v8571_v59 }
 0xca4   : > { %9667 = vst [vmem:[#allocation56_spill] sm:$0xff] %v8575_v50  ;;  %v4185_v61 = vmax.f32 %v8571_v59, %v8575_v50  ;;  %4183 = vmax.xlane.f32.xlu0 %v4182_v35 }
 0xca6   : > { %4186 = vmax.xlane.f32.xlu1 %v4185_v61  ;;  %v4009_v54 = vpop.f32.mrb[188].mxu1 }
 0xca7   : > { %v8579_v30 = vmul.f32 10.0, %v4009_v54  ;;  %v4011_v52 = vpop.f32.mrb[189].mxu1 }
 0xca8   : > { %v8581_v39 = vmul.f32 10.0, %v4011_v52  ;;  %v4013_v29 = vpop.f32.mrb[190].mxu1 }
 0xca9   : > { %9668 = vst [vmem:[#allocation75_spill] sm:$0xff] %v8579_v30  ;;  %v8583_v53 = vmul.f32 10.0, %v4013_v29  ;;  %v4015_v22 = vpop.f32.mrb[191].mxu1 }
 0xcaa   : > { %9669 = vst [vmem:[#allocation58_spill] sm:$0xff] %v8581_v39  ;;  %v4188_v48 = vmax.f32 %v8579_v30, %v8581_v39  ;;  %v8587_v6 = vmul.f32 10.0, %v4015_v22 }
 0xcab   : > { %9670 = vst [vmem:[#allocation41_spill] sm:$0xff] %v8583_v53 }
 0xcac   : > { %9671 = vst [vmem:[#allocation18_spill] sm:$0xff] %v8587_v6  ;;  %v4191_v2 = vmax.f32 %v8583_v53, %v8587_v6  ;;  %4189 = vmax.xlane.f32.xlu0 %v4188_v48 }
 0xcae   : > { %4192 = vmax.xlane.f32.xlu1 %v4191_v2  ;;  %v4019_v61 = vpop.f32.mrb[192].mxu1 }
 0xcaf   : > { %v4021_v35 = vpop.f32.mrb[193].mxu1 }
 0xcb0   : > { %v4023_v54 = vpop.f32.mrb[194].mxu1 }
 0xcb1   : > { %v4025_v62 = vpop.f32.mrb[195].mxu1 }
 0xcb6   : > { %v8591_v52 = vpop.f32.mrb[196].mxu1 }
 0xcb7   : > { %v8593_v23 = vpop.f32.mrb[197].mxu1 }
 0xcb8   : > { %v8595_v29 = vpop.f32.mrb[198].mxu1 }
 0xcb9   : > { %v8597_v5 = vpop.f32.mrb[199].mxu1 }
 0xcbe   : > { %v8599_v15 = vpop.f32.mrb[200].mxu1 }
 0xcbf   : > { %v8601_v22 = vpop.f32.mrb[201].mxu1 }
 0xcc0   : > { %v8603_v28 = vpop.f32.mrb[202].mxu1 }
 0xcc1   : > { %v8605_v48 = vpop.f32.mrb[203].mxu1 }
 0xcc6   : > { %v8607_v2 = vpop.f32.mrb[204].mxu1 }
 0xcc7   : > { %v8609_v11 = vpop.f32.mrb[205].mxu1 }
 0xcc8   : > { %v8611_v4 = vpop.f32.mrb[206].mxu1 }
 0xcc9   : > { %v8613_v17 = vpop.f32.mrb[207].mxu1 }
 0xce1   : > { %v4124_v6 = vpop.xlane.xlu0 %4123 }
 0xce2   : > { %v4218_v53 = vsub.f32 %v8447_v18, %v4124_v6  ;;  %v4219_v39 = vsub.f32 %v8449_v63, %v4124_v6 }
 0xce3   : > { %v4127_v30 = vpop.xlane.xlu1 %4126 }
 0xce4   : > { %v4282_v50 = vmul.f32 1.442695, %v4218_v53  ;;  %v4284_v59 = vmul.f32 1.442695, %v4219_v39  ;;  %v4220_v9 = vsub.f32 %v8451_v38, %v4127_v30  ;;  %v4221_v56 = vsub.f32 %v8455_v37, %v4127_v30 }
 0xce6   : > { %5649 = vpow2.f32 %v4282_v50  ;;  %v4286_v32 = vmul.f32 1.442695, %v4220_v9  ;;  %v4288_v41 = vmul.f32 1.442695, %v4221_v56  ;;  %v8623_v56 = vmul.f32 10.0, %v4019_v61 }
 0xce7   : > { %5651 = vpow2.f32 %v4284_v59 }
 0xce8   : > { %5653 = vpow2.f32 %v4286_v32  ;;  %v8625_v32 = vmul.f32 10.0, %v4021_v35 }
 0xce9   : > { %5655 = vpow2.f32 %v4288_v41  ;;  %v4130_v8 = vpop.xlane.xlu0 %4129 }
 0xcea   : > { %v4222_v14 = vsub.f32 %v8459_v7, %v4130_v8  ;;  %v4223_v18 = vsub.f32 %v8461_v13, %v4130_v8  ;;  %v4194_v9 = vmax.f32 %v8623_v56, %v8625_v32 }
 0xceb   : > { %v4133_v33 = vpop.xlane.xlu1 %4132 }
 0xcec   : > { %v4290_v63 = vmul.f32 1.442695, %v4222_v14  ;;  %v4292_v6 = vmul.f32 1.442695, %v4223_v18  ;;  %v4224_v39 = vsub.f32 %v8463_v51, %v4133_v33  ;;  %v4225_v38 = vsub.f32 %v8467_v26, %v4133_v33 }
 0xced   : > { %v8643_v18 = vmul.f32 10.0, %v4023_v54 }
 0xcee   : > { %5657 = vpow2.f32 %v4290_v63  ;;  %v4294_v37 = vmul.f32 1.442695, %v4224_v39  ;;  %v4296_v50 = vmul.f32 1.442695, %v4225_v38  ;;  %v8650_v39 = vmul.f32 10.0, %v8591_v52 }
 0xcef   : > { %5659 = vpow2.f32 %v4292_v6  ;;  %v8653_v38 = vmul.f32 10.0, %v8593_v23 }
 0xcf0   : > { %v8627_v41 = vpop.eup %5649  ;;  %5661 = vpow2.f32 %v4294_v37 }
 0xcf1   : > { %v8629_v7 = vpop.eup %5651  ;;  %5663 = vpow2.f32 %v4296_v50  ;;  %v4136_v13 = vpop.xlane.xlu0 %4135 }
 0xcf2   : > { %v8631_v14 = vpop.eup %5653  ;;  %v4226_v51 = vsub.f32 %v8471_v49, %v4136_v13  ;;  %v4227_v26 = vsub.f32 %v8473_v44, %v4136_v13  ;;  %v4410_v33 = vadd.f32 %v8629_v7, %v8627_v41  ;;  %v8645_v49 = vmul.f32 10.0, %v4025_v62 }
 0xcf3   : > { %v8637_v8 = vpop.eup %5655  ;;  %v4139_v59 = vpop.xlane.xlu1 %4138 }
 0xcf4   : > { %v4298_v30 = vmul.f32 1.442695, %v4226_v51  ;;  %v4300_v53 = vmul.f32 1.442695, %v4227_v26  ;;  %4411 = vadd.xlane.f32.xlu0 %v4410_v33  ;;  %v4228_v61 = vsub.f32 %v8475_v58, %v4139_v59  ;;  %v4229_v35 = vsub.f32 %v8479_v0, %v4139_v59 }
 0xcf5   : > { %v4413_v44 = vadd.f32 %v8637_v8, %v8631_v14  ;;  %v4197_v0 = vmax.f32 %v8643_v18, %v8645_v49  ;;  %v4200_v51 = vmax.f32 %v8650_v39, %v8653_v38 }
 0xcf6   : > { %5665 = vpow2.f32 %v4298_v30  ;;  %v4302_v63 = vmul.f32 1.442695, %v4228_v61  ;;  %v4304_v6 = vmul.f32 1.442695, %v4229_v35 }
 0xcf7   : > { %5667 = vpow2.f32 %v4300_v53  ;;  %4414 = vadd.xlane.f32.xlu1 %v4413_v44  ;;  %v8682_v44 = vmul.f32 10.0, %v8599_v15 }
 0xcf8   : > { %v8655_v58 = vpop.eup %5657  ;;  %5669 = vpow2.f32 %v4302_v63  ;;  %4195 = vmax.xlane.f32.xlu0 %v4194_v9 }
 0xcf9   : > { %v8657_v62 = vpop.eup %5659  ;;  %5671 = vpow2.f32 %v4304_v6  ;;  %v4142_v54 = vpop.xlane.xlu0 %4141 }
 0xcfa   : > { %v8661_v37 = vpop.eup %5661  ;;  %v4230_v50 = vsub.f32 %v8483_v12, %v4142_v54  ;;  %v4231_v52 = vsub.f32 %v8485_v21, %v4142_v54  ;;  %v4416_v23 = vadd.f32 %v8657_v62, %v8655_v58  ;;  %v8674_v12 = vmul.f32 10.0, %v8595_v29 }
 0xcfb   : > { %v8667_v13 = vpop.eup %5663  ;;  %4198 = vmax.xlane.f32.xlu1 %v4197_v0  ;;  %v4145_v26 = vpop.xlane.xlu1 %4144  ;;  %v8677_v21 = vmul.f32 10.0, %v8597_v5 }
 0xcfc   : > { %v4306_v33 = vmul.f32 1.442695, %v4230_v50  ;;  %v4308_v9 = vmul.f32 1.442695, %v4231_v52  ;;  %4417 = vadd.xlane.f32.xlu0 %v4416_v23  ;;  %v4232_v59 = vsub.f32 %v8487_v46, %v4145_v26  ;;  %v4233_v30 = vsub.f32 %v8491_v31, %v4145_v26 }
 0xcfd   : > { %v4419_v53 = vadd.f32 %v8667_v13, %v8661_v37  ;;  %v8685_v46 = vmul.f32 10.0, %v8601_v22  ;;  %v4203_v29 = vmax.f32 %v8674_v12, %v8677_v21 }
 0xcfe   : > { %5673 = vpow2.f32 %v4306_v33  ;;  %v4310_v61 = vmul.f32 1.442695, %v4232_v59  ;;  %v4312_v35 = vmul.f32 1.442695, %v4233_v30 }
 0xcff   : > { %5675 = vpow2.f32 %v4308_v9  ;;  %4420 = vadd.xlane.f32.xlu1 %v4419_v53  ;;  %v4206_v50 = vmax.f32 %v8682_v44, %v8685_v46  ;;  %v8714_v53 = vmul.f32 10.0, %v8607_v2 }
 0xd00   : > { %v8687_v31 = vpop.eup %5665  ;;  %5677 = vpow2.f32 %v4310_v61  ;;  %4201 = vmax.xlane.f32.xlu0 %v4200_v51 }
 0xd01   : > { %v8689_v5 = vpop.eup %5667  ;;  %5679 = vpow2.f32 %v4312_v35  ;;  %v4148_v63 = vpop.xlane.xlu0 %4147 }
 0xd02   : > { %v8693_v6 = vpop.eup %5669  ;;  %v4234_v0 = vsub.f32 %v8495_v34, %v4148_v63  ;;  %v4235_v15 = vsub.f32 %v8497_v1, %v4148_v63  ;;  %v4422_v22 = vadd.f32 %v8689_v5, %v8687_v31  ;;  %v8706_v34 = vmul.f32 10.0, %v8603_v28 }
 0xd03   : > { %v8699_v54 = vpop.eup %5671  ;;  %4204 = vmax.xlane.f32.xlu1 %v4203_v29  ;;  %v4151_v52 = vpop.xlane.xlu1 %4150  ;;  %v8709_v1 = vmul.f32 10.0, %v8605_v48 }
 0xd04   : > { %v4314_v23 = vmul.f32 1.442695, %v4234_v0  ;;  %v4316_v51 = vmul.f32 1.442695, %v4235_v15  ;;  %4423 = vadd.xlane.f32.xlu0 %v4422_v22  ;;  %v4236_v26 = vsub.f32 %v8499_v3, %v4151_v52  ;;  %v4237_v33 = vsub.f32 %v8503_v60, %v4151_v52 }
 0xd05   : > { %v4425_v9 = vadd.f32 %v8699_v54, %v8693_v6  ;;  %v8717_v3 = vmul.f32 10.0, %v8609_v11  ;;  %v4209_v48 = vmax.f32 %v8706_v34, %v8709_v1 }
 0xd06   : > { %5681 = vpow2.f32 %v4314_v23  ;;  %v4318_v59 = vmul.f32 1.442695, %v4236_v26  ;;  %v4320_v30 = vmul.f32 1.442695, %v4237_v33 }
 0xd07   : > { %5683 = vpow2.f32 %v4316_v51  ;;  %4426 = vadd.xlane.f32.xlu1 %v4425_v9  ;;  %v4212_v0 = vmax.f32 %v8714_v53, %v8717_v3 }
 0xd08   : > { %v8719_v60 = vpop.eup %5673  ;;  %5685 = vpow2.f32 %v4318_v59  ;;  %4207 = vmax.xlane.f32.xlu0 %v4206_v50 }
 0xd09   : > { %v8721_v28 = vpop.eup %5675  ;;  %5687 = vpow2.f32 %v4320_v30  ;;  %v4154_v61 = vpop.xlane.xlu0 %4153 }
 0xd0a   : > { %v8725_v35 = vpop.eup %5677  ;;  %v4238_v29 = vsub.f32 %v8507_v45, %v4154_v61  ;;  %v4239_v2 = vsub.f32 %v8509_v57, %v4154_v61  ;;  %v4428_v11 = vadd.f32 %v8721_v28, %v8719_v60  ;;  %v8738_v45 = vmul.f32 10.0, %v8611_v4 }
 0xd0b   : > { %v8731_v63 = vpop.eup %5679  ;;  %4210 = vmax.xlane.f32.xlu1 %v4209_v48  ;;  %v4157_v15 = vpop.xlane.xlu1 %4156  ;;  %v8741_v57 = vmul.f32 10.0, %v8613_v17 }
 0xd0c   : > { %v4322_v22 = vmul.f32 1.442695, %v4238_v29  ;;  %v4324_v50 = vmul.f32 1.442695, %v4239_v2  ;;  %4429 = vadd.xlane.f32.xlu0 %v4428_v11  ;;  %v4240_v52 = vsub.f32 %v8511_v40, %v4157_v15  ;;  %v4241_v23 = vsub.f32 %v8515_v55, %v4157_v15 }
 0xd0d   : > { %v4431_v51 = vadd.f32 %v8731_v63, %v8725_v35  ;;  %v4215_v4 = vmax.f32 %v8738_v45, %v8741_v57 }
 0xd0e   : > { %5689 = vpow2.f32 %v4322_v22  ;;  %v4326_v26 = vmul.f32 1.442695, %v4240_v52  ;;  %v4328_v33 = vmul.f32 1.442695, %v4241_v23 }
 0xd0f   : > { %5691 = vpow2.f32 %v4324_v50  ;;  %4432 = vadd.xlane.f32.xlu1 %v4431_v51 }
 0xd10   : > { %v8745_v9 = vpop.eup %5681  ;;  %5693 = vpow2.f32 %v4326_v26  ;;  %4213 = vmax.xlane.f32.xlu0 %v4212_v0 }
 0xd11   : > { %v8747_v40 = vpop.eup %5683  ;;  %5695 = vpow2.f32 %v4328_v33  ;;  %v4160_v17 = vpop.xlane.xlu0 %4159 }
 0xd12   : > { %v8751_v55 = vpop.eup %5685  ;;  %v4242_v59 = vsub.f32 %v8519_v24, %v4160_v17  ;;  %v4243_v30 = vsub.f32 %v8521_v16, %v4160_v17  ;;  %v4434_v48 = vadd.f32 %v8747_v40, %v8745_v9 }
 0xd13   : > { %v8757_v61 = vpop.eup %5687  ;;  %4216 = vmax.xlane.f32.xlu1 %v4215_v4  ;;  %v4163_v29 = vpop.xlane.xlu1 %4162 }
 0xd14   : > { %v4330_v2 = vmul.f32 1.442695, %v4242_v59  ;;  %v4332_v11 = vmul.f32 1.442695, %v4243_v30  ;;  %4435 = vadd.xlane.f32.xlu0 %v4434_v48  ;;  %v4244_v0 = vsub.f32 %v8523_v27, %v4163_v29  ;;  %v4245_v15 = vsub.f32 %v8527_v36, %v4163_v29 }
 0xd15   : > { %v4437_v22 = vadd.f32 %v8757_v61, %v8751_v55 }
 0xd16   : > { %5697 = vpow2.f32 %v4330_v2  ;;  %v4334_v24 = vmul.f32 1.442695, %v4244_v0  ;;  %v4336_v16 = vmul.f32 1.442695, %v4245_v15 }
 0xd17   : > { %5699 = vpow2.f32 %v4332_v11  ;;  %4438 = vadd.xlane.f32.xlu1 %v4437_v22 }
 0xd18   : > { %v8763_v50 = vpop.eup %5689  ;;  %5701 = vpow2.f32 %v4334_v24 }
 0xd19   : > { %v8765_v52 = vpop.eup %5691  ;;  %5703 = vpow2.f32 %v4336_v16  ;;  %v4166_v23 = vpop.xlane.xlu0 %4165 }
 0xd1a   : > { %v8767_v51 = vpop.eup %5693  ;;  %v4246_v27 = vsub.f32 %v8531_v25, %v4166_v23  ;;  %v4247_v36 = vsub.f32 %v8533_v20, %v4166_v23  ;;  %v4440_v26 = vadd.f32 %v8765_v52, %v8763_v50 }
 0xd1b   : > { %v8773_v33 = vpop.eup %5695  ;;  %v4169_v4 = vpop.xlane.xlu1 %4168 }
 0xd1c   : > { %v4338_v17 = vmul.f32 1.442695, %v4246_v27  ;;  %v4340_v59 = vmul.f32 1.442695, %v4247_v36  ;;  %4441 = vadd.xlane.f32.xlu0 %v4440_v26  ;;  %v4248_v30 = vsub.f32 %v8535_v19, %v4169_v4  ;;  %v4249_v48 = vsub.f32 %v8539_v42, %v4169_v4  ;;  %v9672_v26 = vld [vmem:[#allocation40_spill] sm:$0xff] }
 0xd1d   : > { %v4443_v29 = vadd.f32 %v8773_v33, %v8767_v51 }
 0xd1e   : > { %5705 = vpow2.f32 %v4338_v17  ;;  %v4342_v25 = vmul.f32 1.442695, %v4248_v30  ;;  %v4344_v2 = vmul.f32 1.442695, %v4249_v48 }
 0xd1f   : > { %5707 = vpow2.f32 %v4340_v59  ;;  %4444 = vadd.xlane.f32.xlu1 %v4443_v29 }
 0xd20   : > { %v8779_v20 = vpop.eup %5697  ;;  %5709 = vpow2.f32 %v4342_v25 }
 0xd21   : > { %v8781_v11 = vpop.eup %5699  ;;  %5711 = vpow2.f32 %v4344_v2  ;;  %v4172_v0 = vpop.xlane.xlu0 %4171  ;;  %v9676_v2 = vld [vmem:[#allocation43_spill] sm:$0xff] }
 0xd22   : > { %v8783_v15 = vpop.eup %5701  ;;  %v4250_v19 = vsub.f32 %v8543_v10, %v4172_v0  ;;  %v4251_v42 = vsub.f32 %v8545_v47, %v4172_v0  ;;  %v4446_v22 = vadd.f32 %v8781_v11, %v8779_v20 }
 0xd23   : > { %v8789_v24 = vpop.eup %5703  ;;  %v4175_v16 = vpop.xlane.xlu1 %4174 }
 0xd24   : > { %v4346_v23 = vmul.f32 1.442695, %v4250_v19  ;;  %v4348_v27 = vmul.f32 1.442695, %v4251_v42  ;;  %4447 = vadd.xlane.f32.xlu0 %v4446_v22  ;;  %v4252_v36 = vsub.f32 %v8547_v43, %v4175_v16  ;;  %v4253_v4 = vsub.f32 %v9672_v26, %v4175_v16  ;;  %v9675_v43 = vld [vmem:[#allocation46_spill] sm:$0xff] }
 0xd25   : > { %v4449_v17 = vadd.f32 %v8789_v24, %v8783_v15  ;;  %v9679_v26 = vld [vmem:[#allocation74_spill] sm:$0xff] }
 0xd26   : > { %5713 = vpow2.f32 %v4346_v23  ;;  %v4350_v10 = vmul.f32 1.442695, %v4252_v36  ;;  %v4352_v59 = vmul.f32 1.442695, %v4253_v4 }
 0xd27   : > { %5715 = vpow2.f32 %v4348_v27  ;;  %4450 = vadd.xlane.f32.xlu1 %v4449_v17  ;;  %v9678_v27 = vld [vmem:[#allocation73_spill] sm:$0xff] }
 0xd28   : > { %v8795_v47 = vpop.eup %5705  ;;  %5717 = vpow2.f32 %v4350_v10 }
 0xd29   : > { %9673 = vst [vmem:[#allocation47_spill] sm:$0xff] %v8795_v47  ;;  %v8797_v30 = vpop.eup %5707  ;;  %5719 = vpow2.f32 %v4352_v59  ;;  %v4178_v48 = vpop.xlane.xlu0 %4177 }
 0xd2a   : > { %v8799_v29 = vpop.eup %5709  ;;  %v4254_v25 = vsub.f32 %v9675_v43, %v4178_v48  ;;  %v4255_v0 = vsub.f32 %v9676_v2, %v4178_v48  ;;  %v4452_v19 = vadd.f32 %v8797_v30, %v8795_v47  ;;  %v9687_v47 = vld [vmem:[#allocation56_spill] sm:$0xff] }
 0xd2b   : > { %9674 = vst [vmem:[#allocation63_spill] sm:$0xff] %v8799_v29  ;;  %v8805_v42 = vpop.eup %5711  ;;  %v4181_v22 = vpop.xlane.xlu1 %4180 }
 0xd2c   : > { %9677 = vst [vmem:[#allocation17_spill] sm:$0xff] %v8805_v42  ;;  %v4354_v16 = vmul.f32 1.442695, %v4254_v25  ;;  %v4356_v23 = vmul.f32 1.442695, %v4255_v0  ;;  %4453 = vadd.xlane.f32.xlu0 %v4452_v19  ;;  %v4256_v36 = vsub.f32 %v9678_v27, %v4181_v22  ;;  %v4257_v4 = vsub.f32 %v9679_v26, %v4181_v22  ;;  %v9683_v0 = vld [vmem:[#allocation55_spill] sm:$0xff] }
 0xd2d   : > { %v4455_v17 = vadd.f32 %v8805_v42, %v8799_v29  ;;  %v9684_v22 = vld [vmem:[#allocation15_spill] sm:$0xff] }
 0xd2e   : > { %5721 = vpow2.f32 %v4354_v16  ;;  %v4358_v10 = vmul.f32 1.442695, %v4256_v36  ;;  %v4360_v59 = vmul.f32 1.442695, %v4257_v4 }
 0xd2f   : > { %5723 = vpow2.f32 %v4356_v23  ;;  %4456 = vadd.xlane.f32.xlu1 %v4455_v17  ;;  %v9686_v17 = vld [vmem:[#allocation9_spill] sm:$0xff] }
 0xd30   : > { %v8811_v48 = vpop.eup %5713  ;;  %5725 = vpow2.f32 %v4358_v10 }
 0xd31   : > { %9680 = vst [vmem:[#allocation24_spill] sm:$0xff] %v8811_v48  ;;  %v8813_v43 = vpop.eup %5715  ;;  %5727 = vpow2.f32 %v4360_v59  ;;  %v4184_v25 = vpop.xlane.xlu0 %4183 }
 0xd32   : > { %9681 = vst [vmem:[#allocation19_spill] sm:$0xff] %v8813_v43  ;;  %v8815_v2 = vpop.eup %5717  ;;  %v4258_v19 = vsub.f32 %v9683_v0, %v4184_v25  ;;  %v4259_v27 = vsub.f32 %v9684_v22, %v4184_v25  ;;  %v4458_v16 = vadd.f32 %v8813_v43, %v8811_v48 }
 0xd33   : > { %9682 = vst [vmem:[#allocation20_spill] sm:$0xff] %v8815_v2  ;;  %v8821_v36 = vpop.eup %5719  ;;  %v4187_v23 = vpop.xlane.xlu1 %4186 }
 0xd34   : > { %9685 = vst [vmem:[#allocation30_spill] sm:$0xff] %v8821_v36  ;;  %v4362_v26 = vmul.f32 1.442695, %v4258_v19  ;;  %v4364_v4 = vmul.f32 1.442695, %v4259_v27  ;;  %4459 = vadd.xlane.f32.xlu0 %v4458_v16  ;;  %v4260_v10 = vsub.f32 %v9686_v17, %v4187_v23  ;;  %v4261_v59 = vsub.f32 %v9687_v47, %v4187_v23  ;;  %v9688_v16 = vld [vmem:[#allocation75_spill] sm:$0xff] }
 0xd35   : > { %v4461_v29 = vadd.f32 %v8821_v36, %v8815_v2  ;;  %v9689_v47 = vld [vmem:[#allocation58_spill] sm:$0xff] }
 0xd36   : > { %5729 = vpow2.f32 %v4362_v26  ;;  %v4366_v0 = vmul.f32 1.442695, %v4260_v10  ;;  %v4368_v42 = vmul.f32 1.442695, %v4261_v59  ;;  %v9691_v2 = vld [vmem:[#allocation18_spill] sm:$0xff] }
 0xd37   : > { %5731 = vpow2.f32 %v4364_v4  ;;  %4462 = vadd.xlane.f32.xlu1 %v4461_v29 }
 0xd38   : > { %v8827_v25 = vpop.eup %5721  ;;  %5733 = vpow2.f32 %v4366_v0  ;;  %v9690_v0 = vld [vmem:[#allocation41_spill] sm:$0xff] }
 0xd39   : > { %v8829_v22 = vpop.eup %5723  ;;  %5735 = vpow2.f32 %v4368_v42  ;;  %v4190_v19 = vpop.xlane.xlu0 %4189 }
 0xd3a   : > { %v8831_v27 = vpop.eup %5725  ;;  %v4262_v17 = vsub.f32 %v9688_v16, %v4190_v19  ;;  %v4263_v23 = vsub.f32 %v9689_v47, %v4190_v19  ;;  %v4464_v26 = vadd.f32 %v8829_v22, %v8827_v25 }
 0xd3b   : > { %v8837_v10 = vpop.eup %5727  ;;  %v4193_v4 = vpop.xlane.xlu1 %4192 }
 0xd3c   : > { %v4370_v29 = vmul.f32 1.442695, %v4262_v17  ;;  %v4372_v59 = vmul.f32 1.442695, %v4263_v23  ;;  %4465 = vadd.xlane.f32.xlu0 %v4464_v26  ;;  %v4264_v48 = vsub.f32 %v9690_v0, %v4193_v4  ;;  %v4265_v42 = vsub.f32 %v9691_v2, %v4193_v4 }
 0xd3d   : > { %v4467_v36 = vadd.f32 %v8837_v10, %v8831_v27 }
 0xd3e   : > { %5737 = vpow2.f32 %v4370_v29  ;;  %v4374_v16 = vmul.f32 1.442695, %v4264_v48  ;;  %v4376_v43 = vmul.f32 1.442695, %v4265_v42 }
 0xd3f   : > { %5739 = vpow2.f32 %v4372_v59  ;;  %4468 = vadd.xlane.f32.xlu1 %v4467_v36 }
 0xd40   : > { %v8843_v19 = vpop.eup %5729  ;;  %5741 = vpow2.f32 %v4374_v16 }
 0xd41   : > { %9692 = vst [vmem:[#allocation32_spill] sm:$0xff] %v8843_v19  ;;  %v8845_v47 = vpop.eup %5731  ;;  %5743 = vpow2.f32 %v4376_v43 }
 0xd42   : > { %v8847_v17 = vpop.eup %5733  ;;  %v4470_v23 = vadd.f32 %v8845_v47, %v8843_v19 }
 0xd43   : > { %9693 = vst [vmem:[#allocation29_spill] sm:$0xff] %v8847_v17  ;;  %v8851_v2 = vpop.eup %5735 }
 0xd44   : > { %9694 = vst [vmem:[#allocation31_spill] sm:$0xff] %v8851_v2  ;;  %4471 = vadd.xlane.f32.xlu0 %v4470_v23  ;;  %v4473_v48 = vadd.f32 %v8851_v2, %v8847_v17 }
 0xd46   : > { %4474 = vadd.xlane.f32.xlu1 %v4473_v48 }
 0xd48   : > { %v8855_v26 = vpop.eup %5737 }
 0xd49   : > { %9695 = vst [vmem:[#allocation36_spill] sm:$0xff] %v8855_v26  ;;  %v8857_v36 = vpop.eup %5739 }
 0xd4a   : > { %9696 = vst [vmem:[#allocation38_spill] sm:$0xff] %v8857_v36  ;;  %v8859_v4 = vpop.eup %5741  ;;  %v4476_v43 = vadd.f32 %v8857_v36, %v8855_v26 }
 0xd4b   : > { %9697 = vst [vmem:[#allocation35_spill] sm:$0xff] %v8859_v4  ;;  %v8863_v29 = vpop.eup %5743 }
 0xd4c   : > { %9698 = vst [vmem:[#allocation37_spill] sm:$0xff] %v8863_v29  ;;  %4477 = vadd.xlane.f32.xlu0 %v4476_v43  ;;  %v4479_v59 = vadd.f32 %v8863_v29, %v8859_v4 }
 0xd4e   : > { %4480 = vadd.xlane.f32.xlu1 %v4479_v59 }
 0xd81   : > { %v4412_v0 = vpop.xlane.xlu0 %4411 }
 0xd82   : > { %5745 = vrcp.f32 %v4412_v0 }
 0xd84   : > { %v4415_v42 = vpop.xlane.xlu1 %4414 }
 0xd85   : > { %5747 = vrcp.f32 %v4415_v42  ;;  %v4196_v16 = vpop.xlane.xlu0 %4195 }
 0xd86   : > { %v4266_v23 = vsub.f32 %v8623_v56, %v4196_v16  ;;  %v4267_v48 = vsub.f32 %v8625_v32, %v4196_v16 }
 0xd88   : > { %v4378_v19 = vmul.f32 1.442695, %v4266_v23  ;;  %v4380_v17 = vmul.f32 1.442695, %v4267_v48  ;;  %v4199_v2 = vpop.xlane.xlu1 %4198 }
 0xd89   : > { %v4268_v26 = vsub.f32 %v8643_v18, %v4199_v2  ;;  %v4269_v43 = vsub.f32 %v8645_v49, %v4199_v2  ;;  %v4418_v36 = vpop.xlane.xlu0 %4417 }
 0xd8a   : > { %5749 = vpow2.f32 %v4378_v19 }
 0xd8b   : > { %5751 = vpow2.f32 %v4380_v17  ;;  %v4382_v59 = vmul.f32 1.442695, %v4268_v26  ;;  %v4384_v4 = vmul.f32 1.442695, %v4269_v43 }
 0xd8c   : > { %v5746_v0 = vpop.eup %5745  ;;  %5753 = vrcp.f32 %v4418_v36  ;;  %v4421_v42 = vpop.xlane.xlu1 %4420 }
 0xd8d   : > { %5755 = vpow2.f32 %v4382_v59  ;;  %v4202_v29 = vpop.xlane.xlu0 %4201  ;;  %v4539_v18 = vmul.f32 %v5746_v0, %v8629_v7  ;;  %v4538_v49 = vmul.f32 %v5746_v0, %v8627_v41 }
 0xd8e   : > { %5757 = vpow2.f32 %v4384_v4  ;;  %v4270_v56 = vsub.f32 %v8650_v39, %v4202_v29  ;;  %v4271_v32 = vsub.f32 %v8653_v38, %v4202_v29 }
 0xd8f   : > { %v5748_v16 = vpop.eup %5747  ;;  %5759 = vrcp.f32 %v4421_v42 }
 0xd90   : > { %v4386_v19 = vmul.f32 1.442695, %v4270_v56  ;;  %v4388_v17 = vmul.f32 1.442695, %v4271_v32  ;;  %v4205_v2 = vpop.xlane.xlu1 %4204  ;;  %v4541_v26 = vmul.f32 %v5748_v16, %v8637_v8  ;;  %v4540_v36 = vmul.f32 %v5748_v16, %v8631_v14 }
 0xd91   : > { %v4272_v23 = vsub.f32 %v8674_v12, %v4205_v2  ;;  %v4273_v4 = vsub.f32 %v8677_v21, %v4205_v2  ;;  %v4424_v39 = vpop.xlane.xlu0 %4423 }
 0xd92   : > { %5761 = vpow2.f32 %v4386_v19  ;;  %v4603_v38 = vpack.c.bf16 %v4541_v26, %v4539_v18  ;;  %v4602_v29 = vpack.c.bf16 %v4540_v36, %v4538_v49 }
 0xd93   : > { %5763 = vpow2.f32 %v4388_v17  ;;  %v4390_v48 = vmul.f32 1.442695, %v4272_v23  ;;  %v4392_v7 = vmul.f32 1.442695, %v4273_v4 }
 0xd94   : > { %v8879_v43 = vpop.eup %5749  ;;  %5765 = vrcp.f32 %v4424_v39  ;;  %4634 = vmatprep.subr.bf16.mxu0 %v4603_v38  ;;  %v4427_v41 = vpop.xlane.xlu1 %4426 }
 0xd95   : > { %v8881_v59 = vpop.eup %5751  ;;  %5767 = vpow2.f32 %v4390_v48  ;;  %4635 = vmatpush1.bf16.xpose.msra.mxu0 %v4602_v29  ;;  %v4208_v14 = vpop.xlane.xlu0 %4207 }
 0xd96   : > { %v5754_v8 = vpop.eup %5753  ;;  %5769 = vpow2.f32 %v4392_v7  ;;  %v4274_v12 = vsub.f32 %v8682_v44, %v4208_v14  ;;  %v4275_v21 = vsub.f32 %v8685_v46, %v4208_v14  ;;  %v4482_v0 = vadd.f32 %v8881_v59, %v8879_v43 }
 0xd97   : > { %v8887_v42 = vpop.eup %5755  ;;  %5771 = vrcp.f32 %v4427_v41  ;;  %v4543_v2 = vmul.f32 %v5754_v8, %v8657_v62  ;;  %v4542_v36 = vmul.f32 %v5754_v8, %v8655_v58 }
 0xd98   : > { %v8889_v56 = vpop.eup %5757  ;;  %v4394_v32 = vmul.f32 1.442695, %v4274_v12  ;;  %v4396_v16 = vmul.f32 1.442695, %v4275_v21  ;;  %4483 = vadd.xlane.f32.xlu0 %v4482_v0  ;;  %v4211_v18 = vpop.xlane.xlu1 %4210 }
 0xd99   : > { %v5760_v49 = vpop.eup %5759  ;;  %v4276_v19 = vsub.f32 %v8706_v34, %v4211_v18  ;;  %v4277_v17 = vsub.f32 %v8709_v1, %v4211_v18  ;;  %v4430_v44 = vpop.xlane.xlu0 %4429  ;;  %v4485_v46 = vadd.f32 %v8889_v56, %v8887_v42 }
 0xd9a   : > { %5773 = vpow2.f32 %v4394_v32  ;;  %v4545_v26 = vmul.f32 %v5760_v49, %v8667_v13  ;;  %v4544_v23 = vmul.f32 %v5760_v49, %v8661_v37 }
 0xd9b   : > { %5775 = vpow2.f32 %v4396_v16  ;;  %v4398_v4 = vmul.f32 1.442695, %v4276_v19  ;;  %v4400_v39 = vmul.f32 1.442695, %v4277_v17  ;;  %4486 = vadd.xlane.f32.xlu1 %v4485_v46 }
 0xd9c   : > { %v8899_v34 = vpop.eup %5761  ;;  %5777 = vrcp.f32 %v4430_v44  ;;  %v4605_v1 = vpack.c.bf16 %v4545_v26, %v4543_v2  ;;  %v4433_v38 = vpop.xlane.xlu1 %4432  ;;  %v4604_v29 = vpack.c.bf16 %v4544_v23, %v4542_v36 }
 0xd9d   : > { %v8901_v48 = vpop.eup %5763  ;;  %5779 = vpow2.f32 %v4398_v4  ;;  %v4214_v62 = vpop.xlane.xlu0 %4213 }
 0xd9e   : > { %v5766_v7 = vpop.eup %5765  ;;  %5781 = vpow2.f32 %v4400_v39  ;;  %4636 = vmatprep.subr.bf16.mxu0 %v4605_v1  ;;  %v4278_v58 = vsub.f32 %v8714_v53, %v4214_v62  ;;  %v4279_v37 = vsub.f32 %v8717_v3, %v4214_v62  ;;  %v4488_v13 = vadd.f32 %v8901_v48, %v8899_v34 }
 0xd9f   : > { %v8907_v41 = vpop.eup %5767  ;;  %5783 = vrcp.f32 %v4433_v38  ;;  %4637 = vmatpush1.bf16.xpose.msra.mxu0 %v4604_v29  ;;  %v4547_v18 = vmul.f32 %v5766_v7, %v8689_v5  ;;  %v4546_v19 = vmul.f32 %v5766_v7, %v8687_v31 }
 0xda0   : > { %v8909_v14 = vpop.eup %5769  ;;  %v4402_v8 = vmul.f32 1.442695, %v4278_v58  ;;  %v4404_v12 = vmul.f32 1.442695, %v4279_v37  ;;  %4489 = vadd.xlane.f32.xlu0 %v4488_v13  ;;  %v4217_v21 = vpop.xlane.xlu1 %4216 }
 0xda1   : > { %v5772_v0 = vpop.eup %5771  ;;  %v4280_v32 = vsub.f32 %v8738_v45, %v4217_v21  ;;  %v4281_v53 = vsub.f32 %v8741_v57, %v4217_v21  ;;  %v4436_v16 = vpop.xlane.xlu0 %4435  ;;  %v4491_v3 = vadd.f32 %v8909_v14, %v8907_v41 }
 0xda2   : > { %5785 = vpow2.f32 %v4402_v8  ;;  %v4549_v49 = vmul.f32 %v5772_v0, %v8699_v54  ;;  %v4548_v17 = vmul.f32 %v5772_v0, %v8693_v6 }
 0xda3   : > { %5787 = vpow2.f32 %v4404_v12  ;;  %v4406_v44 = vmul.f32 1.442695, %v4280_v32  ;;  %v4408_v46 = vmul.f32 1.442695, %v4281_v53  ;;  %4492 = vadd.xlane.f32.xlu1 %v4491_v3 }
 0xda4   : > { %v8919_v45 = vpop.eup %5773  ;;  %5789 = vrcp.f32 %v4436_v16  ;;  %v4607_v57 = vpack.c.bf16 %v4549_v49, %v4547_v18  ;;  %v4439_v2 = vpop.xlane.xlu1 %4438  ;;  %v4606_v26 = vpack.c.bf16 %v4548_v17, %v4546_v19 }
 0xda5   : > { %v8921_v36 = vpop.eup %5775  ;;  %5791 = vpow2.f32 %v4406_v44 }
 0xda6   : > { %v5778_v5 = vpop.eup %5777  ;;  %5793 = vpow2.f32 %v4408_v46  ;;  %4638 = vmatprep.subr.bf16.mxu0 %v4607_v57  ;;  %v4494_v31 = vadd.f32 %v8921_v36, %v8919_v45 }
 0xda7   : > { %v8925_v6 = vpop.eup %5779  ;;  %5795 = vrcp.f32 %v4439_v2  ;;  %4639 = vmatpush1.bf16.xpose.msra.mxu0 %v4606_v26  ;;  %v4551_v1 = vmul.f32 %v5778_v5, %v8721_v28  ;;  %v4550_v29 = vmul.f32 %v5778_v5, %v8719_v60 }
 0xda8   : > { %v8927_v54 = vpop.eup %5781  ;;  %4495 = vadd.xlane.f32.xlu0 %v4494_v31 }
 0xda9   : > { %v5784_v23 = vpop.eup %5783  ;;  %v4442_v4 = vpop.xlane.xlu0 %4441  ;;  %v4497_v39 = vadd.f32 %v8927_v54, %v8925_v6 }
 0xdaa   : > { %v4553_v38 = vmul.f32 %v5784_v23, %v8731_v63  ;;  %v4552_v62 = vmul.f32 %v5784_v23, %v8725_v35  ;;  %5797 = vrcp.f32 %v4442_v4 }
 0xdab   : > { %4498 = vadd.xlane.f32.xlu1 %v4497_v39 }
 0xdac   : > { %v8935_v7 = vpop.eup %5785  ;;  %v4609_v58 = vpack.c.bf16 %v4553_v38, %v4551_v1  ;;  %v4445_v37 = vpop.xlane.xlu1 %4444  ;;  %v4608_v13 = vpack.c.bf16 %v4552_v62, %v4550_v29 }
 0xdad   : > { %v8937_v8 = vpop.eup %5787  ;;  %5799 = vrcp.f32 %v4445_v37  ;;  %v9700_v37 = vld [vmem:[#allocation63_spill] sm:$0xff] }
 0xdae   : > { %v5790_v12 = vpop.eup %5789  ;;  %4640 = vmatprep.subr.bf16.mxu0 %v4609_v58  ;;  %v4500_v28 = vadd.f32 %v8937_v8, %v8935_v7  ;;  %v9699_v58 = vld [vmem:[#allocation17_spill] sm:$0xff] }
 0xdaf   : > { %v8941_v63 = vpop.eup %5791  ;;  %4641 = vmatpush1.bf16.xpose.msra.mxu0 %v4608_v13  ;;  %v4555_v32 = vmul.f32 %v5790_v12, %v8747_v40  ;;  %v4554_v16 = vmul.f32 %v5790_v12, %v8745_v9 }
 0xdb0   : > { %v8943_v60 = vpop.eup %5793  ;;  %4501 = vadd.xlane.f32.xlu0 %v4500_v28 }
 0xdb1   : > { %v5796_v35 = vpop.eup %5795  ;;  %v4448_v21 = vpop.xlane.xlu0 %4447  ;;  %v4503_v0 = vadd.f32 %v8943_v60, %v8941_v63 }
 0xdb2   : > { %v4557_v53 = vmul.f32 %v5796_v35, %v8757_v61  ;;  %v4556_v3 = vmul.f32 %v5796_v35, %v8751_v55  ;;  %5801 = vrcp.f32 %v4448_v21 }
 0xdb3   : > { %4504 = vadd.xlane.f32.xlu1 %v4503_v0 }
 0xdb4   : > { %v4611_v18 = vpack.c.bf16 %v4557_v53, %v4555_v32  ;;  %v4451_v49 = vpop.xlane.xlu1 %4450  ;;  %v4610_v19 = vpack.c.bf16 %v4556_v3, %v4554_v16  ;;  %v5798_v17 = vpop.eup %5797  ;;  %v9702_v32 = vld [vmem:[#allocation19_spill] sm:$0xff]  ;;  %v9703_v16 = vld [vmem:[#allocation30_spill] sm:$0xff]  ;;  %v9704_v3 = vld [vmem:[#allocation20_spill] sm:$0xff] }
 0xdb5   : > { %5803 = vrcp.f32 %v4451_v49  ;;  %v4559_v46 = vmul.f32 %v5798_v17, %v8765_v52  ;;  %v4558_v9 = vmul.f32 %v5798_v17, %v8763_v50 }
 0xdb6   : > { %4642 = vmatprep.subr.bf16.mxu0 %v4611_v18 }
 0xdb7   : > { %v5800_v44 = vpop.eup %5799  ;;  %4643 = vmatpush1.bf16.xpose.msra.mxu0 %v4610_v19  ;;  %v9705_v19 = vld [vmem:[#allocation24_spill] sm:$0xff] }
 0xdb8   : > { %v4561_v40 = vmul.f32 %v5800_v44, %v8773_v33  ;;  %v4560_v61 = vmul.f32 %v5800_v44, %v8767_v51 }
 0xdb9   : > { %v4454_v57 = vpop.xlane.xlu0 %4453 }
 0xdba   : > { %v4613_v55 = vpack.c.bf16 %v4561_v40, %v4559_v46  ;;  %5805 = vrcp.f32 %v4454_v57  ;;  %v4612_v2 = vpack.c.bf16 %v4560_v61, %v4558_v9 }
 0xdbc   : > { %4644 = vmatprep.subr.bf16.mxu0 %v4613_v55  ;;  %v4457_v26 = vpop.xlane.xlu1 %4456  ;;  %v5802_v5 = vpop.eup %5801 }
 0xdbd   : > { %5807 = vrcp.f32 %v4457_v26  ;;  %v4563_v23 = vmul.f32 %v5802_v5, %v8781_v11  ;;  %v4562_v51 = vmul.f32 %v5802_v5, %v8779_v20 }
 0xdbf   : > { %v5804_v31 = vpop.eup %5803  ;;  %4645 = vmatpush1.bf16.xpose.msra.mxu0 %v4612_v2 }
 0xdc0   : > { %v4565_v52 = vmul.f32 %v5804_v31, %v8789_v24  ;;  %v4564_v33 = vmul.f32 %v5804_v31, %v8783_v15  ;;  %v9701_v15 = vld [vmem:[#allocation47_spill] sm:$0xff] }
 0xdc1   : > { %v4460_v4 = vpop.xlane.xlu0 %4459 }
 0xdc2   : > { %v4615_v39 = vpack.c.bf16 %v4565_v52, %v4563_v23  ;;  %5809 = vrcp.f32 %v4460_v4  ;;  %v4614_v50 = vpack.c.bf16 %v4564_v33, %v4562_v51 }
 0xdc4   : > { %4646 = vmatprep.subr.bf16.mxu0 %v4615_v39  ;;  %v4463_v1 = vpop.xlane.xlu1 %4462  ;;  %v5806_v38 = vpop.eup %5805  ;;  %v9706_v39 = vld [vmem:[#allocation31_spill] sm:$0xff] }
 0xdc5   : > { %5811 = vrcp.f32 %v4463_v1  ;;  %v4567_v62 = vmul.f32 %v5806_v38, %v8797_v30  ;;  %v4566_v12 = vmul.f32 %v5806_v38, %v9701_v15 }
 0xdc7   : > { %v5808_v29 = vpop.eup %5807  ;;  %4647 = vmatpush1.bf16.xpose.msra.mxu0 %v4614_v50  ;;  %v9707_v50 = vld [vmem:[#allocation29_spill] sm:$0xff] }
 0xdc8   : > { %v4569_v11 = vmul.f32 %v5808_v29, %v9699_v58  ;;  %v4568_v24 = vmul.f32 %v5808_v29, %v9700_v37  ;;  %v9709_v58 = vld [vmem:[#allocation38_spill] sm:$0xff]  ;;  %v9710_v37 = vld [vmem:[#allocation37_spill] sm:$0xff] }
 0xdc9   : > { %v4466_v13 = vpop.xlane.xlu0 %4465 }
 0xdca   : > { %v4617_v28 = vpack.c.bf16 %v4569_v11, %v4567_v62  ;;  %5813 = vrcp.f32 %v4466_v13  ;;  %v4616_v20 = vpack.c.bf16 %v4568_v24, %v4566_v12  ;;  %v9711_v13 = vld [vmem:[#allocation35_spill] sm:$0xff] }
 0xdcc   : > { %4648 = vmatprep.subr.bf16.mxu0 %v4617_v28  ;;  %v4469_v35 = vpop.xlane.xlu1 %4468  ;;  %v5810_v21 = vpop.eup %5809 }
 0xdcd   : > { %5815 = vrcp.f32 %v4469_v35  ;;  %v4571_v53 = vmul.f32 %v5810_v21, %v9702_v32  ;;  %v4570_v17 = vmul.f32 %v5810_v21, %v9705_v19 }
 0xdcf   : > { %v5812_v0 = vpop.eup %5811  ;;  %4649 = vmatpush1.bf16.xpose.msra.mxu0 %v4616_v20 }
 0xdd0   : > { %v4573_v30 = vmul.f32 %v5812_v0, %v9703_v16  ;;  %v4572_v18 = vmul.f32 %v5812_v0, %v9704_v3 }
 0xdd1   : > { %v4472_v49 = vpop.xlane.xlu0 %4471 }
 0xdd2   : > { %5817 = vrcp.f32 %v4472_v49  ;;  %v4619_v44 = vpack.c.bf16 %v4573_v30, %v4571_v53  ;;  %v4618_v40 = vpack.c.bf16 %v4572_v18, %v4570_v17 }
 0xdd3   : > { %v4475_v46 = vpop.xlane.xlu1 %4474 }
 0xdd4   : > { %4650 = vmatprep.subr.bf16.mxu0 %v4619_v44  ;;  %5819 = vrcp.f32 %v4475_v46  ;;  %v5814_v61 = vpop.eup %5813 }
 0xdd5   : > { %v4575_v9 = vmul.f32 %v5814_v61, %v8829_v22  ;;  %v4574_v5 = vmul.f32 %v5814_v61, %v8827_v25 }
 0xdd7   : > { %v5816_v57 = vpop.eup %5815  ;;  %4651 = vmatpush1.bf16.xpose.msra.mxu0 %v4618_v40 }
 0xdd8   : > { %v4577_v55 = vmul.f32 %v5816_v57, %v8837_v10  ;;  %v4576_v2 = vmul.f32 %v5816_v57, %v8831_v27  ;;  %v9708_v27 = vld [vmem:[#allocation32_spill] sm:$0xff] }
 0xdd9   : > { %v4478_v26 = vpop.xlane.xlu0 %4477 }
 0xdda   : > { %5821 = vrcp.f32 %v4478_v26  ;;  %v4621_v31 = vpack.c.bf16 %v4577_v55, %v4575_v9  ;;  %v4620_v52 = vpack.c.bf16 %v4576_v2, %v4574_v5 }
 0xddb   : > { %v4481_v23 = vpop.xlane.xlu1 %4480 }
 0xddc   : > { %v5818_v33 = vpop.eup %5817  ;;  %4652 = vmatprep.subr.bf16.mxu0 %v4621_v31  ;;  %5823 = vrcp.f32 %v4481_v23 }
 0xddd   : > { %v4579_v51 = vmul.f32 %v5818_v33, %v8845_v47  ;;  %v4578_v38 = vmul.f32 %v5818_v33, %v9708_v27  ;;  %v9712_v47 = vld [vmem:[#allocation36_spill] sm:$0xff] }
 0xdde   : > { %v5820_v4 = vpop.eup %5819 }
 0xddf   : > { %4653 = vmatpush1.bf16.xpose.msra.mxu0 %v4620_v52  ;;  %v4581_v22 = vmul.f32 %v5820_v4, %v9706_v39  ;;  %v4580_v10 = vmul.f32 %v5820_v4, %v9707_v50 }
 0xde1   : > { %v4623_v1 = vpack.c.bf16 %v4581_v22, %v4579_v51  ;;  %v4622_v25 = vpack.c.bf16 %v4580_v10, %v4578_v38  ;;  %v9716_v10 = vld [vmem:[#allocation68_spill] sm:$0xff] }
 0xde2   : > { %v9719_v38 = vld [vmem:[#allocation12_spill] sm:$0xff] }
 0xde3   : > { %4654 = vmatprep.subr.bf16.mxu0 %v4623_v1  ;;  %v9717_v1 = vld [vmem:[#allocation59_spill] sm:$0xff] }
 0xde4   : > { %v5822_v29 = vpop.eup %5821  ;;  %v9718_v27 = vpack.c.bf16 %v9716_v10, %v9717_v1 }
 0xde5   : > { %v4583_v11 = vmul.f32 %v5822_v29, %v9709_v58  ;;  %v4582_v28 = vmul.f32 %v5822_v29, %v9712_v47  ;;  %v9734_v47 = vld [vmem:[#allocation48_spill] sm:$0xff] }
 0xde6   : > { %v5824_v62 = vpop.eup %5823 }
 0xde7   : > { %4655 = vmatpush1.bf16.xpose.msra.mxu0 %v4622_v25  ;;  %v4585_v24 = vmul.f32 %v5824_v62, %v9710_v37  ;;  %v4584_v15 = vmul.f32 %v5824_v62, %v9711_v13  ;;  %v9726_v62 = vld [vmem:[#allocation51_spill] sm:$0xff]  ;;  %v9729_v37 = vld [vmem:[#allocation65_spill] sm:$0xff]  ;;  %v9731_v13 = vld [vmem:[#allocation14_spill] sm:$0xff] }
 0xde9   : > { %v4625_v12 = vpack.c.bf16 %v4585_v24, %v4583_v11  ;;  %v4624_v20 = vpack.c.bf16 %v4584_v15, %v4582_v28  ;;  %v9728_v11 = vld [vmem:[#allocation5_spill] sm:$0xff]  ;;  %v9732_v15 = vld [vmem:[#allocation11_spill] sm:$0xff]  ;;  %v9735_v28 = vld [vmem:[#allocation8_spill] sm:$0xff] }
 0xdea   : > { %v9730_v24 = vpack.c.bf16 %v9728_v11, %v9729_v37 }
 0xdeb   : > { %4656 = vmatprep.subr.bf16.mxu0 %v4625_v12  ;;  %v9733_v12 = vpack.c.bf16 %v9731_v13, %v9732_v15 }
 0xdef   : > { %4657 = vmatpush1.bf16.xpose.msra.mxu0 %v4624_v20  ;;  %v9736_v20 = vpack.c.bf16 %v9734_v47, %v9735_v28 }
 0xe25   : > { %v4484_v35 = vpop.xlane.xlu0 %4483 }
 0xe26   : > { %5825 = vrcp.f32 %v4484_v35  ;;  %v9737_v35 = vld [vmem:[#allocation44_spill] sm:$0xff] }
 0xe28   : > { %v4487_v21 = vpop.xlane.xlu1 %4486 }
 0xe29   : > { %5827 = vrcp.f32 %v4487_v21  ;;  %v9738_v21 = vld [vmem:[#allocation13_spill] sm:$0xff] }
 0xe2d   : > { %v4490_v0 = vpop.xlane.xlu0 %4489 }
 0xe2e   : > { %5829 = vrcp.f32 %v4490_v0  ;;  %v9739_v0 = vpack.c.bf16 %v9737_v35, %v9738_v21 }
 0xe30   : > { %v4493_v32 = vpop.xlane.xlu1 %4492  ;;  %v5826_v53 = vpop.eup %5825 }
 0xe31   : > { %5831 = vrcp.f32 %v4493_v32  ;;  %v4587_v30 = vmul.f32 %v5826_v53, %v8881_v59  ;;  %v4586_v18 = vmul.f32 %v5826_v53, %v8879_v43  ;;  %v9740_v32 = vmov 0   ;;  %v9741_v53 = vld [vmem:[#allocation64_spill] sm:$0xff] }
 0xe33   : > { %v5828_v16 = vpop.eup %5827 }
 0xe34   : > { %v4589_v3 = vmul.f32 %v5828_v16, %v8889_v56  ;;  %v4588_v49 = vmul.f32 %v5828_v16, %v8887_v42  ;;  %v9742_v16 = vld [vmem:[#allocation42_spill] sm:$0xff] }
 0xe35   : > { %v4496_v19 = vpop.xlane.xlu0 %4495 }
 0xe36   : > { %v4627_v17 = vpack.c.bf16 %v4589_v3, %v4587_v30  ;;  %v4626_v44 = vpack.c.bf16 %v4588_v49, %v4586_v18  ;;  %5833 = vrcp.f32 %v4496_v19  ;;  %v9743_v30 = vpack.c.bf16 %v9741_v53, %v9742_v16  ;;  %v9744_v3 = vld [vmem:[#allocation45_spill] sm:$0xff]  ;;  %v9747_v19 = vld [vmem:[#allocation10_spill] sm:$0xff] }
 0xe37   : > { %v9745_v18 = vld [vmem:[#allocation61_spill] sm:$0xff] }
 0xe38   : > { %4658 = vmatprep.subr.bf16.mxu0 %v4627_v17  ;;  %v4499_v46 = vpop.xlane.xlu1 %4498  ;;  %v5830_v40 = vpop.eup %5829  ;;  %v9746_v49 = vpack.c.bf16 %v9744_v3, %v9745_v18  ;;  %v9748_v17 = vld [vmem:[#allocation23_spill] sm:$0xff] }
 0xe39   : > { %5835 = vrcp.f32 %v4499_v46  ;;  %4659 = vmatpush1.bf16.xpose.msra.mxu0 %v4626_v44  ;;  %v4591_v57 = vmul.f32 %v5830_v40, %v8901_v48  ;;  %v4590_v56 = vmul.f32 %v5830_v40, %v8899_v34  ;;  %v9749_v44 = vpack.c.bf16 %v9747_v19, %v9748_v17  ;;  %v9750_v46 = vld [vmem:[#allocation25_spill] sm:$0xff]  ;;  %v9751_v40 = vld [vmem:[#allocation26_spill] sm:$0xff] }
 0xe3b   : > { %v5832_v61 = vpop.eup %5831 }
 0xe3c   : > { %v4593_v59 = vmul.f32 %v5832_v61, %v8909_v14  ;;  %v4592_v43 = vmul.f32 %v5832_v61, %v8907_v41  ;;  %v9752_v61 = vpack.c.bf16 %v9750_v46, %v9751_v40 }
 0xe3d   : > { %v4502_v9 = vpop.xlane.xlu0 %4501 }
 0xe3e   : > { %v4629_v42 = vpack.c.bf16 %v4593_v59, %v4591_v57  ;;  %v4628_v55 = vpack.c.bf16 %v4592_v43, %v4590_v56  ;;  %5837 = vrcp.f32 %v4502_v9  ;;  %v9753_v57 = vld [vmem:[#allocation39_spill] sm:$0xff]  ;;  %v9754_v59 = vld [vmem:[#allocation33_spill] sm:$0xff]  ;;  %v9756_v43 = vld [vmem:[#allocation34_spill] sm:$0xff] }
 0xe3f   : > { %v9755_v56 = vpack.c.bf16 %v9753_v57, %v9754_v59  ;;  %v9757_v9 = vld [vmem:[#allocation16_spill] sm:$0xff] }
 0xe40   : > { %4660 = vmatprep.subr.bf16.mxu0 %v4629_v42  ;;  %v4505_v2 = vpop.xlane.xlu1 %4504  ;;  %v5834_v26 = vpop.eup %5833  ;;  %v9758_v42 = vpack.c.bf16 %v9756_v43, %v9757_v9 }
 0xe41   : > { %5839 = vrcp.f32 %v4505_v2  ;;  %4661 = vmatpush1.bf16.xpose.msra.mxu0 %v4628_v55  ;;  %v4595_v31 = vmul.f32 %v5834_v26, %v8921_v36  ;;  %v4594_v14 = vmul.f32 %v5834_v26, %v8919_v45  ;;  %v9713_v45 = vld [vmem:[#allocation66_spill] sm:$0xff]  ;;  %v247_v55 = vld [vmem:[%s9097_s3] sm:$0xf] }
 0xe42   : > { %4693 = vperm.xlu0 %4984, %v247_v55  }
 0xe43   : > { %v5836_v5 = vpop.eup %5835 }
 0xe44   : > { %v4597_v48 = vmul.f32 %v5836_v5, %v8927_v54  ;;  %v4596_v34 = vmul.f32 %v5836_v5, %v8925_v6  ;;  %v9714_v6 = vld [vmem:[#allocation49_spill] sm:$0xff] }
 0xe45   : > { %v9715_v50 = vpack.c.bf16 %v9713_v45, %v9714_v6 }
 0xe46   : > { %v4631_v23 = vpack.c.bf16 %v4597_v48, %v4595_v31  ;;  %v4630_v41 = vpack.c.bf16 %v4596_v34, %v4594_v14 }
 0xe48   : > { %4662 = vmatprep.subr.bf16.mxu0 %v4631_v23  ;;  %v5838_v52 = vpop.eup %5837 }
 0xe49   : > { %4663 = vmatpush1.bf16.xpose.msra.mxu0 %v4630_v41  ;;  %v4599_v4 = vmul.f32 %v5838_v52, %v8937_v8  ;;  %v4598_v39 = vmul.f32 %v5838_v52, %v8935_v7  ;;  %v9720_v8 = vld [vmem:[#allocation6_spill] sm:$0xff] }
 0xe4a   : > { %v9721_v25 = vpack.c.bf16 %v9719_v38, %v9720_v8  ;;  %v9723_v7 = vld [vmem:[#allocation50_spill] sm:$0xff] }
 0xe4b   : > { %v5840_v33 = vpop.eup %5839 }
 0xe4c   : > { %v4601_v51 = vmul.f32 %v5840_v33, %v8943_v60  ;;  %v4600_v36 = vmul.f32 %v5840_v33, %v8941_v63  ;;  %v9722_v60 = vld [vmem:[#allocation52_spill] sm:$0xff]  ;;  %v9725_v63 = vld [vmem:[#allocation7_spill] sm:$0xff] }
 0xe4d   : > { %v9724_v29 = vpack.c.bf16 %v9722_v60, %v9723_v7  ;;  %v9727_v58 = vpack.c.bf16 %v9725_v63, %v9726_v62 }
 0xe4e   : > { %v4633_v22 = vpack.c.bf16 %v4601_v51, %v4599_v4  ;;  %v4632_v54 = vpack.c.bf16 %v4600_v36, %v4598_v39  ;;  %v246_v51 = vld [vmem:[%s9096_s2] sm:$0x3] }
 0xe50   : > { %4664 = vmatprep.subr.bf16.mxu0 %v4633_v22 }
 0xe51   : > { %4665 = vmatpush1.bf16.xpose.msra.mxu0 %v4632_v54 }
 0xe52   : > { %4696 = vmatprep.subr.bf16.mxu0 %v9715_v50 }
 0xe58   : > { %4667 = vmatmul.mubr.bf16.vlgmr.msra.gmra.mrb[168].mxu0 %v9718_v27 }
 0xe59   : > { %4676 = vmatprep.mubr.bf16.mxu0 %v9721_v25  ;;  %4697 = vmatpush1.bf16.msra.mxu0 %v9724_v29 }
 0xe5a   : > { %4698 = vmatprep.subr.bf16.mxu0 %v9727_v58 }
 0xe5d   : > { %4699 = vmatpush1.bf16.msra.mxu0 %v9730_v24 }
 0xe5e   : > { %4700 = vmatprep.subr.bf16.mxu0 %v9733_v12 }
 0xe60   : > { %4677 = vmatmul.mubr.bf16.gmra.mrb[172].mxu0 %v9736_v20 }
 0xe61   : > { %4701 = vmatpush1.bf16.msra.mxu0 %v9739_v0  ;;  %4728 = vmatprep.mubr.bf16.mxu0 %v9740_v32 }
 0xe62   : > { %4702 = vmatprep.subr.bf16.mxu0 %v9743_v30 }
 0xe65   : > { %4703 = vmatpush1.bf16.msra.mxu0 %v9746_v49 }
 0xe66   : > { %4704 = vmatprep.subr.bf16.mxu0 %v9749_v44 }
 0xe69   : > { %4705 = vmatpush1.bf16.msra.mxu0 %v9752_v61 }
 0xe6a   : > { %4706 = vmatprep.subr.bf16.mxu0 %v9755_v56 }
 0xe6d   : > { %4707 = vmatpush1.bf16.msra.mxu0 %v9758_v42 }
 0xec1   : > { %v4694_v39 = vpop.permute.xlu0 %4693 }
 0xf2b   : > { %v4668_v2 = vpop.f32.mrb[168].mxu0 }
 0xf2c   : > { %v4670_v26 = vpop.f32.mrb[169].mxu0 }
 0xf2d   : > { %v4672_v5 = vpop.f32.mrb[170].mxu0 }
 0xf2e   : > { %v4687_v31 = vpack.c.bf16 %v4672_v5, %v4668_v2  ;;  %v4674_v48 = vpop.f32.mrb[171].mxu0 }
 0xf2f   : > { %v4688_v14 = vpack.c.bf16 %v4674_v48, %v4670_v26 }
 0xf31   : > { %4708 = vmatprep.subr.bf16.mxu0 %v4688_v14 }
 0xf32   : > { %4709 = vmatpush1.bf16.msra.mxu0 %v4687_v31 }
 0xf33   : > { %v4678_v34 = vpop.f32.mrb[172].mxu0 }
 0xf34   : > { %v4680_v23 = vpop.f32.mrb[173].mxu0 }
 0xf35   : > { %v4682_v41 = vpop.f32.mrb[174].mxu0 }
 0xf36   : > { %v4689_v52 = vpack.c.bf16 %v4682_v41, %v4678_v34  ;;  %v4684_v33 = vpop.f32.mrb[175].mxu0 }
 0xf37   : > { %v4690_v4 = vpack.c.bf16 %v4684_v33, %v4680_v23 }
 0xf39   : > { %4710 = vmatprep.subr.bf16.mxu0 %v4690_v4 }
 0xf3a   : > { %4711 = vmatpush1.bf16.msra.mxu0 %v4689_v52 }
 0xf3d   : > { %4729 = vmatmul.mubr.bf16.vlgmr.msra.gmra.mrb[176].mxu0 %v246_v51 }
0x1010   : > { %v4730_v36 = vpop.f32.mrb[176].mxu0 }
0x1011   : > { %v4731_v22 = vadd.f32 %v4730_v36, %v4694_v39  ;;  %v4732_v54 = vpop.f32.mrb[177].mxu0 }
0x1012   : > { %v4733_v45 = vadd.f32 %v4732_v54, %v4694_v39  ;;  %v4734_v6 = vpop.f32.mrb[178].mxu0 }
0x1013   : > { %v4735_v50 = vpop.f32.mrb[179].mxu0 }
0x1014   : > { %v4739_v10 = vcombine.low %v4731_v22, %v4733_v45 }
0x1016   : > { %4741 = vst [vmem:[%s190_s10] sm:$0xff] %v4739_v10 }
0x1017   : > { %5854 = shalt.err (!%p5851_p3)
}
0x1018   : > { %s5855_s28 = scalar_lea.hbm %s9052_s14, 128  ;;  %s5859_s5 = scalar_lea.hbm %s9098_s4, 256 }
0x1019   : > { %p5856_p4 = scmp.ne.s32.totalorder %s9052_s14, %s5855_s28  ;;  %p5860_p9 = scmp.lt.u32.totalorder %s9052_s14, %s9098_s4 }
0x101a   : > { %p5861_p10 = scmp.lt.u32.totalorder %s5859_s5, %s5855_s28  ;;  %p5863_p12 = scmp.lt.u32.totalorder %s5855_s28, %s9052_s14 }
0x101b   : > { %p5857_p7 = pnand %p5856_p4, %p5970_p5 }
0x101c   : > { %p5862_p11 = por %p5861_p10, %p5860_p9 }
0x101d   : > { %p5858_p8 = pneg %p5857_p7 }
0x101e   : > { %p5864_p13 = por %p5863_p12, %p5862_p11 }
0x1020   : > { %p5865_p0 = pnand %p5864_p13, %p5858_p8 }
0x1022   : > { %5868 = shalt.err (!%p5865_p0)
}
0x1023   : > { %4944 = dma.vmem_to_hbm [thread:$0]  (%p5970_p5), %s9054_s11, 128, %s9052_s14, %s4743_s20  }
0x1024 PF: > { %p4950_p1 = scmp.ge.s32.totalorder %s5903_s18, 2  ;;  %s4769_s8 = sand.u32 1, %s5891_s15  }
0x1025   : > { %s4770_s9 = scalar_lea.sflag [#allocation3], %s4769_s8 }
0x1026   : > { %p4947_p2 = pnand %p4950_p1, %p5974_p6 }
0x1028   : > { %5886 = dma.done.wait (!%p4947_p2), %s4770_s9, 128  }
0x1029   : > { %5888 = vsyncadd (!%p4947_p2), %s4770_s9, 4294967168  ;;  %p14_p3 = scmp.ge.s32.totalorder %s5957_s21, 4   ;;  %s9759_s15 = smov %s5895_s16 }
0x102a   : > { %s9760_s16 = smov %s5899_s17  ;;  %s9761_s17 = smov %s5968_s24 }
0x102b   : > { %s9762_s18 = smov %s5957_s21  ;;  %16 = sbr.rel (!%p14_p3) target bundleno = 3 (0x3), region = 71 }
0x1032   :  { %4775 = vsyncpa [#allocation3], 1 }
0x1033   :  { %4777 = vsyncpa [#allocation3 + $0x1], 1 }

</bundles_post_ra>
